<compile_context>
chip_gen: v7x
topology: tpu7x:2x2x1
jax: 0.10.0
libtpu: 0.0.40
codegen_flags: <defaults>
</compile_context>

<pallas_src>
import functools

import jax
import jax.numpy as jnp
from jax import lax
from jax.experimental import pallas as pl
from jax.experimental.pallas import tpu as pltpu


# ----------------------------------------------------------------------------
# Fused kernel: conv1+bn1+relu -> conv2+bn2 -> (+shortcut) -> relu
# ----------------------------------------------------------------------------
def _block_kernel(*refs, s, D, Ho, Wo, CP, planes, has_proj):
    nph = s * s
    xph = refs[:nph]                                    # s*s input phase refs
    w1_ref, b1_ref, w2_ref, b2_ref = refs[nph:nph + 4]
    idx = nph + 4
    if has_proj:
        xs_ref, wsc_ref = refs[idx:idx + 2]
        idx += 2
    else:
        res_ref = refs[idx]
        idx += 1
    out_ref = refs[idx]
    o1buf = refs[idx + 1]            # (3, Ho+2, Wo+2, CP) rolling out1 window

    d = pl.program_id(1)
    M = Ho * Wo
    cin = xph[0].shape[-1]

    # conv1 (+bn1+ReLU) of out1 depth plane `dd` into buffer slot `slot`.
    # slot(dd) == (dd + 1) % 3; slot borders stay zero (spatial halo).
    def conv1_into(dd, slot):
        acc = jnp.broadcast_to(b1_ref[...], (M, CP))       # f32 bias init
        for kd in range(3):
            xpl = [xph[p][dd + kd] for p in range(nph)]    # hoisted loads
            for kh in range(3):
                for kw in range(3):
                    ph = (kh % s) * s + (kw % s)
                    tap = xpl[ph][kh // s:kh // s + Ho,
                                  kw // s:kw // s + Wo, :]
                    acc = acc + jnp.dot(
                        tap.reshape(M, cin), w1_ref[kd * 9 + kh * 3 + kw],
                        preferred_element_type=jnp.float32)
        acc = jnp.maximum(acc, 0.0)
        o1buf[slot, 1:Ho + 1, 1:Wo + 1, :] = (
            acc.reshape(Ho, Wo, CP).astype(o1buf.dtype))

    # ---- maintain the rolling out1 window {d-1, d, d+1} ---------------------
    @pl.when(d == 0)
    def _():
        o1buf[...] = jnp.zeros_like(o1buf)      # halo borders + out1[-1] = 0
        conv1_into(0, 1)
        if D > 1:
            conv1_into(1, 2)

    if D > 2:
        @pl.when((d > 0) & (d < D - 1))
        def _():
            conv1_into(d + 1, (d + 2) % 3)

    if D > 1:
        @pl.when(d == D - 1)
        def _():                                 # depth halo: out1[D] == 0
            o1buf[(d + 2) % 3] = jnp.zeros((Ho + 2, Wo + 2, CP), o1buf.dtype)

    # ---- conv2 (+bn2) + shortcut + ReLU, one full output plane --------------
    acc = jnp.broadcast_to(b2_ref[...], (M, CP))   # bn2 (+ shortcut-bn) bias
    for kd in range(3):
        plane = o1buf[(d + kd) % 3]                # out1[d-1+kd], zero-padded
        for kh in range(3):
            for kw in range(3):
                tap = plane[kh:kh + Ho, kw:kw + Wo, :]
                acc = acc + jnp.dot(
                    tap.reshape(M, CP), w2_ref[kd * 9 + kh * 3 + kw],
                    preferred_element_type=jnp.float32)

    accp = acc[:, :planes]                         # drop MXU channel padding
    if has_proj:                                   # 1x1x1 strided projection
        accp = accp + jnp.dot(
            xs_ref[...].reshape(M, xs_ref.shape[-1]), wsc_ref[...],
            preferred_element_type=jnp.float32)
    else:                                          # identity residual (bf16)
        accp = accp + res_ref[...].reshape(M, planes).astype(jnp.float32)
    accp = jnp.maximum(accp, 0.0)
    out_ref[...] = accp.reshape(Ho, Wo, planes).astype(out_ref.dtype)


# ----------------------------------------------------------------------------
# Plain-JAX glue: BN folding, weight prep, phase decomposition
# ----------------------------------------------------------------------------
def bn_fold(gamma, beta, mean, var, eps=1e-5):
    scale = gamma / jnp.sqrt(var + eps)
    return scale, beta - mean * scale


def _round_up(x, m):
    return ((x + m - 1) // m) * m


def _prep_conv_w(w, scale, cout_pad, cin_pad=None):
    """(Cout,Cin,3,3,3) -> (27, Cin_pad, Cout_pad) bf16 with BN scale folded."""
    cout, cin = w.shape[0], w.shape[1]
    wf = w * scale[:, None, None, None, None]
    wm = jnp.transpose(wf, (2, 3, 4, 1, 0)).reshape(27, cin, cout)
    cin_pad = cin if cin_pad is None else cin_pad
    wm = jnp.pad(wm, ((0, 0), (0, cin_pad - cin), (0, cout_pad - cout)))
    return wm.astype(jnp.bfloat16)


def _prep_sc_w(w, scale):
    """(Cout,Cin,1,1,1) -> (Cin, Cout) bf16 with BN scale folded."""
    cout, cin = w.shape[0], w.shape[1]
    return (w.reshape(cout, cin) * scale[:, None]).T.astype(jnp.bfloat16)


def _prep_bias(b, cp):
    return jnp.pad(b, (0, cp - b.shape[0])).reshape(1, cp).astype(jnp.float32)


def basic_block_3d(x_ndhwc, params, in_planes, planes, stride):
    """Forward pass of BasicBlock3d on an NDHWC input (inference-mode BN)."""
    N, D, H, W, C = x_ndhwc.shape
    assert C == in_planes
    s = stride
    Ho = (H - 1) // s + 1
    Wo = (W - 1) // s + 1
    CP = _round_up(max(planes, 128), 128)   # lane/MXU padding (VMEM-only)

    s1, b1 = bn_fold(*params["bn1"])
    s2, b2 = bn_fold(*params["bn2"])

    x_bf = x_ndhwc.astype(jnp.bfloat16)
    xp = jnp.pad(x_bf, ((0, 0), (1, 1), (1, 1), (1, 1), (0, 0)))
    phases = [xp[:, :, ph::s, pw::s, :] for ph in range(s) for pw in range(s)]
    # static halo check (VMEM refs have no runtime OOB check)
    for kh in range(3):
        for kw in range(3):
            p = phases[(kh % s) * s + (kw % s)]
            assert p.shape[2] >= kh // s + Ho and p.shape[3] >= kw // s + Wo

    w1 = _prep_conv_w(params["conv1_w"], s1, CP)
    w2 = _prep_conv_w(params["conv2_w"], s2, CP, cin_pad=CP)
    b1v = _prep_bias(b1, CP)

    has_proj = (stride != 1) or (in_planes != planes)
    if has_proj:
        ssc, bsc = bn_fold(*params["bn_sc"])
        b2v = _prep_bias(b2 + bsc, CP)      # fold both biases into acc init
        xs = x_bf[:, :, ::s, ::s, :]        # (N, D, Ho, Wo, Cin) bf16
        wsc = _prep_sc_w(params["conv_sc_w"], ssc)      # (Cin, planes)
    else:
        b2v = _prep_bias(b2, CP)

    ins = list(phases) + [w1, b1v, w2, b2v]
    in_specs = [
        pl.BlockSpec((None,) + p.shape[1:], lambda n, d: (n, 0, 0, 0, 0))
        for p in phases
    ]
    in_specs += [
        pl.BlockSpec(w1.shape, lambda n, d: (0, 0, 0)),
        pl.BlockSpec(b1v.shape, lambda n, d: (0, 0)),
        pl.BlockSpec(w2.shape, lambda n, d: (0, 0, 0)),
        pl.BlockSpec(b2v.shape, lambda n, d: (0, 0)),
    ]
    if has_proj:
        ins += [xs, wsc]
        in_specs += [
            pl.BlockSpec((None, None, Ho, Wo, in_planes),
                         lambda n, d: (n, d, 0, 0, 0)),
            pl.BlockSpec(wsc.shape, lambda n, d: (0, 0)),
        ]
    else:
        ins.append(x_bf)                    # unpadded bf16 identity residual
        in_specs.append(pl.BlockSpec((None, None, Ho, Wo, planes),
                                     lambda n, d: (n, d, 0, 0, 0)))

    kernel = functools.partial(_block_kernel, s=s, D=D, Ho=Ho, Wo=Wo, CP=CP,
                               planes=planes, has_proj=has_proj)
    return pl.pallas_call(
        kernel,
        out_shape=jax.ShapeDtypeStruct((N, D, Ho, Wo, planes), jnp.bfloat16),
        grid=(N, D),
        in_specs=in_specs,
        out_specs=pl.BlockSpec((None, None, Ho, Wo, planes),
                               lambda n, d: (n, d, 0, 0, 0)),
        scratch_shapes=[pltpu.VMEM((3, Ho + 2, Wo + 2, CP), jnp.bfloat16)],
        compiler_params=pltpu.CompilerParams(
            dimension_semantics=("parallel", "arbitrary"),
            vmem_limit_bytes=32 * 1024 * 1024),
    )(*ins)


# ----------------------------------------------------------------------------
# Pure-JAX reference (f32 lax.conv) for correctness check
# ----------------------------------------------------------------------------
def _ref_block(x_ndhwc, params, in_planes, planes, stride):
    def conv(x, w, s, pad):
        return lax.conv_general_dilated(
            x, jnp.transpose(w, (2, 3, 4, 1, 0)),
            window_strides=(1, s, s), padding=pad,
            dimension_numbers=("NDHWC", "DHWIO", "NDHWC"))

    def bn(x, g, b, m, v, eps=1e-5):
        return (x - m) * (g / jnp.sqrt(v + eps)) + b

    pad3 = ((1, 1), (1, 1), (1, 1))
    o1 = jnp.maximum(bn(conv(x_ndhwc, params["conv1_w"], stride, pad3),
                        *params["bn1"]), 0.0)
    o2 = bn(conv(o1, params["conv2_w"], 1, pad3), *params["bn2"])
    if stride != 1 or in_planes != planes:
        sc = bn(conv(x_ndhwc, params["conv_sc_w"], stride,
                     ((0, 0), (0, 0), (0, 0))), *params["bn_sc"])
    else:
        sc = x_ndhwc
    return jnp.maximum(o2 + sc, 0.0)


# ----------------------------------------------------------------------------
def make_params(in_planes, planes, stride, key):
    k1, k2, k3 = jax.random.split(key, 3)

    def bn_params(c, shift):
        return (jnp.linspace(0.8, 1.2, c, dtype=jnp.float32),            # gamma
                jnp.linspace(-0.1, 0.1, c, dtype=jnp.float32) + shift,   # beta
                jnp.linspace(-0.05, 0.05, c, dtype=jnp.float32),         # mean
                jnp.linspace(0.9, 1.1, c, dtype=jnp.float32))            # var

    params = {
        "conv1_w": 0.1 * jax.random.normal(k1, (planes, in_planes, 3, 3, 3),
                                           jnp.float32),
        "conv2_w": 0.1 * jax.random.normal(k2, (planes, planes, 3, 3, 3),
                                           jnp.float32),
        "bn1": bn_params(planes, 0.0),
        "bn2": bn_params(planes, 0.02),
    }
    if stride != 1 or in_planes != planes:
        params["conv_sc_w"] = 0.1 * jax.random.normal(
            k3, (planes, in_planes, 1, 1, 1), jnp.float32)
        params["bn_sc"] = bn_params(planes, -0.02)
    return params


if __name__ == "__main__":
    key = jax.random.PRNGKey(0)

    def run_case(k, in_planes, planes, stride, N, D, H, W):
        k1, k2 = jax.random.split(k)
        x_ncdhw = jax.random.normal(k1, (N, in_planes, D, H, W), jnp.float32)
        params = make_params(in_planes, planes, stride, k2)
        x_ndhwc = jnp.transpose(x_ncdhw, (0, 2, 3, 4, 1))   # NCDHW -> NDHWC
        out = jax.block_until_ready(
            basic_block_3d(x_ndhwc, params, in_planes, planes, stride))
        ref = jax.block_until_ready(
            _ref_block(x_ndhwc, params, in_planes, planes, stride))
        assert out.shape == ref.shape, (out.shape, ref.shape)
        # bf16 matmul inputs / bf16 output vs f32 reference -> loose tolerance.
        err = float(jnp.max(jnp.abs(out.astype(jnp.float32) - ref)))
        assert jnp.allclose(out.astype(jnp.float32), ref,
                            atol=1e-1, rtol=5e-2), err
        out_ncdhw = jnp.transpose(out, (0, 4, 1, 2, 3))
        Ho = (H - 1) // stride + 1
        Wo = (W - 1) // stride + 1
        assert out_ncdhw.shape == (N, planes, D, Ho, Wo)

    k1, k2, k3, key = jax.random.split(key, 4)
    # case 1: strided block with projection shortcut
    run_case(k1, in_planes=8, planes=16, stride=2, N=2, D=4, H=16, W=16)
    # case 2: stride-1 block with identity shortcut
    run_case(k2, in_planes=16, planes=16, stride=1, N=1, D=4, H=8, W=8)
    # case 3: depth-edge case, single depth plane
    run_case(k3, in_planes=8, planes=8, stride=1, N=1, D=1, H=8, W=8)

    print("KERNEL_OK")
</pallas_src>

<mosaic_0001>
module attributes {stable_mosaic.version = 11 : i64} {
  func.func @_block_kernel(%arg0: i32, %arg1: i32, %arg2: memref<1x6x9x9x8xbf16, #tpu.memory_space<vmem>>, %arg3: memref<1x6x9x9x8xbf16, #tpu.memory_space<vmem>>, %arg4: memref<1x6x9x9x8xbf16, #tpu.memory_space<vmem>>, %arg5: memref<1x6x9x9x8xbf16, #tpu.memory_space<vmem>>, %arg6: memref<27x8x128xbf16, #tpu.memory_space<vmem>>, %arg7: memref<1x128xf32, #tpu.memory_space<vmem>>, %arg8: memref<27x128x128xbf16, #tpu.memory_space<vmem>>, %arg9: memref<1x128xf32, #tpu.memory_space<vmem>>, %arg10: memref<1x1x8x8x8xbf16, #tpu.memory_space<vmem>>, %arg11: memref<8x16xbf16, #tpu.memory_space<vmem>>, %arg12: memref<1x1x8x8x16xbf16, #tpu.memory_space<vmem>>, %arg13: memref<3x10x10x128xbf16, #tpu.memory_space<vmem>>) attributes {dimension_semantics = [#tpu.dimension_semantics<parallel>, #tpu.dimension_semantics<arbitrary>], iteration_bounds = array<i64: 2, 4>, scalar_prefetch = 0 : i64, scratch_operands = 1 : i64, tpu.core_type = #tpu.core_type<tc>, window_params = [{transform_indices = @transform_0, window_bounds = array<i64: 1, 6, 9, 9, 8>}, {transform_indices = @transform_1, window_bounds = array<i64: 1, 6, 9, 9, 8>}, {transform_indices = @transform_2, window_bounds = array<i64: 1, 6, 9, 9, 8>}, {transform_indices = @transform_3, window_bounds = array<i64: 1, 6, 9, 9, 8>}, {pipeline_mode = #tpu.pipeline_mode<synchronous>, transform_indices = @transform_4, window_bounds = array<i64: 27, 8, 128>}, {pipeline_mode = #tpu.pipeline_mode<synchronous>, transform_indices = @transform_5, window_bounds = array<i64: 1, 128>}, {pipeline_mode = #tpu.pipeline_mode<synchronous>, transform_indices = @transform_6, window_bounds = array<i64: 27, 128, 128>}, {pipeline_mode = #tpu.pipeline_mode<synchronous>, transform_indices = @transform_7, window_bounds = array<i64: 1, 128>}, {transform_indices = @transform_8, window_bounds = array<i64: 1, 1, 8, 8, 8>}, {pipeline_mode = #tpu.pipeline_mode<synchronous>, transform_indices = @transform_9, window_bounds = array<i64: 8, 16>}, {transform_indices = @transform_10, window_bounds = array<i64: 1, 1, 8, 8, 16>}]} {
    %c0_i32 = arith.constant 0 : i32
    %0 = arith.cmpi eq, %arg1, %c0_i32 : i32
    %1 = arith.extui %0 : i1 to i32
    %c0_i32_0 = arith.constant 0 : i32
    %2 = arith.cmpi ne, %1, %c0_i32_0 : i32
    scf.if %2 {
      %cst_129 = arith.constant 0.000000e+00 : bf16
      %232 = vector.broadcast %cst_129 : bf16 to vector<3x10x10x128xbf16>
      %c0_130 = arith.constant 0 : index
      %c0_131 = arith.constant 0 : index
      %c0_132 = arith.constant 0 : index
      %c0_133 = arith.constant 0 : index
      %233 = vector.load %arg13[%c0_130, %c0_131, %c0_132, %c0_133] : memref<3x10x10x128xbf16, #tpu.memory_space<vmem>>, vector<3x10x10x128xbf16>
      tpu.vector_store %arg13[%c0_130, %c0_131, %c0_132, %c0_133], %232 {strides = array<i32>} : memref<3x10x10x128xbf16, #tpu.memory_space<vmem>>, vector<3x10x10x128xbf16>,
      %c0_134 = arith.constant 0 : index
      %c0_135 = arith.constant 0 : index
      %234 = vector.load %arg7[%c0_134, %c0_135] : memref<1x128xf32, #tpu.memory_space<vmem>>, vector<1x128xf32>
      %235 = vector.shape_cast %234 : vector<1x128xf32> to vector<1x128xf32>
      %236 = vector.broadcast %235 : vector<1x128xf32> to vector<64x128xf32>
      %c0_136 = arith.constant 0 : index
      %c0_137 = arith.constant 0 : index
      %c0_138 = arith.constant 0 : index
      %c0_139 = arith.constant 0 : index
      %c0_140 = arith.constant 0 : index
      %237 = vector.load %arg2[%c0_136, %c0_137, %c0_138, %c0_139, %c0_140] : memref<1x6x9x9x8xbf16, #tpu.memory_space<vmem>>, vector<1x1x9x9x8xbf16>
      %238 = vector.shape_cast %237 : vector<1x1x9x9x8xbf16> to vector<9x9x8xbf16>
      %c0_141 = arith.constant 0 : index
      %c0_142 = arith.constant 0 : index
      %c0_143 = arith.constant 0 : index
      %c0_144 = arith.constant 0 : index
      %c0_145 = arith.constant 0 : index
      %239 = vector.load %arg3[%c0_141, %c0_142, %c0_143, %c0_144, %c0_145] : memref<1x6x9x9x8xbf16, #tpu.memory_space<vmem>>, vector<1x1x9x9x8xbf16>
      %240 = vector.shape_cast %239 : vector<1x1x9x9x8xbf16> to vector<9x9x8xbf16>
      %c0_146 = arith.constant 0 : index
      %c0_147 = arith.constant 0 : index
      %c0_148 = arith.constant 0 : index
      %c0_149 = arith.constant 0 : index
      %c0_150 = arith.constant 0 : index
      %241 = vector.load %arg4[%c0_146, %c0_147, %c0_148, %c0_149, %c0_150] : memref<1x6x9x9x8xbf16, #tpu.memory_space<vmem>>, vector<1x1x9x9x8xbf16>
      %242 = vector.shape_cast %241 : vector<1x1x9x9x8xbf16> to vector<9x9x8xbf16>
      %c0_151 = arith.constant 0 : index
      %c0_152 = arith.constant 0 : index
      %c0_153 = arith.constant 0 : index
      %c0_154 = arith.constant 0 : index
      %c0_155 = arith.constant 0 : index
      %243 = vector.load %arg5[%c0_151, %c0_152, %c0_153, %c0_154, %c0_155] : memref<1x6x9x9x8xbf16, #tpu.memory_space<vmem>>, vector<1x1x9x9x8xbf16>
      %244 = vector.shape_cast %243 : vector<1x1x9x9x8xbf16> to vector<9x9x8xbf16>
      %245 = vector.extract_strided_slice %238 {offsets = [0, 0, 0], sizes = [8, 8, 8], strides = [1, 1, 1]} : vector<9x9x8xbf16> to vector<8x8x8xbf16>
      %246 = vector.shape_cast %245 : vector<8x8x8xbf16> to vector<64x8xbf16>
      %c0_156 = arith.constant 0 : index
      %c0_157 = arith.constant 0 : index
      %c0_158 = arith.constant 0 : index
      %247 = vector.load %arg6[%c0_156, %c0_157, %c0_158] : memref<27x8x128xbf16, #tpu.memory_space<vmem>>, vector<1x8x128xbf16>
      %248 = vector.shape_cast %247 : vector<1x8x128xbf16> to vector<8x128xbf16>
      %cst_159 = arith.constant dense<0.000000e+00> : vector<64x128xf32>
      %249 = tpu.matmul %246, %248, %cst_159 {dimension_numbers = #tpu.dot_dimension_numbers<[1], [0], [0], [1], [0, 0, 1, 1], [], []>} : vector<64x8xbf16>, vector<8x128xbf16>, vector<64x128xf32> -> vector<64x128xf32>
      %250 = arith.addf %236, %249 : vector<64x128xf32>
      %251 = vector.extract_strided_slice %240 {offsets = [0, 0, 0], sizes = [8, 8, 8], strides = [1, 1, 1]} : vector<9x9x8xbf16> to vector<8x8x8xbf16>
      %252 = vector.shape_cast %251 : vector<8x8x8xbf16> to vector<64x8xbf16>
      %c1_160 = arith.constant 1 : index
      %c0_161 = arith.constant 0 : index
      %c0_162 = arith.constant 0 : index
      %253 = vector.load %arg6[%c1_160, %c0_161, %c0_162] : memref<27x8x128xbf16, #tpu.memory_space<vmem>>, vector<1x8x128xbf16>
      %254 = vector.shape_cast %253 : vector<1x8x128xbf16> to vector<8x128xbf16>
      %cst_163 = arith.constant dense<0.000000e+00> : vector<64x128xf32>
      %255 = tpu.matmul %252, %254, %cst_163 {dimension_numbers = #tpu.dot_dimension_numbers<[1], [0], [0], [1], [0, 0, 1, 1], [], []>} : vector<64x8xbf16>, vector<8x128xbf16>, vector<64x128xf32> -> vector<64x128xf32>
      %256 = arith.addf %250, %255 : vector<64x128xf32>
      %257 = vector.extract_strided_slice %238 {offsets = [0, 1, 0], sizes = [8, 8, 8], strides = [1, 1, 1]} : vector<9x9x8xbf16> to vector<8x8x8xbf16>
      %258 = vector.shape_cast %257 : vector<8x8x8xbf16> to vector<64x8xbf16>
      %c2_164 = arith.constant 2 : index
      %c0_165 = arith.constant 0 : index
      %c0_166 = arith.constant 0 : index
      %259 = vector.load %arg6[%c2_164, %c0_165, %c0_166] : memref<27x8x128xbf16, #tpu.memory_space<vmem>>, vector<1x8x128xbf16>
      %260 = vector.shape_cast %259 : vector<1x8x128xbf16> to vector<8x128xbf16>
      %cst_167 = arith.constant dense<0.000000e+00> : vector<64x128xf32>
      %261 = tpu.matmul %258, %260, %cst_167 {dimension_numbers = #tpu.dot_dimension_numbers<[1], [0], [0], [1], [0, 0, 1, 1], [], []>} : vector<64x8xbf16>, vector<8x128xbf16>, vector<64x128xf32> -> vector<64x128xf32>
      %262 = arith.addf %256, %261 : vector<64x128xf32>
      %263 = vector.extract_strided_slice %242 {offsets = [0, 0, 0], sizes = [8, 8, 8], strides = [1, 1, 1]} : vector<9x9x8xbf16> to vector<8x8x8xbf16>
      %264 = vector.shape_cast %263 : vector<8x8x8xbf16> to vector<64x8xbf16>
      %c3_168 = arith.constant 3 : index
      %c0_169 = arith.constant 0 : index
      %c0_170 = arith.constant 0 : index
      %265 = vector.load %arg6[%c3_168, %c0_169, %c0_170] : memref<27x8x128xbf16, #tpu.memory_space<vmem>>, vector<1x8x128xbf16>
      %266 = vector.shape_cast %265 : vector<1x8x128xbf16> to vector<8x128xbf16>
      %cst_171 = arith.constant dense<0.000000e+00> : vector<64x128xf32>
      %267 = tpu.matmul %264, %266, %cst_171 {dimension_numbers = #tpu.dot_dimension_numbers<[1], [0], [0], [1], [0, 0, 1, 1], [], []>} : vector<64x8xbf16>, vector<8x128xbf16>, vector<64x128xf32> -> vector<64x128xf32>
      %268 = arith.addf %262, %267 : vector<64x128xf32>
      %269 = vector.extract_strided_slice %244 {offsets = [0, 0, 0], sizes = [8, 8, 8], strides = [1, 1, 1]} : vector<9x9x8xbf16> to vector<8x8x8xbf16>
      %270 = vector.shape_cast %269 : vector<8x8x8xbf16> to vector<64x8xbf16>
      %c4_172 = arith.constant 4 : index
      %c0_173 = arith.constant 0 : index
      %c0_174 = arith.constant 0 : index
      %271 = vector.load %arg6[%c4_172, %c0_173, %c0_174] : memref<27x8x128xbf16, #tpu.memory_space<vmem>>, vector<1x8x128xbf16>
      %272 = vector.shape_cast %271 : vector<1x8x128xbf16> to vector<8x128xbf16>
      %cst_175 = arith.constant dense<0.000000e+00> : vector<64x128xf32>
      %273 = tpu.matmul %270, %272, %cst_175 {dimension_numbers = #tpu.dot_dimension_numbers<[1], [0], [0], [1], [0, 0, 1, 1], [], []>} : vector<64x8xbf16>, vector<8x128xbf16>, vector<64x128xf32> -> vector<64x128xf32>
      %274 = arith.addf %268, %273 : vector<64x128xf32>
      %275 = vector.extract_strided_slice %242 {offsets = [0, 1, 0], sizes = [8, 8, 8], strides = [1, 1, 1]} : vector<9x9x8xbf16> to vector<8x8x8xbf16>
      %276 = vector.shape_cast %275 : vector<8x8x8xbf16> to vector<64x8xbf16>
      %c5_176 = arith.constant 5 : index
      %c0_177 = arith.constant 0 : index
      %c0_178 = arith.constant 0 : index
      %277 = vector.load %arg6[%c5_176, %c0_177, %c0_178] : memref<27x8x128xbf16, #tpu.memory_space<vmem>>, vector<1x8x128xbf16>
      %278 = vector.shape_cast %277 : vector<1x8x128xbf16> to vector<8x128xbf16>
      %cst_179 = arith.constant dense<0.000000e+00> : vector<64x128xf32>
      %279 = tpu.matmul %276, %278, %cst_179 {dimension_numbers = #tpu.dot_dimension_numbers<[1], [0], [0], [1], [0, 0, 1, 1], [], []>} : vector<64x8xbf16>, vector<8x128xbf16>, vector<64x128xf32> -> vector<64x128xf32>
      %280 = arith.addf %274, %279 : vector<64x128xf32>
      %281 = vector.extract_strided_slice %238 {offsets = [1, 0, 0], sizes = [8, 8, 8], strides = [1, 1, 1]} : vector<9x9x8xbf16> to vector<8x8x8xbf16>
      %282 = vector.shape_cast %281 : vector<8x8x8xbf16> to vector<64x8xbf16>
      %c6_180 = arith.constant 6 : index
      %c0_181 = arith.constant 0 : index
      %c0_182 = arith.constant 0 : index
      %283 = vector.load %arg6[%c6_180, %c0_181, %c0_182] : memref<27x8x128xbf16, #tpu.memory_space<vmem>>, vector<1x8x128xbf16>
      %284 = vector.shape_cast %283 : vector<1x8x128xbf16> to vector<8x128xbf16>
      %cst_183 = arith.constant dense<0.000000e+00> : vector<64x128xf32>
      %285 = tpu.matmul %282, %284, %cst_183 {dimension_numbers = #tpu.dot_dimension_numbers<[1], [0], [0], [1], [0, 0, 1, 1], [], []>} : vector<64x8xbf16>, vector<8x128xbf16>, vector<64x128xf32> -> vector<64x128xf32>
      %286 = arith.addf %280, %285 : vector<64x128xf32>
      %287 = vector.extract_strided_slice %240 {offsets = [1, 0, 0], sizes = [8, 8, 8], strides = [1, 1, 1]} : vector<9x9x8xbf16> to vector<8x8x8xbf16>
      %288 = vector.shape_cast %287 : vector<8x8x8xbf16> to vector<64x8xbf16>
      %c7_184 = arith.constant 7 : index
      %c0_185 = arith.constant 0 : index
      %c0_186 = arith.constant 0 : index
      %289 = vector.load %arg6[%c7_184, %c0_185, %c0_186] : memref<27x8x128xbf16, #tpu.memory_space<vmem>>, vector<1x8x128xbf16>
      %290 = vector.shape_cast %289 : vector<1x8x128xbf16> to vector<8x128xbf16>
      %cst_187 = arith.constant dense<0.000000e+00> : vector<64x128xf32>
      %291 = tpu.matmul %288, %290, %cst_187 {dimension_numbers = #tpu.dot_dimension_numbers<[1], [0], [0], [1], [0, 0, 1, 1], [], []>} : vector<64x8xbf16>, vector<8x128xbf16>, vector<64x128xf32> -> vector<64x128xf32>
      %292 = arith.addf %286, %291 : vector<64x128xf32>
      %293 = vector.extract_strided_slice %238 {offsets = [1, 1, 0], sizes = [8, 8, 8], strides = [1, 1, 1]} : vector<9x9x8xbf16> to vector<8x8x8xbf16>
      %294 = vector.shape_cast %293 : vector<8x8x8xbf16> to vector<64x8xbf16>
      %c8_188 = arith.constant 8 : index
      %c0_189 = arith.constant 0 : index
      %c0_190 = arith.constant 0 : index
      %295 = vector.load %arg6[%c8_188, %c0_189, %c0_190] : memref<27x8x128xbf16, #tpu.memory_space<vmem>>, vector<1x8x128xbf16>
      %296 = vector.shape_cast %295 : vector<1x8x128xbf16> to vector<8x128xbf16>
      %cst_191 = arith.constant dense<0.000000e+00> : vector<64x128xf32>
      %297 = tpu.matmul %294, %296, %cst_191 {dimension_numbers = #tpu.dot_dimension_numbers<[1], [0], [0], [1], [0, 0, 1, 1], [], []>} : vector<64x8xbf16>, vector<8x128xbf16>, vector<64x128xf32> -> vector<64x128xf32>
      %298 = arith.addf %292, %297 : vector<64x128xf32>
      %c0_192 = arith.constant 0 : index
      %c1_193 = arith.constant 1 : index
      %c0_194 = arith.constant 0 : index
      %c0_195 = arith.constant 0 : index
      %c0_196 = arith.constant 0 : index
      %299 = vector.load %arg2[%c0_192, %c1_193, %c0_194, %c0_195, %c0_196] : memref<1x6x9x9x8xbf16, #tpu.memory_space<vmem>>, vector<1x1x9x9x8xbf16>
      %300 = vector.shape_cast %299 : vector<1x1x9x9x8xbf16> to vector<9x9x8xbf16>
      %c0_197 = arith.constant 0 : index
      %c1_198 = arith.constant 1 : index
      %c0_199 = arith.constant 0 : index
      %c0_200 = arith.constant 0 : index
      %c0_201 = arith.constant 0 : index
      %301 = vector.load %arg3[%c0_197, %c1_198, %c0_199, %c0_200, %c0_201] : memref<1x6x9x9x8xbf16, #tpu.memory_space<vmem>>, vector<1x1x9x9x8xbf16>
      %302 = vector.shape_cast %301 : vector<1x1x9x9x8xbf16> to vector<9x9x8xbf16>
      %c0_202 = arith.constant 0 : index
      %c1_203 = arith.constant 1 : index
      %c0_204 = arith.constant 0 : index
      %c0_205 = arith.constant 0 : index
      %c0_206 = arith.constant 0 : index
      %303 = vector.load %arg4[%c0_202, %c1_203, %c0_204, %c0_205, %c0_206] : memref<1x6x9x9x8xbf16, #tpu.memory_space<vmem>>, vector<1x1x9x9x8xbf16>
      %304 = vector.shape_cast %303 : vector<1x1x9x9x8xbf16> to vector<9x9x8xbf16>
      %c0_207 = arith.constant 0 : index
      %c1_208 = arith.constant 1 : index
      %c0_209 = arith.constant 0 : index
      %c0_210 = arith.constant 0 : index
      %c0_211 = arith.constant 0 : index
      %305 = vector.load %arg5[%c0_207, %c1_208, %c0_209, %c0_210, %c0_211] : memref<1x6x9x9x8xbf16, #tpu.memory_space<vmem>>, vector<1x1x9x9x8xbf16>
      %306 = vector.shape_cast %305 : vector<1x1x9x9x8xbf16> to vector<9x9x8xbf16>
      %307 = vector.extract_strided_slice %300 {offsets = [0, 0, 0], sizes = [8, 8, 8], strides = [1, 1, 1]} : vector<9x9x8xbf16> to vector<8x8x8xbf16>
      %308 = vector.shape_cast %307 : vector<8x8x8xbf16> to vector<64x8xbf16>
      %c9_212 = arith.constant 9 : index
      %c0_213 = arith.constant 0 : index
      %c0_214 = arith.constant 0 : index
      %309 = vector.load %arg6[%c9_212, %c0_213, %c0_214] : memref<27x8x128xbf16, #tpu.memory_space<vmem>>, vector<1x8x128xbf16>
      %310 = vector.shape_cast %309 : vector<1x8x128xbf16> to vector<8x128xbf16>
      %cst_215 = arith.constant dense<0.000000e+00> : vector<64x128xf32>
      %311 = tpu.matmul %308, %310, %cst_215 {dimension_numbers = #tpu.dot_dimension_numbers<[1], [0], [0], [1], [0, 0, 1, 1], [], []>} : vector<64x8xbf16>, vector<8x128xbf16>, vector<64x128xf32> -> vector<64x128xf32>
      %312 = arith.addf %298, %311 : vector<64x128xf32>
      %313 = vector.extract_strided_slice %302 {offsets = [0, 0, 0], sizes = [8, 8, 8], strides = [1, 1, 1]} : vector<9x9x8xbf16> to vector<8x8x8xbf16>
      %314 = vector.shape_cast %313 : vector<8x8x8xbf16> to vector<64x8xbf16>
      %c10_216 = arith.constant 10 : index
      %c0_217 = arith.constant 0 : index
      %c0_218 = arith.constant 0 : index
      %315 = vector.load %arg6[%c10_216, %c0_217, %c0_218] : memref<27x8x128xbf16, #tpu.memory_space<vmem>>, vector<1x8x128xbf16>
      %316 = vector.shape_cast %315 : vector<1x8x128xbf16> to vector<8x128xbf16>
      %cst_219 = arith.constant dense<0.000000e+00> : vector<64x128xf32>
      %317 = tpu.matmul %314, %316, %cst_219 {dimension_numbers = #tpu.dot_dimension_numbers<[1], [0], [0], [1], [0, 0, 1, 1], [], []>} : vector<64x8xbf16>, vector<8x128xbf16>, vector<64x128xf32> -> vector<64x128xf32>
      %318 = arith.addf %312, %317 : vector<64x128xf32>
      %319 = vector.extract_strided_slice %300 {offsets = [0, 1, 0], sizes = [8, 8, 8], strides = [1, 1, 1]} : vector<9x9x8xbf16> to vector<8x8x8xbf16>
      %320 = vector.shape_cast %319 : vector<8x8x8xbf16> to vector<64x8xbf16>
      %c11_220 = arith.constant 11 : index
      %c0_221 = arith.constant 0 : index
      %c0_222 = arith.constant 0 : index
      %321 = vector.load %arg6[%c11_220, %c0_221, %c0_222] : memref<27x8x128xbf16, #tpu.memory_space<vmem>>, vector<1x8x128xbf16>
      %322 = vector.shape_cast %321 : vector<1x8x128xbf16> to vector<8x128xbf16>
      %cst_223 = arith.constant dense<0.000000e+00> : vector<64x128xf32>
      %323 = tpu.matmul %320, %322, %cst_223 {dimension_numbers = #tpu.dot_dimension_numbers<[1], [0], [0], [1], [0, 0, 1, 1], [], []>} : vector<64x8xbf16>, vector<8x128xbf16>, vector<64x128xf32> -> vector<64x128xf32>
      %324 = arith.addf %318, %323 : vector<64x128xf32>
      %325 = vector.extract_strided_slice %304 {offsets = [0, 0, 0], sizes = [8, 8, 8], strides = [1, 1, 1]} : vector<9x9x8xbf16> to vector<8x8x8xbf16>
      %326 = vector.shape_cast %325 : vector<8x8x8xbf16> to vector<64x8xbf16>
      %c12_224 = arith.constant 12 : index
      %c0_225 = arith.constant 0 : index
      %c0_226 = arith.constant 0 : index
      %327 = vector.load %arg6[%c12_224, %c0_225, %c0_226] : memref<27x8x128xbf16, #tpu.memory_space<vmem>>, vector<1x8x128xbf16>
      %328 = vector.shape_cast %327 : vector<1x8x128xbf16> to vector<8x128xbf16>
      %cst_227 = arith.constant dense<0.000000e+00> : vector<64x128xf32>
      %329 = tpu.matmul %326, %328, %cst_227 {dimension_numbers = #tpu.dot_dimension_numbers<[1], [0], [0], [1], [0, 0, 1, 1], [], []>} : vector<64x8xbf16>, vector<8x128xbf16>, vector<64x128xf32> -> vector<64x128xf32>
      %330 = arith.addf %324, %329 : vector<64x128xf32>
      %331 = vector.extract_strided_slice %306 {offsets = [0, 0, 0], sizes = [8, 8, 8], strides = [1, 1, 1]} : vector<9x9x8xbf16> to vector<8x8x8xbf16>
      %332 = vector.shape_cast %331 : vector<8x8x8xbf16> to vector<64x8xbf16>
      %c13_228 = arith.constant 13 : index
      %c0_229 = arith.constant 0 : index
      %c0_230 = arith.constant 0 : index
      %333 = vector.load %arg6[%c13_228, %c0_229, %c0_230] : memref<27x8x128xbf16, #tpu.memory_space<vmem>>, vector<1x8x128xbf16>
      %334 = vector.shape_cast %333 : vector<1x8x128xbf16> to vector<8x128xbf16>
      %cst_231 = arith.constant dense<0.000000e+00> : vector<64x128xf32>
      %335 = tpu.matmul %332, %334, %cst_231 {dimension_numbers = #tpu.dot_dimension_numbers<[1], [0], [0], [1], [0, 0, 1, 1], [], []>} : vector<64x8xbf16>, vector<8x128xbf16>, vector<64x128xf32> -> vector<64x128xf32>
      %336 = arith.addf %330, %335 : vector<64x128xf32>
      %337 = vector.extract_strided_slice %304 {offsets = [0, 1, 0], sizes = [8, 8, 8], strides = [1, 1, 1]} : vector<9x9x8xbf16> to vector<8x8x8xbf16>
      %338 = vector.shape_cast %337 : vector<8x8x8xbf16> to vector<64x8xbf16>
      %c14_232 = arith.constant 14 : index
      %c0_233 = arith.constant 0 : index
      %c0_234 = arith.constant 0 : index
      %339 = vector.load %arg6[%c14_232, %c0_233, %c0_234] : memref<27x8x128xbf16, #tpu.memory_space<vmem>>, vector<1x8x128xbf16>
      %340 = vector.shape_cast %339 : vector<1x8x128xbf16> to vector<8x128xbf16>
      %cst_235 = arith.constant dense<0.000000e+00> : vector<64x128xf32>
      %341 = tpu.matmul %338, %340, %cst_235 {dimension_numbers = #tpu.dot_dimension_numbers<[1], [0], [0], [1], [0, 0, 1, 1], [], []>} : vector<64x8xbf16>, vector<8x128xbf16>, vector<64x128xf32> -> vector<64x128xf32>
      %342 = arith.addf %336, %341 : vector<64x128xf32>
      %343 = vector.extract_strided_slice %300 {offsets = [1, 0, 0], sizes = [8, 8, 8], strides = [1, 1, 1]} : vector<9x9x8xbf16> to vector<8x8x8xbf16>
      %344 = vector.shape_cast %343 : vector<8x8x8xbf16> to vector<64x8xbf16>
      %c15_236 = arith.constant 15 : index
      %c0_237 = arith.constant 0 : index
      %c0_238 = arith.constant 0 : index
      %345 = vector.load %arg6[%c15_236, %c0_237, %c0_238] : memref<27x8x128xbf16, #tpu.memory_space<vmem>>, vector<1x8x128xbf16>
      %346 = vector.shape_cast %345 : vector<1x8x128xbf16> to vector<8x128xbf16>
      %cst_239 = arith.constant dense<0.000000e+00> : vector<64x128xf32>
      %347 = tpu.matmul %344, %346, %cst_239 {dimension_numbers = #tpu.dot_dimension_numbers<[1], [0], [0], [1], [0, 0, 1, 1], [], []>} : vector<64x8xbf16>, vector<8x128xbf16>, vector<64x128xf32> -> vector<64x128xf32>
      %348 = arith.addf %342, %347 : vector<64x128xf32>
      %349 = vector.extract_strided_slice %302 {offsets = [1, 0, 0], sizes = [8, 8, 8], strides = [1, 1, 1]} : vector<9x9x8xbf16> to vector<8x8x8xbf16>
      %350 = vector.shape_cast %349 : vector<8x8x8xbf16> to vector<64x8xbf16>
      %c16_240 = arith.constant 16 : index
      %c0_241 = arith.constant 0 : index
      %c0_242 = arith.constant 0 : index
      %351 = vector.load %arg6[%c16_240, %c0_241, %c0_242] : memref<27x8x128xbf16, #tpu.memory_space<vmem>>, vector<1x8x128xbf16>
      %352 = vector.shape_cast %351 : vector<1x8x128xbf16> to vector<8x128xbf16>
      %cst_243 = arith.constant dense<0.000000e+00> : vector<64x128xf32>
      %353 = tpu.matmul %350, %352, %cst_243 {dimension_numbers = #tpu.dot_dimension_numbers<[1], [0], [0], [1], [0, 0, 1, 1], [], []>} : vector<64x8xbf16>, vector<8x128xbf16>, vector<64x128xf32> -> vector<64x128xf32>
      %354 = arith.addf %348, %353 : vector<64x128xf32>
      %355 = vector.extract_strided_slice %300 {offsets = [1, 1, 0], sizes = [8, 8, 8], strides = [1, 1, 1]} : vector<9x9x8xbf16> to vector<8x8x8xbf16>
      %356 = vector.shape_cast %355 : vector<8x8x8xbf16> to vector<64x8xbf16>
      %c17_244 = arith.constant 17 : index
      %c0_245 = arith.constant 0 : index
      %c0_246 = arith.constant 0 : index
      %357 = vector.load %arg6[%c17_244, %c0_245, %c0_246] : memref<27x8x128xbf16, #tpu.memory_space<vmem>>, vector<1x8x128xbf16>
      %358 = vector.shape_cast %357 : vector<1x8x128xbf16> to vector<8x128xbf16>
      %cst_247 = arith.constant dense<0.000000e+00> : vector<64x128xf32>
      %359 = tpu.matmul %356, %358, %cst_247 {dimension_numbers = #tpu.dot_dimension_numbers<[1], [0], [0], [1], [0, 0, 1, 1], [], []>} : vector<64x8xbf16>, vector<8x128xbf16>, vector<64x128xf32> -> vector<64x128xf32>
      %360 = arith.addf %354, %359 : vector<64x128xf32>
      %c0_248 = arith.constant 0 : index
      %c2_249 = arith.constant 2 : index
      %c0_250 = arith.constant 0 : index
      %c0_251 = arith.constant 0 : index
      %c0_252 = arith.constant 0 : index
      %361 = vector.load %arg2[%c0_248, %c2_249, %c0_250, %c0_251, %c0_252] : memref<1x6x9x9x8xbf16, #tpu.memory_space<vmem>>, vector<1x1x9x9x8xbf16>
      %362 = vector.shape_cast %361 : vector<1x1x9x9x8xbf16> to vector<9x9x8xbf16>
      %c0_253 = arith.constant 0 : index
      %c2_254 = arith.constant 2 : index
      %c0_255 = arith.constant 0 : index
      %c0_256 = arith.constant 0 : index
      %c0_257 = arith.constant 0 : index
      %363 = vector.load %arg3[%c0_253, %c2_254, %c0_255, %c0_256, %c0_257] : memref<1x6x9x9x8xbf16, #tpu.memory_space<vmem>>, vector<1x1x9x9x8xbf16>
      %364 = vector.shape_cast %363 : vector<1x1x9x9x8xbf16> to vector<9x9x8xbf16>
      %c0_258 = arith.constant 0 : index
      %c2_259 = arith.constant 2 : index
      %c0_260 = arith.constant 0 : index
      %c0_261 = arith.constant 0 : index
      %c0_262 = arith.constant 0 : index
      %365 = vector.load %arg4[%c0_258, %c2_259, %c0_260, %c0_261, %c0_262] : memref<1x6x9x9x8xbf16, #tpu.memory_space<vmem>>, vector<1x1x9x9x8xbf16>
      %366 = vector.shape_cast %365 : vector<1x1x9x9x8xbf16> to vector<9x9x8xbf16>
      %c0_263 = arith.constant 0 : index
      %c2_264 = arith.constant 2 : index
      %c0_265 = arith.constant 0 : index
      %c0_266 = arith.constant 0 : index
      %c0_267 = arith.constant 0 : index
      %367 = vector.load %arg5[%c0_263, %c2_264, %c0_265, %c0_266, %c0_267] : memref<1x6x9x9x8xbf16, #tpu.memory_space<vmem>>, vector<1x1x9x9x8xbf16>
      %368 = vector.shape_cast %367 : vector<1x1x9x9x8xbf16> to vector<9x9x8xbf16>
      %369 = vector.extract_strided_slice %362 {offsets = [0, 0, 0], sizes = [8, 8, 8], strides = [1, 1, 1]} : vector<9x9x8xbf16> to vector<8x8x8xbf16>
      %370 = vector.shape_cast %369 : vector<8x8x8xbf16> to vector<64x8xbf16>
      %c18_268 = arith.constant 18 : index
      %c0_269 = arith.constant 0 : index
      %c0_270 = arith.constant 0 : index
      %371 = vector.load %arg6[%c18_268, %c0_269, %c0_270] : memref<27x8x128xbf16, #tpu.memory_space<vmem>>, vector<1x8x128xbf16>
      %372 = vector.shape_cast %371 : vector<1x8x128xbf16> to vector<8x128xbf16>
      %cst_271 = arith.constant dense<0.000000e+00> : vector<64x128xf32>
      %373 = tpu.matmul %370, %372, %cst_271 {dimension_numbers = #tpu.dot_dimension_numbers<[1], [0], [0], [1], [0, 0, 1, 1], [], []>} : vector<64x8xbf16>, vector<8x128xbf16>, vector<64x128xf32> -> vector<64x128xf32>
      %374 = arith.addf %360, %373 : vector<64x128xf32>
      %375 = vector.extract_strided_slice %364 {offsets = [0, 0, 0], sizes = [8, 8, 8], strides = [1, 1, 1]} : vector<9x9x8xbf16> to vector<8x8x8xbf16>
      %376 = vector.shape_cast %375 : vector<8x8x8xbf16> to vector<64x8xbf16>
      %c19_272 = arith.constant 19 : index
      %c0_273 = arith.constant 0 : index
      %c0_274 = arith.constant 0 : index
      %377 = vector.load %arg6[%c19_272, %c0_273, %c0_274] : memref<27x8x128xbf16, #tpu.memory_space<vmem>>, vector<1x8x128xbf16>
      %378 = vector.shape_cast %377 : vector<1x8x128xbf16> to vector<8x128xbf16>
      %cst_275 = arith.constant dense<0.000000e+00> : vector<64x128xf32>
      %379 = tpu.matmul %376, %378, %cst_275 {dimension_numbers = #tpu.dot_dimension_numbers<[1], [0], [0], [1], [0, 0, 1, 1], [], []>} : vector<64x8xbf16>, vector<8x128xbf16>, vector<64x128xf32> -> vector<64x128xf32>
      %380 = arith.addf %374, %379 : vector<64x128xf32>
      %381 = vector.extract_strided_slice %362 {offsets = [0, 1, 0], sizes = [8, 8, 8], strides = [1, 1, 1]} : vector<9x9x8xbf16> to vector<8x8x8xbf16>
      %382 = vector.shape_cast %381 : vector<8x8x8xbf16> to vector<64x8xbf16>
      %c20_276 = arith.constant 20 : index
      %c0_277 = arith.constant 0 : index
      %c0_278 = arith.constant 0 : index
      %383 = vector.load %arg6[%c20_276, %c0_277, %c0_278] : memref<27x8x128xbf16, #tpu.memory_space<vmem>>, vector<1x8x128xbf16>
      %384 = vector.shape_cast %383 : vector<1x8x128xbf16> to vector<8x128xbf16>
      %cst_279 = arith.constant dense<0.000000e+00> : vector<64x128xf32>
      %385 = tpu.matmul %382, %384, %cst_279 {dimension_numbers = #tpu.dot_dimension_numbers<[1], [0], [0], [1], [0, 0, 1, 1], [], []>} : vector<64x8xbf16>, vector<8x128xbf16>, vector<64x128xf32> -> vector<64x128xf32>
      %386 = arith.addf %380, %385 : vector<64x128xf32>
      %387 = vector.extract_strided_slice %366 {offsets = [0, 0, 0], sizes = [8, 8, 8], strides = [1, 1, 1]} : vector<9x9x8xbf16> to vector<8x8x8xbf16>
      %388 = vector.shape_cast %387 : vector<8x8x8xbf16> to vector<64x8xbf16>
      %c21_280 = arith.constant 21 : index
      %c0_281 = arith.constant 0 : index
      %c0_282 = arith.constant 0 : index
      %389 = vector.load %arg6[%c21_280, %c0_281, %c0_282] : memref<27x8x128xbf16, #tpu.memory_space<vmem>>, vector<1x8x128xbf16>
      %390 = vector.shape_cast %389 : vector<1x8x128xbf16> to vector<8x128xbf16>
      %cst_283 = arith.constant dense<0.000000e+00> : vector<64x128xf32>
      %391 = tpu.matmul %388, %390, %cst_283 {dimension_numbers = #tpu.dot_dimension_numbers<[1], [0], [0], [1], [0, 0, 1, 1], [], []>} : vector<64x8xbf16>, vector<8x128xbf16>, vector<64x128xf32> -> vector<64x128xf32>
      %392 = arith.addf %386, %391 : vector<64x128xf32>
      %393 = vector.extract_strided_slice %368 {offsets = [0, 0, 0], sizes = [8, 8, 8], strides = [1, 1, 1]} : vector<9x9x8xbf16> to vector<8x8x8xbf16>
      %394 = vector.shape_cast %393 : vector<8x8x8xbf16> to vector<64x8xbf16>
      %c22_284 = arith.constant 22 : index
      %c0_285 = arith.constant 0 : index
      %c0_286 = arith.constant 0 : index
      %395 = vector.load %arg6[%c22_284, %c0_285, %c0_286] : memref<27x8x128xbf16, #tpu.memory_space<vmem>>, vector<1x8x128xbf16>
      %396 = vector.shape_cast %395 : vector<1x8x128xbf16> to vector<8x128xbf16>
      %cst_287 = arith.constant dense<0.000000e+00> : vector<64x128xf32>
      %397 = tpu.matmul %394, %396, %cst_287 {dimension_numbers = #tpu.dot_dimension_numbers<[1], [0], [0], [1], [0, 0, 1, 1], [], []>} : vector<64x8xbf16>, vector<8x128xbf16>, vector<64x128xf32> -> vector<64x128xf32>
      %398 = arith.addf %392, %397 : vector<64x128xf32>
      %399 = vector.extract_strided_slice %366 {offsets = [0, 1, 0], sizes = [8, 8, 8], strides = [1, 1, 1]} : vector<9x9x8xbf16> to vector<8x8x8xbf16>
      %400 = vector.shape_cast %399 : vector<8x8x8xbf16> to vector<64x8xbf16>
      %c23_288 = arith.constant 23 : index
      %c0_289 = arith.constant 0 : index
      %c0_290 = arith.constant 0 : index
      %401 = vector.load %arg6[%c23_288, %c0_289, %c0_290] : memref<27x8x128xbf16, #tpu.memory_space<vmem>>, vector<1x8x128xbf16>
      %402 = vector.shape_cast %401 : vector<1x8x128xbf16> to vector<8x128xbf16>
      %cst_291 = arith.constant dense<0.000000e+00> : vector<64x128xf32>
      %403 = tpu.matmul %400, %402, %cst_291 {dimension_numbers = #tpu.dot_dimension_numbers<[1], [0], [0], [1], [0, 0, 1, 1], [], []>} : vector<64x8xbf16>, vector<8x128xbf16>, vector<64x128xf32> -> vector<64x128xf32>
      %404 = arith.addf %398, %403 : vector<64x128xf32>
      %405 = vector.extract_strided_slice %362 {offsets = [1, 0, 0], sizes = [8, 8, 8], strides = [1, 1, 1]} : vector<9x9x8xbf16> to vector<8x8x8xbf16>
      %406 = vector.shape_cast %405 : vector<8x8x8xbf16> to vector<64x8xbf16>
      %c24_292 = arith.constant 24 : index
      %c0_293 = arith.constant 0 : index
      %c0_294 = arith.constant 0 : index
      %407 = vector.load %arg6[%c24_292, %c0_293, %c0_294] : memref<27x8x128xbf16, #tpu.memory_space<vmem>>, vector<1x8x128xbf16>
      %408 = vector.shape_cast %407 : vector<1x8x128xbf16> to vector<8x128xbf16>
      %cst_295 = arith.constant dense<0.000000e+00> : vector<64x128xf32>
      %409 = tpu.matmul %406, %408, %cst_295 {dimension_numbers = #tpu.dot_dimension_numbers<[1], [0], [0], [1], [0, 0, 1, 1], [], []>} : vector<64x8xbf16>, vector<8x128xbf16>, vector<64x128xf32> -> vector<64x128xf32>
      %410 = arith.addf %404, %409 : vector<64x128xf32>
      %411 = vector.extract_strided_slice %364 {offsets = [1, 0, 0], sizes = [8, 8, 8], strides = [1, 1, 1]} : vector<9x9x8xbf16> to vector<8x8x8xbf16>
      %412 = vector.shape_cast %411 : vector<8x8x8xbf16> to vector<64x8xbf16>
      %c25_296 = arith.constant 25 : index
      %c0_297 = arith.constant 0 : index
      %c0_298 = arith.constant 0 : index
      %413 = vector.load %arg6[%c25_296, %c0_297, %c0_298] : memref<27x8x128xbf16, #tpu.memory_space<vmem>>, vector<1x8x128xbf16>
      %414 = vector.shape_cast %413 : vector<1x8x128xbf16> to vector<8x128xbf16>
      %cst_299 = arith.constant dense<0.000000e+00> : vector<64x128xf32>
      %415 = tpu.matmul %412, %414, %cst_299 {dimension_numbers = #tpu.dot_dimension_numbers<[1], [0], [0], [1], [0, 0, 1, 1], [], []>} : vector<64x8xbf16>, vector<8x128xbf16>, vector<64x128xf32> -> vector<64x128xf32>
      %416 = arith.addf %410, %415 : vector<64x128xf32>
      %417 = vector.extract_strided_slice %362 {offsets = [1, 1, 0], sizes = [8, 8, 8], strides = [1, 1, 1]} : vector<9x9x8xbf16> to vector<8x8x8xbf16>
      %418 = vector.shape_cast %417 : vector<8x8x8xbf16> to vector<64x8xbf16>
      %c26_300 = arith.constant 26 : index
      %c0_301 = arith.constant 0 : index
      %c0_302 = arith.constant 0 : index
      %419 = vector.load %arg6[%c26_300, %c0_301, %c0_302] : memref<27x8x128xbf16, #tpu.memory_space<vmem>>, vector<1x8x128xbf16>
      %420 = vector.shape_cast %419 : vector<1x8x128xbf16> to vector<8x128xbf16>
      %cst_303 = arith.constant dense<0.000000e+00> : vector<64x128xf32>
      %421 = tpu.matmul %418, %420, %cst_303 {dimension_numbers = #tpu.dot_dimension_numbers<[1], [0], [0], [1], [0, 0, 1, 1], [], []>} : vector<64x8xbf16>, vector<8x128xbf16>, vector<64x128xf32> -> vector<64x128xf32>
      %422 = arith.addf %416, %421 : vector<64x128xf32>
      %cst_304 = arith.constant 0.000000e+00 : f32
      %423 = vector.broadcast %cst_304 : f32 to vector<64x128xf32>
      %424 = arith.maximumf %422, %423 : vector<64x128xf32>
      %425 = vector.shape_cast %424 : vector<64x128xf32> to vector<8x8x128xf32>
      %426 = arith.truncf %425 : vector<8x8x128xf32> to vector<8x8x128xbf16>
      %c1_305 = arith.constant 1 : index
      %c1_306 = arith.constant 1 : index
      %c1_307 = arith.constant 1 : index
      %c0_308 = arith.constant 0 : index
      %427 = vector.load %arg13[%c1_305, %c1_306, %c1_307, %c0_308] : memref<3x10x10x128xbf16, #tpu.memory_space<vmem>>, vector<1x8x8x128xbf16>
      %428 = vector.shape_cast %427 : vector<1x8x8x128xbf16> to vector<8x8x128xbf16>
      %429 = vector.shape_cast %426 : vector<8x8x128xbf16> to vector<1x8x8x128xbf16>
      tpu.vector_store %arg13[%c1_305, %c1_306, %c1_307, %c0_308], %429 {strides = array<i32>} : memref<3x10x10x128xbf16, #tpu.memory_space<vmem>>, vector<1x8x8x128xbf16>,
      %c0_309 = arith.constant 0 : index
      %c0_310 = arith.constant 0 : index
      %430 = vector.load %arg7[%c0_309, %c0_310] : memref<1x128xf32, #tpu.memory_space<vmem>>, vector<1x128xf32>
      %431 = vector.shape_cast %430 : vector<1x128xf32> to vector<1x128xf32>
      %432 = vector.broadcast %431 : vector<1x128xf32> to vector<64x128xf32>
      %c0_311 = arith.constant 0 : index
      %c1_312 = arith.constant 1 : index
      %c0_313 = arith.constant 0 : index
      %c0_314 = arith.constant 0 : index
      %c0_315 = arith.constant 0 : index
      %433 = vector.load %arg2[%c0_311, %c1_312, %c0_313, %c0_314, %c0_315] : memref<1x6x9x9x8xbf16, #tpu.memory_space<vmem>>, vector<1x1x9x9x8xbf16>
      %434 = vector.shape_cast %433 : vector<1x1x9x9x8xbf16> to vector<9x9x8xbf16>
      %c0_316 = arith.constant 0 : index
      %c1_317 = arith.constant 1 : index
      %c0_318 = arith.constant 0 : index
      %c0_319 = arith.constant 0 : index
      %c0_320 = arith.constant 0 : index
      %435 = vector.load %arg3[%c0_316, %c1_317, %c0_318, %c0_319, %c0_320] : memref<1x6x9x9x8xbf16, #tpu.memory_space<vmem>>, vector<1x1x9x9x8xbf16>
      %436 = vector.shape_cast %435 : vector<1x1x9x9x8xbf16> to vector<9x9x8xbf16>
      %c0_321 = arith.constant 0 : index
      %c1_322 = arith.constant 1 : index
      %c0_323 = arith.constant 0 : index
      %c0_324 = arith.constant 0 : index
      %c0_325 = arith.constant 0 : index
      %437 = vector.load %arg4[%c0_321, %c1_322, %c0_323, %c0_324, %c0_325] : memref<1x6x9x9x8xbf16, #tpu.memory_space<vmem>>, vector<1x1x9x9x8xbf16>
      %438 = vector.shape_cast %437 : vector<1x1x9x9x8xbf16> to vector<9x9x8xbf16>
      %c0_326 = arith.constant 0 : index
      %c1_327 = arith.constant 1 : index
      %c0_328 = arith.constant 0 : index
      %c0_329 = arith.constant 0 : index
      %c0_330 = arith.constant 0 : index
      %439 = vector.load %arg5[%c0_326, %c1_327, %c0_328, %c0_329, %c0_330] : memref<1x6x9x9x8xbf16, #tpu.memory_space<vmem>>, vector<1x1x9x9x8xbf16>
      %440 = vector.shape_cast %439 : vector<1x1x9x9x8xbf16> to vector<9x9x8xbf16>
      %441 = vector.extract_strided_slice %434 {offsets = [0, 0, 0], sizes = [8, 8, 8], strides = [1, 1, 1]} : vector<9x9x8xbf16> to vector<8x8x8xbf16>
      %442 = vector.shape_cast %441 : vector<8x8x8xbf16> to vector<64x8xbf16>
      %c0_331 = arith.constant 0 : index
      %c0_332 = arith.constant 0 : index
      %c0_333 = arith.constant 0 : index
      %443 = vector.load %arg6[%c0_331, %c0_332, %c0_333] : memref<27x8x128xbf16, #tpu.memory_space<vmem>>, vector<1x8x128xbf16>
      %444 = vector.shape_cast %443 : vector<1x8x128xbf16> to vector<8x128xbf16>
      %cst_334 = arith.constant dense<0.000000e+00> : vector<64x128xf32>
      %445 = tpu.matmul %442, %444, %cst_334 {dimension_numbers = #tpu.dot_dimension_numbers<[1], [0], [0], [1], [0, 0, 1, 1], [], []>} : vector<64x8xbf16>, vector<8x128xbf16>, vector<64x128xf32> -> vector<64x128xf32>
      %446 = arith.addf %432, %445 : vector<64x128xf32>
      %447 = vector.extract_strided_slice %436 {offsets = [0, 0, 0], sizes = [8, 8, 8], strides = [1, 1, 1]} : vector<9x9x8xbf16> to vector<8x8x8xbf16>
      %448 = vector.shape_cast %447 : vector<8x8x8xbf16> to vector<64x8xbf16>
      %c1_335 = arith.constant 1 : index
      %c0_336 = arith.constant 0 : index
      %c0_337 = arith.constant 0 : index
      %449 = vector.load %arg6[%c1_335, %c0_336, %c0_337] : memref<27x8x128xbf16, #tpu.memory_space<vmem>>, vector<1x8x128xbf16>
      %450 = vector.shape_cast %449 : vector<1x8x128xbf16> to vector<8x128xbf16>
      %cst_338 = arith.constant dense<0.000000e+00> : vector<64x128xf32>
      %451 = tpu.matmul %448, %450, %cst_338 {dimension_numbers = #tpu.dot_dimension_numbers<[1], [0], [0], [1], [0, 0, 1, 1], [], []>} : vector<64x8xbf16>, vector<8x128xbf16>, vector<64x128xf32> -> vector<64x128xf32>
      %452 = arith.addf %446, %451 : vector<64x128xf32>
      %453 = vector.extract_strided_slice %434 {offsets = [0, 1, 0], sizes = [8, 8, 8], strides = [1, 1, 1]} : vector<9x9x8xbf16> to vector<8x8x8xbf16>
      %454 = vector.shape_cast %453 : vector<8x8x8xbf16> to vector<64x8xbf16>
      %c2_339 = arith.constant 2 : index
      %c0_340 = arith.constant 0 : index
      %c0_341 = arith.constant 0 : index
      %455 = vector.load %arg6[%c2_339, %c0_340, %c0_341] : memref<27x8x128xbf16, #tpu.memory_space<vmem>>, vector<1x8x128xbf16>
      %456 = vector.shape_cast %455 : vector<1x8x128xbf16> to vector<8x128xbf16>
      %cst_342 = arith.constant dense<0.000000e+00> : vector<64x128xf32>
      %457 = tpu.matmul %454, %456, %cst_342 {dimension_numbers = #tpu.dot_dimension_numbers<[1], [0], [0], [1], [0, 0, 1, 1], [], []>} : vector<64x8xbf16>, vector<8x128xbf16>, vector<64x128xf32> -> vector<64x128xf32>
      %458 = arith.addf %452, %457 : vector<64x128xf32>
      %459 = vector.extract_strided_slice %438 {offsets = [0, 0, 0], sizes = [8, 8, 8], strides = [1, 1, 1]} : vector<9x9x8xbf16> to vector<8x8x8xbf16>
      %460 = vector.shape_cast %459 : vector<8x8x8xbf16> to vector<64x8xbf16>
      %c3_343 = arith.constant 3 : index
      %c0_344 = arith.constant 0 : index
      %c0_345 = arith.constant 0 : index
      %461 = vector.load %arg6[%c3_343, %c0_344, %c0_345] : memref<27x8x128xbf16, #tpu.memory_space<vmem>>, vector<1x8x128xbf16>
      %462 = vector.shape_cast %461 : vector<1x8x128xbf16> to vector<8x128xbf16>
      %cst_346 = arith.constant dense<0.000000e+00> : vector<64x128xf32>
      %463 = tpu.matmul %460, %462, %cst_346 {dimension_numbers = #tpu.dot_dimension_numbers<[1], [0], [0], [1], [0, 0, 1, 1], [], []>} : vector<64x8xbf16>, vector<8x128xbf16>, vector<64x128xf32> -> vector<64x128xf32>
      %464 = arith.addf %458, %463 : vector<64x128xf32>
      %465 = vector.extract_strided_slice %440 {offsets = [0, 0, 0], sizes = [8, 8, 8], strides = [1, 1, 1]} : vector<9x9x8xbf16> to vector<8x8x8xbf16>
      %466 = vector.shape_cast %465 : vector<8x8x8xbf16> to vector<64x8xbf16>
      %c4_347 = arith.constant 4 : index
      %c0_348 = arith.constant 0 : index
      %c0_349 = arith.constant 0 : index
      %467 = vector.load %arg6[%c4_347, %c0_348, %c0_349] : memref<27x8x128xbf16, #tpu.memory_space<vmem>>, vector<1x8x128xbf16>
      %468 = vector.shape_cast %467 : vector<1x8x128xbf16> to vector<8x128xbf16>
      %cst_350 = arith.constant dense<0.000000e+00> : vector<64x128xf32>
      %469 = tpu.matmul %466, %468, %cst_350 {dimension_numbers = #tpu.dot_dimension_numbers<[1], [0], [0], [1], [0, 0, 1, 1], [], []>} : vector<64x8xbf16>, vector<8x128xbf16>, vector<64x128xf32> -> vector<64x128xf32>
      %470 = arith.addf %464, %469 : vector<64x128xf32>
      %471 = vector.extract_strided_slice %438 {offsets = [0, 1, 0], sizes = [8, 8, 8], strides = [1, 1, 1]} : vector<9x9x8xbf16> to vector<8x8x8xbf16>
      %472 = vector.shape_cast %471 : vector<8x8x8xbf16> to vector<64x8xbf16>
      %c5_351 = arith.constant 5 : index
      %c0_352 = arith.constant 0 : index
      %c0_353 = arith.constant 0 : index
      %473 = vector.load %arg6[%c5_351, %c0_352, %c0_353] : memref<27x8x128xbf16, #tpu.memory_space<vmem>>, vector<1x8x128xbf16>
      %474 = vector.shape_cast %473 : vector<1x8x128xbf16> to vector<8x128xbf16>
      %cst_354 = arith.constant dense<0.000000e+00> : vector<64x128xf32>
      %475 = tpu.matmul %472, %474, %cst_354 {dimension_numbers = #tpu.dot_dimension_numbers<[1], [0], [0], [1], [0, 0, 1, 1], [], []>} : vector<64x8xbf16>, vector<8x128xbf16>, vector<64x128xf32> -> vector<64x128xf32>
      %476 = arith.addf %470, %475 : vector<64x128xf32>
      %477 = vector.extract_strided_slice %434 {offsets = [1, 0, 0], sizes = [8, 8, 8], strides = [1, 1, 1]} : vector<9x9x8xbf16> to vector<8x8x8xbf16>
      %478 = vector.shape_cast %477 : vector<8x8x8xbf16> to vector<64x8xbf16>
      %c6_355 = arith.constant 6 : index
      %c0_356 = arith.constant 0 : index
      %c0_357 = arith.constant 0 : index
      %479 = vector.load %arg6[%c6_355, %c0_356, %c0_357] : memref<27x8x128xbf16, #tpu.memory_space<vmem>>, vector<1x8x128xbf16>
      %480 = vector.shape_cast %479 : vector<1x8x128xbf16> to vector<8x128xbf16>
      %cst_358 = arith.constant dense<0.000000e+00> : vector<64x128xf32>
      %481 = tpu.matmul %478, %480, %cst_358 {dimension_numbers = #tpu.dot_dimension_numbers<[1], [0], [0], [1], [0, 0, 1, 1], [], []>} : vector<64x8xbf16>, vector<8x128xbf16>, vector<64x128xf32> -> vector<64x128xf32>
      %482 = arith.addf %476, %481 : vector<64x128xf32>
      %483 = vector.extract_strided_slice %436 {offsets = [1, 0, 0], sizes = [8, 8, 8], strides = [1, 1, 1]} : vector<9x9x8xbf16> to vector<8x8x8xbf16>
      %484 = vector.shape_cast %483 : vector<8x8x8xbf16> to vector<64x8xbf16>
      %c7_359 = arith.constant 7 : index
      %c0_360 = arith.constant 0 : index
      %c0_361 = arith.constant 0 : index
      %485 = vector.load %arg6[%c7_359, %c0_360, %c0_361] : memref<27x8x128xbf16, #tpu.memory_space<vmem>>, vector<1x8x128xbf16>
      %486 = vector.shape_cast %485 : vector<1x8x128xbf16> to vector<8x128xbf16>
      %cst_362 = arith.constant dense<0.000000e+00> : vector<64x128xf32>
      %487 = tpu.matmul %484, %486, %cst_362 {dimension_numbers = #tpu.dot_dimension_numbers<[1], [0], [0], [1], [0, 0, 1, 1], [], []>} : vector<64x8xbf16>, vector<8x128xbf16>, vector<64x128xf32> -> vector<64x128xf32>
      %488 = arith.addf %482, %487 : vector<64x128xf32>
      %489 = vector.extract_strided_slice %434 {offsets = [1, 1, 0], sizes = [8, 8, 8], strides = [1, 1, 1]} : vector<9x9x8xbf16> to vector<8x8x8xbf16>
      %490 = vector.shape_cast %489 : vector<8x8x8xbf16> to vector<64x8xbf16>
      %c8_363 = arith.constant 8 : index
      %c0_364 = arith.constant 0 : index
      %c0_365 = arith.constant 0 : index
      %491 = vector.load %arg6[%c8_363, %c0_364, %c0_365] : memref<27x8x128xbf16, #tpu.memory_space<vmem>>, vector<1x8x128xbf16>
      %492 = vector.shape_cast %491 : vector<1x8x128xbf16> to vector<8x128xbf16>
      %cst_366 = arith.constant dense<0.000000e+00> : vector<64x128xf32>
      %493 = tpu.matmul %490, %492, %cst_366 {dimension_numbers = #tpu.dot_dimension_numbers<[1], [0], [0], [1], [0, 0, 1, 1], [], []>} : vector<64x8xbf16>, vector<8x128xbf16>, vector<64x128xf32> -> vector<64x128xf32>
      %494 = arith.addf %488, %493 : vector<64x128xf32>
      %c0_367 = arith.constant 0 : index
      %c2_368 = arith.constant 2 : index
      %c0_369 = arith.constant 0 : index
      %c0_370 = arith.constant 0 : index
      %c0_371 = arith.constant 0 : index
      %495 = vector.load %arg2[%c0_367, %c2_368, %c0_369, %c0_370, %c0_371] : memref<1x6x9x9x8xbf16, #tpu.memory_space<vmem>>, vector<1x1x9x9x8xbf16>
      %496 = vector.shape_cast %495 : vector<1x1x9x9x8xbf16> to vector<9x9x8xbf16>
      %c0_372 = arith.constant 0 : index
      %c2_373 = arith.constant 2 : index
      %c0_374 = arith.constant 0 : index
      %c0_375 = arith.constant 0 : index
      %c0_376 = arith.constant 0 : index
      %497 = vector.load %arg3[%c0_372, %c2_373, %c0_374, %c0_375, %c0_376] : memref<1x6x9x9x8xbf16, #tpu.memory_space<vmem>>, vector<1x1x9x9x8xbf16>
      %498 = vector.shape_cast %497 : vector<1x1x9x9x8xbf16> to vector<9x9x8xbf16>
      %c0_377 = arith.constant 0 : index
      %c2_378 = arith.constant 2 : index
      %c0_379 = arith.constant 0 : index
      %c0_380 = arith.constant 0 : index
      %c0_381 = arith.constant 0 : index
      %499 = vector.load %arg4[%c0_377, %c2_378, %c0_379, %c0_380, %c0_381] : memref<1x6x9x9x8xbf16, #tpu.memory_space<vmem>>, vector<1x1x9x9x8xbf16>
      %500 = vector.shape_cast %499 : vector<1x1x9x9x8xbf16> to vector<9x9x8xbf16>
      %c0_382 = arith.constant 0 : index
      %c2_383 = arith.constant 2 : index
      %c0_384 = arith.constant 0 : index
      %c0_385 = arith.constant 0 : index
      %c0_386 = arith.constant 0 : index
      %501 = vector.load %arg5[%c0_382, %c2_383, %c0_384, %c0_385, %c0_386] : memref<1x6x9x9x8xbf16, #tpu.memory_space<vmem>>, vector<1x1x9x9x8xbf16>
      %502 = vector.shape_cast %501 : vector<1x1x9x9x8xbf16> to vector<9x9x8xbf16>
      %503 = vector.extract_strided_slice %496 {offsets = [0, 0, 0], sizes = [8, 8, 8], strides = [1, 1, 1]} : vector<9x9x8xbf16> to vector<8x8x8xbf16>
      %504 = vector.shape_cast %503 : vector<8x8x8xbf16> to vector<64x8xbf16>
      %c9_387 = arith.constant 9 : index
      %c0_388 = arith.constant 0 : index
      %c0_389 = arith.constant 0 : index
      %505 = vector.load %arg6[%c9_387, %c0_388, %c0_389] : memref<27x8x128xbf16, #tpu.memory_space<vmem>>, vector<1x8x128xbf16>
      %506 = vector.shape_cast %505 : vector<1x8x128xbf16> to vector<8x128xbf16>
      %cst_390 = arith.constant dense<0.000000e+00> : vector<64x128xf32>
      %507 = tpu.matmul %504, %506, %cst_390 {dimension_numbers = #tpu.dot_dimension_numbers<[1], [0], [0], [1], [0, 0, 1, 1], [], []>} : vector<64x8xbf16>, vector<8x128xbf16>, vector<64x128xf32> -> vector<64x128xf32>
      %508 = arith.addf %494, %507 : vector<64x128xf32>
      %509 = vector.extract_strided_slice %498 {offsets = [0, 0, 0], sizes = [8, 8, 8], strides = [1, 1, 1]} : vector<9x9x8xbf16> to vector<8x8x8xbf16>
      %510 = vector.shape_cast %509 : vector<8x8x8xbf16> to vector<64x8xbf16>
      %c10_391 = arith.constant 10 : index
      %c0_392 = arith.constant 0 : index
      %c0_393 = arith.constant 0 : index
      %511 = vector.load %arg6[%c10_391, %c0_392, %c0_393] : memref<27x8x128xbf16, #tpu.memory_space<vmem>>, vector<1x8x128xbf16>
      %512 = vector.shape_cast %511 : vector<1x8x128xbf16> to vector<8x128xbf16>
      %cst_394 = arith.constant dense<0.000000e+00> : vector<64x128xf32>
      %513 = tpu.matmul %510, %512, %cst_394 {dimension_numbers = #tpu.dot_dimension_numbers<[1], [0], [0], [1], [0, 0, 1, 1], [], []>} : vector<64x8xbf16>, vector<8x128xbf16>, vector<64x128xf32> -> vector<64x128xf32>
      %514 = arith.addf %508, %513 : vector<64x128xf32>
      %515 = vector.extract_strided_slice %496 {offsets = [0, 1, 0], sizes = [8, 8, 8], strides = [1, 1, 1]} : vector<9x9x8xbf16> to vector<8x8x8xbf16>
      %516 = vector.shape_cast %515 : vector<8x8x8xbf16> to vector<64x8xbf16>
      %c11_395 = arith.constant 11 : index
      %c0_396 = arith.constant 0 : index
      %c0_397 = arith.constant 0 : index
      %517 = vector.load %arg6[%c11_395, %c0_396, %c0_397] : memref<27x8x128xbf16, #tpu.memory_space<vmem>>, vector<1x8x128xbf16>
      %518 = vector.shape_cast %517 : vector<1x8x128xbf16> to vector<8x128xbf16>
      %cst_398 = arith.constant dense<0.000000e+00> : vector<64x128xf32>
      %519 = tpu.matmul %516, %518, %cst_398 {dimension_numbers = #tpu.dot_dimension_numbers<[1], [0], [0], [1], [0, 0, 1, 1], [], []>} : vector<64x8xbf16>, vector<8x128xbf16>, vector<64x128xf32> -> vector<64x128xf32>
      %520 = arith.addf %514, %519 : vector<64x128xf32>
      %521 = vector.extract_strided_slice %500 {offsets = [0, 0, 0], sizes = [8, 8, 8], strides = [1, 1, 1]} : vector<9x9x8xbf16> to vector<8x8x8xbf16>
      %522 = vector.shape_cast %521 : vector<8x8x8xbf16> to vector<64x8xbf16>
      %c12_399 = arith.constant 12 : index
      %c0_400 = arith.constant 0 : index
      %c0_401 = arith.constant 0 : index
      %523 = vector.load %arg6[%c12_399, %c0_400, %c0_401] : memref<27x8x128xbf16, #tpu.memory_space<vmem>>, vector<1x8x128xbf16>
      %524 = vector.shape_cast %523 : vector<1x8x128xbf16> to vector<8x128xbf16>
      %cst_402 = arith.constant dense<0.000000e+00> : vector<64x128xf32>
      %525 = tpu.matmul %522, %524, %cst_402 {dimension_numbers = #tpu.dot_dimension_numbers<[1], [0], [0], [1], [0, 0, 1, 1], [], []>} : vector<64x8xbf16>, vector<8x128xbf16>, vector<64x128xf32> -> vector<64x128xf32>
      %526 = arith.addf %520, %525 : vector<64x128xf32>
      %527 = vector.extract_strided_slice %502 {offsets = [0, 0, 0], sizes = [8, 8, 8], strides = [1, 1, 1]} : vector<9x9x8xbf16> to vector<8x8x8xbf16>
      %528 = vector.shape_cast %527 : vector<8x8x8xbf16> to vector<64x8xbf16>
      %c13_403 = arith.constant 13 : index
      %c0_404 = arith.constant 0 : index
      %c0_405 = arith.constant 0 : index
      %529 = vector.load %arg6[%c13_403, %c0_404, %c0_405] : memref<27x8x128xbf16, #tpu.memory_space<vmem>>, vector<1x8x128xbf16>
      %530 = vector.shape_cast %529 : vector<1x8x128xbf16> to vector<8x128xbf16>
      %cst_406 = arith.constant dense<0.000000e+00> : vector<64x128xf32>
      %531 = tpu.matmul %528, %530, %cst_406 {dimension_numbers = #tpu.dot_dimension_numbers<[1], [0], [0], [1], [0, 0, 1, 1], [], []>} : vector<64x8xbf16>, vector<8x128xbf16>, vector<64x128xf32> -> vector<64x128xf32>
      %532 = arith.addf %526, %531 : vector<64x128xf32>
      %533 = vector.extract_strided_slice %500 {offsets = [0, 1, 0], sizes = [8, 8, 8], strides = [1, 1, 1]} : vector<9x9x8xbf16> to vector<8x8x8xbf16>
      %534 = vector.shape_cast %533 : vector<8x8x8xbf16> to vector<64x8xbf16>
      %c14_407 = arith.constant 14 : index
      %c0_408 = arith.constant 0 : index
      %c0_409 = arith.constant 0 : index
      %535 = vector.load %arg6[%c14_407, %c0_408, %c0_409] : memref<27x8x128xbf16, #tpu.memory_space<vmem>>, vector<1x8x128xbf16>
      %536 = vector.shape_cast %535 : vector<1x8x128xbf16> to vector<8x128xbf16>
      %cst_410 = arith.constant dense<0.000000e+00> : vector<64x128xf32>
      %537 = tpu.matmul %534, %536, %cst_410 {dimension_numbers = #tpu.dot_dimension_numbers<[1], [0], [0], [1], [0, 0, 1, 1], [], []>} : vector<64x8xbf16>, vector<8x128xbf16>, vector<64x128xf32> -> vector<64x128xf32>
      %538 = arith.addf %532, %537 : vector<64x128xf32>
      %539 = vector.extract_strided_slice %496 {offsets = [1, 0, 0], sizes = [8, 8, 8], strides = [1, 1, 1]} : vector<9x9x8xbf16> to vector<8x8x8xbf16>
      %540 = vector.shape_cast %539 : vector<8x8x8xbf16> to vector<64x8xbf16>
      %c15_411 = arith.constant 15 : index
      %c0_412 = arith.constant 0 : index
      %c0_413 = arith.constant 0 : index
      %541 = vector.load %arg6[%c15_411, %c0_412, %c0_413] : memref<27x8x128xbf16, #tpu.memory_space<vmem>>, vector<1x8x128xbf16>
      %542 = vector.shape_cast %541 : vector<1x8x128xbf16> to vector<8x128xbf16>
      %cst_414 = arith.constant dense<0.000000e+00> : vector<64x128xf32>
      %543 = tpu.matmul %540, %542, %cst_414 {dimension_numbers = #tpu.dot_dimension_numbers<[1], [0], [0], [1], [0, 0, 1, 1], [], []>} : vector<64x8xbf16>, vector<8x128xbf16>, vector<64x128xf32> -> vector<64x128xf32>
      %544 = arith.addf %538, %543 : vector<64x128xf32>
      %545 = vector.extract_strided_slice %498 {offsets = [1, 0, 0], sizes = [8, 8, 8], strides = [1, 1, 1]} : vector<9x9x8xbf16> to vector<8x8x8xbf16>
      %546 = vector.shape_cast %545 : vector<8x8x8xbf16> to vector<64x8xbf16>
      %c16_415 = arith.constant 16 : index
      %c0_416 = arith.constant 0 : index
      %c0_417 = arith.constant 0 : index
      %547 = vector.load %arg6[%c16_415, %c0_416, %c0_417] : memref<27x8x128xbf16, #tpu.memory_space<vmem>>, vector<1x8x128xbf16>
      %548 = vector.shape_cast %547 : vector<1x8x128xbf16> to vector<8x128xbf16>
      %cst_418 = arith.constant dense<0.000000e+00> : vector<64x128xf32>
      %549 = tpu.matmul %546, %548, %cst_418 {dimension_numbers = #tpu.dot_dimension_numbers<[1], [0], [0], [1], [0, 0, 1, 1], [], []>} : vector<64x8xbf16>, vector<8x128xbf16>, vector<64x128xf32> -> vector<64x128xf32>
      %550 = arith.addf %544, %549 : vector<64x128xf32>
      %551 = vector.extract_strided_slice %496 {offsets = [1, 1, 0], sizes = [8, 8, 8], strides = [1, 1, 1]} : vector<9x9x8xbf16> to vector<8x8x8xbf16>
      %552 = vector.shape_cast %551 : vector<8x8x8xbf16> to vector<64x8xbf16>
      %c17_419 = arith.constant 17 : index
      %c0_420 = arith.constant 0 : index
      %c0_421 = arith.constant 0 : index
      %553 = vector.load %arg6[%c17_419, %c0_420, %c0_421] : memref<27x8x128xbf16, #tpu.memory_space<vmem>>, vector<1x8x128xbf16>
      %554 = vector.shape_cast %553 : vector<1x8x128xbf16> to vector<8x128xbf16>
      %cst_422 = arith.constant dense<0.000000e+00> : vector<64x128xf32>
      %555 = tpu.matmul %552, %554, %cst_422 {dimension_numbers = #tpu.dot_dimension_numbers<[1], [0], [0], [1], [0, 0, 1, 1], [], []>} : vector<64x8xbf16>, vector<8x128xbf16>, vector<64x128xf32> -> vector<64x128xf32>
      %556 = arith.addf %550, %555 : vector<64x128xf32>
      %c0_423 = arith.constant 0 : index
      %c3_424 = arith.constant 3 : index
      %c0_425 = arith.constant 0 : index
      %c0_426 = arith.constant 0 : index
      %c0_427 = arith.constant 0 : index
      %557 = vector.load %arg2[%c0_423, %c3_424, %c0_425, %c0_426, %c0_427] : memref<1x6x9x9x8xbf16, #tpu.memory_space<vmem>>, vector<1x1x9x9x8xbf16>
      %558 = vector.shape_cast %557 : vector<1x1x9x9x8xbf16> to vector<9x9x8xbf16>
      %c0_428 = arith.constant 0 : index
      %c3_429 = arith.constant 3 : index
      %c0_430 = arith.constant 0 : index
      %c0_431 = arith.constant 0 : index
      %c0_432 = arith.constant 0 : index
      %559 = vector.load %arg3[%c0_428, %c3_429, %c0_430, %c0_431, %c0_432] : memref<1x6x9x9x8xbf16, #tpu.memory_space<vmem>>, vector<1x1x9x9x8xbf16>
      %560 = vector.shape_cast %559 : vector<1x1x9x9x8xbf16> to vector<9x9x8xbf16>
      %c0_433 = arith.constant 0 : index
      %c3_434 = arith.constant 3 : index
      %c0_435 = arith.constant 0 : index
      %c0_436 = arith.constant 0 : index
      %c0_437 = arith.constant 0 : index
      %561 = vector.load %arg4[%c0_433, %c3_434, %c0_435, %c0_436, %c0_437] : memref<1x6x9x9x8xbf16, #tpu.memory_space<vmem>>, vector<1x1x9x9x8xbf16>
      %562 = vector.shape_cast %561 : vector<1x1x9x9x8xbf16> to vector<9x9x8xbf16>
      %c0_438 = arith.constant 0 : index
      %c3_439 = arith.constant 3 : index
      %c0_440 = arith.constant 0 : index
      %c0_441 = arith.constant 0 : index
      %c0_442 = arith.constant 0 : index
      %563 = vector.load %arg5[%c0_438, %c3_439, %c0_440, %c0_441, %c0_442] : memref<1x6x9x9x8xbf16, #tpu.memory_space<vmem>>, vector<1x1x9x9x8xbf16>
      %564 = vector.shape_cast %563 : vector<1x1x9x9x8xbf16> to vector<9x9x8xbf16>
      %565 = vector.extract_strided_slice %558 {offsets = [0, 0, 0], sizes = [8, 8, 8], strides = [1, 1, 1]} : vector<9x9x8xbf16> to vector<8x8x8xbf16>
      %566 = vector.shape_cast %565 : vector<8x8x8xbf16> to vector<64x8xbf16>
      %c18_443 = arith.constant 18 : index
      %c0_444 = arith.constant 0 : index
      %c0_445 = arith.constant 0 : index
      %567 = vector.load %arg6[%c18_443, %c0_444, %c0_445] : memref<27x8x128xbf16, #tpu.memory_space<vmem>>, vector<1x8x128xbf16>
      %568 = vector.shape_cast %567 : vector<1x8x128xbf16> to vector<8x128xbf16>
      %cst_446 = arith.constant dense<0.000000e+00> : vector<64x128xf32>
      %569 = tpu.matmul %566, %568, %cst_446 {dimension_numbers = #tpu.dot_dimension_numbers<[1], [0], [0], [1], [0, 0, 1, 1], [], []>} : vector<64x8xbf16>, vector<8x128xbf16>, vector<64x128xf32> -> vector<64x128xf32>
      %570 = arith.addf %556, %569 : vector<64x128xf32>
      %571 = vector.extract_strided_slice %560 {offsets = [0, 0, 0], sizes = [8, 8, 8], strides = [1, 1, 1]} : vector<9x9x8xbf16> to vector<8x8x8xbf16>
      %572 = vector.shape_cast %571 : vector<8x8x8xbf16> to vector<64x8xbf16>
      %c19_447 = arith.constant 19 : index
      %c0_448 = arith.constant 0 : index
      %c0_449 = arith.constant 0 : index
      %573 = vector.load %arg6[%c19_447, %c0_448, %c0_449] : memref<27x8x128xbf16, #tpu.memory_space<vmem>>, vector<1x8x128xbf16>
      %574 = vector.shape_cast %573 : vector<1x8x128xbf16> to vector<8x128xbf16>
      %cst_450 = arith.constant dense<0.000000e+00> : vector<64x128xf32>
      %575 = tpu.matmul %572, %574, %cst_450 {dimension_numbers = #tpu.dot_dimension_numbers<[1], [0], [0], [1], [0, 0, 1, 1], [], []>} : vector<64x8xbf16>, vector<8x128xbf16>, vector<64x128xf32> -> vector<64x128xf32>
      %576 = arith.addf %570, %575 : vector<64x128xf32>
      %577 = vector.extract_strided_slice %558 {offsets = [0, 1, 0], sizes = [8, 8, 8], strides = [1, 1, 1]} : vector<9x9x8xbf16> to vector<8x8x8xbf16>
      %578 = vector.shape_cast %577 : vector<8x8x8xbf16> to vector<64x8xbf16>
      %c20_451 = arith.constant 20 : index
      %c0_452 = arith.constant 0 : index
      %c0_453 = arith.constant 0 : index
      %579 = vector.load %arg6[%c20_451, %c0_452, %c0_453] : memref<27x8x128xbf16, #tpu.memory_space<vmem>>, vector<1x8x128xbf16>
      %580 = vector.shape_cast %579 : vector<1x8x128xbf16> to vector<8x128xbf16>
      %cst_454 = arith.constant dense<0.000000e+00> : vector<64x128xf32>
      %581 = tpu.matmul %578, %580, %cst_454 {dimension_numbers = #tpu.dot_dimension_numbers<[1], [0], [0], [1], [0, 0, 1, 1], [], []>} : vector<64x8xbf16>, vector<8x128xbf16>, vector<64x128xf32> -> vector<64x128xf32>
      %582 = arith.addf %576, %581 : vector<64x128xf32>
      %583 = vector.extract_strided_slice %562 {offsets = [0, 0, 0], sizes = [8, 8, 8], strides = [1, 1, 1]} : vector<9x9x8xbf16> to vector<8x8x8xbf16>
      %584 = vector.shape_cast %583 : vector<8x8x8xbf16> to vector<64x8xbf16>
      %c21_455 = arith.constant 21 : index
      %c0_456 = arith.constant 0 : index
      %c0_457 = arith.constant 0 : index
      %585 = vector.load %arg6[%c21_455, %c0_456, %c0_457] : memref<27x8x128xbf16, #tpu.memory_space<vmem>>, vector<1x8x128xbf16>
      %586 = vector.shape_cast %585 : vector<1x8x128xbf16> to vector<8x128xbf16>
      %cst_458 = arith.constant dense<0.000000e+00> : vector<64x128xf32>
      %587 = tpu.matmul %584, %586, %cst_458 {dimension_numbers = #tpu.dot_dimension_numbers<[1], [0], [0], [1], [0, 0, 1, 1], [], []>} : vector<64x8xbf16>, vector<8x128xbf16>, vector<64x128xf32> -> vector<64x128xf32>
      %588 = arith.addf %582, %587 : vector<64x128xf32>
      %589 = vector.extract_strided_slice %564 {offsets = [0, 0, 0], sizes = [8, 8, 8], strides = [1, 1, 1]} : vector<9x9x8xbf16> to vector<8x8x8xbf16>
      %590 = vector.shape_cast %589 : vector<8x8x8xbf16> to vector<64x8xbf16>
      %c22_459 = arith.constant 22 : index
      %c0_460 = arith.constant 0 : index
      %c0_461 = arith.constant 0 : index
      %591 = vector.load %arg6[%c22_459, %c0_460, %c0_461] : memref<27x8x128xbf16, #tpu.memory_space<vmem>>, vector<1x8x128xbf16>
      %592 = vector.shape_cast %591 : vector<1x8x128xbf16> to vector<8x128xbf16>
      %cst_462 = arith.constant dense<0.000000e+00> : vector<64x128xf32>
      %593 = tpu.matmul %590, %592, %cst_462 {dimension_numbers = #tpu.dot_dimension_numbers<[1], [0], [0], [1], [0, 0, 1, 1], [], []>} : vector<64x8xbf16>, vector<8x128xbf16>, vector<64x128xf32> -> vector<64x128xf32>
      %594 = arith.addf %588, %593 : vector<64x128xf32>
      %595 = vector.extract_strided_slice %562 {offsets = [0, 1, 0], sizes = [8, 8, 8], strides = [1, 1, 1]} : vector<9x9x8xbf16> to vector<8x8x8xbf16>
      %596 = vector.shape_cast %595 : vector<8x8x8xbf16> to vector<64x8xbf16>
      %c23_463 = arith.constant 23 : index
      %c0_464 = arith.constant 0 : index
      %c0_465 = arith.constant 0 : index
      %597 = vector.load %arg6[%c23_463, %c0_464, %c0_465] : memref<27x8x128xbf16, #tpu.memory_space<vmem>>, vector<1x8x128xbf16>
      %598 = vector.shape_cast %597 : vector<1x8x128xbf16> to vector<8x128xbf16>
      %cst_466 = arith.constant dense<0.000000e+00> : vector<64x128xf32>
      %599 = tpu.matmul %596, %598, %cst_466 {dimension_numbers = #tpu.dot_dimension_numbers<[1], [0], [0], [1], [0, 0, 1, 1], [], []>} : vector<64x8xbf16>, vector<8x128xbf16>, vector<64x128xf32> -> vector<64x128xf32>
      %600 = arith.addf %594, %599 : vector<64x128xf32>
      %601 = vector.extract_strided_slice %558 {offsets = [1, 0, 0], sizes = [8, 8, 8], strides = [1, 1, 1]} : vector<9x9x8xbf16> to vector<8x8x8xbf16>
      %602 = vector.shape_cast %601 : vector<8x8x8xbf16> to vector<64x8xbf16>
      %c24_467 = arith.constant 24 : index
      %c0_468 = arith.constant 0 : index
      %c0_469 = arith.constant 0 : index
      %603 = vector.load %arg6[%c24_467, %c0_468, %c0_469] : memref<27x8x128xbf16, #tpu.memory_space<vmem>>, vector<1x8x128xbf16>
      %604 = vector.shape_cast %603 : vector<1x8x128xbf16> to vector<8x128xbf16>
      %cst_470 = arith.constant dense<0.000000e+00> : vector<64x128xf32>
      %605 = tpu.matmul %602, %604, %cst_470 {dimension_numbers = #tpu.dot_dimension_numbers<[1], [0], [0], [1], [0, 0, 1, 1], [], []>} : vector<64x8xbf16>, vector<8x128xbf16>, vector<64x128xf32> -> vector<64x128xf32>
      %606 = arith.addf %600, %605 : vector<64x128xf32>
      %607 = vector.extract_strided_slice %560 {offsets = [1, 0, 0], sizes = [8, 8, 8], strides = [1, 1, 1]} : vector<9x9x8xbf16> to vector<8x8x8xbf16>
      %608 = vector.shape_cast %607 : vector<8x8x8xbf16> to vector<64x8xbf16>
      %c25_471 = arith.constant 25 : index
      %c0_472 = arith.constant 0 : index
      %c0_473 = arith.constant 0 : index
      %609 = vector.load %arg6[%c25_471, %c0_472, %c0_473] : memref<27x8x128xbf16, #tpu.memory_space<vmem>>, vector<1x8x128xbf16>
      %610 = vector.shape_cast %609 : vector<1x8x128xbf16> to vector<8x128xbf16>
      %cst_474 = arith.constant dense<0.000000e+00> : vector<64x128xf32>
      %611 = tpu.matmul %608, %610, %cst_474 {dimension_numbers = #tpu.dot_dimension_numbers<[1], [0], [0], [1], [0, 0, 1, 1], [], []>} : vector<64x8xbf16>, vector<8x128xbf16>, vector<64x128xf32> -> vector<64x128xf32>
      %612 = arith.addf %606, %611 : vector<64x128xf32>
      %613 = vector.extract_strided_slice %558 {offsets = [1, 1, 0], sizes = [8, 8, 8], strides = [1, 1, 1]} : vector<9x9x8xbf16> to vector<8x8x8xbf16>
      %614 = vector.shape_cast %613 : vector<8x8x8xbf16> to vector<64x8xbf16>
      %c26_475 = arith.constant 26 : index
      %c0_476 = arith.constant 0 : index
      %c0_477 = arith.constant 0 : index
      %615 = vector.load %arg6[%c26_475, %c0_476, %c0_477] : memref<27x8x128xbf16, #tpu.memory_space<vmem>>, vector<1x8x128xbf16>
      %616 = vector.shape_cast %615 : vector<1x8x128xbf16> to vector<8x128xbf16>
      %cst_478 = arith.constant dense<0.000000e+00> : vector<64x128xf32>
      %617 = tpu.matmul %614, %616, %cst_478 {dimension_numbers = #tpu.dot_dimension_numbers<[1], [0], [0], [1], [0, 0, 1, 1], [], []>} : vector<64x8xbf16>, vector<8x128xbf16>, vector<64x128xf32> -> vector<64x128xf32>
      %618 = arith.addf %612, %617 : vector<64x128xf32>
      %cst_479 = arith.constant 0.000000e+00 : f32
      %619 = vector.broadcast %cst_479 : f32 to vector<64x128xf32>
      %620 = arith.maximumf %618, %619 : vector<64x128xf32>
      %621 = vector.shape_cast %620 : vector<64x128xf32> to vector<8x8x128xf32>
      %622 = arith.truncf %621 : vector<8x8x128xf32> to vector<8x8x128xbf16>
      %c2_480 = arith.constant 2 : index
      %c1_481 = arith.constant 1 : index
      %c1_482 = arith.constant 1 : index
      %c0_483 = arith.constant 0 : index
      %623 = vector.load %arg13[%c2_480, %c1_481, %c1_482, %c0_483] : memref<3x10x10x128xbf16, #tpu.memory_space<vmem>>, vector<1x8x8x128xbf16>
      %624 = vector.shape_cast %623 : vector<1x8x8x128xbf16> to vector<8x8x128xbf16>
      %625 = vector.shape_cast %622 : vector<8x8x128xbf16> to vector<1x8x8x128xbf16>
      tpu.vector_store %arg13[%c2_480, %c1_481, %c1_482, %c0_483], %625 {strides = array<i32>} : memref<3x10x10x128xbf16, #tpu.memory_space<vmem>>, vector<1x8x8x128xbf16>,
    } else {
    }
    %c0_i32_1 = arith.constant 0 : i32
    %3 = arith.cmpi sgt, %arg1, %c0_i32_1 : i32
    %c3_i32 = arith.constant 3 : i32
    %4 = arith.cmpi slt, %arg1, %c3_i32 : i32
    %5 = arith.andi %3, %4 : i1
    %6 = arith.extui %5 : i1 to i32
    %c0_i32_2 = arith.constant 0 : i32
    %7 = arith.cmpi ne, %6, %c0_i32_2 : i32
    scf.if %7 {
      %c1_i32_129 = arith.constant 1 : i32
      %232 = arith.addi %arg1, %c1_i32_129 : i32
      %c2_i32_130 = arith.constant 2 : i32
      %233 = arith.addi %arg1, %c2_i32_130 : i32
      %c3_i32_131 = arith.constant 3 : i32
      %c0_i32_132 = arith.constant 0 : i32
      %234 = arith.cmpi eq, %c3_i32_131, %c0_i32_132 : i32
      %c1_i32_133 = arith.constant 1 : i32
      %235 = arith.select %234, %c1_i32_133, %c3_i32_131 : i32
      %236 = arith.remsi %233, %235 : i32
      %c0_i32_134 = arith.constant 0 : i32
      %237 = arith.cmpi ne, %236, %c0_i32_134 : i32
      %c0_i32_135 = arith.constant 0 : i32
      %238 = arith.cmpi slt, %236, %c0_i32_135 : i32
      %c0_i32_136 = arith.constant 0 : i32
      %239 = arith.cmpi slt, %235, %c0_i32_136 : i32
      %240 = arith.xori %238, %239 : i1
      %241 = arith.andi %240, %237 : i1
      %242 = arith.addi %236, %235 : i32
      %243 = arith.select %241, %242, %236 : i32
      %c0_137 = arith.constant 0 : index
      %c0_138 = arith.constant 0 : index
      %244 = vector.load %arg7[%c0_137, %c0_138] : memref<1x128xf32, #tpu.memory_space<vmem>>, vector<1x128xf32>
      %245 = vector.shape_cast %244 : vector<1x128xf32> to vector<1x128xf32>
      %246 = vector.broadcast %245 : vector<1x128xf32> to vector<64x128xf32>
      %c0_i32_139 = arith.constant 0 : i32
      %247 = arith.addi %232, %c0_i32_139 : i32
      %c0_140 = arith.constant 0 : index
      %248 = arith.index_cast %247 : i32 to index
      %c0_141 = arith.constant 0 : index
      %c0_142 = arith.constant 0 : index
      %c0_143 = arith.constant 0 : index
      %249 = vector.load %arg2[%c0_140, %248, %c0_141, %c0_142, %c0_143] : memref<1x6x9x9x8xbf16, #tpu.memory_space<vmem>>, vector<1x1x9x9x8xbf16>
      %250 = vector.shape_cast %249 : vector<1x1x9x9x8xbf16> to vector<9x9x8xbf16>
      %c0_i32_144 = arith.constant 0 : i32
      %251 = arith.addi %232, %c0_i32_144 : i32
      %c0_145 = arith.constant 0 : index
      %252 = arith.index_cast %251 : i32 to index
      %c0_146 = arith.constant 0 : index
      %c0_147 = arith.constant 0 : index
      %c0_148 = arith.constant 0 : index
      %253 = vector.load %arg3[%c0_145, %252, %c0_146, %c0_147, %c0_148] : memref<1x6x9x9x8xbf16, #tpu.memory_space<vmem>>, vector<1x1x9x9x8xbf16>
      %254 = vector.shape_cast %253 : vector<1x1x9x9x8xbf16> to vector<9x9x8xbf16>
      %c0_i32_149 = arith.constant 0 : i32
      %255 = arith.addi %232, %c0_i32_149 : i32
      %c0_150 = arith.constant 0 : index
      %256 = arith.index_cast %255 : i32 to index
      %c0_151 = arith.constant 0 : index
      %c0_152 = arith.constant 0 : index
      %c0_153 = arith.constant 0 : index
      %257 = vector.load %arg4[%c0_150, %256, %c0_151, %c0_152, %c0_153] : memref<1x6x9x9x8xbf16, #tpu.memory_space<vmem>>, vector<1x1x9x9x8xbf16>
      %258 = vector.shape_cast %257 : vector<1x1x9x9x8xbf16> to vector<9x9x8xbf16>
      %c0_i32_154 = arith.constant 0 : i32
      %259 = arith.addi %232, %c0_i32_154 : i32
      %c0_155 = arith.constant 0 : index
      %260 = arith.index_cast %259 : i32 to index
      %c0_156 = arith.constant 0 : index
      %c0_157 = arith.constant 0 : index
      %c0_158 = arith.constant 0 : index
      %261 = vector.load %arg5[%c0_155, %260, %c0_156, %c0_157, %c0_158] : memref<1x6x9x9x8xbf16, #tpu.memory_space<vmem>>, vector<1x1x9x9x8xbf16>
      %262 = vector.shape_cast %261 : vector<1x1x9x9x8xbf16> to vector<9x9x8xbf16>
      %263 = vector.extract_strided_slice %250 {offsets = [0, 0, 0], sizes = [8, 8, 8], strides = [1, 1, 1]} : vector<9x9x8xbf16> to vector<8x8x8xbf16>
      %264 = vector.shape_cast %263 : vector<8x8x8xbf16> to vector<64x8xbf16>
      %c0_159 = arith.constant 0 : index
      %c0_160 = arith.constant 0 : index
      %c0_161 = arith.constant 0 : index
      %265 = vector.load %arg6[%c0_159, %c0_160, %c0_161] : memref<27x8x128xbf16, #tpu.memory_space<vmem>>, vector<1x8x128xbf16>
      %266 = vector.shape_cast %265 : vector<1x8x128xbf16> to vector<8x128xbf16>
      %cst_162 = arith.constant dense<0.000000e+00> : vector<64x128xf32>
      %267 = tpu.matmul %264, %266, %cst_162 {dimension_numbers = #tpu.dot_dimension_numbers<[1], [0], [0], [1], [0, 0, 1, 1], [], []>} : vector<64x8xbf16>, vector<8x128xbf16>, vector<64x128xf32> -> vector<64x128xf32>
      %268 = arith.addf %246, %267 : vector<64x128xf32>
      %269 = vector.extract_strided_slice %254 {offsets = [0, 0, 0], sizes = [8, 8, 8], strides = [1, 1, 1]} : vector<9x9x8xbf16> to vector<8x8x8xbf16>
      %270 = vector.shape_cast %269 : vector<8x8x8xbf16> to vector<64x8xbf16>
      %c1_163 = arith.constant 1 : index
      %c0_164 = arith.constant 0 : index
      %c0_165 = arith.constant 0 : index
      %271 = vector.load %arg6[%c1_163, %c0_164, %c0_165] : memref<27x8x128xbf16, #tpu.memory_space<vmem>>, vector<1x8x128xbf16>
      %272 = vector.shape_cast %271 : vector<1x8x128xbf16> to vector<8x128xbf16>
      %cst_166 = arith.constant dense<0.000000e+00> : vector<64x128xf32>
      %273 = tpu.matmul %270, %272, %cst_166 {dimension_numbers = #tpu.dot_dimension_numbers<[1], [0], [0], [1], [0, 0, 1, 1], [], []>} : vector<64x8xbf16>, vector<8x128xbf16>, vector<64x128xf32> -> vector<64x128xf32>
      %274 = arith.addf %268, %273 : vector<64x128xf32>
      %275 = vector.extract_strided_slice %250 {offsets = [0, 1, 0], sizes = [8, 8, 8], strides = [1, 1, 1]} : vector<9x9x8xbf16> to vector<8x8x8xbf16>
      %276 = vector.shape_cast %275 : vector<8x8x8xbf16> to vector<64x8xbf16>
      %c2_167 = arith.constant 2 : index
      %c0_168 = arith.constant 0 : index
      %c0_169 = arith.constant 0 : index
      %277 = vector.load %arg6[%c2_167, %c0_168, %c0_169] : memref<27x8x128xbf16, #tpu.memory_space<vmem>>, vector<1x8x128xbf16>
      %278 = vector.shape_cast %277 : vector<1x8x128xbf16> to vector<8x128xbf16>
      %cst_170 = arith.constant dense<0.000000e+00> : vector<64x128xf32>
      %279 = tpu.matmul %276, %278, %cst_170 {dimension_numbers = #tpu.dot_dimension_numbers<[1], [0], [0], [1], [0, 0, 1, 1], [], []>} : vector<64x8xbf16>, vector<8x128xbf16>, vector<64x128xf32> -> vector<64x128xf32>
      %280 = arith.addf %274, %279 : vector<64x128xf32>
      %281 = vector.extract_strided_slice %258 {offsets = [0, 0, 0], sizes = [8, 8, 8], strides = [1, 1, 1]} : vector<9x9x8xbf16> to vector<8x8x8xbf16>
      %282 = vector.shape_cast %281 : vector<8x8x8xbf16> to vector<64x8xbf16>
      %c3_171 = arith.constant 3 : index
      %c0_172 = arith.constant 0 : index
      %c0_173 = arith.constant 0 : index
      %283 = vector.load %arg6[%c3_171, %c0_172, %c0_173] : memref<27x8x128xbf16, #tpu.memory_space<vmem>>, vector<1x8x128xbf16>
      %284 = vector.shape_cast %283 : vector<1x8x128xbf16> to vector<8x128xbf16>
      %cst_174 = arith.constant dense<0.000000e+00> : vector<64x128xf32>
      %285 = tpu.matmul %282, %284, %cst_174 {dimension_numbers = #tpu.dot_dimension_numbers<[1], [0], [0], [1], [0, 0, 1, 1], [], []>} : vector<64x8xbf16>, vector<8x128xbf16>, vector<64x128xf32> -> vector<64x128xf32>
      %286 = arith.addf %280, %285 : vector<64x128xf32>
      %287 = vector.extract_strided_slice %262 {offsets = [0, 0, 0], sizes = [8, 8, 8], strides = [1, 1, 1]} : vector<9x9x8xbf16> to vector<8x8x8xbf16>
      %288 = vector.shape_cast %287 : vector<8x8x8xbf16> to vector<64x8xbf16>
      %c4_175 = arith.constant 4 : index
      %c0_176 = arith.constant 0 : index
      %c0_177 = arith.constant 0 : index
      %289 = vector.load %arg6[%c4_175, %c0_176, %c0_177] : memref<27x8x128xbf16, #tpu.memory_space<vmem>>, vector<1x8x128xbf16>
      %290 = vector.shape_cast %289 : vector<1x8x128xbf16> to vector<8x128xbf16>
      %cst_178 = arith.constant dense<0.000000e+00> : vector<64x128xf32>
      %291 = tpu.matmul %288, %290, %cst_178 {dimension_numbers = #tpu.dot_dimension_numbers<[1], [0], [0], [1], [0, 0, 1, 1], [], []>} : vector<64x8xbf16>, vector<8x128xbf16>, vector<64x128xf32> -> vector<64x128xf32>
      %292 = arith.addf %286, %291 : vector<64x128xf32>
      %293 = vector.extract_strided_slice %258 {offsets = [0, 1, 0], sizes = [8, 8, 8], strides = [1, 1, 1]} : vector<9x9x8xbf16> to vector<8x8x8xbf16>
      %294 = vector.shape_cast %293 : vector<8x8x8xbf16> to vector<64x8xbf16>
      %c5_179 = arith.constant 5 : index
      %c0_180 = arith.constant 0 : index
      %c0_181 = arith.constant 0 : index
      %295 = vector.load %arg6[%c5_179, %c0_180, %c0_181] : memref<27x8x128xbf16, #tpu.memory_space<vmem>>, vector<1x8x128xbf16>
      %296 = vector.shape_cast %295 : vector<1x8x128xbf16> to vector<8x128xbf16>
      %cst_182 = arith.constant dense<0.000000e+00> : vector<64x128xf32>
      %297 = tpu.matmul %294, %296, %cst_182 {dimension_numbers = #tpu.dot_dimension_numbers<[1], [0], [0], [1], [0, 0, 1, 1], [], []>} : vector<64x8xbf16>, vector<8x128xbf16>, vector<64x128xf32> -> vector<64x128xf32>
      %298 = arith.addf %292, %297 : vector<64x128xf32>
      %299 = vector.extract_strided_slice %250 {offsets = [1, 0, 0], sizes = [8, 8, 8], strides = [1, 1, 1]} : vector<9x9x8xbf16> to vector<8x8x8xbf16>
      %300 = vector.shape_cast %299 : vector<8x8x8xbf16> to vector<64x8xbf16>
      %c6_183 = arith.constant 6 : index
      %c0_184 = arith.constant 0 : index
      %c0_185 = arith.constant 0 : index
      %301 = vector.load %arg6[%c6_183, %c0_184, %c0_185] : memref<27x8x128xbf16, #tpu.memory_space<vmem>>, vector<1x8x128xbf16>
      %302 = vector.shape_cast %301 : vector<1x8x128xbf16> to vector<8x128xbf16>
      %cst_186 = arith.constant dense<0.000000e+00> : vector<64x128xf32>
      %303 = tpu.matmul %300, %302, %cst_186 {dimension_numbers = #tpu.dot_dimension_numbers<[1], [0], [0], [1], [0, 0, 1, 1], [], []>} : vector<64x8xbf16>, vector<8x128xbf16>, vector<64x128xf32> -> vector<64x128xf32>
      %304 = arith.addf %298, %303 : vector<64x128xf32>
      %305 = vector.extract_strided_slice %254 {offsets = [1, 0, 0], sizes = [8, 8, 8], strides = [1, 1, 1]} : vector<9x9x8xbf16> to vector<8x8x8xbf16>
      %306 = vector.shape_cast %305 : vector<8x8x8xbf16> to vector<64x8xbf16>
      %c7_187 = arith.constant 7 : index
      %c0_188 = arith.constant 0 : index
      %c0_189 = arith.constant 0 : index
      %307 = vector.load %arg6[%c7_187, %c0_188, %c0_189] : memref<27x8x128xbf16, #tpu.memory_space<vmem>>, vector<1x8x128xbf16>
      %308 = vector.shape_cast %307 : vector<1x8x128xbf16> to vector<8x128xbf16>
      %cst_190 = arith.constant dense<0.000000e+00> : vector<64x128xf32>
      %309 = tpu.matmul %306, %308, %cst_190 {dimension_numbers = #tpu.dot_dimension_numbers<[1], [0], [0], [1], [0, 0, 1, 1], [], []>} : vector<64x8xbf16>, vector<8x128xbf16>, vector<64x128xf32> -> vector<64x128xf32>
      %310 = arith.addf %304, %309 : vector<64x128xf32>
      %311 = vector.extract_strided_slice %250 {offsets = [1, 1, 0], sizes = [8, 8, 8], strides = [1, 1, 1]} : vector<9x9x8xbf16> to vector<8x8x8xbf16>
      %312 = vector.shape_cast %311 : vector<8x8x8xbf16> to vector<64x8xbf16>
      %c8_191 = arith.constant 8 : index
      %c0_192 = arith.constant 0 : index
      %c0_193 = arith.constant 0 : index
      %313 = vector.load %arg6[%c8_191, %c0_192, %c0_193] : memref<27x8x128xbf16, #tpu.memory_space<vmem>>, vector<1x8x128xbf16>
      %314 = vector.shape_cast %313 : vector<1x8x128xbf16> to vector<8x128xbf16>
      %cst_194 = arith.constant dense<0.000000e+00> : vector<64x128xf32>
      %315 = tpu.matmul %312, %314, %cst_194 {dimension_numbers = #tpu.dot_dimension_numbers<[1], [0], [0], [1], [0, 0, 1, 1], [], []>} : vector<64x8xbf16>, vector<8x128xbf16>, vector<64x128xf32> -> vector<64x128xf32>
      %316 = arith.addf %310, %315 : vector<64x128xf32>
      %c1_i32_195 = arith.constant 1 : i32
      %317 = arith.addi %232, %c1_i32_195 : i32
      %c0_196 = arith.constant 0 : index
      %318 = arith.index_cast %317 : i32 to index
      %c0_197 = arith.constant 0 : index
      %c0_198 = arith.constant 0 : index
      %c0_199 = arith.constant 0 : index
      %319 = vector.load %arg2[%c0_196, %318, %c0_197, %c0_198, %c0_199] : memref<1x6x9x9x8xbf16, #tpu.memory_space<vmem>>, vector<1x1x9x9x8xbf16>
      %320 = vector.shape_cast %319 : vector<1x1x9x9x8xbf16> to vector<9x9x8xbf16>
      %c1_i32_200 = arith.constant 1 : i32
      %321 = arith.addi %232, %c1_i32_200 : i32
      %c0_201 = arith.constant 0 : index
      %322 = arith.index_cast %321 : i32 to index
      %c0_202 = arith.constant 0 : index
      %c0_203 = arith.constant 0 : index
      %c0_204 = arith.constant 0 : index
      %323 = vector.load %arg3[%c0_201, %322, %c0_202, %c0_203, %c0_204] : memref<1x6x9x9x8xbf16, #tpu.memory_space<vmem>>, vector<1x1x9x9x8xbf16>
      %324 = vector.shape_cast %323 : vector<1x1x9x9x8xbf16> to vector<9x9x8xbf16>
      %c1_i32_205 = arith.constant 1 : i32
      %325 = arith.addi %232, %c1_i32_205 : i32
      %c0_206 = arith.constant 0 : index
      %326 = arith.index_cast %325 : i32 to index
      %c0_207 = arith.constant 0 : index
      %c0_208 = arith.constant 0 : index
      %c0_209 = arith.constant 0 : index
      %327 = vector.load %arg4[%c0_206, %326, %c0_207, %c0_208, %c0_209] : memref<1x6x9x9x8xbf16, #tpu.memory_space<vmem>>, vector<1x1x9x9x8xbf16>
      %328 = vector.shape_cast %327 : vector<1x1x9x9x8xbf16> to vector<9x9x8xbf16>
      %c1_i32_210 = arith.constant 1 : i32
      %329 = arith.addi %232, %c1_i32_210 : i32
      %c0_211 = arith.constant 0 : index
      %330 = arith.index_cast %329 : i32 to index
      %c0_212 = arith.constant 0 : index
      %c0_213 = arith.constant 0 : index
      %c0_214 = arith.constant 0 : index
      %331 = vector.load %arg5[%c0_211, %330, %c0_212, %c0_213, %c0_214] : memref<1x6x9x9x8xbf16, #tpu.memory_space<vmem>>, vector<1x1x9x9x8xbf16>
      %332 = vector.shape_cast %331 : vector<1x1x9x9x8xbf16> to vector<9x9x8xbf16>
      %333 = vector.extract_strided_slice %320 {offsets = [0, 0, 0], sizes = [8, 8, 8], strides = [1, 1, 1]} : vector<9x9x8xbf16> to vector<8x8x8xbf16>
      %334 = vector.shape_cast %333 : vector<8x8x8xbf16> to vector<64x8xbf16>
      %c9_215 = arith.constant 9 : index
      %c0_216 = arith.constant 0 : index
      %c0_217 = arith.constant 0 : index
      %335 = vector.load %arg6[%c9_215, %c0_216, %c0_217] : memref<27x8x128xbf16, #tpu.memory_space<vmem>>, vector<1x8x128xbf16>
      %336 = vector.shape_cast %335 : vector<1x8x128xbf16> to vector<8x128xbf16>
      %cst_218 = arith.constant dense<0.000000e+00> : vector<64x128xf32>
      %337 = tpu.matmul %334, %336, %cst_218 {dimension_numbers = #tpu.dot_dimension_numbers<[1], [0], [0], [1], [0, 0, 1, 1], [], []>} : vector<64x8xbf16>, vector<8x128xbf16>, vector<64x128xf32> -> vector<64x128xf32>
      %338 = arith.addf %316, %337 : vector<64x128xf32>
      %339 = vector.extract_strided_slice %324 {offsets = [0, 0, 0], sizes = [8, 8, 8], strides = [1, 1, 1]} : vector<9x9x8xbf16> to vector<8x8x8xbf16>
      %340 = vector.shape_cast %339 : vector<8x8x8xbf16> to vector<64x8xbf16>
      %c10_219 = arith.constant 10 : index
      %c0_220 = arith.constant 0 : index
      %c0_221 = arith.constant 0 : index
      %341 = vector.load %arg6[%c10_219, %c0_220, %c0_221] : memref<27x8x128xbf16, #tpu.memory_space<vmem>>, vector<1x8x128xbf16>
      %342 = vector.shape_cast %341 : vector<1x8x128xbf16> to vector<8x128xbf16>
      %cst_222 = arith.constant dense<0.000000e+00> : vector<64x128xf32>
      %343 = tpu.matmul %340, %342, %cst_222 {dimension_numbers = #tpu.dot_dimension_numbers<[1], [0], [0], [1], [0, 0, 1, 1], [], []>} : vector<64x8xbf16>, vector<8x128xbf16>, vector<64x128xf32> -> vector<64x128xf32>
      %344 = arith.addf %338, %343 : vector<64x128xf32>
      %345 = vector.extract_strided_slice %320 {offsets = [0, 1, 0], sizes = [8, 8, 8], strides = [1, 1, 1]} : vector<9x9x8xbf16> to vector<8x8x8xbf16>
      %346 = vector.shape_cast %345 : vector<8x8x8xbf16> to vector<64x8xbf16>
      %c11_223 = arith.constant 11 : index
      %c0_224 = arith.constant 0 : index
      %c0_225 = arith.constant 0 : index
      %347 = vector.load %arg6[%c11_223, %c0_224, %c0_225] : memref<27x8x128xbf16, #tpu.memory_space<vmem>>, vector<1x8x128xbf16>
      %348 = vector.shape_cast %347 : vector<1x8x128xbf16> to vector<8x128xbf16>
      %cst_226 = arith.constant dense<0.000000e+00> : vector<64x128xf32>
      %349 = tpu.matmul %346, %348, %cst_226 {dimension_numbers = #tpu.dot_dimension_numbers<[1], [0], [0], [1], [0, 0, 1, 1], [], []>} : vector<64x8xbf16>, vector<8x128xbf16>, vector<64x128xf32> -> vector<64x128xf32>
      %350 = arith.addf %344, %349 : vector<64x128xf32>
      %351 = vector.extract_strided_slice %328 {offsets = [0, 0, 0], sizes = [8, 8, 8], strides = [1, 1, 1]} : vector<9x9x8xbf16> to vector<8x8x8xbf16>
      %352 = vector.shape_cast %351 : vector<8x8x8xbf16> to vector<64x8xbf16>
      %c12_227 = arith.constant 12 : index
      %c0_228 = arith.constant 0 : index
      %c0_229 = arith.constant 0 : index
      %353 = vector.load %arg6[%c12_227, %c0_228, %c0_229] : memref<27x8x128xbf16, #tpu.memory_space<vmem>>, vector<1x8x128xbf16>
      %354 = vector.shape_cast %353 : vector<1x8x128xbf16> to vector<8x128xbf16>
      %cst_230 = arith.constant dense<0.000000e+00> : vector<64x128xf32>
      %355 = tpu.matmul %352, %354, %cst_230 {dimension_numbers = #tpu.dot_dimension_numbers<[1], [0], [0], [1], [0, 0, 1, 1], [], []>} : vector<64x8xbf16>, vector<8x128xbf16>, vector<64x128xf32> -> vector<64x128xf32>
      %356 = arith.addf %350, %355 : vector<64x128xf32>
      %357 = vector.extract_strided_slice %332 {offsets = [0, 0, 0], sizes = [8, 8, 8], strides = [1, 1, 1]} : vector<9x9x8xbf16> to vector<8x8x8xbf16>
      %358 = vector.shape_cast %357 : vector<8x8x8xbf16> to vector<64x8xbf16>
      %c13_231 = arith.constant 13 : index
      %c0_232 = arith.constant 0 : index
      %c0_233 = arith.constant 0 : index
      %359 = vector.load %arg6[%c13_231, %c0_232, %c0_233] : memref<27x8x128xbf16, #tpu.memory_space<vmem>>, vector<1x8x128xbf16>
      %360 = vector.shape_cast %359 : vector<1x8x128xbf16> to vector<8x128xbf16>
      %cst_234 = arith.constant dense<0.000000e+00> : vector<64x128xf32>
      %361 = tpu.matmul %358, %360, %cst_234 {dimension_numbers = #tpu.dot_dimension_numbers<[1], [0], [0], [1], [0, 0, 1, 1], [], []>} : vector<64x8xbf16>, vector<8x128xbf16>, vector<64x128xf32> -> vector<64x128xf32>
      %362 = arith.addf %356, %361 : vector<64x128xf32>
      %363 = vector.extract_strided_slice %328 {offsets = [0, 1, 0], sizes = [8, 8, 8], strides = [1, 1, 1]} : vector<9x9x8xbf16> to vector<8x8x8xbf16>
      %364 = vector.shape_cast %363 : vector<8x8x8xbf16> to vector<64x8xbf16>
      %c14_235 = arith.constant 14 : index
      %c0_236 = arith.constant 0 : index
      %c0_237 = arith.constant 0 : index
      %365 = vector.load %arg6[%c14_235, %c0_236, %c0_237] : memref<27x8x128xbf16, #tpu.memory_space<vmem>>, vector<1x8x128xbf16>
      %366 = vector.shape_cast %365 : vector<1x8x128xbf16> to vector<8x128xbf16>
      %cst_238 = arith.constant dense<0.000000e+00> : vector<64x128xf32>
      %367 = tpu.matmul %364, %366, %cst_238 {dimension_numbers = #tpu.dot_dimension_numbers<[1], [0], [0], [1], [0, 0, 1, 1], [], []>} : vector<64x8xbf16>, vector<8x128xbf16>, vector<64x128xf32> -> vector<64x128xf32>
      %368 = arith.addf %362, %367 : vector<64x128xf32>
      %369 = vector.extract_strided_slice %320 {offsets = [1, 0, 0], sizes = [8, 8, 8], strides = [1, 1, 1]} : vector<9x9x8xbf16> to vector<8x8x8xbf16>
      %370 = vector.shape_cast %369 : vector<8x8x8xbf16> to vector<64x8xbf16>
      %c15_239 = arith.constant 15 : index
      %c0_240 = arith.constant 0 : index
      %c0_241 = arith.constant 0 : index
      %371 = vector.load %arg6[%c15_239, %c0_240, %c0_241] : memref<27x8x128xbf16, #tpu.memory_space<vmem>>, vector<1x8x128xbf16>
      %372 = vector.shape_cast %371 : vector<1x8x128xbf16> to vector<8x128xbf16>
      %cst_242 = arith.constant dense<0.000000e+00> : vector<64x128xf32>
      %373 = tpu.matmul %370, %372, %cst_242 {dimension_numbers = #tpu.dot_dimension_numbers<[1], [0], [0], [1], [0, 0, 1, 1], [], []>} : vector<64x8xbf16>, vector<8x128xbf16>, vector<64x128xf32> -> vector<64x128xf32>
      %374 = arith.addf %368, %373 : vector<64x128xf32>
      %375 = vector.extract_strided_slice %324 {offsets = [1, 0, 0], sizes = [8, 8, 8], strides = [1, 1, 1]} : vector<9x9x8xbf16> to vector<8x8x8xbf16>
      %376 = vector.shape_cast %375 : vector<8x8x8xbf16> to vector<64x8xbf16>
      %c16_243 = arith.constant 16 : index
      %c0_244 = arith.constant 0 : index
      %c0_245 = arith.constant 0 : index
      %377 = vector.load %arg6[%c16_243, %c0_244, %c0_245] : memref<27x8x128xbf16, #tpu.memory_space<vmem>>, vector<1x8x128xbf16>
      %378 = vector.shape_cast %377 : vector<1x8x128xbf16> to vector<8x128xbf16>
      %cst_246 = arith.constant dense<0.000000e+00> : vector<64x128xf32>
      %379 = tpu.matmul %376, %378, %cst_246 {dimension_numbers = #tpu.dot_dimension_numbers<[1], [0], [0], [1], [0, 0, 1, 1], [], []>} : vector<64x8xbf16>, vector<8x128xbf16>, vector<64x128xf32> -> vector<64x128xf32>
      %380 = arith.addf %374, %379 : vector<64x128xf32>
      %381 = vector.extract_strided_slice %320 {offsets = [1, 1, 0], sizes = [8, 8, 8], strides = [1, 1, 1]} : vector<9x9x8xbf16> to vector<8x8x8xbf16>
      %382 = vector.shape_cast %381 : vector<8x8x8xbf16> to vector<64x8xbf16>
      %c17_247 = arith.constant 17 : index
      %c0_248 = arith.constant 0 : index
      %c0_249 = arith.constant 0 : index
      %383 = vector.load %arg6[%c17_247, %c0_248, %c0_249] : memref<27x8x128xbf16, #tpu.memory_space<vmem>>, vector<1x8x128xbf16>
      %384 = vector.shape_cast %383 : vector<1x8x128xbf16> to vector<8x128xbf16>
      %cst_250 = arith.constant dense<0.000000e+00> : vector<64x128xf32>
      %385 = tpu.matmul %382, %384, %cst_250 {dimension_numbers = #tpu.dot_dimension_numbers<[1], [0], [0], [1], [0, 0, 1, 1], [], []>} : vector<64x8xbf16>, vector<8x128xbf16>, vector<64x128xf32> -> vector<64x128xf32>
      %386 = arith.addf %380, %385 : vector<64x128xf32>
      %c2_i32_251 = arith.constant 2 : i32
      %387 = arith.addi %232, %c2_i32_251 : i32
      %c0_252 = arith.constant 0 : index
      %388 = arith.index_cast %387 : i32 to index
      %c0_253 = arith.constant 0 : index
      %c0_254 = arith.constant 0 : index
      %c0_255 = arith.constant 0 : index
      %389 = vector.load %arg2[%c0_252, %388, %c0_253, %c0_254, %c0_255] : memref<1x6x9x9x8xbf16, #tpu.memory_space<vmem>>, vector<1x1x9x9x8xbf16>
      %390 = vector.shape_cast %389 : vector<1x1x9x9x8xbf16> to vector<9x9x8xbf16>
      %c2_i32_256 = arith.constant 2 : i32
      %391 = arith.addi %232, %c2_i32_256 : i32
      %c0_257 = arith.constant 0 : index
      %392 = arith.index_cast %391 : i32 to index
      %c0_258 = arith.constant 0 : index
      %c0_259 = arith.constant 0 : index
      %c0_260 = arith.constant 0 : index
      %393 = vector.load %arg3[%c0_257, %392, %c0_258, %c0_259, %c0_260] : memref<1x6x9x9x8xbf16, #tpu.memory_space<vmem>>, vector<1x1x9x9x8xbf16>
      %394 = vector.shape_cast %393 : vector<1x1x9x9x8xbf16> to vector<9x9x8xbf16>
      %c2_i32_261 = arith.constant 2 : i32
      %395 = arith.addi %232, %c2_i32_261 : i32
      %c0_262 = arith.constant 0 : index
      %396 = arith.index_cast %395 : i32 to index
      %c0_263 = arith.constant 0 : index
      %c0_264 = arith.constant 0 : index
      %c0_265 = arith.constant 0 : index
      %397 = vector.load %arg4[%c0_262, %396, %c0_263, %c0_264, %c0_265] : memref<1x6x9x9x8xbf16, #tpu.memory_space<vmem>>, vector<1x1x9x9x8xbf16>
      %398 = vector.shape_cast %397 : vector<1x1x9x9x8xbf16> to vector<9x9x8xbf16>
      %c2_i32_266 = arith.constant 2 : i32
      %399 = arith.addi %232, %c2_i32_266 : i32
      %c0_267 = arith.constant 0 : index
      %400 = arith.index_cast %399 : i32 to index
      %c0_268 = arith.constant 0 : index
      %c0_269 = arith.constant 0 : index
      %c0_270 = arith.constant 0 : index
      %401 = vector.load %arg5[%c0_267, %400, %c0_268, %c0_269, %c0_270] : memref<1x6x9x9x8xbf16, #tpu.memory_space<vmem>>, vector<1x1x9x9x8xbf16>
      %402 = vector.shape_cast %401 : vector<1x1x9x9x8xbf16> to vector<9x9x8xbf16>
      %403 = vector.extract_strided_slice %390 {offsets = [0, 0, 0], sizes = [8, 8, 8], strides = [1, 1, 1]} : vector<9x9x8xbf16> to vector<8x8x8xbf16>
      %404 = vector.shape_cast %403 : vector<8x8x8xbf16> to vector<64x8xbf16>
      %c18_271 = arith.constant 18 : index
      %c0_272 = arith.constant 0 : index
      %c0_273 = arith.constant 0 : index
      %405 = vector.load %arg6[%c18_271, %c0_272, %c0_273] : memref<27x8x128xbf16, #tpu.memory_space<vmem>>, vector<1x8x128xbf16>
      %406 = vector.shape_cast %405 : vector<1x8x128xbf16> to vector<8x128xbf16>
      %cst_274 = arith.constant dense<0.000000e+00> : vector<64x128xf32>
      %407 = tpu.matmul %404, %406, %cst_274 {dimension_numbers = #tpu.dot_dimension_numbers<[1], [0], [0], [1], [0, 0, 1, 1], [], []>} : vector<64x8xbf16>, vector<8x128xbf16>, vector<64x128xf32> -> vector<64x128xf32>
      %408 = arith.addf %386, %407 : vector<64x128xf32>
      %409 = vector.extract_strided_slice %394 {offsets = [0, 0, 0], sizes = [8, 8, 8], strides = [1, 1, 1]} : vector<9x9x8xbf16> to vector<8x8x8xbf16>
      %410 = vector.shape_cast %409 : vector<8x8x8xbf16> to vector<64x8xbf16>
      %c19_275 = arith.constant 19 : index
      %c0_276 = arith.constant 0 : index
      %c0_277 = arith.constant 0 : index
      %411 = vector.load %arg6[%c19_275, %c0_276, %c0_277] : memref<27x8x128xbf16, #tpu.memory_space<vmem>>, vector<1x8x128xbf16>
      %412 = vector.shape_cast %411 : vector<1x8x128xbf16> to vector<8x128xbf16>
      %cst_278 = arith.constant dense<0.000000e+00> : vector<64x128xf32>
      %413 = tpu.matmul %410, %412, %cst_278 {dimension_numbers = #tpu.dot_dimension_numbers<[1], [0], [0], [1], [0, 0, 1, 1], [], []>} : vector<64x8xbf16>, vector<8x128xbf16>, vector<64x128xf32> -> vector<64x128xf32>
      %414 = arith.addf %408, %413 : vector<64x128xf32>
      %415 = vector.extract_strided_slice %390 {offsets = [0, 1, 0], sizes = [8, 8, 8], strides = [1, 1, 1]} : vector<9x9x8xbf16> to vector<8x8x8xbf16>
      %416 = vector.shape_cast %415 : vector<8x8x8xbf16> to vector<64x8xbf16>
      %c20_279 = arith.constant 20 : index
      %c0_280 = arith.constant 0 : index
      %c0_281 = arith.constant 0 : index
      %417 = vector.load %arg6[%c20_279, %c0_280, %c0_281] : memref<27x8x128xbf16, #tpu.memory_space<vmem>>, vector<1x8x128xbf16>
      %418 = vector.shape_cast %417 : vector<1x8x128xbf16> to vector<8x128xbf16>
      %cst_282 = arith.constant dense<0.000000e+00> : vector<64x128xf32>
      %419 = tpu.matmul %416, %418, %cst_282 {dimension_numbers = #tpu.dot_dimension_numbers<[1], [0], [0], [1], [0, 0, 1, 1], [], []>} : vector<64x8xbf16>, vector<8x128xbf16>, vector<64x128xf32> -> vector<64x128xf32>
      %420 = arith.addf %414, %419 : vector<64x128xf32>
      %421 = vector.extract_strided_slice %398 {offsets = [0, 0, 0], sizes = [8, 8, 8], strides = [1, 1, 1]} : vector<9x9x8xbf16> to vector<8x8x8xbf16>
      %422 = vector.shape_cast %421 : vector<8x8x8xbf16> to vector<64x8xbf16>
      %c21_283 = arith.constant 21 : index
      %c0_284 = arith.constant 0 : index
      %c0_285 = arith.constant 0 : index
      %423 = vector.load %arg6[%c21_283, %c0_284, %c0_285] : memref<27x8x128xbf16, #tpu.memory_space<vmem>>, vector<1x8x128xbf16>
      %424 = vector.shape_cast %423 : vector<1x8x128xbf16> to vector<8x128xbf16>
      %cst_286 = arith.constant dense<0.000000e+00> : vector<64x128xf32>
      %425 = tpu.matmul %422, %424, %cst_286 {dimension_numbers = #tpu.dot_dimension_numbers<[1], [0], [0], [1], [0, 0, 1, 1], [], []>} : vector<64x8xbf16>, vector<8x128xbf16>, vector<64x128xf32> -> vector<64x128xf32>
      %426 = arith.addf %420, %425 : vector<64x128xf32>
      %427 = vector.extract_strided_slice %402 {offsets = [0, 0, 0], sizes = [8, 8, 8], strides = [1, 1, 1]} : vector<9x9x8xbf16> to vector<8x8x8xbf16>
      %428 = vector.shape_cast %427 : vector<8x8x8xbf16> to vector<64x8xbf16>
      %c22_287 = arith.constant 22 : index
      %c0_288 = arith.constant 0 : index
      %c0_289 = arith.constant 0 : index
      %429 = vector.load %arg6[%c22_287, %c0_288, %c0_289] : memref<27x8x128xbf16, #tpu.memory_space<vmem>>, vector<1x8x128xbf16>
      %430 = vector.shape_cast %429 : vector<1x8x128xbf16> to vector<8x128xbf16>
      %cst_290 = arith.constant dense<0.000000e+00> : vector<64x128xf32>
      %431 = tpu.matmul %428, %430, %cst_290 {dimension_numbers = #tpu.dot_dimension_numbers<[1], [0], [0], [1], [0, 0, 1, 1], [], []>} : vector<64x8xbf16>, vector<8x128xbf16>, vector<64x128xf32> -> vector<64x128xf32>
      %432 = arith.addf %426, %431 : vector<64x128xf32>
      %433 = vector.extract_strided_slice %398 {offsets = [0, 1, 0], sizes = [8, 8, 8], strides = [1, 1, 1]} : vector<9x9x8xbf16> to vector<8x8x8xbf16>
      %434 = vector.shape_cast %433 : vector<8x8x8xbf16> to vector<64x8xbf16>
      %c23_291 = arith.constant 23 : index
      %c0_292 = arith.constant 0 : index
      %c0_293 = arith.constant 0 : index
      %435 = vector.load %arg6[%c23_291, %c0_292, %c0_293] : memref<27x8x128xbf16, #tpu.memory_space<vmem>>, vector<1x8x128xbf16>
      %436 = vector.shape_cast %435 : vector<1x8x128xbf16> to vector<8x128xbf16>
      %cst_294 = arith.constant dense<0.000000e+00> : vector<64x128xf32>
      %437 = tpu.matmul %434, %436, %cst_294 {dimension_numbers = #tpu.dot_dimension_numbers<[1], [0], [0], [1], [0, 0, 1, 1], [], []>} : vector<64x8xbf16>, vector<8x128xbf16>, vector<64x128xf32> -> vector<64x128xf32>
      %438 = arith.addf %432, %437 : vector<64x128xf32>
      %439 = vector.extract_strided_slice %390 {offsets = [1, 0, 0], sizes = [8, 8, 8], strides = [1, 1, 1]} : vector<9x9x8xbf16> to vector<8x8x8xbf16>
      %440 = vector.shape_cast %439 : vector<8x8x8xbf16> to vector<64x8xbf16>
      %c24_295 = arith.constant 24 : index
      %c0_296 = arith.constant 0 : index
      %c0_297 = arith.constant 0 : index
      %441 = vector.load %arg6[%c24_295, %c0_296, %c0_297] : memref<27x8x128xbf16, #tpu.memory_space<vmem>>, vector<1x8x128xbf16>
      %442 = vector.shape_cast %441 : vector<1x8x128xbf16> to vector<8x128xbf16>
      %cst_298 = arith.constant dense<0.000000e+00> : vector<64x128xf32>
      %443 = tpu.matmul %440, %442, %cst_298 {dimension_numbers = #tpu.dot_dimension_numbers<[1], [0], [0], [1], [0, 0, 1, 1], [], []>} : vector<64x8xbf16>, vector<8x128xbf16>, vector<64x128xf32> -> vector<64x128xf32>
      %444 = arith.addf %438, %443 : vector<64x128xf32>
      %445 = vector.extract_strided_slice %394 {offsets = [1, 0, 0], sizes = [8, 8, 8], strides = [1, 1, 1]} : vector<9x9x8xbf16> to vector<8x8x8xbf16>
      %446 = vector.shape_cast %445 : vector<8x8x8xbf16> to vector<64x8xbf16>
      %c25_299 = arith.constant 25 : index
      %c0_300 = arith.constant 0 : index
      %c0_301 = arith.constant 0 : index
      %447 = vector.load %arg6[%c25_299, %c0_300, %c0_301] : memref<27x8x128xbf16, #tpu.memory_space<vmem>>, vector<1x8x128xbf16>
      %448 = vector.shape_cast %447 : vector<1x8x128xbf16> to vector<8x128xbf16>
      %cst_302 = arith.constant dense<0.000000e+00> : vector<64x128xf32>
      %449 = tpu.matmul %446, %448, %cst_302 {dimension_numbers = #tpu.dot_dimension_numbers<[1], [0], [0], [1], [0, 0, 1, 1], [], []>} : vector<64x8xbf16>, vector<8x128xbf16>, vector<64x128xf32> -> vector<64x128xf32>
      %450 = arith.addf %444, %449 : vector<64x128xf32>
      %451 = vector.extract_strided_slice %390 {offsets = [1, 1, 0], sizes = [8, 8, 8], strides = [1, 1, 1]} : vector<9x9x8xbf16> to vector<8x8x8xbf16>
      %452 = vector.shape_cast %451 : vector<8x8x8xbf16> to vector<64x8xbf16>
      %c26_303 = arith.constant 26 : index
      %c0_304 = arith.constant 0 : index
      %c0_305 = arith.constant 0 : index
      %453 = vector.load %arg6[%c26_303, %c0_304, %c0_305] : memref<27x8x128xbf16, #tpu.memory_space<vmem>>, vector<1x8x128xbf16>
      %454 = vector.shape_cast %453 : vector<1x8x128xbf16> to vector<8x128xbf16>
      %cst_306 = arith.constant dense<0.000000e+00> : vector<64x128xf32>
      %455 = tpu.matmul %452, %454, %cst_306 {dimension_numbers = #tpu.dot_dimension_numbers<[1], [0], [0], [1], [0, 0, 1, 1], [], []>} : vector<64x8xbf16>, vector<8x128xbf16>, vector<64x128xf32> -> vector<64x128xf32>
      %456 = arith.addf %450, %455 : vector<64x128xf32>
      %cst_307 = arith.constant 0.000000e+00 : f32
      %457 = vector.broadcast %cst_307 : f32 to vector<64x128xf32>
      %458 = arith.maximumf %456, %457 : vector<64x128xf32>
      %459 = vector.shape_cast %458 : vector<64x128xf32> to vector<8x8x128xf32>
      %460 = arith.truncf %459 : vector<8x8x128xf32> to vector<8x8x128xbf16>
      %461 = arith.index_cast %243 : i32 to index
      %c1_308 = arith.constant 1 : index
      %c1_309 = arith.constant 1 : index
      %c0_310 = arith.constant 0 : index
      %462 = vector.load %arg13[%461, %c1_308, %c1_309, %c0_310] : memref<3x10x10x128xbf16, #tpu.memory_space<vmem>>, vector<1x8x8x128xbf16>
      %463 = vector.shape_cast %462 : vector<1x8x8x128xbf16> to vector<8x8x128xbf16>
      %464 = vector.shape_cast %460 : vector<8x8x128xbf16> to vector<1x8x8x128xbf16>
      tpu.vector_store %arg13[%461, %c1_308, %c1_309, %c0_310], %464 {strides = array<i32>} : memref<3x10x10x128xbf16, #tpu.memory_space<vmem>>, vector<1x8x8x128xbf16>,
    } else {
    }
    %c3_i32_3 = arith.constant 3 : i32
    %8 = arith.cmpi eq, %arg1, %c3_i32_3 : i32
    %9 = arith.extui %8 : i1 to i32
    %c0_i32_4 = arith.constant 0 : i32
    %10 = arith.cmpi ne, %9, %c0_i32_4 : i32
    scf.if %10 {
      %cst_129 = arith.constant 0.000000e+00 : bf16
      %232 = vector.broadcast %cst_129 : bf16 to vector<10x10x128xbf16>
      %c2_i32_130 = arith.constant 2 : i32
      %233 = arith.addi %arg1, %c2_i32_130 : i32
      %c3_i32_131 = arith.constant 3 : i32
      %c0_i32_132 = arith.constant 0 : i32
      %234 = arith.cmpi eq, %c3_i32_131, %c0_i32_132 : i32
      %c1_i32_133 = arith.constant 1 : i32
      %235 = arith.select %234, %c1_i32_133, %c3_i32_131 : i32
      %236 = arith.remsi %233, %235 : i32
      %c0_i32_134 = arith.constant 0 : i32
      %237 = arith.cmpi ne, %236, %c0_i32_134 : i32
      %c0_i32_135 = arith.constant 0 : i32
      %238 = arith.cmpi slt, %236, %c0_i32_135 : i32
      %c0_i32_136 = arith.constant 0 : i32
      %239 = arith.cmpi slt, %235, %c0_i32_136 : i32
      %240 = arith.xori %238, %239 : i1
      %241 = arith.andi %240, %237 : i1
      %242 = arith.addi %236, %235 : i32
      %243 = arith.select %241, %242, %236 : i32
      %244 = arith.index_cast %243 : i32 to index
      %c0_137 = arith.constant 0 : index
      %c0_138 = arith.constant 0 : index
      %c0_139 = arith.constant 0 : index
      %245 = vector.load %arg13[%244, %c0_137, %c0_138, %c0_139] : memref<3x10x10x128xbf16, #tpu.memory_space<vmem>>, vector<1x10x10x128xbf16>
      %246 = vector.shape_cast %245 : vector<1x10x10x128xbf16> to vector<10x10x128xbf16>
      %247 = vector.shape_cast %232 : vector<10x10x128xbf16> to vector<1x10x10x128xbf16>
      tpu.vector_store %arg13[%244, %c0_137, %c0_138, %c0_139], %247 {strides = array<i32>} : memref<3x10x10x128xbf16, #tpu.memory_space<vmem>>, vector<1x10x10x128xbf16>,
    } else {
    }
    %c0 = arith.constant 0 : index
    %c0_5 = arith.constant 0 : index
    %11 = vector.load %arg9[%c0, %c0_5] : memref<1x128xf32, #tpu.memory_space<vmem>>, vector<1x128xf32>
    %12 = vector.shape_cast %11 : vector<1x128xf32> to vector<1x128xf32>
    %13 = vector.broadcast %12 : vector<1x128xf32> to vector<64x128xf32>
    %c0_i32_6 = arith.constant 0 : i32
    %14 = arith.addi %arg1, %c0_i32_6 : i32
    %c3_i32_7 = arith.constant 3 : i32
    %c0_i32_8 = arith.constant 0 : i32
    %15 = arith.cmpi eq, %c3_i32_7, %c0_i32_8 : i32
    %c1_i32 = arith.constant 1 : i32
    %16 = arith.select %15, %c1_i32, %c3_i32_7 : i32
    %17 = arith.remsi %14, %16 : i32
    %c0_i32_9 = arith.constant 0 : i32
    %18 = arith.cmpi ne, %17, %c0_i32_9 : i32
    %c0_i32_10 = arith.constant 0 : i32
    %19 = arith.cmpi slt, %17, %c0_i32_10 : i32
    %c0_i32_11 = arith.constant 0 : i32
    %20 = arith.cmpi slt, %16, %c0_i32_11 : i32
    %21 = arith.xori %19, %20 : i1
    %22 = arith.andi %21, %18 : i1
    %23 = arith.addi %17, %16 : i32
    %24 = arith.select %22, %23, %17 : i32
    %25 = arith.index_cast %24 : i32 to index
    %c0_12 = arith.constant 0 : index
    %c0_13 = arith.constant 0 : index
    %c0_14 = arith.constant 0 : index
    %26 = vector.load %arg13[%25, %c0_12, %c0_13, %c0_14] : memref<3x10x10x128xbf16, #tpu.memory_space<vmem>>, vector<1x10x10x128xbf16>
    %27 = vector.shape_cast %26 : vector<1x10x10x128xbf16> to vector<10x10x128xbf16>
    %28 = vector.extract_strided_slice %27 {offsets = [0, 0, 0], sizes = [8, 8, 128], strides = [1, 1, 1]} : vector<10x10x128xbf16> to vector<8x8x128xbf16>
    %29 = vector.shape_cast %28 : vector<8x8x128xbf16> to vector<64x128xbf16>
    %c0_15 = arith.constant 0 : index
    %c0_16 = arith.constant 0 : index
    %c0_17 = arith.constant 0 : index
    %30 = vector.load %arg8[%c0_15, %c0_16, %c0_17] : memref<27x128x128xbf16, #tpu.memory_space<vmem>>, vector<1x128x128xbf16>
    %31 = vector.shape_cast %30 : vector<1x128x128xbf16> to vector<128x128xbf16>
    %cst = arith.constant dense<0.000000e+00> : vector<64x128xf32>
    %32 = tpu.matmul %29, %31, %cst {dimension_numbers = #tpu.dot_dimension_numbers<[1], [0], [0], [1], [0, 0, 1, 1], [], []>} : vector<64x128xbf16>, vector<128x128xbf16>, vector<64x128xf32> -> vector<64x128xf32>
    %33 = arith.addf %13, %32 : vector<64x128xf32>
    %34 = vector.extract_strided_slice %27 {offsets = [0, 1, 0], sizes = [8, 8, 128], strides = [1, 1, 1]} : vector<10x10x128xbf16> to vector<8x8x128xbf16>
    %35 = vector.shape_cast %34 : vector<8x8x128xbf16> to vector<64x128xbf16>
    %c1 = arith.constant 1 : index
    %c0_18 = arith.constant 0 : index
    %c0_19 = arith.constant 0 : index
    %36 = vector.load %arg8[%c1, %c0_18, %c0_19] : memref<27x128x128xbf16, #tpu.memory_space<vmem>>, vector<1x128x128xbf16>
    %37 = vector.shape_cast %36 : vector<1x128x128xbf16> to vector<128x128xbf16>
    %cst_20 = arith.constant dense<0.000000e+00> : vector<64x128xf32>
    %38 = tpu.matmul %35, %37, %cst_20 {dimension_numbers = #tpu.dot_dimension_numbers<[1], [0], [0], [1], [0, 0, 1, 1], [], []>} : vector<64x128xbf16>, vector<128x128xbf16>, vector<64x128xf32> -> vector<64x128xf32>
    %39 = arith.addf %33, %38 : vector<64x128xf32>
    %40 = vector.extract_strided_slice %27 {offsets = [0, 2, 0], sizes = [8, 8, 128], strides = [1, 1, 1]} : vector<10x10x128xbf16> to vector<8x8x128xbf16>
    %41 = vector.shape_cast %40 : vector<8x8x128xbf16> to vector<64x128xbf16>
    %c2 = arith.constant 2 : index
    %c0_21 = arith.constant 0 : index
    %c0_22 = arith.constant 0 : index
    %42 = vector.load %arg8[%c2, %c0_21, %c0_22] : memref<27x128x128xbf16, #tpu.memory_space<vmem>>, vector<1x128x128xbf16>
    %43 = vector.shape_cast %42 : vector<1x128x128xbf16> to vector<128x128xbf16>
    %cst_23 = arith.constant dense<0.000000e+00> : vector<64x128xf32>
    %44 = tpu.matmul %41, %43, %cst_23 {dimension_numbers = #tpu.dot_dimension_numbers<[1], [0], [0], [1], [0, 0, 1, 1], [], []>} : vector<64x128xbf16>, vector<128x128xbf16>, vector<64x128xf32> -> vector<64x128xf32>
    %45 = arith.addf %39, %44 : vector<64x128xf32>
    %46 = vector.extract_strided_slice %27 {offsets = [1, 0, 0], sizes = [8, 8, 128], strides = [1, 1, 1]} : vector<10x10x128xbf16> to vector<8x8x128xbf16>
    %47 = vector.shape_cast %46 : vector<8x8x128xbf16> to vector<64x128xbf16>
    %c3 = arith.constant 3 : index
    %c0_24 = arith.constant 0 : index
    %c0_25 = arith.constant 0 : index
    %48 = vector.load %arg8[%c3, %c0_24, %c0_25] : memref<27x128x128xbf16, #tpu.memory_space<vmem>>, vector<1x128x128xbf16>
    %49 = vector.shape_cast %48 : vector<1x128x128xbf16> to vector<128x128xbf16>
    %cst_26 = arith.constant dense<0.000000e+00> : vector<64x128xf32>
    %50 = tpu.matmul %47, %49, %cst_26 {dimension_numbers = #tpu.dot_dimension_numbers<[1], [0], [0], [1], [0, 0, 1, 1], [], []>} : vector<64x128xbf16>, vector<128x128xbf16>, vector<64x128xf32> -> vector<64x128xf32>
    %51 = arith.addf %45, %50 : vector<64x128xf32>
    %52 = vector.extract_strided_slice %27 {offsets = [1, 1, 0], sizes = [8, 8, 128], strides = [1, 1, 1]} : vector<10x10x128xbf16> to vector<8x8x128xbf16>
    %53 = vector.shape_cast %52 : vector<8x8x128xbf16> to vector<64x128xbf16>
    %c4 = arith.constant 4 : index
    %c0_27 = arith.constant 0 : index
    %c0_28 = arith.constant 0 : index
    %54 = vector.load %arg8[%c4, %c0_27, %c0_28] : memref<27x128x128xbf16, #tpu.memory_space<vmem>>, vector<1x128x128xbf16>
    %55 = vector.shape_cast %54 : vector<1x128x128xbf16> to vector<128x128xbf16>
    %cst_29 = arith.constant dense<0.000000e+00> : vector<64x128xf32>
    %56 = tpu.matmul %53, %55, %cst_29 {dimension_numbers = #tpu.dot_dimension_numbers<[1], [0], [0], [1], [0, 0, 1, 1], [], []>} : vector<64x128xbf16>, vector<128x128xbf16>, vector<64x128xf32> -> vector<64x128xf32>
    %57 = arith.addf %51, %56 : vector<64x128xf32>
    %58 = vector.extract_strided_slice %27 {offsets = [1, 2, 0], sizes = [8, 8, 128], strides = [1, 1, 1]} : vector<10x10x128xbf16> to vector<8x8x128xbf16>
    %59 = vector.shape_cast %58 : vector<8x8x128xbf16> to vector<64x128xbf16>
    %c5 = arith.constant 5 : index
    %c0_30 = arith.constant 0 : index
    %c0_31 = arith.constant 0 : index
    %60 = vector.load %arg8[%c5, %c0_30, %c0_31] : memref<27x128x128xbf16, #tpu.memory_space<vmem>>, vector<1x128x128xbf16>
    %61 = vector.shape_cast %60 : vector<1x128x128xbf16> to vector<128x128xbf16>
    %cst_32 = arith.constant dense<0.000000e+00> : vector<64x128xf32>
    %62 = tpu.matmul %59, %61, %cst_32 {dimension_numbers = #tpu.dot_dimension_numbers<[1], [0], [0], [1], [0, 0, 1, 1], [], []>} : vector<64x128xbf16>, vector<128x128xbf16>, vector<64x128xf32> -> vector<64x128xf32>
    %63 = arith.addf %57, %62 : vector<64x128xf32>
    %64 = vector.extract_strided_slice %27 {offsets = [2, 0, 0], sizes = [8, 8, 128], strides = [1, 1, 1]} : vector<10x10x128xbf16> to vector<8x8x128xbf16>
    %65 = vector.shape_cast %64 : vector<8x8x128xbf16> to vector<64x128xbf16>
    %c6 = arith.constant 6 : index
    %c0_33 = arith.constant 0 : index
    %c0_34 = arith.constant 0 : index
    %66 = vector.load %arg8[%c6, %c0_33, %c0_34] : memref<27x128x128xbf16, #tpu.memory_space<vmem>>, vector<1x128x128xbf16>
    %67 = vector.shape_cast %66 : vector<1x128x128xbf16> to vector<128x128xbf16>
    %cst_35 = arith.constant dense<0.000000e+00> : vector<64x128xf32>
    %68 = tpu.matmul %65, %67, %cst_35 {dimension_numbers = #tpu.dot_dimension_numbers<[1], [0], [0], [1], [0, 0, 1, 1], [], []>} : vector<64x128xbf16>, vector<128x128xbf16>, vector<64x128xf32> -> vector<64x128xf32>
    %69 = arith.addf %63, %68 : vector<64x128xf32>
    %70 = vector.extract_strided_slice %27 {offsets = [2, 1, 0], sizes = [8, 8, 128], strides = [1, 1, 1]} : vector<10x10x128xbf16> to vector<8x8x128xbf16>
    %71 = vector.shape_cast %70 : vector<8x8x128xbf16> to vector<64x128xbf16>
    %c7 = arith.constant 7 : index
    %c0_36 = arith.constant 0 : index
    %c0_37 = arith.constant 0 : index
    %72 = vector.load %arg8[%c7, %c0_36, %c0_37] : memref<27x128x128xbf16, #tpu.memory_space<vmem>>, vector<1x128x128xbf16>
    %73 = vector.shape_cast %72 : vector<1x128x128xbf16> to vector<128x128xbf16>
    %cst_38 = arith.constant dense<0.000000e+00> : vector<64x128xf32>
    %74 = tpu.matmul %71, %73, %cst_38 {dimension_numbers = #tpu.dot_dimension_numbers<[1], [0], [0], [1], [0, 0, 1, 1], [], []>} : vector<64x128xbf16>, vector<128x128xbf16>, vector<64x128xf32> -> vector<64x128xf32>
    %75 = arith.addf %69, %74 : vector<64x128xf32>
    %76 = vector.extract_strided_slice %27 {offsets = [2, 2, 0], sizes = [8, 8, 128], strides = [1, 1, 1]} : vector<10x10x128xbf16> to vector<8x8x128xbf16>
    %77 = vector.shape_cast %76 : vector<8x8x128xbf16> to vector<64x128xbf16>
    %c8 = arith.constant 8 : index
    %c0_39 = arith.constant 0 : index
    %c0_40 = arith.constant 0 : index
    %78 = vector.load %arg8[%c8, %c0_39, %c0_40] : memref<27x128x128xbf16, #tpu.memory_space<vmem>>, vector<1x128x128xbf16>
    %79 = vector.shape_cast %78 : vector<1x128x128xbf16> to vector<128x128xbf16>
    %cst_41 = arith.constant dense<0.000000e+00> : vector<64x128xf32>
    %80 = tpu.matmul %77, %79, %cst_41 {dimension_numbers = #tpu.dot_dimension_numbers<[1], [0], [0], [1], [0, 0, 1, 1], [], []>} : vector<64x128xbf16>, vector<128x128xbf16>, vector<64x128xf32> -> vector<64x128xf32>
    %81 = arith.addf %75, %80 : vector<64x128xf32>
    %c1_i32_42 = arith.constant 1 : i32
    %82 = arith.addi %arg1, %c1_i32_42 : i32
    %c3_i32_43 = arith.constant 3 : i32
    %c0_i32_44 = arith.constant 0 : i32
    %83 = arith.cmpi eq, %c3_i32_43, %c0_i32_44 : i32
    %c1_i32_45 = arith.constant 1 : i32
    %84 = arith.select %83, %c1_i32_45, %c3_i32_43 : i32
    %85 = arith.remsi %82, %84 : i32
    %c0_i32_46 = arith.constant 0 : i32
    %86 = arith.cmpi ne, %85, %c0_i32_46 : i32
    %c0_i32_47 = arith.constant 0 : i32
    %87 = arith.cmpi slt, %85, %c0_i32_47 : i32
    %c0_i32_48 = arith.constant 0 : i32
    %88 = arith.cmpi slt, %84, %c0_i32_48 : i32
    %89 = arith.xori %87, %88 : i1
    %90 = arith.andi %89, %86 : i1
    %91 = arith.addi %85, %84 : i32
    %92 = arith.select %90, %91, %85 : i32
    %93 = arith.index_cast %92 : i32 to index
    %c0_49 = arith.constant 0 : index
    %c0_50 = arith.constant 0 : index
    %c0_51 = arith.constant 0 : index
    %94 = vector.load %arg13[%93, %c0_49, %c0_50, %c0_51] : memref<3x10x10x128xbf16, #tpu.memory_space<vmem>>, vector<1x10x10x128xbf16>
    %95 = vector.shape_cast %94 : vector<1x10x10x128xbf16> to vector<10x10x128xbf16>
    %96 = vector.extract_strided_slice %95 {offsets = [0, 0, 0], sizes = [8, 8, 128], strides = [1, 1, 1]} : vector<10x10x128xbf16> to vector<8x8x128xbf16>
    %97 = vector.shape_cast %96 : vector<8x8x128xbf16> to vector<64x128xbf16>
    %c9 = arith.constant 9 : index
    %c0_52 = arith.constant 0 : index
    %c0_53 = arith.constant 0 : index
    %98 = vector.load %arg8[%c9, %c0_52, %c0_53] : memref<27x128x128xbf16, #tpu.memory_space<vmem>>, vector<1x128x128xbf16>
    %99 = vector.shape_cast %98 : vector<1x128x128xbf16> to vector<128x128xbf16>
    %cst_54 = arith.constant dense<0.000000e+00> : vector<64x128xf32>
    %100 = tpu.matmul %97, %99, %cst_54 {dimension_numbers = #tpu.dot_dimension_numbers<[1], [0], [0], [1], [0, 0, 1, 1], [], []>} : vector<64x128xbf16>, vector<128x128xbf16>, vector<64x128xf32> -> vector<64x128xf32>
    %101 = arith.addf %81, %100 : vector<64x128xf32>
    %102 = vector.extract_strided_slice %95 {offsets = [0, 1, 0], sizes = [8, 8, 128], strides = [1, 1, 1]} : vector<10x10x128xbf16> to vector<8x8x128xbf16>
    %103 = vector.shape_cast %102 : vector<8x8x128xbf16> to vector<64x128xbf16>
    %c10 = arith.constant 10 : index
    %c0_55 = arith.constant 0 : index
    %c0_56 = arith.constant 0 : index
    %104 = vector.load %arg8[%c10, %c0_55, %c0_56] : memref<27x128x128xbf16, #tpu.memory_space<vmem>>, vector<1x128x128xbf16>
    %105 = vector.shape_cast %104 : vector<1x128x128xbf16> to vector<128x128xbf16>
    %cst_57 = arith.constant dense<0.000000e+00> : vector<64x128xf32>
    %106 = tpu.matmul %103, %105, %cst_57 {dimension_numbers = #tpu.dot_dimension_numbers<[1], [0], [0], [1], [0, 0, 1, 1], [], []>} : vector<64x128xbf16>, vector<128x128xbf16>, vector<64x128xf32> -> vector<64x128xf32>
    %107 = arith.addf %101, %106 : vector<64x128xf32>
    %108 = vector.extract_strided_slice %95 {offsets = [0, 2, 0], sizes = [8, 8, 128], strides = [1, 1, 1]} : vector<10x10x128xbf16> to vector<8x8x128xbf16>
    %109 = vector.shape_cast %108 : vector<8x8x128xbf16> to vector<64x128xbf16>
    %c11 = arith.constant 11 : index
    %c0_58 = arith.constant 0 : index
    %c0_59 = arith.constant 0 : index
    %110 = vector.load %arg8[%c11, %c0_58, %c0_59] : memref<27x128x128xbf16, #tpu.memory_space<vmem>>, vector<1x128x128xbf16>
    %111 = vector.shape_cast %110 : vector<1x128x128xbf16> to vector<128x128xbf16>
    %cst_60 = arith.constant dense<0.000000e+00> : vector<64x128xf32>
    %112 = tpu.matmul %109, %111, %cst_60 {dimension_numbers = #tpu.dot_dimension_numbers<[1], [0], [0], [1], [0, 0, 1, 1], [], []>} : vector<64x128xbf16>, vector<128x128xbf16>, vector<64x128xf32> -> vector<64x128xf32>
    %113 = arith.addf %107, %112 : vector<64x128xf32>
    %114 = vector.extract_strided_slice %95 {offsets = [1, 0, 0], sizes = [8, 8, 128], strides = [1, 1, 1]} : vector<10x10x128xbf16> to vector<8x8x128xbf16>
    %115 = vector.shape_cast %114 : vector<8x8x128xbf16> to vector<64x128xbf16>
    %c12 = arith.constant 12 : index
    %c0_61 = arith.constant 0 : index
    %c0_62 = arith.constant 0 : index
    %116 = vector.load %arg8[%c12, %c0_61, %c0_62] : memref<27x128x128xbf16, #tpu.memory_space<vmem>>, vector<1x128x128xbf16>
    %117 = vector.shape_cast %116 : vector<1x128x128xbf16> to vector<128x128xbf16>
    %cst_63 = arith.constant dense<0.000000e+00> : vector<64x128xf32>
    %118 = tpu.matmul %115, %117, %cst_63 {dimension_numbers = #tpu.dot_dimension_numbers<[1], [0], [0], [1], [0, 0, 1, 1], [], []>} : vector<64x128xbf16>, vector<128x128xbf16>, vector<64x128xf32> -> vector<64x128xf32>
    %119 = arith.addf %113, %118 : vector<64x128xf32>
    %120 = vector.extract_strided_slice %95 {offsets = [1, 1, 0], sizes = [8, 8, 128], strides = [1, 1, 1]} : vector<10x10x128xbf16> to vector<8x8x128xbf16>
    %121 = vector.shape_cast %120 : vector<8x8x128xbf16> to vector<64x128xbf16>
    %c13 = arith.constant 13 : index
    %c0_64 = arith.constant 0 : index
    %c0_65 = arith.constant 0 : index
    %122 = vector.load %arg8[%c13, %c0_64, %c0_65] : memref<27x128x128xbf16, #tpu.memory_space<vmem>>, vector<1x128x128xbf16>
    %123 = vector.shape_cast %122 : vector<1x128x128xbf16> to vector<128x128xbf16>
    %cst_66 = arith.constant dense<0.000000e+00> : vector<64x128xf32>
    %124 = tpu.matmul %121, %123, %cst_66 {dimension_numbers = #tpu.dot_dimension_numbers<[1], [0], [0], [1], [0, 0, 1, 1], [], []>} : vector<64x128xbf16>, vector<128x128xbf16>, vector<64x128xf32> -> vector<64x128xf32>
    %125 = arith.addf %119, %124 : vector<64x128xf32>
    %126 = vector.extract_strided_slice %95 {offsets = [1, 2, 0], sizes = [8, 8, 128], strides = [1, 1, 1]} : vector<10x10x128xbf16> to vector<8x8x128xbf16>
    %127 = vector.shape_cast %126 : vector<8x8x128xbf16> to vector<64x128xbf16>
    %c14 = arith.constant 14 : index
    %c0_67 = arith.constant 0 : index
    %c0_68 = arith.constant 0 : index
    %128 = vector.load %arg8[%c14, %c0_67, %c0_68] : memref<27x128x128xbf16, #tpu.memory_space<vmem>>, vector<1x128x128xbf16>
    %129 = vector.shape_cast %128 : vector<1x128x128xbf16> to vector<128x128xbf16>
    %cst_69 = arith.constant dense<0.000000e+00> : vector<64x128xf32>
    %130 = tpu.matmul %127, %129, %cst_69 {dimension_numbers = #tpu.dot_dimension_numbers<[1], [0], [0], [1], [0, 0, 1, 1], [], []>} : vector<64x128xbf16>, vector<128x128xbf16>, vector<64x128xf32> -> vector<64x128xf32>
    %131 = arith.addf %125, %130 : vector<64x128xf32>
    %132 = vector.extract_strided_slice %95 {offsets = [2, 0, 0], sizes = [8, 8, 128], strides = [1, 1, 1]} : vector<10x10x128xbf16> to vector<8x8x128xbf16>
    %133 = vector.shape_cast %132 : vector<8x8x128xbf16> to vector<64x128xbf16>
    %c15 = arith.constant 15 : index
    %c0_70 = arith.constant 0 : index
    %c0_71 = arith.constant 0 : index
    %134 = vector.load %arg8[%c15, %c0_70, %c0_71] : memref<27x128x128xbf16, #tpu.memory_space<vmem>>, vector<1x128x128xbf16>
    %135 = vector.shape_cast %134 : vector<1x128x128xbf16> to vector<128x128xbf16>
    %cst_72 = arith.constant dense<0.000000e+00> : vector<64x128xf32>
    %136 = tpu.matmul %133, %135, %cst_72 {dimension_numbers = #tpu.dot_dimension_numbers<[1], [0], [0], [1], [0, 0, 1, 1], [], []>} : vector<64x128xbf16>, vector<128x128xbf16>, vector<64x128xf32> -> vector<64x128xf32>
    %137 = arith.addf %131, %136 : vector<64x128xf32>
    %138 = vector.extract_strided_slice %95 {offsets = [2, 1, 0], sizes = [8, 8, 128], strides = [1, 1, 1]} : vector<10x10x128xbf16> to vector<8x8x128xbf16>
    %139 = vector.shape_cast %138 : vector<8x8x128xbf16> to vector<64x128xbf16>
    %c16 = arith.constant 16 : index
    %c0_73 = arith.constant 0 : index
    %c0_74 = arith.constant 0 : index
    %140 = vector.load %arg8[%c16, %c0_73, %c0_74] : memref<27x128x128xbf16, #tpu.memory_space<vmem>>, vector<1x128x128xbf16>
    %141 = vector.shape_cast %140 : vector<1x128x128xbf16> to vector<128x128xbf16>
    %cst_75 = arith.constant dense<0.000000e+00> : vector<64x128xf32>
    %142 = tpu.matmul %139, %141, %cst_75 {dimension_numbers = #tpu.dot_dimension_numbers<[1], [0], [0], [1], [0, 0, 1, 1], [], []>} : vector<64x128xbf16>, vector<128x128xbf16>, vector<64x128xf32> -> vector<64x128xf32>
    %143 = arith.addf %137, %142 : vector<64x128xf32>
    %144 = vector.extract_strided_slice %95 {offsets = [2, 2, 0], sizes = [8, 8, 128], strides = [1, 1, 1]} : vector<10x10x128xbf16> to vector<8x8x128xbf16>
    %145 = vector.shape_cast %144 : vector<8x8x128xbf16> to vector<64x128xbf16>
    %c17 = arith.constant 17 : index
    %c0_76 = arith.constant 0 : index
    %c0_77 = arith.constant 0 : index
    %146 = vector.load %arg8[%c17, %c0_76, %c0_77] : memref<27x128x128xbf16, #tpu.memory_space<vmem>>, vector<1x128x128xbf16>
    %147 = vector.shape_cast %146 : vector<1x128x128xbf16> to vector<128x128xbf16>
    %cst_78 = arith.constant dense<0.000000e+00> : vector<64x128xf32>
    %148 = tpu.matmul %145, %147, %cst_78 {dimension_numbers = #tpu.dot_dimension_numbers<[1], [0], [0], [1], [0, 0, 1, 1], [], []>} : vector<64x128xbf16>, vector<128x128xbf16>, vector<64x128xf32> -> vector<64x128xf32>
    %149 = arith.addf %143, %148 : vector<64x128xf32>
    %c2_i32 = arith.constant 2 : i32
    %150 = arith.addi %arg1, %c2_i32 : i32
    %c3_i32_79 = arith.constant 3 : i32
    %c0_i32_80 = arith.constant 0 : i32
    %151 = arith.cmpi eq, %c3_i32_79, %c0_i32_80 : i32
    %c1_i32_81 = arith.constant 1 : i32
    %152 = arith.select %151, %c1_i32_81, %c3_i32_79 : i32
    %153 = arith.remsi %150, %152 : i32
    %c0_i32_82 = arith.constant 0 : i32
    %154 = arith.cmpi ne, %153, %c0_i32_82 : i32
    %c0_i32_83 = arith.constant 0 : i32
    %155 = arith.cmpi slt, %153, %c0_i32_83 : i32
    %c0_i32_84 = arith.constant 0 : i32
    %156 = arith.cmpi slt, %152, %c0_i32_84 : i32
    %157 = arith.xori %155, %156 : i1
    %158 = arith.andi %157, %154 : i1
    %159 = arith.addi %153, %152 : i32
    %160 = arith.select %158, %159, %153 : i32
    %161 = arith.index_cast %160 : i32 to index
    %c0_85 = arith.constant 0 : index
    %c0_86 = arith.constant 0 : index
    %c0_87 = arith.constant 0 : index
    %162 = vector.load %arg13[%161, %c0_85, %c0_86, %c0_87] : memref<3x10x10x128xbf16, #tpu.memory_space<vmem>>, vector<1x10x10x128xbf16>
    %163 = vector.shape_cast %162 : vector<1x10x10x128xbf16> to vector<10x10x128xbf16>
    %164 = vector.extract_strided_slice %163 {offsets = [0, 0, 0], sizes = [8, 8, 128], strides = [1, 1, 1]} : vector<10x10x128xbf16> to vector<8x8x128xbf16>
    %165 = vector.shape_cast %164 : vector<8x8x128xbf16> to vector<64x128xbf16>
    %c18 = arith.constant 18 : index
    %c0_88 = arith.constant 0 : index
    %c0_89 = arith.constant 0 : index
    %166 = vector.load %arg8[%c18, %c0_88, %c0_89] : memref<27x128x128xbf16, #tpu.memory_space<vmem>>, vector<1x128x128xbf16>
    %167 = vector.shape_cast %166 : vector<1x128x128xbf16> to vector<128x128xbf16>
    %cst_90 = arith.constant dense<0.000000e+00> : vector<64x128xf32>
    %168 = tpu.matmul %165, %167, %cst_90 {dimension_numbers = #tpu.dot_dimension_numbers<[1], [0], [0], [1], [0, 0, 1, 1], [], []>} : vector<64x128xbf16>, vector<128x128xbf16>, vector<64x128xf32> -> vector<64x128xf32>
    %169 = arith.addf %149, %168 : vector<64x128xf32>
    %170 = vector.extract_strided_slice %163 {offsets = [0, 1, 0], sizes = [8, 8, 128], strides = [1, 1, 1]} : vector<10x10x128xbf16> to vector<8x8x128xbf16>
    %171 = vector.shape_cast %170 : vector<8x8x128xbf16> to vector<64x128xbf16>
    %c19 = arith.constant 19 : index
    %c0_91 = arith.constant 0 : index
    %c0_92 = arith.constant 0 : index
    %172 = vector.load %arg8[%c19, %c0_91, %c0_92] : memref<27x128x128xbf16, #tpu.memory_space<vmem>>, vector<1x128x128xbf16>
    %173 = vector.shape_cast %172 : vector<1x128x128xbf16> to vector<128x128xbf16>
    %cst_93 = arith.constant dense<0.000000e+00> : vector<64x128xf32>
    %174 = tpu.matmul %171, %173, %cst_93 {dimension_numbers = #tpu.dot_dimension_numbers<[1], [0], [0], [1], [0, 0, 1, 1], [], []>} : vector<64x128xbf16>, vector<128x128xbf16>, vector<64x128xf32> -> vector<64x128xf32>
    %175 = arith.addf %169, %174 : vector<64x128xf32>
    %176 = vector.extract_strided_slice %163 {offsets = [0, 2, 0], sizes = [8, 8, 128], strides = [1, 1, 1]} : vector<10x10x128xbf16> to vector<8x8x128xbf16>
    %177 = vector.shape_cast %176 : vector<8x8x128xbf16> to vector<64x128xbf16>
    %c20 = arith.constant 20 : index
    %c0_94 = arith.constant 0 : index
    %c0_95 = arith.constant 0 : index
    %178 = vector.load %arg8[%c20, %c0_94, %c0_95] : memref<27x128x128xbf16, #tpu.memory_space<vmem>>, vector<1x128x128xbf16>
    %179 = vector.shape_cast %178 : vector<1x128x128xbf16> to vector<128x128xbf16>
    %cst_96 = arith.constant dense<0.000000e+00> : vector<64x128xf32>
    %180 = tpu.matmul %177, %179, %cst_96 {dimension_numbers = #tpu.dot_dimension_numbers<[1], [0], [0], [1], [0, 0, 1, 1], [], []>} : vector<64x128xbf16>, vector<128x128xbf16>, vector<64x128xf32> -> vector<64x128xf32>
    %181 = arith.addf %175, %180 : vector<64x128xf32>
    %182 = vector.extract_strided_slice %163 {offsets = [1, 0, 0], sizes = [8, 8, 128], strides = [1, 1, 1]} : vector<10x10x128xbf16> to vector<8x8x128xbf16>
    %183 = vector.shape_cast %182 : vector<8x8x128xbf16> to vector<64x128xbf16>
    %c21 = arith.constant 21 : index
    %c0_97 = arith.constant 0 : index
    %c0_98 = arith.constant 0 : index
    %184 = vector.load %arg8[%c21, %c0_97, %c0_98] : memref<27x128x128xbf16, #tpu.memory_space<vmem>>, vector<1x128x128xbf16>
    %185 = vector.shape_cast %184 : vector<1x128x128xbf16> to vector<128x128xbf16>
    %cst_99 = arith.constant dense<0.000000e+00> : vector<64x128xf32>
    %186 = tpu.matmul %183, %185, %cst_99 {dimension_numbers = #tpu.dot_dimension_numbers<[1], [0], [0], [1], [0, 0, 1, 1], [], []>} : vector<64x128xbf16>, vector<128x128xbf16>, vector<64x128xf32> -> vector<64x128xf32>
    %187 = arith.addf %181, %186 : vector<64x128xf32>
    %188 = vector.extract_strided_slice %163 {offsets = [1, 1, 0], sizes = [8, 8, 128], strides = [1, 1, 1]} : vector<10x10x128xbf16> to vector<8x8x128xbf16>
    %189 = vector.shape_cast %188 : vector<8x8x128xbf16> to vector<64x128xbf16>
    %c22 = arith.constant 22 : index
    %c0_100 = arith.constant 0 : index
    %c0_101 = arith.constant 0 : index
    %190 = vector.load %arg8[%c22, %c0_100, %c0_101] : memref<27x128x128xbf16, #tpu.memory_space<vmem>>, vector<1x128x128xbf16>
    %191 = vector.shape_cast %190 : vector<1x128x128xbf16> to vector<128x128xbf16>
    %cst_102 = arith.constant dense<0.000000e+00> : vector<64x128xf32>
    %192 = tpu.matmul %189, %191, %cst_102 {dimension_numbers = #tpu.dot_dimension_numbers<[1], [0], [0], [1], [0, 0, 1, 1], [], []>} : vector<64x128xbf16>, vector<128x128xbf16>, vector<64x128xf32> -> vector<64x128xf32>
    %193 = arith.addf %187, %192 : vector<64x128xf32>
    %194 = vector.extract_strided_slice %163 {offsets = [1, 2, 0], sizes = [8, 8, 128], strides = [1, 1, 1]} : vector<10x10x128xbf16> to vector<8x8x128xbf16>
    %195 = vector.shape_cast %194 : vector<8x8x128xbf16> to vector<64x128xbf16>
    %c23 = arith.constant 23 : index
    %c0_103 = arith.constant 0 : index
    %c0_104 = arith.constant 0 : index
    %196 = vector.load %arg8[%c23, %c0_103, %c0_104] : memref<27x128x128xbf16, #tpu.memory_space<vmem>>, vector<1x128x128xbf16>
    %197 = vector.shape_cast %196 : vector<1x128x128xbf16> to vector<128x128xbf16>
    %cst_105 = arith.constant dense<0.000000e+00> : vector<64x128xf32>
    %198 = tpu.matmul %195, %197, %cst_105 {dimension_numbers = #tpu.dot_dimension_numbers<[1], [0], [0], [1], [0, 0, 1, 1], [], []>} : vector<64x128xbf16>, vector<128x128xbf16>, vector<64x128xf32> -> vector<64x128xf32>
    %199 = arith.addf %193, %198 : vector<64x128xf32>
    %200 = vector.extract_strided_slice %163 {offsets = [2, 0, 0], sizes = [8, 8, 128], strides = [1, 1, 1]} : vector<10x10x128xbf16> to vector<8x8x128xbf16>
    %201 = vector.shape_cast %200 : vector<8x8x128xbf16> to vector<64x128xbf16>
    %c24 = arith.constant 24 : index
    %c0_106 = arith.constant 0 : index
    %c0_107 = arith.constant 0 : index
    %202 = vector.load %arg8[%c24, %c0_106, %c0_107] : memref<27x128x128xbf16, #tpu.memory_space<vmem>>, vector<1x128x128xbf16>
    %203 = vector.shape_cast %202 : vector<1x128x128xbf16> to vector<128x128xbf16>
    %cst_108 = arith.constant dense<0.000000e+00> : vector<64x128xf32>
    %204 = tpu.matmul %201, %203, %cst_108 {dimension_numbers = #tpu.dot_dimension_numbers<[1], [0], [0], [1], [0, 0, 1, 1], [], []>} : vector<64x128xbf16>, vector<128x128xbf16>, vector<64x128xf32> -> vector<64x128xf32>
    %205 = arith.addf %199, %204 : vector<64x128xf32>
    %206 = vector.extract_strided_slice %163 {offsets = [2, 1, 0], sizes = [8, 8, 128], strides = [1, 1, 1]} : vector<10x10x128xbf16> to vector<8x8x128xbf16>
    %207 = vector.shape_cast %206 : vector<8x8x128xbf16> to vector<64x128xbf16>
    %c25 = arith.constant 25 : index
    %c0_109 = arith.constant 0 : index
    %c0_110 = arith.constant 0 : index
    %208 = vector.load %arg8[%c25, %c0_109, %c0_110] : memref<27x128x128xbf16, #tpu.memory_space<vmem>>, vector<1x128x128xbf16>
    %209 = vector.shape_cast %208 : vector<1x128x128xbf16> to vector<128x128xbf16>
    %cst_111 = arith.constant dense<0.000000e+00> : vector<64x128xf32>
    %210 = tpu.matmul %207, %209, %cst_111 {dimension_numbers = #tpu.dot_dimension_numbers<[1], [0], [0], [1], [0, 0, 1, 1], [], []>} : vector<64x128xbf16>, vector<128x128xbf16>, vector<64x128xf32> -> vector<64x128xf32>
    %211 = arith.addf %205, %210 : vector<64x128xf32>
    %212 = vector.extract_strided_slice %163 {offsets = [2, 2, 0], sizes = [8, 8, 128], strides = [1, 1, 1]} : vector<10x10x128xbf16> to vector<8x8x128xbf16>
    %213 = vector.shape_cast %212 : vector<8x8x128xbf16> to vector<64x128xbf16>
    %c26 = arith.constant 26 : index
    %c0_112 = arith.constant 0 : index
    %c0_113 = arith.constant 0 : index
    %214 = vector.load %arg8[%c26, %c0_112, %c0_113] : memref<27x128x128xbf16, #tpu.memory_space<vmem>>, vector<1x128x128xbf16>
    %215 = vector.shape_cast %214 : vector<1x128x128xbf16> to vector<128x128xbf16>
    %cst_114 = arith.constant dense<0.000000e+00> : vector<64x128xf32>
    %216 = tpu.matmul %213, %215, %cst_114 {dimension_numbers = #tpu.dot_dimension_numbers<[1], [0], [0], [1], [0, 0, 1, 1], [], []>} : vector<64x128xbf16>, vector<128x128xbf16>, vector<64x128xf32> -> vector<64x128xf32>
    %217 = arith.addf %211, %216 : vector<64x128xf32>
    %218 = vector.extract_strided_slice %217 {offsets = [0, 0], sizes = [64, 16], strides = [1, 1]} : vector<64x128xf32> to vector<64x16xf32>
    %c0_115 = arith.constant 0 : index
    %c0_116 = arith.constant 0 : index
    %c0_117 = arith.constant 0 : index
    %c0_118 = arith.constant 0 : index
    %c0_119 = arith.constant 0 : index
    %219 = vector.load %arg10[%c0_115, %c0_116, %c0_117, %c0_118, %c0_119] : memref<1x1x8x8x8xbf16, #tpu.memory_space<vmem>>, vector<1x1x8x8x8xbf16>
    %220 = vector.shape_cast %219 : vector<1x1x8x8x8xbf16> to vector<8x8x8xbf16>
    %221 = vector.shape_cast %220 : vector<8x8x8xbf16> to vector<64x8xbf16>
    %c0_120 = arith.constant 0 : index
    %c0_121 = arith.constant 0 : index
    %222 = vector.load %arg11[%c0_120, %c0_121] : memref<8x16xbf16, #tpu.memory_space<vmem>>, vector<8x16xbf16>
    %cst_122 = arith.constant dense<0.000000e+00> : vector<64x16xf32>
    %223 = tpu.matmul %221, %222, %cst_122 {dimension_numbers = #tpu.dot_dimension_numbers<[1], [0], [0], [1], [0, 0, 1, 1], [], []>} : vector<64x8xbf16>, vector<8x16xbf16>, vector<64x16xf32> -> vector<64x16xf32>
    %224 = arith.addf %218, %223 : vector<64x16xf32>
    %cst_123 = arith.constant 0.000000e+00 : f32
    %225 = vector.broadcast %cst_123 : f32 to vector<64x16xf32>
    %226 = arith.maximumf %224, %225 : vector<64x16xf32>
    %227 = vector.shape_cast %226 : vector<64x16xf32> to vector<8x8x16xf32>
    %228 = arith.truncf %227 : vector<8x8x16xf32> to vector<8x8x16xbf16>
    %c0_124 = arith.constant 0 : index
    %c0_125 = arith.constant 0 : index
    %c0_126 = arith.constant 0 : index
    %c0_127 = arith.constant 0 : index
    %c0_128 = arith.constant 0 : index
    %229 = vector.load %arg12[%c0_124, %c0_125, %c0_126, %c0_127, %c0_128] : memref<1x1x8x8x16xbf16, #tpu.memory_space<vmem>>, vector<1x1x8x8x16xbf16>
    %230 = vector.shape_cast %229 : vector<1x1x8x8x16xbf16> to vector<8x8x16xbf16>
    %231 = vector.shape_cast %228 : vector<8x8x16xbf16> to vector<1x1x8x8x16xbf16>
    tpu.vector_store %arg12[%c0_124, %c0_125, %c0_126, %c0_127, %c0_128], %231 {strides = array<i32>} : memref<1x1x8x8x16xbf16, #tpu.memory_space<vmem>>, vector<1x1x8x8x16xbf16>,
    return
  }
  func.func @transform_0(%arg0: i32, %arg1: i32) -> (i32, i32, i32, i32, i32) {
    %c0_i32 = arith.constant 0 : i32
    %c0_i32_0 = arith.constant 0 : i32
    %c0_i32_1 = arith.constant 0 : i32
    %c0_i32_2 = arith.constant 0 : i32
    %c0_i32_3 = arith.constant 0 : i32
    return %arg0, %c0_i32, %c0_i32_0, %c0_i32_1, %c0_i32_2 : i32, i32, i32, i32, i32
  }
  func.func @transform_1(%arg0: i32, %arg1: i32) -> (i32, i32, i32, i32, i32) {
    %c0_i32 = arith.constant 0 : i32
    %c0_i32_0 = arith.constant 0 : i32
    %c0_i32_1 = arith.constant 0 : i32
    %c0_i32_2 = arith.constant 0 : i32
    %c0_i32_3 = arith.constant 0 : i32
    return %arg0, %c0_i32, %c0_i32_0, %c0_i32_1, %c0_i32_2 : i32, i32, i32, i32, i32
  }
  func.func @transform_2(%arg0: i32, %arg1: i32) -> (i32, i32, i32, i32, i32) {
    %c0_i32 = arith.constant 0 : i32
    %c0_i32_0 = arith.constant 0 : i32
    %c0_i32_1 = arith.constant 0 : i32
    %c0_i32_2 = arith.constant 0 : i32
    %c0_i32_3 = arith.constant 0 : i32
    return %arg0, %c0_i32, %c0_i32_0, %c0_i32_1, %c0_i32_2 : i32, i32, i32, i32, i32
  }
  func.func @transform_3(%arg0: i32, %arg1: i32) -> (i32, i32, i32, i32, i32) {
    %c0_i32 = arith.constant 0 : i32
    %c0_i32_0 = arith.constant 0 : i32
    %c0_i32_1 = arith.constant 0 : i32
    %c0_i32_2 = arith.constant 0 : i32
    %c0_i32_3 = arith.constant 0 : i32
    return %arg0, %c0_i32, %c0_i32_0, %c0_i32_1, %c0_i32_2 : i32, i32, i32, i32, i32
  }
  func.func @transform_4(%arg0: i32, %arg1: i32) -> (i32, i32, i32) {
    %c0_i32 = arith.constant 0 : i32
    %c0_i32_0 = arith.constant 0 : i32
    %c0_i32_1 = arith.constant 0 : i32
    %c0_i32_2 = arith.constant 0 : i32
    return %c0_i32, %c0_i32_0, %c0_i32_1 : i32, i32, i32
  }
  func.func @transform_5(%arg0: i32, %arg1: i32) -> (i32, i32) {
    %c0_i32 = arith.constant 0 : i32
    %c0_i32_0 = arith.constant 0 : i32
    %c0_i32_1 = arith.constant 0 : i32
    return %c0_i32, %c0_i32_0 : i32, i32
  }
  func.func @transform_6(%arg0: i32, %arg1: i32) -> (i32, i32, i32) {
    %c0_i32 = arith.constant 0 : i32
    %c0_i32_0 = arith.constant 0 : i32
    %c0_i32_1 = arith.constant 0 : i32
    %c0_i32_2 = arith.constant 0 : i32
    return %c0_i32, %c0_i32_0, %c0_i32_1 : i32, i32, i32
  }
  func.func @transform_7(%arg0: i32, %arg1: i32) -> (i32, i32) {
    %c0_i32 = arith.constant 0 : i32
    %c0_i32_0 = arith.constant 0 : i32
    %c0_i32_1 = arith.constant 0 : i32
    return %c0_i32, %c0_i32_0 : i32, i32
  }
  func.func @transform_8(%arg0: i32, %arg1: i32) -> (i32, i32, i32, i32, i32) {
    %c0_i32 = arith.constant 0 : i32
    %c0_i32_0 = arith.constant 0 : i32
    %c0_i32_1 = arith.constant 0 : i32
    %c0_i32_2 = arith.constant 0 : i32
    return %arg0, %arg1, %c0_i32, %c0_i32_0, %c0_i32_1 : i32, i32, i32, i32, i32
  }
  func.func @transform_9(%arg0: i32, %arg1: i32) -> (i32, i32) {
    %c0_i32 = arith.constant 0 : i32
    %c0_i32_0 = arith.constant 0 : i32
    %c0_i32_1 = arith.constant 0 : i32
    return %c0_i32, %c0_i32_0 : i32, i32
  }
  func.func @transform_10(%arg0: i32, %arg1: i32) -> (i32, i32, i32, i32, i32) {
    %c0_i32 = arith.constant 0 : i32
    %c0_i32_0 = arith.constant 0 : i32
    %c0_i32_1 = arith.constant 0 : i32
    %c0_i32_2 = arith.constant 0 : i32
    return %arg0, %arg1, %c0_i32, %c0_i32_0, %c0_i32_1 : i32, i32, i32, i32, i32
  }
}

</mosaic_0001>

<bundles_post_ra>
// kernel: tpu_custom_call.1
= control target key start
LH: loop header
LB: loop body
LE: loop exit
PB: predicated region body
PF: predicated region fallthrough
CT: control target
= control target key end

     0   :  { %s28574_s0 = inlined_call_operand.vmem [shape: bf16[2,6,9,9,8], index: 0, kind: input, shape index: {}]   ;;  %s28575_s1 = inlined_call_operand.vmem [shape: bf16[2,6,9,9,8], index: 1, kind: input, shape index: {}]   ;;  %s28576_s2 = inlined_call_operand.vmem [shape: bf16[2,6,9,9,8], index: 2, kind: input, shape index: {}]   ;;  %s28577_s3 = inlined_call_operand.vmem [shape: bf16[2,6,9,9,8], index: 3, kind: input, shape index: {}]   ;;  %s28578_s4 = inlined_call_operand.vmem [shape: bf16[27,8,128], index: 4, kind: input, shape index: {}]   ;;  %s28579_s5 = inlined_call_operand.vmem [shape: f32[1,128], index: 5, kind: input, shape index: {}]   ;;  %s28580_s6 = inlined_call_operand.vmem [shape: bf16[27,128,128], index: 6, kind: input, shape index: {}]   ;;  %s28581_s7 = inlined_call_operand.vmem [shape: f32[1,128], index: 7, kind: input, shape index: {}]   ;;  %s28582_s8 = inlined_call_operand.vmem [shape: bf16[2,4,8,8,8], index: 8, kind: input, shape index: {}]   ;;  %s28583_s9 = inlined_call_operand.vmem [shape: bf16[8,16], index: 9, kind: input, shape index: {}]   ;;  %s28584_s10 = inlined_call_operand.hbm [shape: bf16[2,4,8,8,16], index: 10, kind: output, shape index: {}]  }
   0x1   :  { %28718 = sst [smem:[#allocation92_spill]] %s28574_s0 }
   0x2   :  { %28719 = sst [smem:[#allocation93_spill]] %s28584_s10 }
   0x3   :  { %15 = vsyncpa [#allocation4], 0 }
   0x4   :  { %17 = vsyncpa [#allocation4 + $0x1], 0  ;;  %s23108_s13 = smov 0   ;;  %s23110_s14 = smov 0  }
   0x5   :  { %s23112_s15 = smov 0   ;;  %s23114_s16 = smov 0  }
   0x6   :  { %s23116_s17 = smov 0   ;;  %s23118_s18 = smov 0  }
   0x7   :  { %s23120_s19 = smov 0   ;;  %s23122_s20 = smov 0  }
   0x8 LB: > { %28720 = sst [smem:[#allocation6_spill]] %s23018_s13  ;;  %s17178_s21 = sadd.s32 4294967295, %s23046_s20   ;;  %s23046_s20 = sphi %s23122_s20, %s23_s20   ;;  %s23042_s19 = sphi %s23120_s19, %s29115_s19   ;;  %s23038_s18 = sphi %s23118_s18, %s29114_s18   ;;  %s23034_s17 = sphi %s23116_s17, %s29113_s17   ;;  %s23030_s16 = sphi %s23114_s16, %s29112_s16   ;;  %s23026_s15 = sphi %s23112_s15, %s29118_s15   ;;  %s23022_s14 = sphi %s23110_s14, %s29117_s14   ;;  %s23018_s13 = sphi %s23108_s13, %s29116_s13  }
   0x9   : > { %28721 = sst [smem:[#allocation7_spill]] %s23026_s15  ;;  %s17179_s22 = sadd.s32 4294967294, %s23046_s20  }
   0xa   : > { %28722 = sst [smem:[#allocation8_spill]] %s23038_s18  ;;  %s32_s23 = sadd.s32 1, %s23038_s18 }
   0xb   : > { %28723 = sst [smem:[#allocation9_spill]] %s23042_s19  ;;  %p33_p0 = scmp.ge.s32.totalorder %s32_s23, 4 }
   0xc   : > { %28724 = sst [smem:[#allocation10_spill]] %s23046_s20  ;;  %s35_s24 = sadd.s32 1, %s23042_s19 }
   0xd   : > { %p291_p1 = scmp.ne.s32.totalorder %s23026_s15, %s23022_s14  ;;  %p292_p2 = scmp.eq.s32.totalorder %s17178_s21, 7 }
   0xe   : > { %s29120_s23 = smov (%p33_p0, %s32_s23), 0  ;;  %s29122_s24 = smov (!%p33_p0, %s35_s24), %s23042_s19 }
   0xf   : > { %28725 = sst [smem:[#allocation11_spill]] %s29120_s23  ;;  %s277_s25 = ssub.s32 %s23038_s18, %s29120_s23 }
  0x10   : > { %p23159_p3 = por %p292_p2, %p291_p1  ;;  %p37_p4 = scmp.ge.s32.totalorder %s29122_s24, 2 }
  0x11   : > { %p297_p5 = scmp.ne.s32.totalorder %s23022_s14, %s23018_s13  ;;  %p298_p6 = scmp.eq.s32.totalorder %s17179_s22, 7 }
  0x12   : > { %s28726_s26 = scalar_select %p23159_p3, 1, 0 }
  0x13   : > { %p17182_p7 = scmp.ge.s32.totalorder %s23046_s20, 1  ;;  %s29124_s24 = smov (%p37_p4, %s29122_s24), 0 }
  0x14   : > { %28727 = sst [smem:[#allocation12_spill]] %s28726_s26  ;;  %p23168_p8 = por %p298_p6, %p297_p5 }
  0x15   : > { %28728 = sst [smem:[#allocation13_spill]] %s29124_s24  ;;  %p375_p9 = scmp.lt.s32.totalorder %s23046_s20, 9 }
  0x16   : > { %s28729_s27 = scalar_select %p23168_p8, 1, 0 }
  0x17   : > { %s276_s28 = ssub.s32 %s23042_s19, %s29124_s24  ;;  %s281_s29 = sadd.s32 1, %s23026_s15 }
  0x18   : > { %28730 = sst [smem:[#allocation14_spill]] %s28729_s27  ;;  %s278_s30 = sor.u32 %s277_s25, %s276_s28 }
  0x19   : > { %p376_p10 = pnand %p17182_p7, %p375_p9  ;;  %p279_p11 = scmp.eq.s32.totalorder %s278_s30, 0 }
  0x1b   : > { %s23177_s11 = scalar_select %p279_p11, %s23026_s15, %s281_s29  }
  0x1c   : > { %379 = sbr.rel (%p376_p10) target bundleno = 1967 (0x7af), region = 60 }
  0x1d   : > { %28731 = sst [smem:[#allocation15_spill]] %s23177_s11 }
  0x23   : > { %s28592_s12 = sand.u32 1, %s23022_s14   ;;  %p437_p12 = scmp.lt.s32.totalorder %s23034_s17, 1 }
  0x24   : > { %s17183_s21 = sshll.u32 %s28592_s12, 5  ;;  %p459_p13 = scmp.lt.s32.totalorder %s23030_s16, 3 }
  0x25   : > { %s438_s22 = scalar_select %p437_p12, %s23034_s17, 1 }
  0x26   : > { %s460_s25 = scalar_select %p459_p13, %s23030_s16, 3 }
  0x27   : > { %s22351_s28 = smul.u32 432, %s438_s22  ;;  %s17189_s29 = sshll.u32 %s438_s22, 5 }
  0x28   : > { %s17188_s30 = sshll.u32 %s460_s25, 3  ;;  %s28732_s0 = sld [smem:[#allocation92_spill]] }
  0x29   : > { %s23196_s15 = scalar_lea.vmem %s28575_s1, %s22351_s28  ;;  %s23201_s12 = scalar_lea.vmem %s28576_s2, %s22351_s28 }
  0x2a   : > { %s23206_s25 = scalar_lea.vmem %s28577_s3, %s22351_s28  ;;  %s463_s22 = sadd.s32 %s17189_s29, %s17188_s30 }
  0x2b   : > { %s17190_s26 = sshll.u32 %s463_s22, 2  ;;  %s23213_s18 = scalar_lea.vmem [#allocation3], %s17183_s21 }
  0x2c   : > { %p17191_p0 = scmp.ne.s32.totalorder %s23030_s16, 0 }
  0x2e   : > { %s23191_s19 = scalar_lea.vmem %s28732_s0, %s22351_s28  ;;  %s23211_s0 = scalar_lea.vmem %s28582_s8, %s17190_s26 }
  0x2f   : > { %470 = sbr.rel (%p17191_p0) target bundleno = 763 (0x2fb), region = 64 }
  0x36   : > { %v589_v0 = vld [vmem:[%s28578_s4] sm:$0xf]  ;;  %vm623_vm0 = vcmask 1043456   ;;  %vm610_vm1 = vcmask 64512   ;;  %v23228_v5 = vld [vmem:[%s23191_s19 + $0x8] sm:$0xf] }
  0x37   : > { %v4443_v1 = vld [vmem:[%s28578_s4] sm:$0xf]  ;;  %22268 = vmatprep.subr.msk.bf16.mxu0 %vm623_vm0, %v589_v0  ;;  %v625_v2 = vsel %vm623_vm0, %v589_v0, 0  ;;  %v828_v9 = vshrl.u32 %v23228_v5, 16  ;;  %v17546_v10 = vld [vmem:[%s23191_s19 + $0x48] sm:$0xf] }
  0x38   : > { %22295 = vmatprep.subr.msk.bf16.mxu1 %vm623_vm0, %v4443_v1  ;;  %v4477_v3 = vsel %vm623_vm0, %v4443_v1, 0  ;;  %v538_v4 = vld [vmem:[%s23191_s19] sm:$0xf]  ;;  %19927 = vmatpush3.bf16.msra.mxu0 %v625_v2  ;;  %v831_v11 = vshll.u32 %v23228_v5, 16  ;;  %v23235_v12 = vld [vmem:[%s23191_s19 + $0x50] sm:$0xf] }
  0x39   : > { %20197 = vmatpush3.bf16.msra.mxu1 %v4477_v3  ;;  %v17193_v6 = vcombine.low %v538_v4, %v23228_v5  ;;  %v814_v7 = vshrl.u32 %v538_v4, 16  ;;  %v817_v8 = vshll.u32 %v538_v4, 16  ;;  %v4662_v13 = vshrl.u32 %v17546_v10, 16  ;;  %v23240_v19 = vld [vmem:[%s23191_s19 + $0x10] sm:$0xf] }
  0x3a   : > { %v4665_v14 = vshll.u32 %v17546_v10, 16  ;;  %v830_v17 = vrot.slane %v828_v9, 4  ;;  %v17597_v18 = vcombine.low %v17546_v10, %v23235_v12  ;;  %v833_v20 = vrot.slane %v831_v11, 5  ;;  %v23244_v24 = vld [vmem:[%s23191_s19 + $0x18] sm:$0xf] }
  0x3b   : > { %19928 = vmatprep.mubr.msk.bf16.mxu0 %vm610_vm1, %v17193_v6  ;;  %v816_v15 = vrot.slane %v814_v7, 4  ;;  %v819_v16 = vrot.slane %v817_v8, 5  ;;  %v4664_v21 = vrot.slane %v4662_v13, 4  ;;  %v4676_v23 = vshrl.u32 %v23235_v12, 16  ;;  %28733 = vst [vmem:[#allocation16_spill] sm:$0xff] %v23244_v24 }
  0x3c   : > { %v4667_v22 = vrot.slane %v4665_v14, 5  ;;  %20198 = vmatprep.mubr.msk.bf16.mxu1 %vm610_vm1, %v17597_v18  ;;  %v4679_v26 = vshll.u32 %v23235_v12, 16  ;;  %v17194_v27 = vcombine.low %v23240_v19, %v23244_v24  ;;  %v842_v28 = vshrl.u32 %v23240_v19, 16  ;;  %v17201_v29 = vld [vmem:[%s28578_s4 + $0x4] sm:$0xf] }
  0x3d   : > { %v820_v25 = vor.u32 %v819_v16, %v816_v15  ;;  %v23255_v30 = vld [vmem:[%s23191_s19 + $0x58] sm:$0xf]  ;;  %v834_v31 = vor.u32 %v833_v20, %v830_v17  ;;  %v4678_v33 = vrot.slane %v4676_v23, 4  ;;  %v845_v34 = vshll.u32 %v23240_v19, 16  ;;  %22269 = vmatprep.subr.msk.bf16.mxu0 %vm623_vm0, %v17201_v29  ;;  %v23260_v35 = vld [vmem:[%s23191_s19 + $0x60] sm:$0xf] }
  0x3e   : > { %v4668_v32 = vor.u32 %v4667_v22, %v4664_v21  ;;  %28734 = vst [vmem:[#allocation17_spill] sm:$0xff] %v23260_v35  ;;  %v17605_v36 = vld [vmem:[%s28578_s4 + $0x4] sm:$0xf]  ;;  %v4681_v38 = vrot.slane %v4679_v26, 5  ;;  %19929 = vmatmul.mubr.msk.bf16.vlgmr.msra.gmra.mrb[0].mxu0 %vm610_vm1, %v17194_v27  ;;  %v844_v39 = vrot.slane %v842_v28, 4  ;;  %v856_v40 = vshrl.u32 %v23244_v24, 16 }
  0x3f   : > { %v23265_v37 = vrot.slane %v820_v25, 4  ;;  %22296 = vmatprep.subr.msk.bf16.mxu1 %vm623_vm0, %v17605_v36  ;;  %v23270_v41 = vrot.slane %v834_v31, 4  ;;  %v847_v43 = vrot.slane %v845_v34, 5  ;;  %v859_v44 = vshll.u32 %v23244_v24, 16  ;;  %v23279_v49 = vld [vmem:[%s23191_s19 + $0x20] sm:$0xf] }
  0x40   : > { %v23272_v42 = vrot.slane %v4668_v32, 4  ;;  %v4682_v45 = vor.u32 %v4681_v38, %v4678_v33  ;;  %v858_v46 = vrot.slane %v856_v40, 4  ;;  %v17598_v47 = vcombine.low %v23255_v30, %v23260_v35  ;;  %28735 = vst [vmem:[#allocation18_spill] sm:$0xff] %v23279_v49  ;;  %v23282_v50 = vld [vmem:[%s23191_s19 + $0x28] sm:$0xf] }
  0x41   : > { %v4690_v48 = vshrl.u32 %v23255_v30, 16  ;;  %28736 = vst [vmem:[#allocation19_spill] sm:$0xff] %v23282_v50  ;;  %v848_v51 = vor.u32 %v847_v43, %v844_v39  ;;  %v861_v52 = vrot.slane %v859_v44, 5  ;;  %v4693_v53 = vshll.u32 %v23255_v30, 16  ;;  %v23287_v55 = vld [vmem:[%s23191_s19 + $0x68] sm:$0xf] }
  0x42   : > { %v4704_v54 = vshrl.u32 %v23260_v35, 16  ;;  %28737 = vst [vmem:[#allocation20_spill] sm:$0xff] %v23287_v55  ;;  %v23289_v56 = vrot.slane %v4682_v45, 4  ;;  %20199 = vmatmul.mubr.msk.bf16.vlgmr.msra.gmra.mrb[0].mxu1 %vm610_vm1, %v17598_v47  ;;  %v4707_v58 = vshll.u32 %v23260_v35, 16  ;;  %v735_v59 = vsel %vm623_vm0, %v17201_v29, 0 }
  0x43   : > { %v4692_v57 = vrot.slane %v4690_v48, 4  ;;  %v23295_v60 = vld [vmem:[%s23191_s19 + $0x70] sm:$0xf]  ;;  %v23297_v61 = vrot.slane %v848_v51, 4  ;;  %v862_v62 = vor.u32 %v861_v52, %v858_v46  ;;  %v4695_v63 = vrot.slane %v4693_v53, 5  ;;  %19937 = vmatpush3.bf16.msra.mxu0 %v735_v59 }
  0x44   : > { %28738 = vst [vmem:[#allocation21_spill] sm:$0xff] %v23295_v60  ;;  %v4706_v0 = vrot.slane %v4704_v54, 4  ;;  %v23300_v1 = vld [vmem:[%s23191_s19 + $0x30] sm:$0xf]  ;;  %v4709_v2 = vrot.slane %v4707_v58, 5  ;;  %v4586_v3 = vsel %vm623_vm0, %v17605_v36, 0  ;;  %v17195_v4 = vcombine.low %v23279_v49, %v23282_v50 }
  0x45   : > { %28739 = vst [vmem:[#allocation22_spill] sm:$0xff] %v23300_v1  ;;  %v870_v6 = vshrl.u32 %v23279_v49, 16  ;;  %v23307_v7 = vld [vmem:[%s23191_s19 + $0x38] sm:$0xf]  ;;  %v23309_v8 = vrot.slane %v862_v62, 4  ;;  %v4696_v9 = vor.u32 %v4695_v63, %v4692_v57  ;;  %20207 = vmatpush3.bf16.msra.mxu1 %v4586_v3  ;;  %v873_v10 = vshll.u32 %v23279_v49, 16 }
  0x46   : > { %28740 = vst [vmem:[#allocation23_spill] sm:$0xff] %v23307_v7  ;;  %v884_v11 = vshrl.u32 %v23282_v50, 16  ;;  %v23314_v13 = vld [vmem:[%s23191_s19 + $0x78] sm:$0xf]  ;;  %v23317_v14 = vld [vmem:[%s23191_s19 + $0x80] sm:$0xf]  ;;  %v4710_v15 = vor.u32 %v4709_v2, %v4706_v0  ;;  %19932 = vmatprep.mubr.msk.bf16.mxu0 %vm610_vm1, %v17195_v4  ;;  %v17599_v17 = vcombine.low %v23287_v55, %v23295_v60  ;;  %v17196_v32 = vcombine.low %v23300_v1, %v23307_v7 }
  0x47   : > { %28741 = vst [vmem:[#allocation24_spill] sm:$0xff] %v23314_v13  ;;  %28742 = vst [vmem:[#allocation25_spill] sm:$0xff] %v23317_v14  ;;  %v556_v18 = vld [vmem:[%s23196_s15] sm:$0xf]  ;;  %v23326_v20 = vld [vmem:[%s23196_s15 + $0x8] sm:$0xf]  ;;  %v17600_v45 = vcombine.low %v23314_v13, %v23317_v14 }
  0x48   : > { %28743 = vst [vmem:[#allocation26_spill] sm:$0xff] %v23326_v20  ;;  %v17564_v21 = vld [vmem:[%s23196_s15 + $0x48] sm:$0xf]  ;;  %v23329_v22 = vrot.slane %v4696_v9, 4  ;;  %v887_v23 = vshll.u32 %v23282_v50, 16  ;;  %v4718_v25 = vshrl.u32 %v23287_v55, 16  ;;  %20202 = vmatprep.mubr.msk.bf16.mxu1 %vm610_vm1, %v17599_v17  ;;  %19933 = vmatmul.mubr.msk.bf16.gmra.mrb[4].mxu0 %vm610_vm1, %v17196_v32  ;;  %v17202_v48 = vcombine.low %v556_v18, %v23326_v20 }
  0x49   : > { %v4721_v26 = vshll.u32 %v23287_v55, 16  ;;  %v23335_v27 = vld [vmem:[%s23196_s15 + $0x50] sm:$0xf]  ;;  %v23337_v28 = vrot.slane %v4710_v15, 4  ;;  %v23349_v34 = vld [vmem:[%s23196_s15 + $0x18] sm:$0xf] }
  0x4a   : > { %28744 = vst [vmem:[#allocation27_spill] sm:$0xff] %v23335_v27  ;;  %v23346_v33 = vld [vmem:[%s23196_s15 + $0x10] sm:$0xf]  ;;  %28746 = vst [vmem:[#allocation29_spill] sm:$0xff] %v23349_v34  ;;  %v17210_v43 = vld [vmem:[%s28578_s4 + $0x8] sm:$0xf]  ;;  %v17606_v51 = vcombine.low %v17564_v21, %v23335_v27  ;;  %20203 = vmatmul.mubr.msk.bf16.gmra.mrb[4].mxu1 %vm610_vm1, %v17600_v45  ;;  %19938 = vmatprep.mubr.msk.bf16.mxu0 %vm610_vm1, %v17202_v48 }
  0x4b   : > { %28745 = vst [vmem:[#allocation28_spill] sm:$0xff] %v23346_v33  ;;  %22270 = vmatprep.subr.msk.bf16.mxu0 %vm623_vm0, %v17210_v43  ;;  %v23368_v52 = vld [vmem:[%s23196_s15 + $0x58] sm:$0xf]  ;;  %v23371_v53 = vld [vmem:[%s23196_s15 + $0x60] sm:$0xf]  ;;  %v17203_v59 = vcombine.low %v23346_v33, %v23349_v34  ;;  %v952_v2 = vsel %vm623_vm0, %v17210_v43, 0 }
  0x4c   : > { %28747 = vst [vmem:[#allocation30_spill] sm:$0xff] %v23368_v52  ;;  %28748 = vst [vmem:[#allocation31_spill] sm:$0xff] %v23371_v53  ;;  %v17614_v54 = vld [vmem:[%s28578_s4 + $0x8] sm:$0xf]  ;;  %v23383_v62 = vld [vmem:[%s23196_s15 + $0x20] sm:$0xf]  ;;  %20208 = vmatprep.mubr.msk.bf16.mxu1 %vm610_vm1, %v17606_v51  ;;  %v17607_v18 = vcombine.low %v23368_v52, %v23371_v53 }
  0x4d   : > { %22297 = vmatprep.subr.msk.bf16.mxu1 %vm623_vm0, %v17614_v54  ;;  %28749 = vst [vmem:[#allocation32_spill] sm:$0xff] %v23383_v62  ;;  %v23386_v63 = vld [vmem:[%s23196_s15 + $0x28] sm:$0xf]  ;;  %v4799_v3 = vsel %vm623_vm0, %v17614_v54, 0  ;;  %v23400_v15 = vld [vmem:[%s23196_s15 + $0x70] sm:$0xf] }
  0x4e   : > { %28750 = vst [vmem:[#allocation33_spill] sm:$0xff] %v23386_v63  ;;  %v23397_v9 = vld [vmem:[%s23196_s15 + $0x68] sm:$0xf]  ;;  %28752 = vst [vmem:[#allocation35_spill] sm:$0xff] %v23400_v15  ;;  %v23409_v32 = vld [vmem:[%s23196_s15 + $0x30] sm:$0xf]  ;;  %v17204_v21 = vcombine.low %v23383_v62, %v23386_v63 }
  0x4f   : > { %28751 = vst [vmem:[#allocation34_spill] sm:$0xff] %v23397_v9  ;;  %28753 = vst [vmem:[#allocation36_spill] sm:$0xff] %v23409_v32  ;;  %v23412_v43 = vld [vmem:[%s23196_s15 + $0x38] sm:$0xf]  ;;  %v23418_v48 = vld [vmem:[%s23196_s15 + $0x80] sm:$0xf]  ;;  %v17608_v4 = vcombine.low %v23397_v9, %v23400_v15 }
  0x50   : > { %28754 = vst [vmem:[#allocation37_spill] sm:$0xff] %v23412_v43  ;;  %v23415_v45 = vld [vmem:[%s23196_s15 + $0x78] sm:$0xf]  ;;  %28756 = vst [vmem:[#allocation39_spill] sm:$0xff] %v23418_v48  ;;  %v539_v31 = vld [vmem:[%s23191_s19 + $0x4] sm:$0x1]  ;;  %19939 = vmatmul.mubr.msk.bf16.vlgmr.msra.gmra.mrb[0].mxu0 %vm610_vm1, %v17203_v59 }
  0x51   : > { %28755 = vst [vmem:[#allocation38_spill] sm:$0xff] %v23415_v45  ;;  %v541_v16 = vld [vmem:[%s23191_s19 + $0xc] sm:$0x1]  ;;  %vm810_vm2 = vsmask.f32 3328  ;;  %v823_v0 = vshll.u32 %v539_v31, 16  ;;  %19947 = vmatpush3.bf16.msra.mxu0 %v952_v2  ;;  %19942 = vmatprep.mubr.msk.bf16.mxu0 %vm610_vm1, %v17204_v21  ;;  %v17609_v31 = vcombine.low %v23415_v45, %v23418_v48 }
  0x52   : > { %vm811_vm3 = vsmask.f32 7440  ;;  %v837_v51 = vshll.u32 %v541_v16, 16  ;;  %v17547_v58 = vld [vmem:[%s23191_s19 + $0x4c] sm:$0x1]  ;;  %v23443_v40 = vrot.slane %v870_v6, 4  ;;  %v17205_v6 = vcombine.low %v23409_v32, %v23412_v43  ;;  %20209 = vmatmul.mubr.msk.bf16.vlgmr.msra.gmra.mrb[0].mxu1 %vm610_vm1, %v17607_v18 }
  0x53   : > { %vm23435_vm4 = vmor %vm810_vm2, %vm811_vm3  ;;  %v17549_v47 = vld [vmem:[%s23191_s19 + $0x54] sm:$0x1]  ;;  %v4671_v46 = vshll.u32 %v17547_v58, 16  ;;  %v825_v54 = vrot.slane %v823_v0, 5  ;;  %v545_v38 = vld [vmem:[%s23191_s19 + $0x1c] sm:$0x1]  ;;  %20217 = vmatpush3.bf16.msra.mxu1 %v4799_v3  ;;  %20212 = vmatprep.mubr.msk.bf16.mxu1 %vm610_vm1, %v17608_v4 }
  0x54   : > { %v543_v44 = vld [vmem:[%s23191_s19 + $0x14] sm:$0x1]  ;;  %v839_v17 = vrot.slane %v837_v51, 5  ;;  %v4685_v39 = vshll.u32 %v17549_v47, 16  ;;  %v865_v29 = vshll.u32 %v545_v38, 16  ;;  %vm4337_vm6 = vcmask 1040384  }
  0x55   : > { %v851_v58 = vshll.u32 %v543_v44, 16  ;;  %v4673_v36 = vrot.slane %v4671_v46, 5  ;;  %v17219_v59 = vld [vmem:[%s28578_s4 + $0xc] sm:$0xf]  ;;  %v17551_v47 = vld [vmem:[%s23191_s19 + $0x5c] sm:$0x1]  ;;  %v826_v44 = vsel %vm23435_vm4, %v23265_v37, %v825_v54 }
  0x56   : > { %v23467_v0 = vsel %vm23435_vm4, %v23270_v41, %v839_v17  ;;  %v4687_v2 = vrot.slane %v4685_v39, 5  ;;  %22271 = vmatprep.subr.msk.bf16.mxu0 %vm623_vm0, %v17219_v59  ;;  %v17553_v38 = vld [vmem:[%s23191_s19 + $0x64] sm:$0x1]  ;;  %v17623_v21 = vld [vmem:[%s28578_s4 + $0xc] sm:$0xf]  ;;  %v867_v17 = vrot.slane %v865_v29, 5 }
  0x57   : > { %v853_v46 = vrot.slane %v851_v58, 5  ;;  %v17211_v37 = vcombine.low %v826_v44, %v23467_v0  ;;  %v4674_v41 = vsel %vm23435_vm4, %v23272_v42, %v4673_v36  ;;  %v4699_v39 = vshll.u32 %v17551_v47, 16  ;;  %v547_v18 = vld [vmem:[%s23191_s19 + $0x24] sm:$0x1]  ;;  %22298 = vmatprep.subr.msk.bf16.mxu1 %vm623_vm0, %v17623_v21  ;;  %v549_v42 = vld [vmem:[%s23191_s19 + $0x2c] sm:$0x1] }
  0x58   : > { %v23483_v51 = vsel %vm23435_vm4, %v23289_v56, %v4687_v2  ;;  %v4713_v4 = vshll.u32 %v17553_v38, 16  ;;  %v1062_v54 = vsel %vm623_vm0, %v17219_v59, 0  ;;  %v23497_v36 = vsel %vm23435_vm4, %v23309_v8, %v867_v17  ;;  %19943 = vmatmul.mubr.msk.bf16.gmra.mrb[4].mxu0 %vm610_vm1, %v17205_v6  ;;  %v17581_v45 = vld [vmem:[%s23201_s12 + $0x68] sm:$0xf]  ;;  %v17583_v43 = vld [vmem:[%s23201_s12 + $0x70] sm:$0xf] }
  0x59   : > { %v23488_v3 = vsel %vm23435_vm4, %v23297_v61, %v853_v46  ;;  %v17615_v29 = vcombine.low %v4674_v41, %v23483_v51  ;;  %28759 = vst [vmem:[#allocation40_spill] sm:$0xff] %v23497_v36  ;;  %v4701_v56 = vrot.slane %v4699_v39, 5  ;;  %v23500_v58 = vsel %vm623_vm0, %v17623_v21, 0  ;;  %v17555_v21 = vld [vmem:[%s23191_s19 + $0x6c] sm:$0x1]  ;;  %19948 = vmatprep.mubr.msk.bf16.mxu0 %vm610_vm1, %v17211_v37 }
  0x5a   : > { %v17212_v61 = vcombine.low %v23488_v3, %v23497_v36  ;;  %v4715_v47 = vrot.slane %v4713_v4, 5  ;;  %v875_v59 = vrot.slane %v873_v10, 5  ;;  %v879_v44 = vshll.u32 %v547_v18, 16  ;;  %20213 = vmatmul.mubr.msk.bf16.gmra.mrb[4].mxu1 %vm610_vm1, %v17609_v31  ;;  %v577_v53 = vld [vmem:[%s23201_s12 + $0x30] sm:$0xf] }
  0x5b   : > { %v23509_v2 = vsel %vm23435_vm4, %v23329_v22, %v4701_v56  ;;  %v886_v8 = vrot.slane %v884_v11, 4  ;;  %v889_v46 = vrot.slane %v887_v23, 5  ;;  %v893_v38 = vshll.u32 %v549_v42, 16  ;;  %v17557_v22 = vld [vmem:[%s23191_s19 + $0x74] sm:$0x1]  ;;  %20218 = vmatprep.mubr.msk.bf16.mxu1 %vm610_vm1, %v17615_v29 }
  0x5c   : > { %v23520_v10 = vsel %vm23435_vm4, %v23337_v28, %v4715_v47  ;;  %v876_v41 = vor.u32 %v875_v59, %v23443_v40  ;;  %v881_v17 = vrot.slane %v879_v44, 5  ;;  %v4720_v11 = vrot.slane %v4718_v25, 4  ;;  %v551_v44 = vld [vmem:[%s23191_s19 + $0x34] sm:$0x1]  ;;  %v579_v32 = vld [vmem:[%s23201_s12 + $0x38] sm:$0xf] }
  0x5d   : > { %28760 = vst [vmem:[#allocation41_spill] sm:$0xff] %v23520_v10  ;;  %v17616_v23 = vcombine.low %v23509_v2, %v23520_v10  ;;  %v890_v39 = vor.u32 %v889_v46, %v886_v8  ;;  %v895_v6 = vrot.slane %v893_v38, 5  ;;  %v4723_v28 = vrot.slane %v4721_v26, 5  ;;  %v22462_v55 = vld [vmem:[%s23206_s25 + $0x20] ss:$8 sps:$4 sm:$0xff]  }
  0x5e   : > { %v877_v40 = vrot.slane %v876_v41, 4  ;;  %v4727_v18 = vshll.u32 %v17555_v21, 16  ;;  %v28761_v4 = vshrl.u32 %v23295_v60, 16  ;;  %v28762_v25 = vshll.u32 %v23295_v60, 16  ;;  %v553_v21 = vld [vmem:[%s23191_s19 + $0x3c] sm:$0x1] }
  0x5f   : > { %v891_v37 = vrot.slane %v890_v39, 4  ;;  %v4724_v47 = vor.u32 %v4723_v28, %v4720_v11  ;;  %v4741_v59 = vshll.u32 %v17557_v22, 16  ;;  %v28763_v8 = vshrl.u32 %v23300_v1, 16  ;;  %v17573_v22 = vld [vmem:[%s23201_s12 + $0x48] sm:$0xf] }
  0x60   : > { %v4734_v42 = vrot.slane %v28761_v4, 4  ;;  %v4737_v56 = vrot.slane %v28762_v25, 5  ;;  %v23542_v31 = vsel %vm23435_vm4, %v877_v40, %v881_v17  ;;  %v4729_v46 = vrot.slane %v4727_v18, 5  ;;  %19949 = vmatmul.mubr.msk.bf16.vlgmr.msra.gmra.mrb[0].mxu0 %vm610_vm1, %v17212_v61 }
  0x61   : > { %v900_v26 = vrot.slane %v28763_v8, 4  ;;  %28764 = vst [vmem:[#allocation42_spill] sm:$0xff] %v23542_v31  ;;  %v28765_v41 = vshll.u32 %v23300_v1, 16  ;;  %v23549_v29 = vsel %vm23435_vm4, %v891_v37, %v895_v6  ;;  %v4725_v11 = vrot.slane %v4724_v47, 4  ;;  %v23567_v8 = vld [vmem:[%s28578_s4 + $0x10] sm:$0xf]  ;;  %19957 = vmatpush3.bf16.msra.mxu0 %v1062_v54 }
  0x62   : > { %v4738_v38 = vor.u32 %v4737_v56, %v4734_v42  ;;  %v4743_v39 = vrot.slane %v4741_v59, 5  ;;  %v17213_v17 = vcombine.low %v23542_v31, %v23549_v29  ;;  %v907_v18 = vshll.u32 %v551_v44, 16  ;;  %v17559_v42 = vld [vmem:[%s23191_s19 + $0x7c] sm:$0x1]  ;;  %20219 = vmatmul.mubr.msk.bf16.vlgmr.msra.gmra.mrb[0].mxu1 %vm610_vm1, %v17616_v23  ;;  %22272 = vmatprep.subr.msk.bf16.mxu0 %vm623_vm0, %v23567_v8  ;;  %v573_v31 = vld [vmem:[%s23201_s12 + $0x20] sm:$0xf] }
  0x63   : > { %v903_v4 = vrot.slane %v28765_v41, 5  ;;  %v23558_v25 = vsel %vm23435_vm4, %v4725_v11, %v4729_v46  ;;  %v28767_v6 = vshrl.u32 %v23307_v7, 16  ;;  %v28768_v37 = vshll.u32 %v23307_v7, 16  ;;  %v17561_v41 = vld [vmem:[%s23191_s19 + $0x84] sm:$0x1]  ;;  %20227 = vmatpush3.bf16.msra.mxu1 %v23500_v58 }
  0x64   : > { %v4739_v28 = vrot.slane %v4738_v38, 4  ;;  %28766 = vst [vmem:[#allocation43_spill] sm:$0xff] %v23558_v25  ;;  %v921_v59 = vshll.u32 %v553_v21, 16  ;;  %v909_v38 = vrot.slane %v907_v18, 5  ;;  %19952 = vmatprep.mubr.msk.bf16.mxu0 %vm610_vm1, %v17213_v17  ;;  %v28769_v61 = vshrl.u32 %v23314_v13, 16 }
  0x65   : > { %v904_v40 = vor.u32 %v903_v4, %v900_v26  ;;  %v914_v56 = vrot.slane %v28767_v6, 4  ;;  %v917_v47 = vrot.slane %v28768_v37, 5  ;;  %v565_v4 = vld [vmem:[%s23201_s12] sm:$0xf]  ;;  %v28770_v54 = vshll.u32 %v23314_v13, 16 }
  0x66   : > { %v23572_v44 = vsel %vm23435_vm4, %v4739_v28, %v4743_v39  ;;  %v923_v6 = vrot.slane %v921_v59, 5  ;;  %v4748_v37 = vrot.slane %v28769_v61, 4  ;;  %v567_v39 = vld [vmem:[%s23201_s12 + $0x8] sm:$0xf]  ;;  %v23587_v28 = vld [vmem:[%s28578_s4 + $0x10] sm:$0xf]  ;;  %v17626_v62 = vcombine.low %v17581_v45, %v17583_v43 }
  0x67   : > { %v905_v46 = vrot.slane %v904_v40, 4  ;;  %v17617_v21 = vcombine.low %v23558_v25, %v23572_v44  ;;  %v918_v11 = vor.u32 %v917_v47, %v914_v56  ;;  %v4751_v17 = vrot.slane %v28770_v54, 5  ;;  %22299 = vmatprep.subr.msk.bf16.mxu1 %vm623_vm0, %v23587_v28  ;;  %v569_v25 = vld [vmem:[%s23201_s12 + $0x10] sm:$0xf]  ;;  %v568_v7 = vld [vmem:[%s23201_s12 + $0xc] sm:$0x1] }
  0x68   : > { %v4755_v40 = vshll.u32 %v17559_v42, 16  ;;  %v28771_v18 = vshrl.u32 %v23317_v14, 16  ;;  %v28772_v59 = vshll.u32 %v23317_v14, 16  ;;  %v4769_v42 = vshll.u32 %v17561_v41, 16  ;;  %v22458_v14 = vld [vmem:[%s23206_s25] ss:$8 sps:$4 sm:$0xff]  }
  0x69   : > { %20222 = vmatprep.mubr.msk.bf16.mxu1 %vm610_vm1, %v17617_v21  ;;  %v23600_v47 = vsel %vm23435_vm4, %v905_v46, %v909_v38  ;;  %v919_v23 = vrot.slane %v918_v11, 4  ;;  %v4752_v54 = vor.u32 %v4751_v17, %v4748_v37  ;;  %v17220_v26 = vcombine.low %v565_v4, %v567_v39  ;;  %v17575_v11 = vld [vmem:[%s23201_s12 + $0x50] sm:$0xf] }
  0x6a   : > { %v4762_v56 = vrot.slane %v28771_v18, 4  ;;  %v4765_v61 = vrot.slane %v28772_v59, 5  ;;  %v4757_v18 = vrot.slane %v4755_v40, 5  ;;  %v4771_v38 = vrot.slane %v4769_v42, 5 }
  0x6b   : > { %v23609_v58 = vsel %vm23435_vm4, %v919_v23, %v923_v6  ;;  %v1248_v21 = vshrl.u32 %v565_v4, 16  ;;  %v4753_v37 = vrot.slane %v4752_v54, 4  ;;  %v1251_v17 = vshll.u32 %v565_v4, 16 }
  0x6c   : > { %28773 = vst [vmem:[#allocation44_spill] sm:$0xff] %v23609_v58  ;;  %v4766_v46 = vor.u32 %v4765_v61, %v4762_v56  ;;  %v17214_v41 = vcombine.low %v23600_v47, %v23609_v58  ;;  %v1262_v40 = vshrl.u32 %v567_v39, 16  ;;  %v1265_v16 = vshll.u32 %v567_v39, 16  ;;  %v571_v61 = vld [vmem:[%s23201_s12 + $0x18] sm:$0xf] }
  0x6d   : > { %v23618_v6 = vsel %vm23435_vm4, %v4753_v37, %v4757_v18  ;;  %v17624_v56 = vcombine.low %v17573_v22, %v17575_v11  ;;  %v5093_v23 = vshrl.u32 %v17573_v22, 16  ;;  %v5096_v4 = vshll.u32 %v17573_v22, 16 }
  0x6e   : > { %v4767_v59 = vrot.slane %v4766_v46, 4  ;;  %19953 = vmatmul.mubr.msk.bf16.gmra.mrb[4].mxu0 %vm610_vm1, %v17214_v41  ;;  %v5107_v39 = vshrl.u32 %v17575_v11, 16  ;;  %v5110_v54 = vshll.u32 %v17575_v11, 16  ;;  %v17577_v46 = vld [vmem:[%s23201_s12 + $0x58] sm:$0xf]  ;;  %v23630_v37 = vrot.slane %v1248_v21, 4 }
  0x6f   : > { %19958 = vmatprep.mubr.msk.bf16.mxu0 %vm610_vm1, %v17220_v26  ;;  %v17579_v41 = vld [vmem:[%s23201_s12 + $0x60] sm:$0xf]  ;;  %v23632_v58 = vrot.slane %v1251_v17, 5  ;;  %v23634_v10 = vrot.slane %v1262_v40, 4  ;;  %v1276_v22 = vshrl.u32 %v569_v25, 16  ;;  %v1279_v26 = vshll.u32 %v569_v25, 16 }
  0x70   : > { %v23623_v42 = vsel %vm23435_vm4, %v4767_v59, %v4771_v38  ;;  %v575_v38 = vld [vmem:[%s23201_s12 + $0x28] sm:$0xf]  ;;  %v23638_v59 = vrot.slane %v1265_v16, 5  ;;  %v1290_v11 = vshrl.u32 %v571_v61, 16  ;;  %v23641_v36 = vrot.slane %v5093_v23, 4 }
  0x71   : > { %28774 = vst [vmem:[#allocation45_spill] sm:$0xff] %v23623_v42  ;;  %v17618_v18 = vcombine.low %v23618_v6, %v23623_v42  ;;  %v17221_v48 = vcombine.low %v569_v25, %v571_v61  ;;  %v1293_v42 = vshll.u32 %v571_v61, 16  ;;  %v5121_v21 = vshrl.u32 %v17577_v46, 16 }
  0x72   : > { %v23645_v17 = vrot.slane %v5096_v4, 5  ;;  %v23647_v40 = vrot.slane %v5107_v39, 4  ;;  %v23649_v16 = vrot.slane %v5110_v54, 5  ;;  %v5124_v15 = vshll.u32 %v17577_v46, 16 }
  0x73   : > { %20223 = vmatmul.mubr.msk.bf16.gmra.mrb[4].mxu1 %vm610_vm1, %v17618_v18  ;;  %v23652_v9 = vrot.slane %v1276_v22, 4  ;;  %v23654_v23 = vrot.slane %v1279_v26, 5  ;;  %v23656_v25 = vrot.slane %v1290_v11, 4  ;;  %v17625_v61 = vcombine.low %v17577_v46, %v17579_v41 }
  0x74   : > { %20228 = vmatprep.mubr.msk.bf16.mxu1 %vm610_vm1, %v17624_v56  ;;  %v23661_v56 = vld [vmem:[%s28578_s4 + $0x14] sm:$0xf]  ;;  %v5135_v4 = vshrl.u32 %v17579_v41, 16  ;;  %v5138_v18 = vshll.u32 %v17579_v41, 16  ;;  %v1172_v39 = vsel %vm623_vm0, %v23567_v8, 0  ;;  %v17222_v54 = vcombine.low %v573_v31, %v575_v38 }
  0x75   : > { %v23668_v22 = vrot.slane %v1293_v42, 5  ;;  %v23670_v46 = vrot.slane %v5121_v21, 4  ;;  %v1304_v26 = vshrl.u32 %v573_v31, 16  ;;  %v1307_v11 = vshll.u32 %v573_v31, 16 }
  0x76   : > { %19959 = vmatmul.mubr.msk.bf16.vlgmr.msra.gmra.mrb[0].mxu0 %vm610_vm1, %v17221_v48  ;;  %v23672_v63 = vrot.slane %v5124_v15, 5  ;;  %v1318_v41 = vshrl.u32 %v575_v38, 16  ;;  %v1321_v8 = vshll.u32 %v575_v38, 16  ;;  %v23678_v48 = vld [vmem:[%s28578_s4 + $0x14] sm:$0xf]  ;;  %v5017_v42 = vsel %vm623_vm0, %v23587_v28, 0 }
  0x77   : > { %19967 = vmatpush3.bf16.msra.mxu0 %v1172_v39  ;;  %19962 = vmatprep.mubr.msk.bf16.mxu0 %vm610_vm1, %v17222_v54  ;;  %v5149_v21 = vshrl.u32 %v17581_v45, 16  ;;  %v5152_v34 = vshll.u32 %v17581_v45, 16  ;;  %v5163_v31 = vshrl.u32 %v17583_v43, 16  ;;  %v23683_v15 = vld [vmem:[%s23201_s12 + $0x78] sm:$0xf]  ;;  %v23690_v38 = vrot.slane %v5135_v4, 4 }
  0x78   : > { %v23686_v39 = vld [vmem:[%s23201_s12 + $0x80] sm:$0xf]  ;;  %22273 = vmatprep.subr.msk.bf16.mxu0 %vm623_vm0, %v23661_v56  ;;  %v23692_v54 = vrot.slane %v5138_v18, 5  ;;  %v23694_v52 = vrot.slane %v1304_v26, 4  ;;  %v5166_v27 = vshll.u32 %v17583_v43, 16  ;;  %v23697_v28 = vrot.slane %v1307_v11, 5 }
  0x79   : > { %v17223_v45 = vcombine.low %v577_v53, %v579_v32  ;;  %v1332_v33 = vshrl.u32 %v577_v53, 16  ;;  %v1335_v20 = vshll.u32 %v577_v53, 16  ;;  %v23700_v13 = vrot.slane %v1318_v41, 4 }
  0x7a   : > { %v23702_v60 = vrot.slane %v1321_v8, 5  ;;  %v1346_v4 = vshrl.u32 %v579_v32, 16  ;;  %v1349_v18 = vshll.u32 %v579_v32, 16  ;;  %v23705_v26 = vrot.slane %v5149_v21, 4  ;;  %v22459_v21 = vld [vmem:[%s23206_s25 + $0x48] ss:$8 sps:$4 sm:$0xff]  }
  0x7b   : > { %20229 = vmatmul.mubr.msk.bf16.vlgmr.msra.gmra.mrb[0].mxu1 %vm610_vm1, %v17625_v61  ;;  %v23707_v43 = vrot.slane %v5152_v34, 5  ;;  %v23709_v61 = vrot.slane %v5163_v31, 4  ;;  %v5177_v11 = vshrl.u32 %v23683_v15, 16  ;;  %v23714_v53 = vrot.slane %v5166_v27, 5 }
  0x7c   : > { %20237 = vmatpush3.bf16.msra.mxu1 %v5017_v42  ;;  %20232 = vmatprep.mubr.msk.bf16.mxu1 %vm610_vm1, %v17626_v62  ;;  %v23716_v41 = vrot.slane %v1332_v33, 4  ;;  %v23718_v62 = vrot.slane %v1335_v20, 5  ;;  %v17627_v34 = vcombine.low %v23683_v15, %v23686_v39  ;;  %v23723_v32 = vrot.slane %v1346_v4, 4  ;;  %v22460_v4 = vld [vmem:[%s23206_s25 + $0x10] ss:$8 sps:$4 sm:$0xff]  }
  0x7d   : > { %22300 = vmatprep.subr.msk.bf16.mxu1 %vm623_vm0, %v23678_v48  ;;  %v23725_v8 = vrot.slane %v1349_v18, 5  ;;  %v5180_v27 = vshll.u32 %v23683_v15, 16  ;;  %v5191_v42 = vshrl.u32 %v23686_v39, 16  ;;  %v23729_v33 = vrot.slane %v5177_v11, 4  ;;  %v566_v18 = vld [vmem:[%s23201_s12 + $0x4] sm:$0x1] }
  0x7e   : > { %19963 = vmatmul.mubr.msk.bf16.gmra.mrb[4].mxu0 %vm610_vm1, %v17223_v45  ;;  %v5194_v20 = vshll.u32 %v23686_v39, 16  ;;  %v1254_v31 = vor.u32 %v23632_v58, %v23630_v37  ;;  %v1268_v45 = vor.u32 %v23638_v59, %v23634_v10  ;;  %v17574_v15 = vld [vmem:[%s23201_s12 + $0x4c] sm:$0x1]  ;;  %v5099_v11 = vor.u32 %v23645_v17, %v23641_v36  ;;  %v17576_v59 = vld [vmem:[%s23201_s12 + $0x54] sm:$0x1] }
  0x7f   : > { %19968 = vmatprep.mubr.msk.bf16.mxu0 %vm610_vm1, %v22458_v14  ;;  %v5113_v39 = vor.u32 %v23649_v16, %v23647_v40  ;;  %v1282_v14 = vor.u32 %v23654_v23, %v23652_v9  ;;  %v1257_v37 = vshll.u32 %v566_v18, 16  ;;  %v1271_v10 = vshll.u32 %v568_v7, 16  ;;  %v570_v36 = vld [vmem:[%s23201_s12 + $0x14] sm:$0x1]  ;;  %v572_v16 = vld [vmem:[%s23201_s12 + $0x1c] sm:$0x1] }
  0x80   : > { %v1255_v58 = vrot.slane %v1254_v31, 4  ;;  %v1269_v35 = vrot.slane %v1268_v45, 4  ;;  %v5100_v1 = vrot.slane %v5099_v11, 4  ;;  %v5102_v50 = vshll.u32 %v17574_v15, 16  ;;  %v17580_v11 = vld [vmem:[%s23201_s12 + $0x64] sm:$0x1] }
  0x81   : > { %v5114_v49 = vrot.slane %v5113_v39, 4  ;;  %v5116_v24 = vshll.u32 %v17576_v59, 16  ;;  %v1386_v9 = vsel %vm623_vm0, %v23661_v56, 0  ;;  %v1259_v17 = vrot.slane %v1257_v37, 5 }
  0x82   : > { %v1273_v40 = vrot.slane %v1271_v10, 5  ;;  %v1285_v7 = vshll.u32 %v570_v36, 16  ;;  %v5104_v23 = vrot.slane %v5102_v50, 5  ;;  %v23756_v31 = vrot.slane %v1282_v14, 4 }
  0x83   : > { %20233 = vmatmul.mubr.msk.bf16.gmra.mrb[4].mxu1 %vm610_vm1, %v17627_v34  ;;  %v5118_v34 = vrot.slane %v5116_v24, 5  ;;  %v1296_v45 = vor.u32 %v23668_v22, %v23656_v25  ;;  %v1260_v56 = vsel %vm23435_vm4, %v1255_v58, %v1259_v17  ;;  %v1299_v50 = vshll.u32 %v572_v16, 16  ;;  %v17578_v24 = vld [vmem:[%s23201_s12 + $0x5c] sm:$0x1]  ;;  %v22461_v25 = vld [vmem:[%s23206_s25 + $0x58] ss:$8 sps:$4 sm:$0xff]  }
  0x84   : > { %20238 = vmatprep.mubr.msk.bf16.mxu1 %vm610_vm1, %v22459_v21  ;;  %v23763_v21 = vld [vmem:[%s28578_s4 + $0x18] sm:$0xf]  ;;  %v1274_v18 = vsel %vm23435_vm4, %v1269_v35, %v1273_v40  ;;  %v23769_v15 = vrot.slane %v1285_v7, 5  ;;  %v23773_v39 = vrot.slane %v5180_v27, 5  ;;  %v22463_v22 = vld [vmem:[%s23206_s25 + $0x68] ss:$8 sps:$4 sm:$0xff]   ;;  %v5105_v14 = vsel %vm23435_vm4, %v5100_v1, %v5104_v23 }
  0x85   : > { %v5119_v58 = vsel %vm23435_vm4, %v5114_v49, %v5118_v34  ;;  %v5127_v35 = vor.u32 %v23672_v63, %v23670_v46  ;;  %v23784_v37 = vrot.slane %v5191_v42, 4  ;;  %v23786_v10 = vrot.slane %v5194_v20, 5  ;;  %v574_v1 = vld [vmem:[%s23201_s12 + $0x24] sm:$0x1]  ;;  %v576_v46 = vld [vmem:[%s23201_s12 + $0x2c] sm:$0x1] }
  0x86   : > { %19969 = vmatmul.mubr.msk.bf16.vlgmr.msra.gmra.mrb[0].mxu0 %vm610_vm1, %v22460_v4  ;;  %v5230_v27 = vsel %vm623_vm0, %v23678_v48, 0  ;;  %v5130_v4 = vshll.u32 %v17578_v24, 16  ;;  %v17238_v59 = vcombine.low %v1260_v56, %v1274_v18  ;;  %v1297_v36 = vrot.slane %v1296_v45, 4  ;;  %v23804_v20 = vld [vmem:[%s28578_s4 + $0x18] sm:$0xf] }
  0x87   : > { %19977 = vmatpush3.bf16.msra.mxu0 %v1386_v9  ;;  %19972 = vmatprep.mubr.msk.bf16.mxu0 %vm610_vm1, %v22462_v55  ;;  %v5141_v49 = vor.u32 %v23692_v54, %v23690_v38  ;;  %v5144_v63 = vshll.u32 %v17580_v11, 16  ;;  %v17642_v42 = vcombine.low %v5105_v14, %v5119_v58  ;;  %v1288_v48 = vsel %vm23435_vm4, %v23756_v31, %v23769_v15  ;;  %v17582_v17 = vld [vmem:[%s23201_s12 + $0x6c] sm:$0x1]  ;;  %v22464_v38 = vld [vmem:[%s23206_s25 + $0x30] ss:$8 sps:$4 sm:$0xff]  }
  0x88   : > { %22274 = vmatprep.subr.msk.bf16.mxu0 %vm623_vm0, %v23763_v21  ;;  %v1301_v55 = vrot.slane %v1299_v50, 5  ;;  %v1310_v9 = vor.u32 %v23697_v28, %v23694_v52  ;;  %v5128_v54 = vrot.slane %v5127_v35, 4  ;;  %v5132_v40 = vrot.slane %v5130_v4, 5  ;;  %v17584_v45 = vld [vmem:[%s23201_s12 + $0x74] sm:$0x1] }
  0x89   : > { %v1313_v16 = vshll.u32 %v574_v1, 16  ;;  %v1324_v7 = vor.u32 %v23702_v60, %v23700_v13  ;;  %v5142_v23 = vrot.slane %v5141_v49, 4  ;;  %v1327_v31 = vshll.u32 %v576_v46, 16  ;;  %v578_v60 = vld [vmem:[%s23201_s12 + $0x34] sm:$0x1] }
  0x8a   : > { %v1311_v34 = vrot.slane %v1310_v9, 4  ;;  %v5155_v52 = vor.u32 %v23707_v43, %v23705_v26  ;;  %v5146_v28 = vrot.slane %v5144_v63, 5  ;;  %v5158_v15 = vshll.u32 %v17582_v17, 16  ;;  %v22465_v26 = vld [vmem:[%s23206_s25 + $0x78] ss:$8 sps:$4 sm:$0xff]  }
  0x8b   : > { %20239 = vmatmul.mubr.msk.bf16.vlgmr.msra.gmra.mrb[0].mxu1 %vm610_vm1, %v22461_v25  ;;  %v1315_v56 = vrot.slane %v1313_v16, 5  ;;  %v1325_v18 = vrot.slane %v1324_v7, 4  ;;  %v1302_v13 = vsel %vm23435_vm4, %v1297_v36, %v1301_v55  ;;  %v1329_v50 = vrot.slane %v1327_v31, 5  ;;  %v580_v14 = vld [vmem:[%s23201_s12 + $0x3c] sm:$0x1] }
  0x8c   : > { %20247 = vmatpush3.bf16.msra.mxu1 %v5230_v27  ;;  %20242 = vmatprep.mubr.msk.bf16.mxu1 %vm610_vm1, %v22463_v22  ;;  %v5156_v24 = vrot.slane %v5155_v52, 4  ;;  %v5169_v11 = vor.u32 %v23714_v53, %v23709_v61  ;;  %v5160_v25 = vrot.slane %v5158_v15, 5  ;;  %v5172_v22 = vshll.u32 %v17584_v45, 16  ;;  %v17586_v4 = vld [vmem:[%s23201_s12 + $0x7c] sm:$0x1] }
  0x8d   : > { %22301 = vmatprep.subr.msk.bf16.mxu1 %vm623_vm0, %v23804_v20  ;;  %v1316_v43 = vsel %vm23435_vm4, %v1311_v34, %v1315_v56  ;;  %v1338_v58 = vor.u32 %v23718_v62, %v23716_v41  ;;  %v1330_v35 = vsel %vm23435_vm4, %v1325_v18, %v1329_v50  ;;  %v1341_v61 = vshll.u32 %v578_v60, 16  ;;  %v17588_v41 = vld [vmem:[%s23201_s12 + $0x84] sm:$0x1]  ;;  %v17255_v7 = vld [vmem:[%s28578_s4 + $0x1c] sm:$0xf] }
  0x8e   : > { %19973 = vmatmul.mubr.msk.bf16.gmra.mrb[4].mxu0 %vm610_vm1, %v22464_v38  ;;  %v5170_v27 = vrot.slane %v5169_v11, 4  ;;  %v1352_v53 = vor.u32 %v23725_v8, %v23723_v32  ;;  %v17239_v1 = vcombine.low %v1288_v48, %v1302_v13  ;;  %v5133_v36 = vsel %vm23435_vm4, %v5128_v54, %v5132_v40  ;;  %v17659_v45 = vld [vmem:[%s28578_s4 + $0x1c] sm:$0xf] }
  0x8f   : > { %19978 = vmatprep.mubr.msk.bf16.mxu0 %vm610_vm1, %v17238_v59  ;;  %v5147_v49 = vsel %vm23435_vm4, %v5142_v23, %v5146_v28  ;;  %v5174_v63 = vrot.slane %v5172_v22, 5  ;;  %v17240_v62 = vcombine.low %v1316_v43, %v1330_v35  ;;  %v5161_v59 = vsel %vm23435_vm4, %v5156_v24, %v5160_v25  ;;  %v23899_v43 = vld [vmem:[%s23191_s19 + $0x60] sm:$0xf]  ;;  %v28778_v25 = vld [vmem:[#allocation18_spill] sm:$0xff] }
  0x90   : > { %v1339_v46 = vrot.slane %v1338_v58, 4  ;;  %v1355_v55 = vshll.u32 %v580_v14, 16  ;;  %v1343_v9 = vrot.slane %v1341_v61, 5  ;;  %v1353_v32 = vrot.slane %v1352_v53, 4  ;;  %v23914_v14 = vld [vmem:[%s23191_s19 + $0xb0] sm:$0xf] }
  0x91   : > { %v5183_v8 = vor.u32 %v23773_v39, %v23729_v33  ;;  %v5186_v48 = vshll.u32 %v17586_v4, 16  ;;  %v5175_v17 = vsel %vm23435_vm4, %v5170_v27, %v5174_v63  ;;  %v5197_v54 = vor.u32 %v23786_v10, %v23784_v37  ;;  %v28780_v58 = vld [vmem:[#allocation19_spill] sm:$0xff]  ;;  %v28781_v35 = vld [vmem:[#allocation22_spill] sm:$0xff]  ;;  %v554_v61 = vld [vmem:[%s23191_s19 + $0x40] sm:$0xf] }
  0x92   : > { %v1357_v38 = vrot.slane %v1355_v55, 5  ;;  %v5200_v40 = vshll.u32 %v17588_v41, 16  ;;  %v1482_v16 = vsel %vm623_vm0, %v23763_v21, 0  ;;  %v17643_v33 = vcombine.low %v5133_v36, %v5147_v49  ;;  %v28783_v36 = vld [vmem:[#allocation17_spill] sm:$0xff]  ;;  %v28784_v49 = vld [vmem:[#allocation20_spill] sm:$0xff]  ;;  %v28786_v41 = vld [vmem:[#allocation23_spill] sm:$0xff] }
  0x93   : > { %20243 = vmatmul.mubr.msk.bf16.gmra.mrb[4].mxu1 %vm610_vm1, %v22465_v26  ;;  %v17644_v39 = vcombine.low %v5161_v59, %v5175_v17  ;;  %v5188_v23 = vrot.slane %v5186_v48, 5  ;;  %v1344_v37 = vsel %vm23435_vm4, %v1339_v46, %v1343_v9  ;;  %v5198_v21 = vrot.slane %v5197_v54, 4  ;;  %v17264_v26 = vld [vmem:[%s28578_s4 + $0x20] sm:$0xf]  ;;  %v23934_v59 = vld [vmem:[%s23191_s19 + $0x88] sm:$0xf] }
  0x94   : > { %20248 = vmatprep.mubr.msk.bf16.mxu1 %vm610_vm1, %v17642_v42  ;;  %v5184_v42 = vrot.slane %v5183_v8, 4  ;;  %v1358_v10 = vsel %vm23435_vm4, %v1353_v32, %v1357_v38  ;;  %v5202_v34 = vrot.slane %v5200_v40, 5  ;;  %v5325_v31 = vsel %vm623_vm0, %v23804_v20, 0  ;;  %v23937_v46 = vld [vmem:[%s23196_s15 + $0x60] sm:$0xf]  ;;  %v28789_v9 = vld [vmem:[#allocation24_spill] sm:$0xff] }
  0x95   : > { %v17265_v52 = vcombine.low %v23467_v0, %v23488_v3  ;;  %v17241_v28 = vcombine.low %v1344_v37, %v1358_v10  ;;  %v17669_v20 = vcombine.low %v23483_v51, %v23509_v2  ;;  %v17267_v15 = vcombine.low %v23549_v29, %v23600_v47  ;;  %v28788_v55 = vld [vmem:[#allocation21_spill] sm:$0xff]  ;;  %v23944_v8 = vld [vmem:[%s23196_s15 + $0xa8] sm:$0xf]  ;;  %v23950_v17 = vld [vmem:[%s23196_s15 + $0xb0] sm:$0xf] }
  0x96   : > { %19979 = vmatmul.mubr.msk.bf16.vlgmr.msra.gmra.mrb[0].mxu0 %vm610_vm1, %v17239_v1  ;;  %v5189_v56 = vsel %vm23435_vm4, %v5184_v42, %v5188_v23  ;;  %v5203_v18 = vsel %vm23435_vm4, %v5198_v21, %v5202_v34  ;;  %v17671_v60 = vcombine.low %v23572_v44, %v23618_v6  ;;  %v28775_v50 = vcombine.low %v23228_v5, %v23240_v19  ;;  %v23902_v5 = vld [vmem:[%s23191_s19 + $0x68] sm:$0xf]  ;;  %v28777_v19 = vld [vmem:[#allocation16_spill] sm:$0xff]  ;;  %v17668_v1 = vld [vmem:[%s28578_s4 + $0x20] sm:$0xf] }
  0x97   : > { %19987 = vmatpush3.bf16.msra.mxu0 %v1482_v16  ;;  %19982 = vmatprep.mubr.msk.bf16.mxu0 %vm610_vm1, %v17240_v62  ;;  %v17645_v13 = vcombine.low %v5189_v56, %v5203_v18  ;;  %v28776_v24 = vcombine.low %v23235_v12, %v23255_v30  ;;  %v1578_v11 = vsel %vm623_vm0, %v17255_v7, 0  ;;  %v28779_v22 = vcombine.low %v28777_v19, %v28778_v25  ;;  %v23909_v12 = vld [vmem:[%s23191_s19 + $0xa8] sm:$0xf]  ;;  %v28794_v40 = vld [vmem:[#allocation25_spill] sm:$0xff]  ;;  %v28798_v37 = vld [vmem:[#allocation27_spill] sm:$0xff] }
  0x98   : > { %22275 = vmatprep.subr.msk.bf16.mxu0 %vm623_vm0, %v17255_v7  ;;  %v28782_v27 = vcombine.low %v28780_v58, %v28781_v35  ;;  %v5420_v4 = vsel %vm623_vm0, %v17659_v45, 0  ;;  %v28785_v63 = vcombine.low %v28783_v36, %v28784_v49  ;;  %v17250_v62 = vcombine.low %v28786_v41, %v554_v61  ;;  %28787 = vst [vmem:[#allocation16_spill] sm:$0xff] %v23937_v46  ;;  %v23947_v48 = vld [vmem:[%s23196_s15 + $0x68] sm:$0xf]  ;;  %v28802_v19 = vld [vmem:[#allocation32_spill] sm:$0xff]  ;;  %v28822_v29 = vld [vmem:[#allocation41_spill] sm:$0xff] }
  0x99   : > { %v28790_v32 = vcombine.low %v28788_v55, %v28789_v9  ;;  %28791 = vst [vmem:[#allocation18_spill] sm:$0xff] %v23944_v8  ;;  %28792 = vst [vmem:[#allocation19_spill] sm:$0xff] %v23947_v48  ;;  %v17654_v16 = vcombine.low %v28794_v40, %v23934_v59  ;;  %v28795_v7 = vld [vmem:[#allocation26_spill] sm:$0xff]  ;;  %v2080_v42 = vshrl.u32 %v23899_v43, 16  ;;  %v2083_v23 = vshll.u32 %v23899_v43, 16  ;;  %v28823_v47 = vld [vmem:[#allocation43_spill] sm:$0xff] }
  0x9a   : > { %28793 = vst [vmem:[#allocation22_spill] sm:$0xff] %v23950_v17  ;;  %v28799_v10 = vld [vmem:[#allocation30_spill] sm:$0xff]  ;;  %v5915_v34 = vshrl.u32 %v23909_v12, 16  ;;  %v1654_v18 = vshrl.u32 %v554_v61, 16  ;;  %v5496_v58 = vshrl.u32 %v23934_v59, 16  ;;  %v5528_v35 = vsel %vm623_vm0, %v17668_v1, 0 }
  0x9b   : > { %20249 = vmatmul.mubr.msk.bf16.vlgmr.msra.gmra.mrb[0].mxu1 %vm610_vm1, %v17643_v33  ;;  %v28796_v33 = vld [vmem:[#allocation28_spill] sm:$0xff]  ;;  %v28800_v21 = vcombine.low %v28798_v37, %v28799_v10  ;;  %v2085_v56 = vrot.slane %v2083_v23, 5  ;;  %v2097_v49 = vshll.u32 %v23902_v5, 16  ;;  %v17684_v55 = vld [vmem:[%s23191_s19 + $0xac] sm:$0x1]  ;;  %v28810_v10 = vld [vmem:[#allocation37_spill] sm:$0xff] }
  0x9c   : > { %20257 = vmatpush3.bf16.msra.mxu1 %v5325_v31  ;;  %20252 = vmatprep.mubr.msk.bf16.mxu1 %vm610_vm1, %v17644_v39  ;;  %v28797_v39 = vcombine.low %v28795_v7, %v28796_v33  ;;  %v1687_v31 = vsel %vm623_vm0, %v17264_v26, 0  ;;  %v1656_v40 = vrot.slane %v1654_v18, 4  ;;  %v5932_v7 = vshll.u32 %v23914_v14, 16  ;;  %v28808_v23 = vld [vmem:[#allocation34_spill] sm:$0xff]  ;;  %v24187_v38 = vld [vmem:[%s23196_s15 + $0x70] sm:$0xf] }
  0x9d   : > { %22302 = vmatprep.subr.msk.bf16.mxu1 %vm623_vm0, %v17659_v45  ;;  %v5918_v45 = vshll.u32 %v23909_v12, 16  ;;  %v17333_v2 = vld [vmem:[%s28578_s4 + $0x28] sm:$0xf]  ;;  %28830 = vst [vmem:[#allocation28_spill] sm:$0xff] %v24187_v38  ;;  %v24196_v53 = vld [vmem:[%s23196_s15 + $0x78] sm:$0xf] }
  0x9e   : > { %19983 = vmatmul.mubr.msk.bf16.gmra.mrb[4].mxu0 %vm610_vm1, %v17241_v28  ;;  %v2082_v28 = vrot.slane %v2080_v42, 4  ;;  %v28807_v42 = vld [vmem:[#allocation31_spill] sm:$0xff]  ;;  %28832 = vst [vmem:[#allocation30_spill] sm:$0xff] %v24196_v53  ;;  %vm4332_vm5 = vsmask.f32 7938 }
  0x9f   : > { %19988 = vmatprep.mubr.msk.bf16.mxu0 %vm610_vm1, %v28775_v50  ;;  %v17280_v50 = vld [vmem:[%s23191_s19 + $0x64] sm:$0x1]  ;;  %v5920_v9 = vrot.slane %v5918_v45, 5  ;;  %v28809_v37 = vcombine.low %v28807_v42, %v28808_v23  ;;  %v28811_v45 = vld [vmem:[#allocation35_spill] sm:$0xff]  ;;  %v5934_v42 = vrot.slane %v5932_v7, 5  ;;  %vm25641_vm8 = vmand %vm623_vm0, %vm4332_vm5 }
  0xa0   : > { %v2086_v41 = vor.u32 %v2085_v56, %v2082_v28  ;;  %v28812_v28 = vld [vmem:[#allocation38_spill] sm:$0xff]  ;;  %vm4338_vm7 = vsmask.f32 256 }
  0xa1   : > { %v28813_v56 = vcombine.low %v28811_v45, %v28812_v28  ;;  %vm25649_vm9 = vmand %vm4337_vm6, %vm4338_vm7 }
  0xa3   : > { %20253 = vmatmul.mubr.msk.bf16.gmra.mrb[4].mxu1 %vm610_vm1, %v17645_v13  ;;  %v23977_v13 = vld [vmem:[%s28578_s4 + $0x24] sm:$0xf] }
  0xa4   : > { %20258 = vmatprep.mubr.msk.bf16.mxu1 %vm610_vm1, %v28776_v24  ;;  %v1657_v24 = vshll.u32 %v554_v61, 16  ;;  %v17572_v61 = vld [vmem:[%s23196_s15 + $0x88] sm:$0xf] }
  0xa6   : > { %19989 = vmatmul.mubr.msk.bf16.vlgmr.msra.gmra.mrb[0].mxu0 %vm610_vm1, %v28779_v22  ;;  %v2094_v22 = vshrl.u32 %v23902_v5, 16  ;;  %v1659_v33 = vrot.slane %v1657_v24, 5  ;;  %v2099_v24 = vrot.slane %v2097_v49, 5 }
  0xa7   : > { %19997 = vmatpush3.bf16.msra.mxu0 %v1578_v11  ;;  %19992 = vmatprep.mubr.msk.bf16.mxu0 %vm610_vm1, %v28782_v27  ;;  %v28801_v11 = vld [vmem:[#allocation29_spill] sm:$0xff] }
  0xa8   : > { %22276 = vmatprep.subr.msk.bf16.mxu0 %vm623_vm0, %v17264_v26  ;;  %v28803_v25 = vcombine.low %v28801_v11, %v28802_v19  ;;  %v564_v26 = vld [vmem:[%s23196_s15 + $0x40] sm:$0xf]  ;;  %v5498_v19 = vrot.slane %v5496_v58, 4  ;;  %v17563_v58 = vld [vmem:[%s23191_s19 + $0x8c] sm:$0x1] }
  0xa9   : > { %v28804_v27 = vld [vmem:[#allocation33_spill] sm:$0xff]  ;;  %v5505_v3 = vshll.u32 %v17563_v58, 16 }
  0xab   : > { %20259 = vmatmul.mubr.msk.bf16.vlgmr.msra.gmra.mrb[0].mxu1 %vm610_vm1, %v28785_v63  ;;  %v5917_v63 = vrot.slane %v5915_v34, 4  ;;  %v555_v34 = vld [vmem:[%s23191_s19 + $0x44] sm:$0x1]  ;;  %v5507_v28 = vrot.slane %v5505_v3, 5  ;;  %v24120_v3 = vld [vmem:[%s23191_s19 + $0x80] sm:$0xf] }
  0xac   : > { %20267 = vmatpush3.bf16.msra.mxu1 %v5420_v4  ;;  %20262 = vmatprep.mubr.msk.bf16.mxu1 %vm610_vm1, %v28790_v32  ;;  %v28805_v4 = vld [vmem:[#allocation36_spill] sm:$0xff]  ;;  %v17282_v32 = vld [vmem:[%s23191_s19 + $0x6c] sm:$0x1]  ;;  %v2139_v54 = vshll.u32 %v24120_v3, 16 }
  0xad   : > { %22303 = vmatprep.subr.msk.bf16.mxu1 %vm623_vm0, %v17668_v1  ;;  %v28806_v36 = vcombine.low %v28804_v27, %v28805_v4  ;;  %v17728_v1 = vld [vmem:[%s28578_s4 + $0x24] sm:$0xf]  ;;  %v5921_v18 = vor.u32 %v5920_v9, %v5917_v63  ;;  %v2103_v11 = vshll.u32 %v17282_v32, 16  ;;  %v1660_v63 = vor.u32 %v1659_v33, %v1656_v40 }
  0xae   : > { %19993 = vmatmul.mubr.msk.bf16.gmra.mrb[4].mxu0 %vm610_vm1, %v17250_v62  ;;  %v2089_v62 = vshll.u32 %v17280_v50, 16  ;;  %v5924_v50 = vshll.u32 %v17684_v55, 16  ;;  %v1663_v55 = vshll.u32 %v555_v34, 16  ;;  %v28820_v34 = vld [vmem:[#allocation42_spill] sm:$0xff] }
  0xaf   : > { %19998 = vmatprep.mubr.msk.bf16.mxu0 %vm610_vm1, %v28797_v39  ;;  %v5499_v39 = vshll.u32 %v23934_v59, 16  ;;  %v17686_v59 = vld [vmem:[%s23191_s19 + $0xb4] sm:$0x1]  ;;  %v1661_v33 = vrot.slane %v1660_v63, 4 }
  0xb0   : > { %v2091_v4 = vrot.slane %v2089_v62, 5  ;;  %v5938_v49 = vshll.u32 %v17686_v59, 16  ;;  %v5926_v9 = vrot.slane %v5924_v50, 5  ;;  %v17275_v50 = vld [vmem:[%s23191_s19 + $0x50] sm:$0xf] }
  0xb1   : > { %v5501_v23 = vrot.slane %v5499_v39, 5  ;;  %v1665_v39 = vrot.slane %v1663_v55, 5  ;;  %v2055_v63 = vshll.u32 %v17275_v50, 16  ;;  %v24097_v55 = vld [vmem:[%s23191_s19 + $0xa0] sm:$0xf] }
  0xb2   : > { %v5940_v32 = vrot.slane %v5938_v49, 5 }
  0xb3   : > { %20263 = vmatmul.mubr.msk.bf16.gmra.mrb[4].mxu1 %vm610_vm1, %v17654_v16  ;;  %v5929_v16 = vshrl.u32 %v23914_v14, 16  ;;  %v5502_v0 = vor.u32 %v5501_v23, %v5498_v19  ;;  %v2052_v23 = vshrl.u32 %v17275_v50, 16 }
  0xb4   : > { %20268 = vmatprep.mubr.msk.bf16.mxu1 %vm610_vm1, %v28800_v21  ;;  %v17259_v21 = vcombine.low %v28810_v10, %v564_v26  ;;  %v2087_v26 = vrot.slane %v2086_v41, 4 }
  0xb5   : > { %v5503_v45 = vrot.slane %v5502_v0, 4  ;;  %v24117_v0 = vld [vmem:[%s23191_s19 + $0x78] sm:$0xf] }
  0xb6   : > { %19999 = vmatmul.mubr.msk.bf16.vlgmr.msra.gmra.mrb[0].mxu0 %vm610_vm1, %v28803_v25  ;;  %v28814_v25 = vld [vmem:[#allocation39_spill] sm:$0xff] }
  0xb7   : > { %20007 = vmatpush3.bf16.msra.mxu0 %v1687_v31  ;;  %20002 = vmatprep.mubr.msk.bf16.mxu0 %vm610_vm1, %v28806_v36  ;;  %v2096_v31 = vrot.slane %v2094_v22, 4  ;;  %v17663_v27 = vcombine.low %v28814_v25, %v17572_v61  ;;  %v5931_v36 = vrot.slane %v5929_v16, 4  ;;  %v5922_v61 = vrot.slane %v5921_v18, 4  ;;  %v17273_v18 = vld [vmem:[%s23191_s19 + $0x48] sm:$0xf] }
  0xb8   : > { %22277 = vmatprep.subr.msk.bf16.mxu0 %vm623_vm0, %v23977_v13  ;;  %v24025_v16 = vsel %vm23435_vm4, %v2087_v26, %v2091_v4  ;;  %v17325_v19 = vcombine.low %v17273_v18, %v17275_v50  ;;  %v17677_v25 = vld [vmem:[%s23191_s19 + $0x90] sm:$0xf]  ;;  %v28826_v26 = vld [vmem:[#allocation45_spill] sm:$0xff]  ;;  %v2041_v44 = vshll.u32 %v17273_v18, 16  ;;  %v5901_v50 = vshrl.u32 %v24097_v55, 16 }
  0xb9   : > { %v2100_v22 = vor.u32 %v2099_v24, %v2096_v31  ;;  %v5935_v62 = vor.u32 %v5934_v42, %v5931_v36  ;;  %28815 = vst [vmem:[#allocation17_spill] sm:$0xff] %v24025_v16  ;;  %v17737_v24 = vld [vmem:[%s28578_s4 + $0x28] sm:$0xf]  ;;  %v5876_v36 = vshll.u32 %v17677_v25, 16  ;;  %v24094_v42 = vld [vmem:[%s23191_s19 + $0x70] sm:$0xf] }
  0xba   : > { %v24102_v58 = vrot.slane %v2041_v44, 5  ;;  %v24162_v44 = vld [vmem:[%s23196_s15 + $0x98] sm:$0xf] }
  0xbb   : > { %20269 = vmatmul.mubr.msk.bf16.vlgmr.msra.gmra.mrb[0].mxu1 %vm610_vm1, %v28809_v37  ;;  %v2101_v41 = vrot.slane %v2100_v22, 4  ;;  %v5936_v7 = vrot.slane %v5935_v62, 4  ;;  %v24040_v37 = vsel %vm23435_vm4, %v5922_v61, %v5926_v9  ;;  %v2038_v22 = vshrl.u32 %v17273_v18, 16  ;;  %v24107_v9 = vld [vmem:[%s23191_s19 + $0xb8] sm:$0xf]  ;;  %28827 = vst [vmem:[#allocation24_spill] sm:$0xff] %v24162_v44 }
  0xbc   : > { %20277 = vmatpush3.bf16.msra.mxu1 %v5528_v35  ;;  %20272 = vmatprep.mubr.msk.bf16.mxu1 %vm610_vm1, %v28813_v56  ;;  %v2105_v35 = vrot.slane %v2103_v11, 5  ;;  %28817 = vst [vmem:[#allocation23_spill] sm:$0xff] %v24040_v37  ;;  %v5688_v56 = vsel %vm623_vm0, %v17728_v1, 0  ;;  %v28824_v11 = vcombine.low %v28822_v29, %v28823_v47  ;;  %v2057_v18 = vrot.slane %v2055_v63, 5 }
  0xbd   : > { %22304 = vmatprep.subr.msk.bf16.mxu1 %vm623_vm0, %v17728_v1  ;;  %v24044_v10 = vsel %vm23435_vm4, %v5936_v7, %v5940_v32  ;;  %v5508_v1 = vsel %vm23435_vm4, %v5503_v45, %v5507_v28  ;;  %v24100_v49 = vrot.slane %v2038_v22, 4  ;;  %v17327_v7 = vcombine.low %v23902_v5, %v24094_v42  ;;  %v24138_v45 = vld [vmem:[%s23191_s19 + $0xc8] sm:$0xf]  ;;  %v17274_v28 = vld [vmem:[%s23191_s19 + $0x4c] sm:$0x1] }
  0xbe   : > { %20003 = vmatmul.mubr.msk.bf16.gmra.mrb[4].mxu0 %vm610_vm1, %v17259_v21  ;;  %v24029_v40 = vsel %vm23435_vm4, %v2101_v41, %v2105_v35  ;;  %28818 = vst [vmem:[#allocation21_spill] sm:$0xff] %v24044_v10  ;;  %v1852_v21 = vsel %vm623_vm0, %v23977_v13, 0  ;;  %v1666_v13 = vsel %vm23435_vm4, %v1661_v33, %v1665_v39  ;;  %v17672_v4 = vcombine.low %v28826_v26, %v5508_v1  ;;  %v24091_v35 = vld [vmem:[%s23191_s19 + $0x58] sm:$0xf]  ;;  %v24125_v33 = vld [vmem:[%s28578_s4 + $0x2c] sm:$0xf] }
  0xbf   : > { %20008 = vmatprep.mubr.msk.bf16.mxu0 %vm610_vm1, %v17265_v52  ;;  %28816 = vst [vmem:[#allocation20_spill] sm:$0xff] %v24029_v40  ;;  %v17326_v61 = vcombine.low %v24091_v35, %v23899_v43  ;;  %v24127_v39 = vrot.slane %v5876_v36, 5  ;;  %v5904_v29 = vshll.u32 %v24097_v55, 16  ;;  %v2108_v47 = vshrl.u32 %v24094_v42, 16  ;;  %v24156_v26 = vld [vmem:[%s23196_s15 + $0x90] sm:$0xf] }
  0xc0   : > { %v2111_v1 = vshll.u32 %v24094_v42, 16  ;;  %v2122_v22 = vshrl.u32 %v24117_v0, 16  ;;  %v2047_v36 = vshll.u32 %v17274_v28, 16  ;;  %v17678_v52 = vld [vmem:[%s23191_s19 + $0x94] sm:$0x1]  ;;  %v17738_v28 = vcombine.low %v24156_v26, %v24162_v44 }
  0xc1   : > { %v17682_v26 = vld [vmem:[%s23191_s19 + $0xa4] sm:$0x1] }
  0xc3   : > { %20273 = vmatmul.mubr.msk.bf16.gmra.mrb[4].mxu1 %vm610_vm1, %v17663_v27  ;;  %v24083_v27 = vld [vmem:[%s23191_s19 + $0x98] sm:$0xf] }
  0xc4   : > { %20278 = vmatprep.mubr.msk.bf16.mxu1 %vm610_vm1, %v17669_v20  ;;  %v28819_v20 = vld [vmem:[#allocation40_spill] sm:$0xff]  ;;  %v17729_v6 = vcombine.low %v17677_v25, %v24083_v27  ;;  %v5887_v62 = vshrl.u32 %v24083_v27, 16  ;;  %v5890_v32 = vshll.u32 %v24083_v27, 16  ;;  %v17336_v27 = vcombine.low %v23947_v48, %v24187_v38 }
  0xc5   : > { %v28821_v31 = vcombine.low %v28819_v20, %v28820_v34  ;;  %v2069_v20 = vshll.u32 %v24091_v35, 16  ;;  %v1962_v34 = vsel %vm623_vm0, %v17333_v2, 0 }
  0xc6   : > { %v5889_v63 = vrot.slane %v5887_v62, 4 }
  0xc7   : > { %20009 = vmatmul.mubr.msk.bf16.vlgmr.msra.gmra.mrb[0].mxu0 %vm610_vm1, %v28821_v31  ;;  %v17730_v31 = vcombine.low %v24097_v55, %v23909_v12  ;;  %v2124_v55 = vrot.slane %v2122_v22, 4  ;;  %v17288_v22 = vld [vmem:[%s23191_s19 + $0x84] sm:$0x1] }
  0xc8   : > { %20017 = vmatpush3.bf16.msra.mxu0 %v1852_v21  ;;  %20012 = vmatprep.mubr.msk.bf16.mxu0 %vm610_vm1, %v17267_v15  ;;  %v28825_v15 = vld [vmem:[#allocation44_spill] sm:$0xff]  ;;  %v2066_v21 = vshrl.u32 %v24091_v35, 16 }
  0xc9   : > { %22278 = vmatprep.subr.msk.bf16.mxu0 %vm623_vm0, %v17333_v2  ;;  %v17268_v59 = vcombine.low %v28825_v15, %v1666_v13  ;;  %v24135_v13 = vld [vmem:[%s23191_s19 + $0xc0] sm:$0xf]  ;;  %v5797_v2 = vsel %vm623_vm0, %v17737_v24, 0  ;;  %v17292_v15 = vld [vmem:[%s23196_s15 + $0x50] sm:$0xf] }
  0xca   : > { %v17688_v35 = vld [vmem:[%s23191_s19 + $0xbc] sm:$0x1] }
  0xcb   : > { %20279 = vmatmul.mubr.msk.bf16.vlgmr.msra.gmra.mrb[0].mxu1 %vm610_vm1, %v28824_v11  ;;  %v17291_v11 = vld [vmem:[%s23196_s15 + $0x48] sm:$0xf] }
  0xcc   : > { %20287 = vmatpush3.bf16.msra.mxu1 %v5688_v56  ;;  %20282 = vmatprep.mubr.msk.bf16.mxu1 %vm610_vm1, %v17671_v60  ;;  %v5873_v60 = vshrl.u32 %v17677_v25, 16  ;;  %v2054_v56 = vrot.slane %v2052_v23, 4  ;;  %v5943_v25 = vshrl.u32 %v24107_v9, 16  ;;  %v2125_v23 = vshll.u32 %v24117_v0, 16 }
  0xcd   : > { %22305 = vmatprep.subr.msk.bf16.mxu1 %vm623_vm0, %v17737_v24  ;;  %v5946_v24 = vshll.u32 %v24107_v9, 16 }
  0xce   : > { %v24110_v41 = vrot.slane %v5873_v60, 4  ;;  %v2044_v60 = vor.u32 %v24102_v58, %v24100_v49  ;;  %v17732_v49 = vcombine.low %v24135_v13, %v24138_v45  ;;  %v5882_v58 = vshll.u32 %v17678_v52, 16 }
  0xcf   : > { %20013 = vmatmul.mubr.msk.bf16.gmra.mrb[4].mxu0 %vm610_vm1, %v17268_v59  ;;  %v17276_v59 = vld [vmem:[%s23191_s19 + $0x54] sm:$0x1]  ;;  %v2176_v52 = vsel %vm623_vm0, %v24125_v33, 0 }
  0xd0   : > { %20018 = vmatprep.mubr.msk.bf16.mxu0 %vm610_vm1, %v17325_v19  ;;  %v17731_v19 = vcombine.low %v23914_v14, %v24107_v9  ;;  %v2061_v51 = vshll.u32 %v17276_v59, 16  ;;  %v24193_v59 = vld [vmem:[%s23196_s15 + $0xb8] sm:$0xf]  ;;  %v5879_v30 = vor.u32 %v24127_v39, %v24110_v41  ;;  %v5892_v41 = vrot.slane %v5890_v32, 5 }
  0xd1   : > { %28831 = vst [vmem:[#allocation27_spill] sm:$0xff] %v24193_v59  ;;  %v2071_v32 = vrot.slane %v2069_v20, 5  ;;  %v5945_v20 = vrot.slane %v5943_v25, 4 }
  0xd2   : > { %v5893_v62 = vor.u32 %v5892_v41, %v5889_v63  ;;  %v2113_v63 = vrot.slane %v2111_v1, 5  ;;  %v17286_v1 = vld [vmem:[%s23191_s19 + $0x7c] sm:$0x1] }
  0xd3   : > { %20283 = vmatmul.mubr.msk.bf16.gmra.mrb[4].mxu1 %vm610_vm1, %v17672_v4  ;;  %v17328_v4 = vcombine.low %v24117_v0, %v24120_v3 }
  0xd4   : > { %20288 = vmatprep.mubr.msk.bf16.mxu1 %vm610_vm1, %v17729_v6  ;;  %v17746_v6 = vld [vmem:[%s28578_s4 + $0x2c] sm:$0xf] }
  0xd7   : > { %20019 = vmatmul.mubr.msk.bf16.vlgmr.msra.gmra.mrb[0].mxu0 %vm610_vm1, %v17326_v61  ;;  %v24174_v61 = vld [vmem:[%s23196_s15 + $0x58] sm:$0xf] }
  0xd8   : > { %20027 = vmatpush3.bf16.msra.mxu0 %v1962_v34  ;;  %20022 = vmatprep.mubr.msk.bf16.mxu0 %vm610_vm1, %v17327_v7  ;;  %28828 = vst [vmem:[#allocation25_spill] sm:$0xff] %v24174_v61  ;;  %v24177_v7 = vld [vmem:[%s23196_s15 + $0xa0] sm:$0xf]  ;;  %v2058_v34 = vor.u32 %v2057_v18, %v2054_v56  ;;  %v17334_v18 = vcombine.low %v17291_v11, %v17292_v15  ;;  %v2049_v56 = vrot.slane %v2047_v36, 5  ;;  %v2063_v11 = vrot.slane %v2061_v51, 5 }
  0xd9   : > { %22279 = vmatprep.subr.msk.bf16.mxu0 %vm623_vm0, %v24125_v33  ;;  %28829 = vst [vmem:[#allocation26_spill] sm:$0xff] %v24177_v7  ;;  %v17680_v15 = vld [vmem:[%s23191_s19 + $0x9c] sm:$0x1]  ;;  %v17335_v39 = vcombine.low %v24174_v61, %v23937_v46  ;;  %v24219_v51 = vsel %vm623_vm0, %v17746_v6, 0  ;;  %v17705_v46 = vld [vmem:[%s23201_s12 + $0x94] sm:$0x1] }
  0xda   : > { %v5896_v36 = vshll.u32 %v17680_v15, 16  ;;  %v5910_v15 = vshll.u32 %v17682_v26, 16  ;;  %v17307_v61 = vld [vmem:[%s23201_s12 + $0x64] sm:$0x1] }
  0xdb   : > { %20289 = vmatmul.mubr.msk.bf16.vlgmr.msra.gmra.mrb[0].mxu1 %vm610_vm1, %v17730_v31  ;;  %v2059_v31 = vrot.slane %v2058_v34, 4  ;;  %v2068_v34 = vrot.slane %v2066_v21, 4  ;;  %v17284_v21 = vld [vmem:[%s23191_s19 + $0x74] sm:$0x1] }
  0xdc   : > { %20297 = vmatpush3.bf16.msra.mxu1 %v5797_v2  ;;  %20292 = vmatprep.mubr.msk.bf16.mxu1 %vm610_vm1, %v17731_v19  ;;  %v24204_v2 = vld [vmem:[%s23196_s15 + $0x80] sm:$0xf]  ;;  %v2045_v19 = vrot.slane %v2044_v60, 4  ;;  %v17278_v60 = vld [vmem:[%s23191_s19 + $0x5c] sm:$0x1] }
  0xdd   : > { %22306 = vmatprep.subr.msk.bf16.mxu1 %vm623_vm0, %v17746_v6  ;;  %28833 = vst [vmem:[#allocation29_spill] sm:$0xff] %v24204_v2  ;;  %v24233_v6 = vrot.slane %v5882_v58, 5  ;;  %v5903_v58 = vrot.slane %v5901_v50, 4  ;;  %v5948_v50 = vrot.slane %v5946_v24, 5  ;;  %v2072_v9 = vor.u32 %v2071_v32, %v2068_v34  ;;  %v17351_v24 = vld [vmem:[%s28578_s4 + $0x30] sm:$0xf] }
  0xde   : > { %v2050_v33 = vsel %vm23435_vm4, %v2045_v19, %v2049_v56  ;;  %v5906_v56 = vrot.slane %v5904_v29, 5  ;;  %v2127_v29 = vrot.slane %v2125_v23, 5  ;;  %v2141_v19 = vrot.slane %v2139_v54, 5 }
  0xdf   : > { %20023 = vmatmul.mubr.msk.bf16.gmra.mrb[4].mxu0 %vm610_vm1, %v17328_v4  ;;  %v24229_v4 = vrot.slane %v5879_v30, 4  ;;  %v2075_v30 = vshll.u32 %v17278_v60, 16  ;;  %v5949_v54 = vor.u32 %v5948_v50, %v5945_v20  ;;  %v5952_v60 = vshll.u32 %v17688_v35, 16 }
  0xe0   : > { %20028 = vmatprep.mubr.msk.bf16.mxu0 %vm610_vm1, %v17334_v18  ;;  %v24239_v18 = vsel %vm23435_vm4, %v2059_v31, %v2063_v11  ;;  %v2110_v31 = vrot.slane %v2108_v47, 4  ;;  %v5898_v47 = vrot.slane %v5896_v36, 5  ;;  %v5894_v11 = vrot.slane %v5893_v62, 4 }
  0xe1   : > { %28834 = vst [vmem:[#allocation32_spill] sm:$0xff] %v24239_v18  ;;  %v5885_v42 = vsel %vm23435_vm4, %v24229_v4, %v24233_v6  ;;  %v17343_v25 = vcombine.low %v2050_v33, %v24239_v18  ;;  %v2077_v0 = vrot.slane %v2075_v30, 5  ;;  %v5907_v23 = vor.u32 %v5906_v56, %v5903_v58  ;;  %v24277_v4 = vld [vmem:[%s23196_s15 + $0xc0] sm:$0xf]  ;;  %v24280_v33 = vld [vmem:[%s23196_s15 + $0xc8] sm:$0xf] }
  0xe2   : > { %v2114_v41 = vor.u32 %v2113_v63, %v2110_v31  ;;  %v2128_v62 = vor.u32 %v2127_v29, %v2124_v55  ;;  %v2131_v32 = vshll.u32 %v17286_v1, 16  ;;  %28836 = vst [vmem:[#allocation33_spill] sm:$0xff] %v24277_v4  ;;  %28837 = vst [vmem:[#allocation36_spill] sm:$0xff] %v24280_v33  ;;  %v28838_v6 = vshrl.u32 %v24135_v13, 16  ;;  %v17690_v56 = vld [vmem:[%s23191_s19 + $0xc4] sm:$0x1] }
  0xe3   : > { %20293 = vmatmul.mubr.msk.bf16.gmra.mrb[4].mxu1 %vm610_vm1, %v17732_v49  ;;  %v28835_v49 = vshrl.u32 %v24120_v3, 16  ;;  %v2117_v3 = vshll.u32 %v17284_v21, 16  ;;  %v28839_v36 = vshll.u32 %v24135_v13, 16  ;;  %v24292_v30 = vsel %vm23435_vm4, %v5894_v11, %v5898_v47  ;;  %v17692_v1 = vld [vmem:[%s23191_s19 + $0xcc] sm:$0x1] }
  0xe4   : > { %20298 = vmatprep.mubr.msk.bf16.mxu1 %vm610_vm1, %v17738_v28  ;;  %28840 = vst [vmem:[#allocation31_spill] sm:$0xff] %v24292_v30  ;;  %v2073_v58 = vrot.slane %v2072_v9, 4  ;;  %v28841_v21 = vshrl.u32 %v24138_v45, 16  ;;  %v28842_v63 = vshll.u32 %v24138_v45, 16  ;;  %v28843_v20 = vcombine.low %v24177_v7, %v23944_v8  ;;  %v24522_v8 = vld [vmem:[%s23201_s12 + $0xc8] sm:$0xf] }
  0xe5   : > { %v2138_v28 = vrot.slane %v28835_v49, 4  ;;  %v5962_v34 = vrot.slane %v28839_v36, 5  ;;  %v5908_v50 = vrot.slane %v5907_v23, 4  ;;  %v5912_v13 = vrot.slane %v5910_v15, 5  ;;  %v17305_v7 = vld [vmem:[%s23201_s12 + $0x5c] sm:$0x1] }
  0xe6   : > { %v5973_v31 = vrot.slane %v28841_v21, 4  ;;  %v5976_v35 = vrot.slane %v28842_v63, 5  ;;  %v2115_v55 = vrot.slane %v2114_v41, 4  ;;  %v2119_v29 = vrot.slane %v2117_v3, 5 }
  0xe7   : > { %20029 = vmatmul.mubr.msk.bf16.vlgmr.msra.gmra.mrb[0].mxu0 %vm610_vm1, %v17335_v39  ;;  %v17755_v39 = vld [vmem:[%s28578_s4 + $0x30] sm:$0xf]  ;;  %v2142_v26 = vor.u32 %v2141_v19, %v2138_v28  ;;  %v28844_v47 = vcombine.low %v23950_v17, %v24193_v59  ;;  %v5950_v49 = vrot.slane %v5949_v54, 4  ;;  %v5954_v45 = vrot.slane %v5952_v60, 5 }
  0xe8   : > { %20037 = vmatpush3.bf16.msra.mxu0 %v2176_v52  ;;  %20032 = vmatprep.mubr.msk.bf16.mxu0 %vm610_vm1, %v17336_v27  ;;  %v2145_v52 = vshll.u32 %v17288_v22, 16  ;;  %v5959_v27 = vrot.slane %v28838_v6, 4  ;;  %v2129_v28 = vrot.slane %v2128_v62, 4  ;;  %v2133_v19 = vrot.slane %v2131_v32, 5 }
  0xe9   : > { %22280 = vmatprep.subr.msk.bf16.mxu0 %vm623_vm0, %v17351_v24  ;;  %v2143_v11 = vrot.slane %v2142_v26, 4  ;;  %v5966_v23 = vshll.u32 %v17690_v56, 16  ;;  %v5977_v15 = vor.u32 %v5976_v35, %v5973_v31  ;;  %v5980_v41 = vshll.u32 %v17692_v1, 16  ;;  %v24330_v26 = vld [vmem:[%s23201_s12 + $0x48] sm:$0xf] }
  0xea   : > { %v2147_v9 = vrot.slane %v2145_v52, 5  ;;  %v5963_v22 = vor.u32 %v5962_v34, %v5959_v27  ;;  %v28845_v3 = vcombine.low %v24196_v53, %v24204_v2  ;;  %v17747_v54 = vcombine.low %v5885_v42, %v24292_v30 }
  0xeb   : > { %20299 = vmatmul.mubr.msk.bf16.vlgmr.msra.gmra.mrb[0].mxu1 %vm610_vm1, %v28843_v20  ;;  %v24319_v60 = vsel %vm23435_vm4, %v2073_v58, %v2077_v0  ;;  %v24323_v62 = vsel %vm23435_vm4, %v5908_v50, %v5912_v13  ;;  %v24327_v32 = vsel %vm23435_vm4, %v2115_v55, %v2119_v29  ;;  %v24335_v52 = vsel %vm23435_vm4, %v5950_v49, %v5954_v45  ;;  %v24342_v0 = vld [vmem:[%s23201_s12 + $0x50] sm:$0xf]  ;;  %v24378_v49 = vld [vmem:[%s23201_s12 + $0x58] sm:$0xf]  ;;  %v24381_v45 = vld [vmem:[%s23201_s12 + $0x60] sm:$0xf] }
  0xec   : > { %20307 = vmatpush3.bf16.msra.mxu1 %v24219_v51  ;;  %20302 = vmatprep.mubr.msk.bf16.mxu1 %vm610_vm1, %v28844_v47  ;;  %v17741_v51 = vcombine.low %v24277_v4, %v24280_v33  ;;  %28846 = vst [vmem:[#allocation34_spill] sm:$0xff] %v24319_v60  ;;  %28847 = vst [vmem:[#allocation37_spill] sm:$0xff] %v24323_v62  ;;  %v24339_v42 = vsel %vm23435_vm4, %v2129_v28, %v2133_v19  ;;  %v2472_v6 = vshrl.u32 %v24330_v26, 16  ;;  %v24363_v13 = vld [vmem:[%s23201_s12 + $0x90] sm:$0xf] }
  0xed   : > { %22307 = vmatprep.subr.msk.bf16.mxu1 %vm623_vm0, %v17755_v39  ;;  %28848 = vst [vmem:[#allocation35_spill] sm:$0xff] %v24327_v32  ;;  %28849 = vst [vmem:[#allocation38_spill] sm:$0xff] %v24335_v52  ;;  %v2475_v27 = vshll.u32 %v24330_v26, 16  ;;  %v24348_v36 = vsel %vm23435_vm4, %v2143_v11, %v2147_v9  ;;  %v5968_v34 = vrot.slane %v5966_v23, 5  ;;  %v2486_v58 = vshrl.u32 %v24342_v0, 16 }
  0xee   : > { %28850 = vst [vmem:[#allocation39_spill] sm:$0xff] %v24339_v42  ;;  %28851 = vst [vmem:[#allocation40_spill] sm:$0xff] %v24348_v36  ;;  %v2286_v56 = vsel %vm623_vm0, %v17351_v24, 0  ;;  %v6119_v21 = vsel %vm623_vm0, %v17755_v39, 0  ;;  %v5978_v31 = vrot.slane %v5977_v15, 4  ;;  %v5982_v63 = vrot.slane %v5980_v41, 5 }
  0xef   : > { %20033 = vmatmul.mubr.msk.bf16.gmra.mrb[4].mxu0 %vm610_vm1, %v28845_v3  ;;  %v17344_v35 = vcombine.low %v24319_v60, %v24025_v16  ;;  %v17748_v20 = vcombine.low %v24323_v62, %v24040_v37  ;;  %v17345_v50 = vcombine.low %v24029_v40, %v24327_v32  ;;  %v17749_v24 = vcombine.low %v24044_v10, %v24335_v52  ;;  %v24366_v39 = vld [vmem:[%s23201_s12 + $0x98] sm:$0xf]  ;;  %v24402_v3 = vld [vmem:[%s23201_s12 + $0xa0] sm:$0xf] }
  0xf0   : > { %20038 = vmatprep.mubr.msk.bf16.mxu0 %vm610_vm1, %v17343_v25  ;;  %v5964_v25 = vrot.slane %v5963_v22, 4  ;;  %v24373_v1 = vrot.slane %v2472_v6, 4  ;;  %v24375_v47 = vrot.slane %v2475_v27, 5  ;;  %v24387_v19 = vrot.slane %v2486_v58, 4  ;;  %v17360_v22 = vld [vmem:[%s28578_s4 + $0x34] sm:$0xf] }
  0xf1   : > { %v2489_v11 = vshll.u32 %v24342_v0, 16  ;;  %v6304_v9 = vshrl.u32 %v24363_v13, 16  ;;  %v24396_v23 = vsel %vm23435_vm4, %v5978_v31, %v5982_v63  ;;  %v6318_v15 = vshrl.u32 %v24366_v39, 16  ;;  %v24483_v62 = vld [vmem:[%s23201_s12 + $0x78] sm:$0xf] }
  0xf2   : > { %v24385_v28 = vsel %vm23435_vm4, %v5964_v25, %v5968_v34  ;;  %28853 = vst [vmem:[#allocation41_spill] sm:$0xff] %v24396_v23  ;;  %v6321_v41 = vshll.u32 %v24366_v39, 16  ;;  %v2503_v6 = vshll.u32 %v24378_v49, 16  ;;  %v2514_v27 = vshrl.u32 %v24381_v45, 16  ;;  %v24410_v34 = vld [vmem:[%s23201_s12 + $0xa8] sm:$0xf] }
  0xf3   : > { %20303 = vmatmul.mubr.msk.bf16.gmra.mrb[4].mxu1 %vm610_vm1, %v17741_v51  ;;  %28852 = vst [vmem:[#allocation42_spill] sm:$0xff] %v24385_v28  ;;  %v6307_v51 = vshll.u32 %v24363_v13, 16  ;;  %v2517_v25 = vshll.u32 %v24381_v45, 16  ;;  %v6332_v31 = vshrl.u32 %v24402_v3, 16  ;;  %v6335_v63 = vshll.u32 %v24402_v3, 16 }
  0xf4   : > { %20308 = vmatprep.mubr.msk.bf16.mxu1 %vm610_vm1, %v17747_v54  ;;  %v2500_v54 = vshrl.u32 %v24378_v49, 16  ;;  %v17750_v29 = vcombine.low %v24385_v28, %v24396_v23  ;;  %v24420_v55 = vrot.slane %v2489_v11, 5  ;;  %v24422_v10 = vrot.slane %v6304_v9, 4  ;;  %v17764_v11 = vld [vmem:[%s28578_s4 + $0x34] sm:$0xf] }
  0xf5   : > { %v24429_v58 = vrot.slane %v6318_v15, 4  ;;  %v24431_v37 = vrot.slane %v6321_v41, 5  ;;  %v24443_v15 = vrot.slane %v2514_v27, 4  ;;  %v24448_v41 = vld [vmem:[%s23201_s12 + $0x68] sm:$0xf]  ;;  %v24451_v40 = vrot.slane %v6332_v31, 4 }
  0xf6   : > { %v24439_v9 = vrot.slane %v2500_v54, 4  ;;  %v24453_v23 = vrot.slane %v6335_v63, 5  ;;  %v6349_v54 = vshll.u32 %v24410_v34, 16  ;;  %v24463_v27 = vsel %vm623_vm0, %v17360_v22, 0  ;;  %v24495_v52 = vld [vmem:[%s23201_s12 + $0x80] sm:$0xf] }
  0xf7   : > { %20039 = vmatmul.mubr.msk.bf16.vlgmr.msra.gmra.mrb[0].mxu0 %vm610_vm1, %v17344_v35  ;;  %v6346_v35 = vshrl.u32 %v24410_v34, 16  ;;  %v2531_v16 = vshll.u32 %v24448_v41, 16  ;;  %v28854_v33 = vcombine.low %v24339_v42, %v24348_v36  ;;  %v28855_v32 = vcombine.low %v24330_v26, %v24342_v0  ;;  %v24513_v0 = vld [vmem:[%s23201_s12 + $0xc0] sm:$0xf] }
  0xf8   : > { %20047 = vmatpush3.bf16.msra.mxu0 %v2286_v56  ;;  %20042 = vmatprep.mubr.msk.bf16.mxu0 %vm610_vm1, %v17345_v50  ;;  %v24427_v50 = vrot.slane %v6307_v51, 5  ;;  %v24441_v51 = vrot.slane %v2503_v6, 5  ;;  %v24445_v56 = vrot.slane %v2517_v25, 5  ;;  %v24459_v6 = vld [vmem:[%s23201_s12 + $0x70] sm:$0xf]  ;;  %v2556_v36 = vshrl.u32 %v24483_v62, 16 }
  0xf9   : > { %22281 = vmatprep.subr.msk.bf16.mxu0 %vm623_vm0, %v17360_v22  ;;  %v24470_v25 = vld [vmem:[%s23201_s12 + $0xb8] sm:$0xf]  ;;  %v2542_v22 = vshrl.u32 %v24459_v6, 16  ;;  %v2545_v30 = vshll.u32 %v24459_v6, 16  ;;  %v17354_v63 = vcombine.low %v24448_v41, %v24459_v6  ;;  %v2570_v6 = vshrl.u32 %v24495_v52, 16 }
  0xfa   : > { %v6374_v28 = vshrl.u32 %v24470_v25, 16  ;;  %v24505_v42 = vrot.slane %v6349_v54, 5  ;;  %v2573_v26 = vshll.u32 %v24495_v52, 16  ;;  %v6388_v54 = vshrl.u32 %v24513_v0, 16 }
  0xfb   : > { %20309 = vmatmul.mubr.msk.bf16.vlgmr.msra.gmra.mrb[0].mxu1 %vm610_vm1, %v17748_v20  ;;  %v24455_v20 = vrot.slane %v6346_v35, 4  ;;  %v24477_v35 = vsel %vm623_vm0, %v17764_v11, 0  ;;  %v24517_v2 = vrot.slane %v2542_v22, 4  ;;  %v24519_v17 = vrot.slane %v2545_v30, 5  ;;  %v17369_v30 = vld [vmem:[%s28578_s4 + $0x38] sm:$0xf] }
  0xfc   : > { %20317 = vmatpush3.bf16.msra.mxu1 %v6119_v21  ;;  %20312 = vmatprep.mubr.msk.bf16.mxu1 %vm610_vm1, %v17749_v24  ;;  %v2528_v21 = vshrl.u32 %v24448_v41, 16  ;;  %v24467_v24 = vld [vmem:[%s23201_s12 + $0xb0] sm:$0xf]  ;;  %v2559_v41 = vshll.u32 %v24483_v62, 16  ;;  %v24531_v4 = vrot.slane %v6374_v28, 4  ;;  %v28856_v48 = vcombine.low %v24363_v13, %v24366_v39 }
  0xfd   : > { %22308 = vmatprep.subr.msk.bf16.mxu1 %vm623_vm0, %v17764_v11  ;;  %v6360_v11 = vshrl.u32 %v24467_v24, 16  ;;  %v6363_v31 = vshll.u32 %v24467_v24, 16  ;;  %v17303_v22 = vld [vmem:[%s23201_s12 + $0x54] sm:$0x1]  ;;  %v24548_v28 = vrot.slane %v2570_v6, 4  ;;  %v24551_v38 = vrot.slane %v2573_v26, 5 }
  0xfe   : > { %v24507_v18 = vrot.slane %v2528_v21, 4  ;;  %v17301_v21 = vld [vmem:[%s23201_s12 + $0x4c] sm:$0x1]  ;;  %v6402_v53 = vshrl.u32 %v24522_v8, 16  ;;  %v2478_v13 = vor.u32 %v24375_v47, %v24373_v1  ;;  %v17707_v39 = vld [vmem:[%s23201_s12 + $0x9c] sm:$0x1]  ;;  %v2492_v6 = vor.u32 %v24420_v55, %v24387_v19 }
  0xff   : > { %20043 = vmatmul.mubr.msk.bf16.gmra.mrb[4].mxu0 %vm610_vm1, %v28854_v33  ;;  %v6377_v33 = vshll.u32 %v24470_v25, 16  ;;  %v24527_v59 = vrot.slane %v6360_v11, 4  ;;  %v24529_v60 = vrot.slane %v6363_v31, 5  ;;  %v24544_v11 = vrot.slane %v2556_v36, 4  ;;  %v24578_v55 = vld [vmem:[%s23191_s19 + $0xa8] sm:$0xf] }
 0x100   : > { %20048 = vmatprep.mubr.msk.bf16.mxu0 %vm610_vm1, %v28855_v32  ;;  %v24515_v32 = vrot.slane %v2531_v16, 5  ;;  %v6391_v16 = vshll.u32 %v24513_v0, 16  ;;  %v24546_v31 = vrot.slane %v2559_v41, 5  ;;  %v24557_v36 = vrot.slane %v6388_v54, 4  ;;  %v17773_v41 = vld [vmem:[%s28578_s4 + $0x38] sm:$0xf] }
 0x101   : > { %v2495_v26 = vshll.u32 %v17303_v22, 16  ;;  %v28857_v44 = vcombine.low %v24378_v49, %v24381_v45  ;;  %v6310_v47 = vor.u32 %v24427_v50, %v24422_v10  ;;  %v6313_v54 = vshll.u32 %v17705_v46, 16  ;;  %v24581_v19 = vld [vmem:[%s23191_s19 + $0xb0] sm:$0xf]  ;;  %v24596_v45 = vld [vmem:[%s23191_s19 + $0xf8] sm:$0xf] }
 0x102   : > { %v24569_v1 = vrot.slane %v6391_v16, 5  ;;  %v24588_v46 = vsel %vm623_vm0, %v17369_v30, 0  ;;  %v6327_v10 = vshll.u32 %v17707_v39, 16  ;;  %v2479_v50 = vrot.slane %v2478_v13, 4  ;;  %v17709_v49 = vld [vmem:[%s23201_s12 + $0xa4] sm:$0x1] }
 0x103   : > { %20313 = vmatmul.mubr.msk.bf16.gmra.mrb[4].mxu1 %vm610_vm1, %v17750_v29  ;;  %v24542_v29 = vrot.slane %v6377_v33, 5  ;;  %v6405_v33 = vshll.u32 %v24522_v8, 16  ;;  %v2493_v16 = vrot.slane %v2492_v6, 4  ;;  %v2497_v22 = vrot.slane %v2495_v26, 5  ;;  %v24625_v26 = vld [vmem:[%s23196_s15 + $0xa8] sm:$0xf] }
 0x104   : > { %20318 = vmatprep.mubr.msk.bf16.mxu1 %vm610_vm1, %v28856_v48  ;;  %v2481_v48 = vshll.u32 %v17301_v21, 16  ;;  %v6324_v21 = vor.u32 %v24431_v37, %v24429_v58  ;;  %v24591_v37 = vld [vmem:[%s23191_s19 + $0xf0] sm:$0xf]  ;;  %v24600_v58 = vsel %vm623_vm0, %v17773_v41, 0  ;;  %v2506_v39 = vor.u32 %v24441_v51, %v24439_v9 }
 0x105   : > { %v24614_v13 = vrot.slane %v6405_v33, 5  ;;  %v28859_v9 = vcombine.low %v24467_v24, %v24470_v25  ;;  %v2520_v51 = vor.u32 %v24445_v56, %v24443_v15  ;;  %v2523_v33 = vshll.u32 %v17307_v61, 16  ;;  %v24633_v25 = vld [vmem:[%s23196_s15 + $0xf0] sm:$0xf]  ;;  %v17309_v15 = vld [vmem:[%s23201_s12 + $0x6c] sm:$0x1] }
 0x106   : > { %v6325_v6 = vrot.slane %v6324_v21, 4  ;;  %28860 = vst [vmem:[#allocation43_spill] sm:$0xff] %v24633_v25  ;;  %v2498_v61 = vsel %vm23435_vm4, %v2493_v16, %v2497_v22  ;;  %v2507_v56 = vrot.slane %v2506_v39, 4  ;;  %v17311_v21 = vld [vmem:[%s23201_s12 + $0x74] sm:$0x1] }
 0x107   : > { %20049 = vmatmul.mubr.msk.bf16.vlgmr.msra.gmra.mrb[0].mxu0 %vm610_vm1, %v28857_v44  ;;  %v17355_v44 = vcombine.low %v24483_v62, %v24495_v52  ;;  %v2483_v62 = vrot.slane %v2481_v48, 5  ;;  %v6311_v48 = vrot.slane %v6310_v47, 4  ;;  %v17711_v52 = vld [vmem:[%s23201_s12 + $0xac] sm:$0x1]  ;;  %v17759_v47 = vcombine.low %v24513_v0, %v24522_v8  ;;  %v17824_v8 = vld [vmem:[%s23191_s19 + $0x114] sm:$0x1] }
 0x108   : > { %20057 = vmatpush3.bf16.msra.mxu0 %v24463_v27  ;;  %20052 = vmatprep.mubr.msk.bf16.mxu0 %vm610_vm1, %v17354_v63  ;;  %v24604_v27 = vrot.slane %v6402_v53, 4  ;;  %v22506_v63 = vld [vmem:[%s23206_s25 + $0x48] ss:$8 sps:$4 sm:$0xff]   ;;  %v6315_v53 = vrot.slane %v6313_v54, 5  ;;  %v24639_v54 = vld [vmem:[%s23196_s15 + $0xf8] sm:$0xf] }
 0x109   : > { %22282 = vmatprep.subr.msk.bf16.mxu0 %vm623_vm0, %v17369_v30  ;;  %v28858_v30 = vcombine.low %v24402_v3, %v24410_v34  ;;  %v6329_v3 = vrot.slane %v6327_v10, 5  ;;  %v2509_v34 = vshll.u32 %v17305_v7, 16  ;;  %v2484_v24 = vsel %vm23435_vm4, %v2479_v50, %v2483_v62  ;;  %28862 = vst [vmem:[#allocation45_spill] sm:$0xff] %v24639_v54  ;;  %v22507_v7 = vld [vmem:[%s23206_s25 + $0x90] ss:$8 sps:$4 sm:$0xff]  }
 0x10a   : > { %v6341_v10 = vshll.u32 %v17709_v49, 16  ;;  %v6352_v50 = vor.u32 %v24505_v42, %v24455_v20  ;;  %v6355_v62 = vshll.u32 %v17711_v52, 16  ;;  %v2521_v22 = vrot.slane %v2520_v51, 4 }
 0x10b   : > { %20319 = vmatmul.mubr.msk.bf16.vlgmr.msra.gmra.mrb[0].mxu1 %vm610_vm1, %v28858_v30  ;;  %v2511_v16 = vrot.slane %v2509_v34, 5  ;;  %v2525_v39 = vrot.slane %v2523_v33, 5  ;;  %v2534_v30 = vor.u32 %v24515_v32, %v24507_v18  ;;  %v24662_v42 = vcombine.low %v2484_v24, %v2498_v61  ;;  %v22508_v32 = vld [vmem:[%s23206_s25 + $0x58] ss:$8 sps:$4 sm:$0xff]   ;;  %v17713_v34 = vld [vmem:[%s23201_s12 + $0xb4] sm:$0x1] }
 0x10c   : > { %20327 = vmatpush3.bf16.msra.mxu1 %v24477_v35  ;;  %20322 = vmatprep.mubr.msk.bf16.mxu1 %vm610_vm1, %v28859_v9  ;;  %v24636_v35 = vld [vmem:[%s23196_s15 + $0xb0] sm:$0xf]  ;;  %v2537_v9 = vshll.u32 %v17309_v15, 16  ;;  %v6330_v20 = vsel %vm23435_vm4, %v6325_v6, %v6329_v3  ;;  %v3304_v49 = vshrl.u32 %v24578_v55, 16  ;;  %v3307_v18 = vshll.u32 %v24578_v55, 16 }
 0x10d   : > { %22309 = vmatprep.subr.msk.bf16.mxu1 %vm623_vm0, %v17773_v41  ;;  %28861 = vst [vmem:[#allocation44_spill] sm:$0xff] %v24636_v35  ;;  %v6338_v41 = vor.u32 %v24453_v23, %v24451_v40  ;;  %v2548_v40 = vor.u32 %v24519_v17, %v24517_v2  ;;  %v2551_v23 = vshll.u32 %v17311_v21, 16  ;;  %v24674_v17 = vrot.slane %v6352_v50, 4  ;;  %v22509_v33 = vld [vmem:[%s23206_s25 + $0xa0] ss:$8 sps:$4 sm:$0xff]  }
 0x10e   : > { %v24676_v2 = vrot.slane %v6355_v62, 5  ;;  %v2526_v6 = vsel %vm23435_vm4, %v2521_v22, %v2525_v39  ;;  %v2535_v3 = vrot.slane %v2534_v30, 4  ;;  %v6366_v51 = vor.u32 %v24529_v60, %v24527_v59  ;;  %v17715_v15 = vld [vmem:[%s23201_s12 + $0xbc] sm:$0x1]  ;;  %v22511_v60 = vld [vmem:[%s23206_s25 + $0xb0] ss:$8 sps:$4 sm:$0xff]  }
 0x10f   : > { %20053 = vmatmul.mubr.msk.bf16.gmra.mrb[4].mxu0 %vm610_vm1, %v17355_v44  ;;  %v6316_v44 = vsel %vm23435_vm4, %v6311_v48, %v6315_v53  ;;  %v24670_v52 = vrot.slane %v6338_v41, 4  ;;  %v22510_v48 = vld [vmem:[%s23206_s25 + $0x68] ss:$8 sps:$4 sm:$0xff]   ;;  %v2512_v53 = vsel %vm23435_vm4, %v2507_v56, %v2511_v16  ;;  %v2549_v24 = vrot.slane %v2548_v40, 4  ;;  %v24695_v56 = vld [vmem:[%s28578_s4 + $0x3c] sm:$0xf] }
 0x110   : > { %20058 = vmatprep.mubr.msk.bf16.mxu0 %vm610_vm1, %v22506_v63  ;;  %v24672_v63 = vrot.slane %v6341_v10, 5  ;;  %v2553_v61 = vrot.slane %v2551_v23, 5  ;;  %v24690_v21 = vcombine.low %v6316_v44, %v6330_v20  ;;  %v7133_v41 = vshll.u32 %v24591_v37, 16  ;;  %v17412_v39 = vld [vmem:[%s23191_s19 + $0xac] sm:$0x1] }
 0x111   : > { %v3306_v10 = vrot.slane %v3304_v49, 4  ;;  %v3309_v59 = vrot.slane %v3307_v18, 5  ;;  %v24700_v50 = vcombine.low %v2512_v53, %v2526_v6  ;;  %v6358_v16 = vsel %vm23435_vm4, %v24674_v17, %v24676_v2  ;;  %v24716_v30 = vld [vmem:[%s28578_s4 + $0x3c] sm:$0xf] }
 0x112   : > { %v6344_v62 = vsel %vm23435_vm4, %v24670_v52, %v24672_v63  ;;  %v6369_v22 = vshll.u32 %v17713_v34, 16  ;;  %v24718_v44 = vrot.slane %v6366_v51, 4  ;;  %v6383_v40 = vshll.u32 %v17715_v15, 16  ;;  %v17313_v23 = vld [vmem:[%s23201_s12 + $0x7c] sm:$0x1] }
 0x113   : > { %20323 = vmatmul.mubr.msk.bf16.gmra.mrb[4].mxu1 %vm610_vm1, %v17759_v47  ;;  %v2539_v47 = vrot.slane %v2537_v9, 5  ;;  %v6380_v9 = vor.u32 %v24542_v29, %v24531_v4  ;;  %v3318_v20 = vshrl.u32 %v24581_v19, 16  ;;  %v2554_v49 = vsel %vm23435_vm4, %v2549_v24, %v2553_v61  ;;  %v17414_v4 = vld [vmem:[%s23191_s19 + $0xb4] sm:$0x1]  ;;  %v22512_v51 = vld [vmem:[%s23206_s25 + $0x78] ss:$8 sps:$4 sm:$0xff]  }
 0x114   : > { %20328 = vmatprep.mubr.msk.bf16.mxu1 %vm610_vm1, %v22507_v7  ;;  %v7130_v7 = vshrl.u32 %v24591_v37, 16  ;;  %v3321_v18 = vshll.u32 %v24581_v19, 16  ;;  %v2562_v29 = vor.u32 %v24546_v31, %v24544_v11  ;;  %v3310_v53 = vor.u32 %v3309_v59, %v3306_v10  ;;  %v17315_v31 = vld [vmem:[%s23201_s12 + $0x84] sm:$0x1]  ;;  %v17791_v63 = vld [vmem:[%s28578_s4 + $0x40] sm:$0xf] }
 0x115   : > { %v3313_v6 = vshll.u32 %v17412_v39, 16  ;;  %v7135_v34 = vrot.slane %v7133_v41, 5  ;;  %v6371_v15 = vrot.slane %v6369_v22, 5  ;;  %v7147_v24 = vshll.u32 %v24596_v45, 16  ;;  %v17818_v39 = vld [vmem:[%s23191_s19 + $0xfc] sm:$0x1] }
 0x116   : > { %v6381_v11 = vrot.slane %v6380_v9, 4  ;;  %v3323_v59 = vrot.slane %v3321_v18, 5  ;;  %v3327_v22 = vshll.u32 %v17414_v4, 16  ;;  %v7153_v4 = vshll.u32 %v17818_v39, 16  ;;  %v22575_v39 = vld [vmem:[%s23191_s19 + $0x58] sm:$0xf] }
 0x117   : > { %20059 = vmatmul.mubr.msk.bf16.vlgmr.msra.gmra.mrb[0].mxu0 %vm610_vm1, %v22508_v32  ;;  %v17816_v32 = vld [vmem:[%s23191_s19 + $0xf4] sm:$0x1]  ;;  %v3315_v9 = vrot.slane %v3313_v6, 5  ;;  %v6372_v18 = vsel %vm23435_vm4, %v24718_v44, %v6371_v15  ;;  %v6536_v52 = vsel %vm623_vm0, %v24716_v30, 0 }
 0x118   : > { %20067 = vmatpush3.bf16.msra.mxu0 %v24588_v46  ;;  %20062 = vmatprep.mubr.msk.bf16.mxu0 %vm610_vm1, %v22510_v48  ;;  %v2540_v46 = vsel %vm23435_vm4, %v2535_v3, %v2539_v47  ;;  %v7132_v48 = vrot.slane %v7130_v7, 4  ;;  %v2565_v3 = vshll.u32 %v17313_v23, 16  ;;  %v7144_v47 = vshrl.u32 %v24596_v45, 16 }
 0x119   : > { %22283 = vmatprep.subr.msk.bf16.mxu0 %vm623_vm0, %v24695_v56  ;;  %v17372_v61 = vcombine.low %v2540_v46, %v2554_v49  ;;  %v3320_v7 = vrot.slane %v3318_v20, 4  ;;  %v7139_v10 = vshll.u32 %v17816_v32, 16  ;;  %v6385_v23 = vrot.slane %v6383_v40, 5  ;;  %v17717_v49 = vld [vmem:[%s23201_s12 + $0xc4] sm:$0x1] }
 0x11a   : > { %v7136_v41 = vor.u32 %v7135_v34, %v7132_v48  ;;  %v3311_v46 = vrot.slane %v3310_v53, 4  ;;  %v7149_v20 = vrot.slane %v7147_v24, 5  ;;  %v2567_v32 = vrot.slane %v2565_v3, 5  ;;  %v17719_v40 = vld [vmem:[%s23201_s12 + $0xcc] sm:$0x1] }
 0x11b   : > { %20329 = vmatmul.mubr.msk.bf16.vlgmr.msra.gmra.mrb[0].mxu1 %vm610_vm1, %v22509_v33  ;;  %v2576_v33 = vor.u32 %v24551_v38, %v24548_v28  ;;  %v3324_v0 = vor.u32 %v3323_v59, %v3320_v7  ;;  %v3329_v38 = vrot.slane %v3327_v22, 5  ;;  %v7146_v28 = vrot.slane %v7144_v47, 4 }
 0x11c   : > { %20337 = vmatpush3.bf16.msra.mxu1 %v24600_v58  ;;  %20332 = vmatprep.mubr.msk.bf16.mxu1 %vm610_vm1, %v22511_v60  ;;  %v22513_v58 = vld [vmem:[%s23206_s25 + $0xc0] ss:$8 sps:$4 sm:$0xff]   ;;  %v2563_v60 = vrot.slane %v2562_v29, 4  ;;  %v2579_v48 = vshll.u32 %v17315_v31, 16  ;;  %v7137_v29 = vrot.slane %v7136_v41, 4  ;;  %v7141_v53 = vrot.slane %v7139_v10, 5 }
 0x11d   : > { %22310 = vmatprep.subr.msk.bf16.mxu1 %vm623_vm0, %v24716_v30  ;;  %v3325_v6 = vrot.slane %v3324_v0, 4  ;;  %v7150_v34 = vor.u32 %v7149_v20, %v7146_v28  ;;  %v2577_v47 = vrot.slane %v2576_v33, 4  ;;  %v6394_v24 = vor.u32 %v24569_v1, %v24557_v36 }
 0x11e   : > { %v6397_v7 = vshll.u32 %v17717_v49, 16  ;;  %v24763_v44 = vsel %vm23435_vm4, %v3311_v46, %v3315_v9  ;;  %v2581_v3 = vrot.slane %v2579_v48, 5  ;;  %v6408_v36 = vor.u32 %v24614_v13, %v24604_v27  ;;  %v22577_v46 = vld [vmem:[%s23191_s19 + $0xa0] sm:$0xf]  ;;  %v22578_v49 = vld [vmem:[%s23191_s19 + $0x70] sm:$0xf] }
 0x11f   : > { %20063 = vmatmul.mubr.msk.bf16.gmra.mrb[4].mxu0 %vm610_vm1, %v22512_v51  ;;  %v6386_v51 = vsel %vm23435_vm4, %v6381_v11, %v6385_v23  ;;  %28863 = vst [vmem:[#allocation46_spill] sm:$0xff] %v24763_v44  ;;  %v24767_v15 = vsel %vm23435_vm4, %v3325_v6, %v3329_v38  ;;  %v7151_v0 = vrot.slane %v7150_v34, 4  ;;  %v6411_v1 = vshll.u32 %v17719_v40, 16  ;;  %v22579_v38 = vld [vmem:[%s23191_s19 + $0x78] sm:$0xf] }
 0x120   : > { %20068 = vmatprep.mubr.msk.bf16.mxu0 %vm610_vm1, %v24662_v42  ;;  %v7155_v42 = vrot.slane %v7153_v4, 5  ;;  %28864 = vst [vmem:[#allocation47_spill] sm:$0xff] %v24767_v15  ;;  %v2706_v31 = vsel %vm623_vm0, %v24695_v56, 0  ;;  %v24779_v33 = vsel %vm23435_vm4, %v7137_v29, %v7141_v53  ;;  %v17775_v13 = vcombine.low %v6344_v62, %v6358_v16  ;;  %v22580_v48 = vld [vmem:[%s23191_s19 + $0xb8] sm:$0xf] }
 0x121   : > { %28865 = vst [vmem:[#allocation48_spill] sm:$0xff] %v24779_v33  ;;  %v17776_v56 = vcombine.low %v6372_v18, %v6386_v51  ;;  %v2568_v10 = vsel %vm23435_vm4, %v2563_v60, %v2567_v32  ;;  %v6395_v59 = vrot.slane %v6394_v24, 4  ;;  %v6399_v17 = vrot.slane %v6397_v7, 5  ;;  %v22576_v60 = vld [vmem:[%s23191_s19 + $0x98] sm:$0xf]  ;;  %v28869_v24 = vld [vmem:[#allocation25_spill] sm:$0xff] }
 0x122   : > { %v24783_v41 = vsel %vm23435_vm4, %v7151_v0, %v7155_v42  ;;  %v6409_v2 = vrot.slane %v6408_v36, 4  ;;  %v6413_v22 = vrot.slane %v6411_v1, 5  ;;  %v17783_v9 = vcombine.low %v22576_v60, %v22577_v46  ;;  %v17396_v18 = vld [vmem:[%s28578_s4 + $0x44] sm:$0xf]  ;;  %v22581_v40 = vld [vmem:[%s23191_s19 + $0xc0] sm:$0xf] }
 0x123   : > { %20333 = vmatmul.mubr.msk.bf16.gmra.mrb[4].mxu1 %vm610_vm1, %v22513_v58  ;;  %28866 = vst [vmem:[#allocation49_spill] sm:$0xff] %v24783_v41  ;;  %v6400_v16 = vsel %vm23435_vm4, %v6395_v59, %v6399_v17  ;;  %v17381_v28 = vcombine.low %v22578_v49, %v22579_v38  ;;  %v28867_v32 = vcombine.low %v23899_v43, %v23902_v5  ;;  %v17289_v29 = vld [vmem:[%s23191_s19 + $0x88] sm:$0xf]  ;;  %v6631_v53 = vsel %vm623_vm0, %v17791_v63, 0  ;;  %v17800_v43 = vld [vmem:[%s28578_s4 + $0x44] sm:$0xf] }
 0x124   : > { %20338 = vmatprep.mubr.msk.bf16.mxu1 %vm610_vm1, %v24690_v21  ;;  %v17387_v21 = vld [vmem:[%s28578_s4 + $0x40] sm:$0xf]  ;;  %v6414_v30 = vsel %vm23435_vm4, %v6409_v2, %v6413_v22  ;;  %v17785_v4 = vcombine.low %v22580_v48, %v22581_v40  ;;  %v28868_v5 = vcombine.low %v23909_v12, %v23914_v14  ;;  %v17693_v51 = vld [vmem:[%s23191_s19 + $0xd0] sm:$0xf]  ;;  %v22584_v7 = vld [vmem:[%s23191_s19 + $0xc8] sm:$0xf] }
 0x125   : > { %v17777_v23 = vcombine.low %v6400_v16, %v6414_v30  ;;  %v2802_v20 = vsel %vm623_vm0, %v17387_v21, 0  ;;  %v22582_v6 = vld [vmem:[%s23191_s19 + $0x80] sm:$0xf]  ;;  %v17786_v0 = vcombine.low %v22584_v7, %v17693_v51  ;;  %v28870_v12 = vld [vmem:[#allocation26_spill] sm:$0xff]  ;;  %v28871_v14 = vld [vmem:[#allocation24_spill] sm:$0xff]  ;;  %v2881_v17 = vshll.u32 %v17289_v29, 16 }
 0x126   : > { %v17382_v34 = vcombine.low %v22582_v6, %v17289_v29  ;;  %v28872_v36 = vld [vmem:[#allocation30_spill] sm:$0xff]  ;;  %v28873_v1 = vld [vmem:[#allocation28_spill] sm:$0xff]  ;;  %v28877_v2 = vld [vmem:[#allocation33_spill] sm:$0xff]  ;;  %v6707_v30 = vshrl.u32 %v17693_v51, 16  ;;  %v6710_v49 = vshll.u32 %v17693_v51, 16 }
 0x127   : > { %20069 = vmatmul.mubr.msk.bf16.vlgmr.msra.gmra.mrb[0].mxu0 %vm610_vm1, %v24700_v50  ;;  %v2582_v50 = vsel %vm23435_vm4, %v2577_v47, %v2581_v3  ;;  %v22583_v47 = vld [vmem:[%s23196_s15 + $0x50] sm:$0xf]  ;;  %v17792_v3 = vcombine.low %v28871_v14, %v28870_v12  ;;  %v17860_v16 = vld [vmem:[%s28578_s4 + $0x48] sm:$0xf]  ;;  %v28885_v40 = vld [vmem:[#allocation36_spill] sm:$0xff] }
 0x128   : > { %20077 = vmatpush3.bf16.msra.mxu0 %v2706_v31  ;;  %20072 = vmatprep.mubr.msk.bf16.mxu0 %vm610_vm1, %v17372_v61  ;;  %v17373_v62 = vcombine.low %v2568_v10, %v2582_v50  ;;  %v22574_v61 = vld [vmem:[%s23191_s19 + $0x50] sm:$0xf]  ;;  %v17388_v42 = vcombine.low %v22583_v47, %v28869_v24  ;;  %v17390_v31 = vcombine.low %v28873_v1, %v28872_v36  ;;  %v2878_v50 = vshrl.u32 %v17289_v29, 16  ;;  %v17694_v51 = vld [vmem:[%s23191_s19 + $0xd4] sm:$0x1]  ;;  %v28888_v14 = vld [vmem:[#allocation17_spill] sm:$0xff] }
 0x129   : > { %22284 = vmatprep.subr.msk.bf16.mxu0 %vm623_vm0, %v17387_v21  ;;  %v17379_v58 = vcombine.low %v22574_v61, %v22575_v39  ;;  %v2911_v21 = vsel %vm623_vm0, %v17396_v18, 0  ;;  %v28875_v10 = vld [vmem:[#allocation19_spill] sm:$0xff]  ;;  %v28879_v61 = vld [vmem:[#allocation18_spill] sm:$0xff]  ;;  %v6709_v48 = vrot.slane %v6707_v30, 4  ;;  %v6712_v29 = vrot.slane %v6710_v49, 5 }
 0x12a   : > { %v28878_v22 = vld [vmem:[#allocation27_spill] sm:$0xff]  ;;  %v28880_v39 = vld [vmem:[#allocation22_spill] sm:$0xff]  ;;  %v2880_v46 = vrot.slane %v2878_v50, 4  ;;  %v6716_v7 = vshll.u32 %v17694_v51, 16 }
 0x12b   : > { %20339 = vmatmul.mubr.msk.bf16.vlgmr.msra.gmra.mrb[0].mxu1 %vm610_vm1, %v17775_v13  ;;  %v17456_v13 = vld [vmem:[%s28578_s4 + $0x48] sm:$0xf]  ;;  %v17703_v38 = vld [vmem:[%s23196_s15 + $0xd0] sm:$0xf]  ;;  %v17465_v12 = vld [vmem:[%s28578_s4 + $0x4c] sm:$0xf] }
 0x12c   : > { %20347 = vmatpush3.bf16.msra.mxu1 %v6536_v52  ;;  %20342 = vmatprep.mubr.msk.bf16.mxu1 %vm610_vm1, %v17776_v56  ;;  %v28874_v56 = vld [vmem:[#allocation16_spill] sm:$0xff]  ;;  %v17794_v52 = vcombine.low %v28878_v22, %v28877_v2  ;;  %v28891_v1 = vld [vmem:[#allocation35_spill] sm:$0xff]  ;;  %v17869_v2 = vld [vmem:[%s28578_s4 + $0x4c] sm:$0xf] }
 0x12d   : > { %22311 = vmatprep.subr.msk.bf16.mxu1 %vm623_vm0, %v17791_v63  ;;  %v28876_v59 = vcombine.low %v28874_v56, %v28875_v10  ;;  %v17299_v63 = vld [vmem:[%s23196_s15 + $0x88] sm:$0xf]  ;;  %v6718_v10 = vrot.slane %v6716_v7, 5  ;;  %v17405_v50 = vld [vmem:[%s23191_s19 + $0x90] sm:$0xf] }
 0x12e   : > { %v28894_v22 = vld [vmem:[#allocation23_spill] sm:$0xff]  ;;  %v24970_v51 = vld [vmem:[%s23191_s19 + $0xc8] sm:$0xf] }
 0x12f   : > { %20073 = vmatmul.mubr.msk.bf16.gmra.mrb[4].mxu0 %vm610_vm1, %v17373_v62  ;;  %v6739_v62 = vsel %vm623_vm0, %v17800_v43, 0 }
 0x130   : > { %20078 = vmatprep.mubr.msk.bf16.mxu0 %vm610_vm1, %v17379_v58  ;;  %v28881_v58 = vcombine.low %v28879_v61, %v28880_v39  ;;  %v28899_v61 = vld [vmem:[#allocation42_spill] sm:$0xff] }
 0x133   : > { %20343 = vmatmul.mubr.msk.bf16.gmra.mrb[4].mxu1 %vm610_vm1, %v17777_v23  ;;  %v28882_v23 = vld [vmem:[#allocation29_spill] sm:$0xff] }
 0x134   : > { %20348 = vmatprep.mubr.msk.bf16.mxu1 %vm610_vm1, %v17783_v9  ;;  %v17391_v60 = vcombine.low %v28882_v23, %v17299_v63  ;;  %v2883_v9 = vrot.slane %v2881_v17, 5  ;;  %v24919_v17 = vld [vmem:[%s23191_s19 + $0x98] sm:$0xf] }
 0x135   : > { %v17457_v23 = vcombine.low %v17405_v50, %v24919_v17  ;;  %v3279_v7 = vshll.u32 %v24919_v17, 16 }
 0x136   : > { %v2884_v6 = vor.u32 %v2883_v9, %v2880_v46  ;;  %v24939_v46 = vld [vmem:[%s23191_s19 + $0xe0] sm:$0xf] }
 0x137   : > { %20079 = vmatmul.mubr.msk.bf16.vlgmr.msra.gmra.mrb[0].mxu0 %vm610_vm1, %v28867_v32  ;;  %v17290_v32 = vld [vmem:[%s23191_s19 + $0x8c] sm:$0x1]  ;;  %v28901_v9 = vld [vmem:[#allocation41_spill] sm:$0xff] }
 0x138   : > { %20087 = vmatpush3.bf16.msra.mxu0 %v2802_v20  ;;  %20082 = vmatprep.mubr.msk.bf16.mxu0 %vm610_vm1, %v17381_v28  ;;  %v28883_v28 = vld [vmem:[#allocation34_spill] sm:$0xff]  ;;  %v28884_v20 = vld [vmem:[#allocation32_spill] sm:$0xff]  ;;  %v2885_v47 = vrot.slane %v2884_v6, 4  ;;  %v3276_v6 = vshrl.u32 %v24919_v17, 16 }
 0x139   : > { %22285 = vmatprep.subr.msk.bf16.mxu0 %vm623_vm0, %v17396_v18  ;;  %v17397_v18 = vcombine.low %v28884_v20, %v28883_v28  ;;  %v24947_v28 = vld [vmem:[%s23191_s19 + $0xa0] sm:$0xf]  ;;  %v24950_v20 = vld [vmem:[%s23191_s19 + $0xb8] sm:$0xf] }
 0x13b   : > { %20349 = vmatmul.mubr.msk.bf16.vlgmr.msra.gmra.mrb[0].mxu1 %vm610_vm1, %v28868_v5 }
 0x13c   : > { %20357 = vmatpush3.bf16.msra.mxu1 %v6631_v53  ;;  %20352 = vmatprep.mubr.msk.bf16.mxu1 %vm610_vm1, %v17785_v4  ;;  %v17795_v4 = vcombine.low %v28885_v40, %v17703_v38  ;;  %v28886_v53 = vld [vmem:[#allocation37_spill] sm:$0xff] }
 0x13d   : > { %22312 = vmatprep.subr.msk.bf16.mxu1 %vm623_vm0, %v17800_v43  ;;  %v28887_v43 = vld [vmem:[#allocation31_spill] sm:$0xff] }
 0x13e   : > { %v17801_v5 = vcombine.low %v28887_v43, %v28886_v53  ;;  %v3186_v43 = vsel %vm623_vm0, %v17465_v12, 0 }
 0x13f   : > { %20083 = vmatmul.mubr.msk.bf16.gmra.mrb[4].mxu0 %vm610_vm1, %v17382_v34  ;;  %v2887_v34 = vshll.u32 %v17290_v32, 16  ;;  %v3265_v32 = vshll.u32 %v17405_v50, 16 }
 0x140   : > { %20088 = vmatprep.mubr.msk.bf16.mxu0 %vm610_vm1, %v17388_v42  ;;  %v6713_v42 = vor.u32 %v6712_v29, %v6709_v48  ;;  %v17458_v48 = vcombine.low %v24947_v28, %v24578_v55  ;;  %v17459_v29 = vcombine.low %v24581_v19, %v24950_v20 }
 0x141   : > { %v2889_v24 = vrot.slane %v2887_v34, 5  ;;  %v24967_v34 = vld [vmem:[%s23191_s19 + $0xc0] sm:$0xf] }
 0x142   : > { %v6714_v56 = vrot.slane %v6713_v42, 4  ;;  %v24979_v42 = vrot.slane %v3265_v32, 5  ;;  %v3349_v32 = vshll.u32 %v24967_v34, 16 }
 0x143   : > { %20353 = vmatmul.mubr.msk.bf16.gmra.mrb[4].mxu1 %vm610_vm1, %v17786_v0  ;;  %v3076_v0 = vsel %vm623_vm0, %v17456_v13, 0 }
 0x144   : > { %20358 = vmatprep.mubr.msk.bf16.mxu1 %vm610_vm1, %v17792_v3  ;;  %v28889_v3 = vld [vmem:[#allocation20_spill] sm:$0xff] }
 0x145   : > { %v28890_v36 = vcombine.low %v28888_v14, %v28889_v3  ;;  %v7102_v3 = vshrl.u32 %v24939_v46, 16 }
 0x147   : > { %20089 = vmatmul.mubr.msk.bf16.vlgmr.msra.gmra.mrb[0].mxu0 %vm610_vm1, %v28876_v59  ;;  %v6903_v59 = vsel %vm623_vm0, %v17860_v16, 0 }
 0x148   : > { %20097 = vmatpush3.bf16.msra.mxu0 %v2911_v21  ;;  %20092 = vmatprep.mubr.msk.bf16.mxu0 %vm610_vm1, %v17390_v31  ;;  %v28892_v31 = vld [vmem:[#allocation39_spill] sm:$0xff] }
 0x149   : > { %22286 = vmatprep.subr.msk.bf16.mxu0 %vm623_vm0, %v17456_v13  ;;  %v28893_v21 = vcombine.low %v28891_v1, %v28892_v31  ;;  %v2890_v13 = vsel %vm23435_vm4, %v2885_v47, %v2889_v24  ;;  %v24975_v47 = vld [vmem:[%s28578_s4 + $0x50] sm:$0xf]  ;;  %v24994_v31 = vld [vmem:[%s23196_s15 + $0x98] sm:$0xf] }
 0x14b   : > { %20359 = vmatmul.mubr.msk.bf16.vlgmr.msra.gmra.mrb[0].mxu1 %vm610_vm1, %v28881_v58  ;;  %v6719_v58 = vsel %vm23435_vm4, %v6714_v56, %v6718_v10  ;;  %v3293_v56 = vshll.u32 %v24947_v28, 16  ;;  %v7012_v10 = vsel %vm623_vm0, %v17869_v2, 0 }
 0x14c   : > { %20367 = vmatpush3.bf16.msra.mxu1 %v6739_v62  ;;  %20362 = vmatprep.mubr.msk.bf16.mxu1 %vm610_vm1, %v17794_v52  ;;  %v28895_v52 = vld [vmem:[#allocation21_spill] sm:$0xff]  ;;  %v28897_v62 = vld [vmem:[#allocation40_spill] sm:$0xff]  ;;  %v17804_v49 = vcombine.low %v28901_v9, %v6719_v58  ;;  %v3278_v9 = vrot.slane %v3276_v6, 4 }
 0x14d   : > { %22313 = vmatprep.subr.msk.bf16.mxu1 %vm623_vm0, %v17860_v16  ;;  %v28896_v63 = vcombine.low %v28894_v22, %v28895_v52  ;;  %v17400_v30 = vcombine.low %v28897_v62, %v2890_v13  ;;  %v28898_v16 = vld [vmem:[#allocation38_spill] sm:$0xff]  ;;  %v3290_v13 = vshrl.u32 %v24947_v28, 16  ;;  %v3332_v52 = vshrl.u32 %v24950_v20, 16  ;;  %v25015_v62 = vld [vmem:[%s23196_s15 + $0xe0] sm:$0xf] }
 0x14e   : > { %v28900_v39 = vcombine.low %v28898_v16, %v28899_v61  ;;  %v7104_v28 = vrot.slane %v7102_v3, 4  ;;  %v25046_v6 = vld [vmem:[%s23196_s15 + $0xb8] sm:$0xf] }
 0x14f   : > { %20093 = vmatmul.mubr.msk.bf16.gmra.mrb[4].mxu0 %vm610_vm1, %v17391_v60  ;;  %v17809_v60 = vld [vmem:[%s23191_s19 + $0xd8] sm:$0xf] }
 0x150   : > { %20098 = vmatprep.mubr.msk.bf16.mxu0 %vm610_vm1, %v17397_v18  ;;  %v17861_v38 = vcombine.low %v17809_v60, %v24939_v46  ;;  %v3262_v18 = vshrl.u32 %v17405_v50, 16  ;;  %v7088_v40 = vshrl.u32 %v17809_v60, 16  ;;  %v7091_v53 = vshll.u32 %v17809_v60, 16  ;;  %v25005_v50 = vld [vmem:[%s23191_s19 + $0x110] sm:$0xf] }
 0x151   : > { %v17406_v60 = vld [vmem:[%s23191_s19 + $0x94] sm:$0x1] }
 0x152   : > { %v24977_v24 = vrot.slane %v3262_v18, 4  ;;  %v24986_v14 = vrot.slane %v7088_v40, 4  ;;  %v3346_v18 = vshrl.u32 %v24967_v34, 16  ;;  %v3363_v40 = vshll.u32 %v24970_v51, 16 }
 0x153   : > { %20363 = vmatmul.mubr.msk.bf16.gmra.mrb[4].mxu1 %vm610_vm1, %v17795_v4  ;;  %v24957_v4 = vld [vmem:[%s23191_s19 + $0xe8] sm:$0xf] }
 0x154   : > { %20368 = vmatprep.mubr.msk.bf16.mxu1 %vm610_vm1, %v17801_v5  ;;  %v24963_v5 = vld [vmem:[%s23191_s19 + $0x100] sm:$0xf]  ;;  %v7116_v17 = vshrl.u32 %v24957_v4, 16  ;;  %v7119_v22 = vshll.u32 %v24957_v4, 16 }
 0x155   : > { %v17863_v1 = vcombine.low %v24596_v45, %v24963_v5  ;;  %v7158_v16 = vshrl.u32 %v24963_v5, 16  ;;  %v7161_v61 = vshll.u32 %v24963_v5, 16 }
 0x157   : > { %20099 = vmatmul.mubr.msk.bf16.vlgmr.msra.gmra.mrb[0].mxu0 %vm610_vm1, %v28890_v36  ;;  %v7105_v36 = vshll.u32 %v24939_v46, 16  ;;  %v17408_v46 = vld [vmem:[%s23191_s19 + $0x9c] sm:$0x1] }
 0x158   : > { %20107 = vmatpush3.bf16.msra.mxu0 %v3076_v0  ;;  %20102 = vmatprep.mubr.msk.bf16.mxu0 %vm610_vm1, %v28893_v21  ;;  %v17862_v0 = vcombine.low %v24957_v4, %v24591_v37  ;;  %v24996_v21 = vrot.slane %v7091_v53, 5  ;;  %v3285_v3 = vshll.u32 %v17408_v46, 16  ;;  %v25075_v46 = vld [vmem:[%s23191_s19 + $0xbc] sm:$0x1] }
 0x159   : > { %22287 = vmatprep.subr.msk.bf16.mxu0 %vm623_vm0, %v17465_v12  ;;  %v17423_v12 = vld [vmem:[%s23196_s15 + $0x90] sm:$0xf] }
 0x15a   : > { %v17466_v58 = vcombine.low %v17423_v12, %v24994_v31 }
 0x15b   : > { %20369 = vmatmul.mubr.msk.bf16.vlgmr.msra.gmra.mrb[0].mxu1 %vm610_vm1, %v28896_v63  ;;  %v3335_v63 = vshll.u32 %v24950_v20, 16  ;;  %v7107_v20 = vrot.slane %v7105_v36, 5  ;;  %v7094_v36 = vor.u32 %v24996_v21, %v24986_v14  ;;  %v25066_v14 = vrot.slane %v3290_v13, 4 }
 0x15c   : > { %20377 = vmatpush3.bf16.msra.mxu1 %v6903_v59  ;;  %20372 = vmatprep.mubr.msk.bf16.mxu1 %vm610_vm1, %v28900_v39  ;;  %v25002_v59 = vld [vmem:[%s23191_s19 + $0x108] sm:$0xf]  ;;  %v17460_v39 = vcombine.low %v24967_v34, %v24970_v51  ;;  %v25068_v21 = vrot.slane %v3293_v56, 5 }
 0x15d   : > { %22314 = vmatprep.subr.msk.bf16.mxu1 %vm623_vm0, %v17869_v2  ;;  %v17827_v2 = vld [vmem:[%s23196_s15 + $0xd8] sm:$0xf]  ;;  %v17864_v53 = vcombine.low %v25002_v59, %v25005_v50  ;;  %v7108_v11 = vor.u32 %v7107_v20, %v7104_v28  ;;  %v25087_v13 = vrot.slane %v7094_v36, 4  ;;  %v25093_v28 = vld [vmem:[%s23196_s15 + $0x100] sm:$0xf] }
 0x15e   : > { %v17870_v12 = vcombine.low %v17827_v2, %v25015_v62  ;;  %v17468_v2 = vcombine.low %v24636_v35, %v25046_v6  ;;  %28902 = vst [vmem:[#allocation25_spill] sm:$0xff] %v25093_v28 }
 0x15f   : > { %20103 = vmatmul.mubr.msk.bf16.gmra.mrb[4].mxu0 %vm610_vm1, %v17400_v30  ;;  %v25020_v30 = vld [vmem:[%s28578_s4 + $0x50] sm:$0xf] }
 0x160   : > { %20108 = vmatprep.mubr.msk.bf16.mxu0 %vm610_vm1, %v17457_v23  ;;  %v25029_v23 = vld [vmem:[%s23196_s15 + $0xa0] sm:$0xf]  ;;  %v7225_v36 = vsel %vm623_vm0, %v25020_v30, 0 }
 0x163   : > { %20373 = vmatmul.mubr.msk.bf16.gmra.mrb[4].mxu1 %vm610_vm1, %v17804_v49  ;;  %v3281_v49 = vrot.slane %v3279_v7, 5  ;;  %v3268_v7 = vor.u32 %v24979_v42, %v24977_v24  ;;  %v25059_v42 = vsel %vm623_vm0, %v24975_v47, 0 }
 0x164   : > { %20378 = vmatprep.mubr.msk.bf16.mxu1 %vm610_vm1, %v17861_v38  ;;  %v17810_v38 = vld [vmem:[%s23191_s19 + $0xdc] sm:$0x1] }
 0x165   : > { %v3282_v27 = vor.u32 %v3281_v49, %v3278_v9  ;;  %v25077_v9 = vrot.slane %v3332_v52, 4  ;;  %v25083_v49 = vld [vmem:[%s23196_s15 + $0xe8] sm:$0xf]  ;;  %v25097_v52 = vrot.slane %v7108_v11, 4  ;;  %v3296_v11 = vor.u32 %v25068_v21, %v25066_v14  ;;  %v17820_v14 = vld [vmem:[%s23191_s19 + $0x104] sm:$0x1] }
 0x166   : > { %v7160_v21 = vrot.slane %v7158_v16, 4 }
 0x167   : > { %20109 = vmatmul.mubr.msk.bf16.vlgmr.msra.gmra.mrb[0].mxu0 %vm610_vm1, %v17458_v48  ;;  %v3360_v48 = vshrl.u32 %v24970_v51, 16  ;;  %v25095_v20 = vrot.slane %v3282_v27, 4  ;;  %v7118_v27 = vrot.slane %v7116_v17, 4  ;;  %v17814_v17 = vld [vmem:[%s23191_s19 + $0xec] sm:$0x1] }
 0x168   : > { %20117 = vmatpush3.bf16.msra.mxu0 %v3186_v43  ;;  %20112 = vmatprep.mubr.msk.bf16.mxu0 %vm610_vm1, %v17459_v29  ;;  %v17812_v29 = vld [vmem:[%s23191_s19 + $0xe4] sm:$0x1]  ;;  %v7172_v43 = vshrl.u32 %v25002_v59, 16 }
 0x169   : > { %22288 = vmatprep.subr.msk.bf16.mxu0 %vm623_vm0, %v24975_v47  ;;  %v7111_v24 = vshll.u32 %v17812_v29, 16  ;;  %v25079_v47 = vrot.slane %v3335_v63, 5 }
 0x16b   : > { %20379 = vmatmul.mubr.msk.bf16.vlgmr.msra.gmra.mrb[0].mxu1 %vm610_vm1, %v17862_v0  ;;  %v3271_v0 = vshll.u32 %v17406_v60, 16  ;;  %v25099_v63 = vrot.slane %v7111_v24, 5  ;;  %v3338_v4 = vor.u32 %v25079_v47, %v25077_v9  ;;  %v25129_v24 = vld [vmem:[%s23196_s15 + $0xc0] sm:$0xf]  ;;  %v25149_v9 = vld [vmem:[%s23196_s15 + $0x108] sm:$0xf] }
 0x16c   : > { %20387 = vmatpush3.bf16.msra.mxu1 %v7012_v10  ;;  %20382 = vmatprep.mubr.msk.bf16.mxu1 %vm610_vm1, %v17863_v1  ;;  %v7097_v1 = vshll.u32 %v17810_v38, 16  ;;  %v17467_v10 = vcombine.low %v25029_v23, %v24625_v26  ;;  %v25085_v38 = vrot.slane %v3285_v3, 5  ;;  %v17871_v3 = vcombine.low %v25083_v49, %v24633_v25  ;;  %28904 = vst [vmem:[#allocation24_spill] sm:$0xff] %v25149_v9 }
 0x16d   : > { %22315 = vmatprep.subr.msk.bf16.mxu1 %vm623_vm0, %v25020_v30  ;;  %v25072_v60 = vrot.slane %v3271_v0, 5  ;;  %v3341_v0 = vshll.u32 %v25075_v46, 16  ;;  %v7163_v46 = vrot.slane %v7161_v61, 5  ;;  %v25165_v16 = vsel %vm23435_vm4, %v25097_v52, %v25099_v63 }
 0x16e   : > { %v25089_v56 = vrot.slane %v7097_v1, 5  ;;  %v25117_v1 = vld [vmem:[%s28578_s4 + $0x54] sm:$0xf]  ;;  %28906 = vst [vmem:[#allocation28_spill] sm:$0xff] %v25165_v16  ;;  %v7125_v47 = vshll.u32 %v17814_v17, 16  ;;  %v3351_v52 = vrot.slane %v3349_v32, 5 }
 0x16f   : > { %20113 = vmatmul.mubr.msk.bf16.gmra.mrb[4].mxu0 %vm610_vm1, %v17460_v39  ;;  %v25064_v39 = vld [vmem:[%s23191_s19 + $0xa4] sm:$0x1]  ;;  %v7186_v63 = vshrl.u32 %v25005_v50, 16  ;;  %v3362_v32 = vrot.slane %v3360_v48, 4 }
 0x170   : > { %20118 = vmatprep.mubr.msk.bf16.mxu0 %vm610_vm1, %v17466_v58  ;;  %v25070_v58 = vrot.slane %v3268_v7, 4  ;;  %v3299_v29 = vshll.u32 %v25064_v39, 16  ;;  %v7121_v7 = vrot.slane %v7119_v22, 5  ;;  %v17872_v22 = vcombine.low %v24639_v54, %v25093_v28  ;;  %v17837_v54 = vld [vmem:[%s23201_s12 + $0xdc] sm:$0x1] }
 0x171   : > { %v7100_v5 = vsel %vm23435_vm4, %v25087_v13, %v25089_v56  ;;  %v25177_v13 = vld [vmem:[%s28578_s4 + $0x54] sm:$0xf]  ;;  %v3339_v56 = vrot.slane %v3338_v4, 4  ;;  %v3348_v39 = vrot.slane %v3346_v18, 4  ;;  %v17420_v18 = vld [vmem:[%s23191_s19 + $0xcc] sm:$0x1] }
 0x172   : > { %v3274_v30 = vsel %vm23435_vm4, %v25070_v58, %v25072_v60  ;;  %v25155_v58 = vsel %vm23435_vm4, %v25095_v20, %v25085_v38  ;;  %v3301_v61 = vrot.slane %v3299_v29, 5  ;;  %v7122_v60 = vor.u32 %v7121_v7, %v7118_v27  ;;  %v17418_v7 = vld [vmem:[%s23191_s19 + $0xc4] sm:$0x1] }
 0x173   : > { %20383 = vmatmul.mubr.msk.bf16.gmra.mrb[4].mxu1 %vm610_vm1, %v17864_v53  ;;  %v23048_v53 = vmov 0   ;;  %28905 = vst [vmem:[#allocation30_spill] sm:$0xff] %v25155_v58  ;;  %v3343_v38 = vrot.slane %v3341_v0, 5  ;;  %v7167_v20 = vshll.u32 %v17820_v14, 16  ;;  %v7189_v29 = vshll.u32 %v25005_v50, 16 }
 0x174   : > { %20388 = vmatprep.mubr.msk.bf16.mxu1 %vm610_vm1, %v17870_v12  ;;  %471 = vst [vmem:[#allocation2] sm:$0xf] %v23048_v53  ;;  %472 = vst [vmem:[#allocation2 + $0x4] sm:$0x1] %v23048_v53  ;;  %v7175_v12 = vshll.u32 %v25002_v59, 16  ;;  %v17475_v27 = vcombine.low %v3274_v30, %v25155_v58  ;;  %v3365_v0 = vrot.slane %v3363_v40, 5  ;;  %v17879_v17 = vcombine.low %v7100_v5, %v25165_v16 }
 0x175   : > { %473 = vst [vmem:[#allocation2 + $0x8] sm:$0xf] %v23048_v53  ;;  %474 = vst [vmem:[#allocation2 + $0xc] sm:$0x1] %v23048_v53  ;;  %v7127_v4 = vrot.slane %v7125_v47, 5  ;;  %v25207_v51 = vsel %vm23435_vm4, %v3339_v56, %v3343_v38  ;;  %v7169_v48 = vrot.slane %v7167_v20, 5  ;;  %v3352_v40 = vor.u32 %v3351_v52, %v3348_v39 }
 0x176   : > { %475 = vst [vmem:[#allocation2 + $0x10] sm:$0xf] %v23048_v53  ;;  %476 = vst [vmem:[#allocation2 + $0x14] sm:$0x1] %v23048_v53  ;;  %v3355_v14 = vshll.u32 %v17418_v7, 16  ;;  %v3366_v5 = vor.u32 %v3365_v0, %v3362_v32  ;;  %v7191_v47 = vrot.slane %v7189_v29, 5  ;;  %v17477_v20 = vcombine.low %v24767_v15, %v25207_v51 }
 0x177   : > { %477 = vst [vmem:[#allocation2 + $0x18] sm:$0xf] %v23048_v53  ;;  %478 = vst [vmem:[#allocation2 + $0x1c] sm:$0x1] %v23048_v53  ;;  %20119 = vmatmul.mubr.msk.bf16.vlgmr.msra.gmra.mrb[0].mxu0 %vm610_vm1, %v17467_v10  ;;  %v25146_v10 = vld [vmem:[%s23196_s15 + $0xc8] sm:$0xf] }
 0x178   : > { %479 = vst [vmem:[#allocation2 + $0x20] sm:$0xf] %v23048_v53  ;;  %480 = vst [vmem:[#allocation2 + $0x24] sm:$0x1] %v23048_v53  ;;  %20127 = vmatpush3.bf16.msra.mxu0 %v25059_v42  ;;  %20122 = vmatprep.mubr.msk.bf16.mxu0 %vm610_vm1, %v17468_v2  ;;  %v25170_v42 = vld [vmem:[%s23196_s15 + $0x110] sm:$0xf] }
 0x179   : > { %481 = vst [vmem:[#allocation2 + $0x28] sm:$0xf] %v23048_v53  ;;  %482 = vst [vmem:[#allocation2 + $0x2c] sm:$0x1] %v23048_v53  ;;  %v3297_v2 = vrot.slane %v3296_v11, 4  ;;  %22289 = vmatprep.subr.msk.bf16.mxu0 %vm623_vm0, %v25117_v1  ;;  %v7164_v11 = vor.u32 %v7163_v46, %v7160_v21  ;;  %v3369_v21 = vshll.u32 %v17420_v18, 16 }
 0x17a   : > { %483 = vst [vmem:[#allocation2 + $0x30] sm:$0xf] %v23048_v53  ;;  %484 = vst [vmem:[#allocation2 + $0x34] sm:$0x1] %v23048_v53  ;;  %v7174_v46 = vrot.slane %v7172_v43, 4  ;;  %v3353_v39 = vrot.slane %v3352_v40, 4 }
 0x17b   : > { %485 = vst [vmem:[#allocation2 + $0x38] sm:$0xf] %v23048_v53  ;;  %486 = vst [vmem:[#allocation2 + $0x3c] sm:$0x1] %v23048_v53  ;;  %20389 = vmatmul.mubr.msk.bf16.vlgmr.msra.gmra.mrb[0].mxu1 %vm610_vm1, %v17871_v3  ;;  %v17873_v3 = vcombine.low %v25149_v9, %v25170_v42  ;;  %v7165_v30 = vrot.slane %v7164_v11, 4  ;;  %v3371_v52 = vrot.slane %v3369_v21, 5 }
 0x17c   : > { %487 = vst [vmem:[#allocation2 + $0x40] sm:$0xf] %v23048_v53  ;;  %488 = vst [vmem:[#allocation2 + $0x44] sm:$0x1] %v23048_v53  ;;  %20397 = vmatpush3.bf16.msra.mxu1 %v7225_v36  ;;  %20392 = vmatprep.mubr.msk.bf16.mxu1 %vm610_vm1, %v17872_v22  ;;  %v25201_v36 = vsel %vm23435_vm4, %v3297_v2, %v3301_v61  ;;  %v7123_v22 = vrot.slane %v7122_v60, 4  ;;  %v7177_v2 = vrot.slane %v7175_v12, 5 }
 0x17d   : > { %489 = vst [vmem:[#allocation2 + $0x48] sm:$0xf] %v23048_v53  ;;  %490 = vst [vmem:[#allocation2 + $0x4c] sm:$0x1] %v23048_v53  ;;  %22316 = vmatprep.subr.msk.bf16.mxu1 %vm623_vm0, %v25177_v13  ;;  %v17822_v61 = vld [vmem:[%s23191_s19 + $0x10c] sm:$0x1]  ;;  %v17476_v38 = vcombine.low %v25201_v36, %v24763_v44  ;;  %v25226_v43 = vsel %vm23435_vm4, %v7165_v30, %v7169_v48 }
 0x17e   : > { %491 = vst [vmem:[#allocation2 + $0x50] sm:$0xf] %v23048_v53  ;;  %492 = vst [vmem:[#allocation2 + $0x54] sm:$0x1] %v23048_v53  ;;  %v7188_v60 = vrot.slane %v7186_v63, 4  ;;  %v25219_v56 = vsel %vm23435_vm4, %v7123_v22, %v7127_v4  ;;  %v3357_v12 = vrot.slane %v3355_v14, 5  ;;  %v17881_v0 = vcombine.low %v24783_v41, %v25226_v43 }
 0x17f   : > { %497 = vst [vmem:[#allocation2 + $0x68] sm:$0xf] %v23048_v53  ;;  %498 = vst [vmem:[#allocation2 + $0x6c] sm:$0x1] %v23048_v53  ;;  %v7181_v63 = vshll.u32 %v17822_v61, 16  ;;  %v3367_v29 = vrot.slane %v3366_v5, 4  ;;  %v17880_v32 = vcombine.low %v25219_v56, %v24779_v33 }
 0x180   : > { %509 = vst [vmem:[#allocation2 + $0x98] sm:$0xf] %v23048_v53  ;;  %510 = vst [vmem:[#allocation2 + $0x9c] sm:$0x1] %v23048_v53  ;;  %v7192_v11 = vor.u32 %v7191_v47, %v7188_v60  ;;  %v3510_v7 = vsel %vm623_vm0, %v25117_v1, 0  ;;  %v7334_v48 = vsel %vm623_vm0, %v25177_v13, 0 }
 0x181   : > { %511 = vst [vmem:[#allocation2 + $0xa0] sm:$0xf] %v23048_v53  ;;  %512 = vst [vmem:[#allocation2 + $0xa4] sm:$0x1] %v23048_v53  ;;  %v25234_v18 = vld [vmem:[%s28578_s4 + $0x58] sm:$0xf]  ;;  %v25248_v1 = vsel %vm23435_vm4, %v3367_v29, %v3371_v52 }
 0x182   : > { %529 = vst [vmem:[#allocation2 + $0xe8] sm:$0xf] %v23048_v53  ;;  %530 = vst [vmem:[#allocation2 + $0xec] sm:$0x1] %v23048_v53  ;;  %v7193_v4 = vrot.slane %v7192_v11, 4 }
 0x183   : > { %493 = vst [vmem:[#allocation2 + $0x58] sm:$0xf] %v23048_v53  ;;  %494 = vst [vmem:[#allocation2 + $0x5c] sm:$0x1] %v23048_v53  ;;  %20393 = vmatmul.mubr.msk.bf16.gmra.mrb[4].mxu1 %vm610_vm1, %v17873_v3  ;;  %v7183_v3 = vrot.slane %v7181_v63, 5 }
 0x184   : > { %495 = vst [vmem:[#allocation2 + $0x60] sm:$0xf] %v23048_v53  ;;  %496 = vst [vmem:[#allocation2 + $0x64] sm:$0x1] %v23048_v53  ;;  %20398 = vmatprep.mubr.msk.bf16.mxu1 %vm610_vm1, %v17879_v17  ;;  %v17432_v40 = vld [vmem:[%s23201_s12 + $0x90] sm:$0xf] }
 0x185   : > { %499 = vst [vmem:[#allocation2 + $0x70] sm:$0xf] %v23048_v53  ;;  %500 = vst [vmem:[#allocation2 + $0x74] sm:$0x1] %v23048_v53  ;;  %v17434_v30 = vld [vmem:[%s23201_s12 + $0x98] sm:$0xf] }
 0x186   : > { %501 = vst [vmem:[#allocation2 + $0x78] sm:$0xf] %v23048_v53  ;;  %502 = vst [vmem:[#allocation2 + $0x7c] sm:$0x1] %v23048_v53  ;;  %v25259_v14 = vld [vmem:[%s28578_s4 + $0x58] sm:$0xf]  ;;  %v17484_v5 = vcombine.low %v17432_v40, %v17434_v30 }
 0x187   : > { %503 = vst [vmem:[#allocation2 + $0x80] sm:$0xf] %v23048_v53  ;;  %504 = vst [vmem:[#allocation2 + $0x84] sm:$0x1] %v23048_v53  ;;  %v17836_v61 = vld [vmem:[%s23201_s12 + $0xd8] sm:$0xf] }
 0x188   : > { %505 = vst [vmem:[#allocation2 + $0x88] sm:$0xf] %v23048_v53  ;;  %506 = vst [vmem:[#allocation2 + $0x8c] sm:$0x1] %v23048_v53  ;;  %v3699_v60 = vshll.u32 %v17432_v40, 16  ;;  %v3710_v47 = vshrl.u32 %v17434_v30, 16 }
 0x189   : > { %507 = vst [vmem:[#allocation2 + $0x90] sm:$0xf] %v23048_v53  ;;  %508 = vst [vmem:[#allocation2 + $0x94] sm:$0x1] %v23048_v53  ;;  %v7522_v52 = vshll.u32 %v17836_v61, 16 }
 0x18a   : > { %513 = vst [vmem:[#allocation2 + $0xa8] sm:$0xf] %v23048_v53  ;;  %514 = vst [vmem:[#allocation2 + $0xac] sm:$0x1] %v23048_v53  ;;  %v17436_v29 = vld [vmem:[%s23201_s12 + $0xa0] sm:$0xf] }
 0x18b   : > { %515 = vst [vmem:[#allocation2 + $0xb0] sm:$0xf] %v23048_v53  ;;  %516 = vst [vmem:[#allocation2 + $0xb4] sm:$0x1] %v23048_v53  ;;  %20399 = vmatmul.mubr.msk.bf16.vlgmr.msra.gmra.mrb[0].mxu1 %vm610_vm1, %v17880_v32  ;;  %v17440_v32 = vld [vmem:[%s23201_s12 + $0xb0] sm:$0xf] }
 0x18c   : > { %517 = vst [vmem:[#allocation2 + $0xb8] sm:$0xf] %v23048_v53  ;;  %518 = vst [vmem:[#allocation2 + $0xbc] sm:$0x1] %v23048_v53  ;;  %20407 = vmatpush3.bf16.msra.mxu1 %v7334_v48  ;;  %20402 = vmatprep.mubr.msk.bf16.mxu1 %vm610_vm1, %v17881_v0  ;;  %v17433_v16 = vld [vmem:[%s23201_s12 + $0x94] sm:$0x1] }
 0x18d   : > { %519 = vst [vmem:[#allocation2 + $0xc0] sm:$0xf] %v23048_v53  ;;  %520 = vst [vmem:[#allocation2 + $0xc4] sm:$0x1] %v23048_v53  ;;  %22317 = vmatprep.subr.msk.bf16.mxu1 %vm623_vm0, %v25259_v14  ;;  %v17839_v28 = vld [vmem:[%s23201_s12 + $0xe4] sm:$0x1] }
 0x18e   : > { %521 = vst [vmem:[#allocation2 + $0xc8] sm:$0xf] %v23048_v53  ;;  %522 = vst [vmem:[#allocation2 + $0xcc] sm:$0x1] %v23048_v53 }
 0x18f   : > { %523 = vst [vmem:[#allocation2 + $0xd0] sm:$0xf] %v23048_v53  ;;  %524 = vst [vmem:[#allocation2 + $0xd4] sm:$0x1] %v23048_v53 }
 0x190   : > { %525 = vst [vmem:[#allocation2 + $0xd8] sm:$0xf] %v23048_v53  ;;  %526 = vst [vmem:[#allocation2 + $0xdc] sm:$0x1] %v23048_v53 }
 0x191   : > { %527 = vst [vmem:[#allocation2 + $0xe0] sm:$0xf] %v23048_v53  ;;  %528 = vst [vmem:[#allocation2 + $0xe4] sm:$0x1] %v23048_v53  ;;  %v17469_v53 = vcombine.low %v25129_v24, %v25146_v10 }
 0x192   : > { %28903 = vst [vmem:[#allocation26_spill] sm:$0xff] %v25146_v10  ;;  %28907 = vst [vmem:[#allocation16_spill] sm:$0xff] %v25170_v42  ;;  %v17435_v10 = vld [vmem:[%s23201_s12 + $0x9c] sm:$0x1] }
 0x193   : > { %28908 = vst [vmem:[#allocation19_spill] sm:$0xff] %v25201_v36  ;;  %28909 = vst [vmem:[#allocation33_spill] sm:$0xff] %v25207_v51  ;;  %20123 = vmatmul.mubr.msk.bf16.gmra.mrb[4].mxu0 %vm610_vm1, %v17469_v53  ;;  %v7178_v53 = vor.u32 %v7177_v2, %v7174_v46  ;;  %v3696_v2 = vshrl.u32 %v17432_v40, 16 }
 0x194   : > { %20128 = vmatprep.mubr.msk.bf16.mxu0 %vm610_vm1, %v17475_v27  ;;  %28910 = vst [vmem:[#allocation27_spill] sm:$0xff] %v25219_v56  ;;  %28911 = vst [vmem:[#allocation18_spill] sm:$0xff] %v25226_v43  ;;  %v7195_v27 = vshll.u32 %v17824_v8, 16  ;;  %v25243_v8 = vsel %vm23435_vm4, %v3353_v39, %v3357_v12  ;;  %v7519_v39 = vshrl.u32 %v17836_v61, 16  ;;  %v25316_v43 = vld [vmem:[%s28578_s4 + $0x5c] sm:$0xf] }
 0x195   : > { %28912 = vst [vmem:[#allocation22_spill] sm:$0xff] %v25243_v8  ;;  %28913 = vst [vmem:[#allocation29_spill] sm:$0xff] %v25248_v1  ;;  %v7179_v17 = vrot.slane %v7178_v53, 4  ;;  %v17478_v21 = vcombine.low %v25243_v8, %v25248_v1  ;;  %v17438_v53 = vld [vmem:[%s23201_s12 + $0xa8] sm:$0xf]  ;;  %v25285_v0 = vrot.slane %v3696_v2, 4 }
 0x196   : > { %v7197_v22 = vrot.slane %v7195_v27, 5  ;;  %v25294_v40 = vrot.slane %v7519_v39, 4  ;;  %v17844_v1 = vld [vmem:[%s23201_s12 + $0xf8] sm:$0xf]  ;;  %v25336_v8 = vld [vmem:[%s23201_s12 + $0x110] sm:$0xf] }
 0x197   : > { %v25267_v13 = vsel %vm23435_vm4, %v7179_v17, %v7183_v3  ;;  %v25287_v3 = vrot.slane %v3699_v60, 5  ;;  %v25289_v17 = vrot.slane %v3710_v47, 4  ;;  %v3738_v60 = vshrl.u32 %v17438_v53, 16 }
 0x198   : > { %28914 = vst [vmem:[#allocation34_spill] sm:$0xff] %v25267_v13  ;;  %v25271_v46 = vsel %vm23435_vm4, %v7193_v4, %v7197_v22  ;;  %v3724_v4 = vshrl.u32 %v17436_v29, 16  ;;  %v17442_v22 = vld [vmem:[%s23201_s12 + $0xb8] sm:$0xf]  ;;  %v3741_v47 = vshll.u32 %v17438_v53, 16  ;;  %v7578_v51 = vshll.u32 %v17844_v1, 16 }
 0x199   : > { %28915 = vst [vmem:[#allocation32_spill] sm:$0xff] %v25271_v46  ;;  %v17882_v12 = vcombine.low %v25267_v13, %v25271_v46  ;;  %v17486_v39 = vcombine.low %v17440_v32, %v17442_v22  ;;  %v17444_v13 = vld [vmem:[%s23201_s12 + $0xc0] sm:$0xf] }
 0x19a   : > { %v3780_v36 = vshrl.u32 %v17444_v13, 16  ;;  %v25363_v25 = vrot.slane %v7578_v51, 5 }
 0x19b   : > { %20129 = vmatmul.mubr.msk.bf16.vlgmr.msra.gmra.mrb[0].mxu0 %vm610_vm1, %v17476_v38  ;;  %v17838_v38 = vld [vmem:[%s23201_s12 + $0xe0] sm:$0xf]  ;;  %20403 = vmatmul.mubr.msk.bf16.gmra.mrb[4].mxu1 %vm610_vm1, %v17882_v12  ;;  %v3620_v12 = vsel %vm623_vm0, %v25234_v18, 0 }
 0x19c   : > { %20137 = vmatpush3.bf16.msra.mxu0 %v3510_v7  ;;  %20132 = vmatprep.mubr.msk.bf16.mxu0 %vm610_vm1, %v17477_v20  ;;  %v3713_v20 = vshll.u32 %v17434_v30, 16  ;;  %v7533_v63 = vshrl.u32 %v17838_v38, 16  ;;  %v17888_v11 = vcombine.low %v17836_v61, %v17838_v38  ;;  %v7536_v27 = vshll.u32 %v17838_v38, 16  ;;  %v17840_v7 = vld [vmem:[%s23201_s12 + $0xe8] sm:$0xf] }
 0x19d   : > { %22290 = vmatprep.subr.msk.bf16.mxu0 %vm623_vm0, %v25234_v18  ;;  %v17485_v30 = vcombine.low %v17436_v29, %v17438_v53  ;;  %v25298_v61 = vrot.slane %v7522_v52, 5  ;;  %v7550_v46 = vshll.u32 %v17840_v7, 16  ;;  %v17846_v52 = vld [vmem:[%s23201_s12 + $0x100] sm:$0xf]  ;;  %v3766_v18 = vshrl.u32 %v17442_v22, 16 }
 0x19e   : > { %v25292_v48 = vrot.slane %v3713_v20, 5  ;;  %v25300_v2 = vrot.slane %v7533_v63, 4  ;;  %20408 = vmatprep.mubr.msk.bf16.mxu1 %vm610_vm1, %v17888_v11  ;;  %v25303_v38 = vrot.slane %v7536_v27, 5  ;;  %v7547_v20 = vshrl.u32 %v17840_v7, 16 }
 0x19f   : > { %v3752_v11 = vshrl.u32 %v17440_v32, 16  ;;  %v3755_v27 = vshll.u32 %v17440_v32, 16  ;;  %v25326_v15 = vrot.slane %v7550_v46, 5  ;;  %v17890_v32 = vcombine.low %v17844_v1, %v17846_v52  ;;  %v25343_v46 = vld [vmem:[%s28578_s4 + $0x5c] sm:$0xf] }
 0x1a0   : > { %v25354_v56 = vrot.slane %v3766_v18, 4  ;;  %v3702_v18 = vor.u32 %v25287_v3, %v25285_v0  ;;  %v3716_v51 = vor.u32 %v25292_v48, %v25289_v17  ;;  %v7528_v0 = vshll.u32 %v17837_v54, 16 }
 0x1a1   : > { %v7539_v54 = vor.u32 %v25303_v38, %v25300_v2  ;;  %v17443_v38 = vld [vmem:[%s23201_s12 + $0xbc] sm:$0x1] }
 0x1a2   : > { %v3703_v17 = vrot.slane %v3702_v18, 4  ;;  %v25403_v18 = vrot.slane %v7528_v0, 5  ;;  %v7656_v0 = vsel %vm623_vm0, %v25343_v46, 0 }
 0x1a3   : > { %20133 = vmatmul.mubr.msk.bf16.gmra.mrb[4].mxu0 %vm610_vm1, %v17478_v21  ;;  %v3727_v21 = vshll.u32 %v17436_v29, 16  ;;  %v25306_v29 = vrot.slane %v3724_v4, 4  ;;  %v25319_v4 = vrot.slane %v3738_v60, 4  ;;  %v17446_v60 = vld [vmem:[%s23201_s12 + $0xc8] sm:$0xf] }
 0x1a4   : > { %20138 = vmatprep.mubr.msk.bf16.mxu0 %vm610_vm1, %v17484_v5  ;;  %v17842_v5 = vld [vmem:[%s23201_s12 + $0xf0] sm:$0xf]  ;;  %v17487_v58 = vcombine.low %v17444_v13, %v17446_v60 }
 0x1a5   : > { %v17889_v41 = vcombine.low %v17840_v7, %v17842_v5  ;;  %v7561_v33 = vshrl.u32 %v17842_v5, 16  ;;  %v25311_v63 = vrot.slane %v3727_v21, 5  ;;  %v7564_v53 = vshll.u32 %v17842_v5, 16 }
 0x1a6   : > { %v25321_v7 = vrot.slane %v3741_v47, 5  ;;  %v3769_v21 = vshll.u32 %v17442_v22, 16  ;;  %v25324_v5 = vrot.slane %v7547_v20, 4  ;;  %v7443_v47 = vsel %vm623_vm0, %v25259_v14, 0  ;;  %v17848_v20 = vld [vmem:[%s23201_s12 + $0x108] sm:$0xf] }
 0x1a7   : > { %v25330_v44 = vrot.slane %v7561_v33, 4  ;;  %v7589_v22 = vshrl.u32 %v17846_v52, 16  ;;  %v25347_v33 = vrot.slane %v3752_v11, 4  ;;  %v22554_v14 = vld [vmem:[%s23206_s25 + $0x90] ss:$8 sps:$4 sm:$0xff]   ;;  %20409 = vmatmul.mubr.msk.bf16.vlgmr.msra.gmra.mrb[0].mxu1 %vm610_vm1, %v17889_v41  ;;  %v3783_v11 = vshll.u32 %v17444_v13, 16 }
 0x1a8   : > { %v25356_v42 = vrot.slane %v3769_v21, 5  ;;  %20417 = vmatpush3.bf16.msra.mxu1 %v7443_v47  ;;  %20412 = vmatprep.mubr.msk.bf16.mxu1 %vm610_vm1, %v17890_v32  ;;  %v3705_v21 = vshll.u32 %v17433_v16, 16  ;;  %v17891_v13 = vcombine.low %v17848_v20, %v25336_v8  ;;  %v7603_v32 = vshrl.u32 %v17848_v20, 16 }
 0x1a9   : > { %v25365_v41 = vrot.slane %v7589_v22, 4  ;;  %22318 = vmatprep.subr.msk.bf16.mxu1 %vm623_vm0, %v25343_v46  ;;  %v3719_v22 = vshll.u32 %v17435_v10, 16  ;;  %v7525_v16 = vor.u32 %v25298_v61, %v25294_v40  ;;  %v25383_v3 = vrot.slane %v3783_v11, 5  ;;  %v22556_v10 = vld [vmem:[%s23206_s25 + $0xa0] ss:$8 sps:$4 sm:$0xff]  }
 0x1aa   : > { %v7606_v35 = vshll.u32 %v17848_v20, 16  ;;  %v3707_v48 = vrot.slane %v3705_v21, 5  ;;  %v17439_v40 = vld [vmem:[%s23201_s12 + $0xac] sm:$0x1]  ;;  %v25396_v61 = vrot.slane %v7603_v32, 4  ;;  %v3717_v20 = vrot.slane %v3716_v51, 4 }
 0x1ab   : > { %20139 = vmatmul.mubr.msk.bf16.vlgmr.msra.gmra.mrb[0].mxu0 %vm610_vm1, %v17485_v30  ;;  %v7575_v30 = vshrl.u32 %v17844_v1, 16  ;;  %v7592_v1 = vshll.u32 %v17846_v52, 16  ;;  %v3797_v52 = vshll.u32 %v17446_v60, 16  ;;  %v3730_v2 = vor.u32 %v25311_v63, %v25306_v29  ;;  %v22558_v32 = vld [vmem:[%s23206_s25 + $0xb0] ss:$8 sps:$4 sm:$0xff]  }
 0x1ac   : > { %20147 = vmatpush3.bf16.msra.mxu0 %v3620_v12  ;;  %20142 = vmatprep.mubr.msk.bf16.mxu0 %vm610_vm1, %v17486_v39  ;;  %v25345_v39 = vrot.slane %v7564_v53, 5  ;;  %v25349_v12 = vrot.slane %v3755_v27, 5  ;;  %v3794_v27 = vshrl.u32 %v17446_v60, 16  ;;  %v25378_v60 = vrot.slane %v3780_v36, 4  ;;  %v25426_v63 = vld [vmem:[%s28578_s4 + $0x60] sm:$0xf] }
 0x1ad   : > { %22291 = vmatprep.subr.msk.bf16.mxu0 %vm623_vm0, %v25316_v43  ;;  %v25360_v53 = vrot.slane %v7575_v30, 4  ;;  %v25371_v47 = vrot.slane %v7592_v1, 5  ;;  %v22555_v30 = vld [vmem:[%s23206_s25 + $0xd8] ss:$8 sps:$4 sm:$0xff]   ;;  %v25387_v9 = vrot.slane %v3797_v52, 5  ;;  %v3721_v52 = vrot.slane %v3719_v22, 5 }
 0x1ae   : > { %v25385_v1 = vrot.slane %v3794_v27, 4  ;;  %v7542_v27 = vshll.u32 %v17839_v28, 16  ;;  %v25401_v36 = vrot.slane %v7525_v16, 4  ;;  %v25408_v21 = vrot.slane %v7606_v35, 5  ;;  %v22557_v22 = vld [vmem:[%s23206_s25 + $0xe8] ss:$8 sps:$4 sm:$0xff]  }
 0x1af   : > { %20413 = vmatmul.mubr.msk.bf16.gmra.mrb[4].mxu1 %vm610_vm1, %v17891_v13  ;;  %v3744_v13 = vor.u32 %v25321_v7, %v25319_v4  ;;  %v3747_v51 = vshll.u32 %v17439_v40, 16  ;;  %v3834_v16 = vsel %vm623_vm0, %v25316_v43, 0  ;;  %v3708_v35 = vsel %vm23435_vm4, %v3703_v17, %v3707_v48  ;;  %v17841_v4 = vld [vmem:[%s23201_s12 + $0xec] sm:$0x1]  ;;  %v17843_v7 = vld [vmem:[%s23201_s12 + $0xf4] sm:$0x1] }
 0x1b0   : > { %20418 = vmatprep.mubr.msk.bf16.mxu1 %vm610_vm1, %v22555_v30  ;;  %v25421_v29 = vrot.slane %v7539_v54, 4  ;;  %v3758_v30 = vor.u32 %v25349_v12, %v25347_v33  ;;  %v3772_v46 = vor.u32 %v25356_v42, %v25354_v56  ;;  %v22559_v17 = vld [vmem:[%s23206_s25 + $0xf8] ss:$8 sps:$4 sm:$0xff]   ;;  %v3722_v48 = vsel %vm23435_vm4, %v3717_v20, %v3721_v52  ;;  %v17845_v33 = vld [vmem:[%s23201_s12 + $0xfc] sm:$0x1] }
 0x1b1   : > { %v7531_v54 = vsel %vm23435_vm4, %v25401_v36, %v25403_v18  ;;  %v7544_v40 = vrot.slane %v7542_v27, 5  ;;  %v3731_v11 = vrot.slane %v3730_v2, 4  ;;  %v3745_v42 = vrot.slane %v3744_v13, 4  ;;  %v25456_v18 = vld [vmem:[%s28578_s4 + $0x60] sm:$0xf] }
 0x1b2   : > { %v3749_v56 = vrot.slane %v3747_v51, 5  ;;  %v7556_v20 = vshll.u32 %v17841_v4, 16  ;;  %v7567_v36 = vor.u32 %v25345_v39, %v25330_v44  ;;  %v7570_v27 = vshll.u32 %v17843_v7, 16 }
 0x1b3   : > { %20143 = vmatmul.mubr.msk.bf16.gmra.mrb[4].mxu0 %vm610_vm1, %v17487_v58  ;;  %v17437_v58 = vld [vmem:[%s23201_s12 + $0xa4] sm:$0x1]  ;;  %v7581_v52 = vor.u32 %v25363_v25, %v25360_v53  ;;  %v3759_v2 = vrot.slane %v3758_v30, 4  ;;  %v7584_v13 = vshll.u32 %v17845_v33, 16  ;;  %v7595_v44 = vor.u32 %v25371_v47, %v25365_v41 }
 0x1b4   : > { %20148 = vmatprep.mubr.msk.bf16.mxu0 %vm610_vm1, %v22554_v14  ;;  %v17441_v14 = vld [vmem:[%s23201_s12 + $0xb4] sm:$0x1]  ;;  %v3733_v28 = vshll.u32 %v17437_v58, 16  ;;  %v3775_v58 = vshll.u32 %v17443_v38, 16  ;;  %v17445_v25 = vld [vmem:[%s23201_s12 + $0xc4] sm:$0x1]  ;;  %v7545_v53 = vsel %vm23435_vm4, %v25421_v29, %v7544_v40 }
 0x1b5   : > { %v3761_v43 = vshll.u32 %v17441_v14, 16  ;;  %v17847_v14 = vld [vmem:[%s23201_s12 + $0x104] sm:$0x1]  ;;  %v7568_v4 = vrot.slane %v7567_v36, 4  ;;  %v7572_v41 = vrot.slane %v7570_v27, 5  ;;  %v7582_v47 = vrot.slane %v7581_v52, 4 }
 0x1b6   : > { %v3735_v12 = vrot.slane %v3733_v28, 5  ;;  %v3777_v38 = vrot.slane %v3775_v58, 5  ;;  %v17502_v28 = vcombine.low %v3708_v35, %v3722_v48  ;;  %v7598_v39 = vshll.u32 %v17847_v14, 16  ;;  %v17849_v14 = vld [vmem:[%s23201_s12 + $0x10c] sm:$0x1] }
 0x1b7   : > { %20419 = vmatmul.mubr.msk.bf16.vlgmr.msra.gmra.mrb[0].mxu1 %vm610_vm1, %v22557_v22  ;;  %v3750_v22 = vsel %vm23435_vm4, %v3745_v42, %v3749_v56  ;;  %v7558_v35 = vrot.slane %v7556_v20, 5  ;;  %v3789_v30 = vshll.u32 %v17445_v25, 16  ;;  %v7596_v58 = vrot.slane %v7595_v44, 4  ;;  %v17851_v20 = vld [vmem:[%s23201_s12 + $0x114] sm:$0x1] }
 0x1b8   : > { %20427 = vmatpush3.bf16.msra.mxu1 %v7656_v0  ;;  %20422 = vmatprep.mubr.msk.bf16.mxu1 %vm610_vm1, %v22559_v17  ;;  %v3736_v51 = vsel %vm23435_vm4, %v3731_v11, %v3735_v12  ;;  %v17447_v0 = vld [vmem:[%s23201_s12 + $0xcc] sm:$0x1]  ;;  %v3786_v11 = vor.u32 %v25383_v3, %v25378_v60  ;;  %v7600_v17 = vrot.slane %v7598_v39, 5  ;;  %v3800_v48 = vor.u32 %v25387_v9, %v25385_v1 }
 0x1b9   : > { %22319 = vmatprep.subr.msk.bf16.mxu1 %vm623_vm0, %v25456_v18  ;;  %v28916_v40 = vshrl.u32 %v25336_v8, 16  ;;  %v28917_v12 = vshll.u32 %v25336_v8, 16  ;;  %v17906_v60 = vcombine.low %v7531_v54, %v7545_v53  ;;  %v3803_v3 = vshll.u32 %v17447_v0, 16 }
 0x1ba   : > { %v17503_v56 = vcombine.low %v3736_v51, %v3750_v22  ;;  %v7573_v36 = vsel %vm23435_vm4, %v7568_v4, %v7572_v41  ;;  %v3787_v1 = vrot.slane %v3786_v11, 4  ;;  %v3791_v27 = vrot.slane %v3789_v30, 5  ;;  %v22585_v41 = vld [vmem:[%s23191_s19 + $0x98] sm:$0xf]  ;;  %v22588_v11 = vld [vmem:[%s23191_s19 + $0xe8] sm:$0xf] }
 0x1bb   : > { %20149 = vmatmul.mubr.msk.bf16.vlgmr.msra.gmra.mrb[0].mxu0 %vm610_vm1, %v22556_v10  ;;  %v7553_v10 = vor.u32 %v25326_v15, %v25324_v5  ;;  %v3763_v15 = vrot.slane %v3761_v43, 5  ;;  %v3773_v5 = vrot.slane %v3772_v46, 4  ;;  %v22561_v43 = vld [vmem:[%s23206_s25 + $0x108] ss:$8 sps:$4 sm:$0xff]   ;;  %v7586_v46 = vrot.slane %v7584_v13, 5 }
 0x1bc   : > { %20157 = vmatpush3.bf16.msra.mxu0 %v3834_v16  ;;  %20152 = vmatprep.mubr.msk.bf16.mxu0 %vm610_vm1, %v22558_v32  ;;  %v22560_v32 = vld [vmem:[%s23206_s25 + $0xc0] ss:$8 sps:$4 sm:$0xff]   ;;  %v7619_v33 = vrot.slane %v28916_v40, 4  ;;  %v7622_v42 = vrot.slane %v28917_v12, 5  ;;  %v7601_v54 = vsel %vm23435_vm4, %v7596_v58, %v7600_v17  ;;  %v3801_v52 = vrot.slane %v3800_v48, 4 }
 0x1bd   : > { %22292 = vmatprep.subr.msk.bf16.mxu0 %vm623_vm0, %v25426_v63  ;;  %v7554_v16 = vrot.slane %v7553_v10, 4  ;;  %v3764_v7 = vsel %vm23435_vm4, %v3759_v2, %v3763_v15  ;;  %v3778_v29 = vsel %vm23435_vm4, %v3773_v5, %v3777_v38  ;;  %v7587_v8 = vsel %vm23435_vm4, %v7582_v47, %v7586_v46  ;;  %v17519_v13 = vld [vmem:[%s28578_s4 + $0x64] sm:$0xf]  ;;  %v22586_v47 = vld [vmem:[%s23191_s19 + $0xa0] sm:$0xf] }
 0x1be   : > { %v17504_v9 = vcombine.low %v3764_v7, %v3778_v29  ;;  %v7609_v2 = vor.u32 %v25408_v21, %v25396_v61  ;;  %v3805_v15 = vrot.slane %v3803_v3, 5  ;;  %v7612_v5 = vshll.u32 %v17849_v14, 16  ;;  %v22587_v29 = vld [vmem:[%s23191_s19 + $0xe0] sm:$0xf]  ;;  %v17528_v17 = vld [vmem:[%s28578_s4 + $0x68] sm:$0xf] }
 0x1bf   : > { %v7559_v10 = vsel %vm23435_vm4, %v7554_v16, %v7558_v35  ;;  %20423 = vmatmul.mubr.msk.bf16.gmra.mrb[4].mxu1 %vm610_vm1, %v22561_v43  ;;  %v7623_v38 = vor.u32 %v7622_v42, %v7619_v33  ;;  %v17908_v39 = vcombine.low %v7587_v8, %v7601_v54  ;;  %v3792_v61 = vsel %vm23435_vm4, %v3787_v1, %v3791_v27  ;;  %v17923_v16 = vld [vmem:[%s28578_s4 + $0x64] sm:$0xf]  ;;  %v22589_v43 = vld [vmem:[%s23191_s19 + $0xb8] sm:$0xf]  ;;  %v22590_v40 = vld [vmem:[%s23191_s19 + $0x100] sm:$0xf] }
 0x1c0   : > { %20428 = vmatprep.mubr.msk.bf16.mxu1 %vm610_vm1, %v17906_v60  ;;  %v17907_v44 = vcombine.low %v7559_v10, %v7573_v36  ;;  %v7610_v21 = vrot.slane %v7609_v2, 4  ;;  %v7614_v25 = vrot.slane %v7612_v5, 5  ;;  %v7751_v22 = vsel %vm623_vm0, %v25456_v18, 0  ;;  %v17421_v12 = vld [vmem:[%s23191_s19 + $0xd0] sm:$0xf]  ;;  %v28925_v1 = vld [vmem:[#allocation45_spill] sm:$0xff] }
 0x1c1   : > { %v7624_v53 = vrot.slane %v7623_v38, 4  ;;  %v17511_v0 = vcombine.low %v22585_v41, %v22586_v47  ;;  %v17915_v30 = vcombine.low %v22587_v29, %v22588_v11  ;;  %v17513_v46 = vcombine.low %v22589_v43, %v24967_v34  ;;  %v17932_v42 = vld [vmem:[%s28578_s4 + $0x68] sm:$0xf]  ;;  %v17431_v36 = vld [vmem:[%s23196_s15 + $0xd0] sm:$0xf] }
 0x1c2   : > { %v7615_v4 = vsel %vm23435_vm4, %v7610_v21, %v7614_v25  ;;  %v4026_v58 = vsel %vm623_vm0, %v17519_v13, 0  ;;  %v28918_v48 = vcombine.low %v24578_v55, %v24581_v19  ;;  %v17917_v33 = vcombine.low %v22590_v40, %v25002_v59  ;;  %v22591_v19 = vld [vmem:[%s23191_s19 + $0xc8] sm:$0xf]  ;;  %v17825_v59 = vld [vmem:[%s23191_s19 + $0x118] sm:$0xf]  ;;  %v28928_v5 = vld [vmem:[#allocation19_spill] sm:$0xff] }
 0x1c3   : > { %20153 = vmatmul.mubr.msk.bf16.gmra.mrb[4].mxu0 %vm610_vm1, %v22560_v32  ;;  %v7626_v32 = vshll.u32 %v17851_v20, 16  ;;  %v7846_v34 = vsel %vm623_vm0, %v17923_v16, 0  ;;  %v28919_v55 = vcombine.low %v24591_v37, %v24596_v45  ;;  %v17514_v60 = vcombine.low %v22591_v19, %v17421_v12  ;;  %v28929_v38 = vld [vmem:[#allocation30_spill] sm:$0xff]  ;;  %v28931_v21 = vld [vmem:[#allocation27_spill] sm:$0xff]  ;;  %v28940_v40 = vld [vmem:[#allocation48_spill] sm:$0xff] }
 0x1c4   : > { %20158 = vmatprep.mubr.msk.bf16.mxu0 %vm610_vm1, %v17502_v28  ;;  %v3930_v28 = vsel %vm623_vm0, %v25426_v63, 0  ;;  %v3806_v63 = vsel %vm23435_vm4, %v3801_v52, %v3805_v15  ;;  %v17520_v3 = vcombine.low %v24994_v31, %v25029_v23  ;;  %v17924_v37 = vcombine.low %v25015_v62, %v25083_v49  ;;  %v28920_v23 = vld [vmem:[#allocation44_spill] sm:$0xff]  ;;  %v28923_v49 = vld [vmem:[#allocation25_spill] sm:$0xff]  ;;  %v28936_v29 = vld [vmem:[#allocation47_spill] sm:$0xff] }
 0x1c5   : > { %v7628_v51 = vrot.slane %v7626_v32, 5  ;;  %v17505_v35 = vcombine.low %v3792_v61, %v3806_v63  ;;  %v17522_v45 = vcombine.low %v25046_v6, %v25129_v24  ;;  %v4135_v31 = vsel %vm623_vm0, %v17528_v17, 0  ;;  %v28922_v62 = vld [vmem:[#allocation24_spill] sm:$0xff]  ;;  %v28939_v43 = vld [vmem:[#allocation18_spill] sm:$0xff] }
 0x1c6   : > { %v28921_v10 = vcombine.low %v24625_v26, %v28920_v23  ;;  %v4105_v14 = vshll.u32 %v17421_v12, 16  ;;  %v17926_v20 = vcombine.low %v28923_v49, %v28922_v62  ;;  %v7954_v6 = vsel %vm623_vm0, %v17932_v42, 0  ;;  %v28927_v26 = vld [vmem:[#allocation26_spill] sm:$0xff]  ;;  %v17835_v15 = vld [vmem:[%s23196_s15 + $0x118] sm:$0xf] }
 0x1c7   : > { %20429 = vmatmul.mubr.msk.bf16.vlgmr.msra.gmra.mrb[0].mxu1 %vm610_vm1, %v17907_v44  ;;  %v7629_v18 = vsel %vm23435_vm4, %v7624_v53, %v7628_v51  ;;  %v7922_v24 = vshrl.u32 %v17825_v59, 16  ;;  %v17523_v8 = vcombine.low %v28927_v26, %v17431_v36  ;;  %v7925_v2 = vshll.u32 %v17825_v59, 16  ;;  %v28930_v44 = vld [vmem:[#allocation16_spill] sm:$0xff] }
 0x1c8   : > { %20437 = vmatpush3.bf16.msra.mxu1 %v7751_v22  ;;  %20432 = vmatprep.mubr.msk.bf16.mxu1 %vm610_vm1, %v17908_v39  ;;  %v17909_v7 = vcombine.low %v7615_v4, %v7629_v18  ;;  %v4107_v52 = vrot.slane %v4105_v14, 5  ;;  %v17529_v32 = vcombine.low %v28929_v38, %v28928_v5  ;;  %v17927_v39 = vcombine.low %v28930_v44, %v17835_v15  ;;  %v28932_v63 = vld [vmem:[#allocation28_spill] sm:$0xff]  ;;  %v4349_v15 = vld [vmem:[#allocation2 + $0x68] sm:$0xf] }
 0x1c9   : > { %22320 = vmatprep.subr.msk.bf16.mxu1 %vm623_vm0, %v17923_v16  ;;  %v7927_v61 = vrot.slane %v7925_v2, 5  ;;  %v17933_v25 = vcombine.low %v28932_v63, %v28931_v21  ;;  %v17826_v22 = vld [vmem:[%s23191_s19 + $0x11c] sm:$0x1]  ;;  %v28933_v16 = vld [vmem:[#allocation22_spill] sm:$0xff] }
 0x1ca   : > { %v28944_v19 = vld [vmem:[#allocation32_spill] sm:$0xff] }
 0x1cb   : > { %20159 = vmatmul.mubr.msk.bf16.vlgmr.msra.gmra.mrb[0].mxu0 %vm610_vm1, %v17503_v56  ;;  %v17918_v56 = vcombine.low %v25005_v50, %v17825_v59  ;;  %v4102_v50 = vshrl.u32 %v17421_v12, 16  ;;  %v25626_v59 = vld [vmem:[%s28579_s5] ss:$0 sm:$0xff] }
 0x1cc   : > { %20167 = vmatpush3.bf16.msra.mxu0 %v3930_v28  ;;  %20162 = vmatprep.mubr.msk.bf16.mxu0 %vm610_vm1, %v17504_v9  ;;  %v28924_v9 = vld [vmem:[#allocation43_spill] sm:$0xff] }
 0x1cd   : > { %22293 = vmatprep.subr.msk.bf16.mxu0 %vm623_vm0, %v17519_v13  ;;  %v28926_v27 = vcombine.low %v28924_v9, %v28925_v1  ;;  %v4104_v54 = vrot.slane %v4102_v50, 4  ;;  %v17422_v28 = vld [vmem:[%s23191_s19 + $0xd4] sm:$0x1]  ;;  %v7924_v13 = vrot.slane %v7922_v24, 4 }
 0x1ce   : > { %v4111_v51 = vshll.u32 %v17422_v28, 16 }
 0x1cf   : > { %20433 = vmatmul.mubr.msk.bf16.gmra.mrb[4].mxu1 %vm610_vm1, %v17909_v7  ;;  %v4108_v53 = vor.u32 %v4107_v52, %v4104_v54  ;;  %v7928_v47 = vor.u32 %v7927_v61, %v7924_v13  ;;  %v28935_v7 = vld [vmem:[#allocation46_spill] sm:$0xff] }
 0x1d0   : > { %20438 = vmatprep.mubr.msk.bf16.mxu1 %vm610_vm1, %v17915_v30  ;;  %v4113_v41 = vrot.slane %v4111_v51, 5  ;;  %v28937_v11 = vcombine.low %v28935_v7, %v28936_v29  ;;  %v28938_v30 = vld [vmem:[#allocation34_spill] sm:$0xff] }
 0x1d1   : > { %v4109_v18 = vrot.slane %v4108_v53, 4  ;;  %v4352_v61 = vld [vmem:[#allocation2 + $0x6c] sm:$0x1] }
 0x1d3   : > { %20163 = vmatmul.mubr.msk.bf16.gmra.mrb[4].mxu0 %vm610_vm1, %v17505_v35  ;;  %v28934_v35 = vld [vmem:[#allocation33_spill] sm:$0xff] }
 0x1d4   : > { %20168 = vmatprep.mubr.msk.bf16.mxu0 %vm610_vm1, %v17511_v0  ;;  %v17531_v4 = vcombine.low %v28934_v35, %v28933_v16  ;;  %v7931_v0 = vshll.u32 %v17826_v22, 16  ;;  %v4334_v16 = vld [vmem:[#allocation2 + $0x58] sm:$0xf] }
 0x1d7   : > { %20439 = vmatmul.mubr.msk.bf16.vlgmr.msra.gmra.mrb[0].mxu1 %vm610_vm1, %v28919_v55 }
 0x1d8   : > { %20447 = vmatpush3.bf16.msra.mxu1 %v7846_v34  ;;  %20442 = vmatprep.mubr.msk.bf16.mxu1 %vm610_vm1, %v17917_v33  ;;  %v28941_v33 = vld [vmem:[#allocation49_spill] sm:$0xff] }
 0x1d9   : > { %22321 = vmatprep.subr.msk.bf16.mxu1 %vm623_vm0, %v17932_v42  ;;  %v28942_v12 = vcombine.low %v28940_v40, %v28941_v33  ;;  %v28943_v34 = vld [vmem:[#allocation29_spill] sm:$0xff] }
 0x1db   : > { %20169 = vmatmul.mubr.msk.bf16.vlgmr.msra.gmra.mrb[0].mxu0 %vm610_vm1, %v28918_v48  ;;  %v7933_v48 = vrot.slane %v7931_v0, 5 }
 0x1dc   : > { %20177 = vmatpush3.bf16.msra.mxu0 %v4026_v58  ;;  %20172 = vmatprep.mubr.msk.bf16.mxu0 %vm610_vm1, %v17513_v46  ;;  %v17935_v46 = vcombine.low %v28939_v43, %v28938_v30  ;;  %v4114_v58 = vsel %vm23435_vm4, %v4109_v18, %v4113_v41  ;;  %v8162_v43 = vld [vmem:[#allocation2 + $0xb8] sm:$0xf] }
 0x1dd   : > { %22294 = vmatprep.subr.msk.bf16.mxu0 %vm623_vm0, %v17528_v17  ;;  %v7929_v17 = vrot.slane %v7928_v47, 4  ;;  %v17532_v42 = vcombine.low %v28943_v34, %v4114_v58 }
 0x1df   : > { %20443 = vmatmul.mubr.msk.bf16.gmra.mrb[4].mxu1 %vm610_vm1, %v17918_v56  ;;  %v7934_v55 = vsel %vm23435_vm4, %v7929_v17, %v7933_v48 }
 0x1e0   : > { %20448 = vmatprep.mubr.msk.bf16.mxu1 %vm610_vm1, %v17924_v37 }
 0x1e3   : > { %20173 = vmatmul.mubr.msk.bf16.gmra.mrb[4].mxu0 %vm610_vm1, %v17514_v60  ;;  %v17936_v60 = vcombine.low %v28944_v19, %v7934_v55  ;;  %v8150_v55 = vld [vmem:[#allocation2 + $0xa8] sm:$0xf] }
 0x1e4   : > { %20178 = vmatprep.mubr.msk.bf16.mxu0 %vm610_vm1, %v17520_v3 }
 0x1e7   : > { %20449 = vmatmul.mubr.msk.bf16.vlgmr.msra.gmra.mrb[0].mxu1 %vm610_vm1, %v28926_v27 }
 0x1e8   : > { %20457 = vmatpush3.bf16.msra.mxu1 %v7954_v6  ;;  %20452 = vmatprep.mubr.msk.bf16.mxu1 %vm610_vm1, %v17926_v20 }
 0x1eb   : > { %20179 = vmatmul.mubr.msk.bf16.vlgmr.msra.gmra.mrb[0].mxu0 %vm610_vm1, %v28921_v10 }
 0x1ec   : > { %20187 = vmatpush3.bf16.msra.mxu0 %v4135_v31  ;;  %20182 = vmatprep.mubr.msk.bf16.mxu0 %vm610_vm1, %v17522_v45 }
 0x1ef   : > { %20453 = vmatmul.mubr.msk.bf16.gmra.mrb[4].mxu1 %vm610_vm1, %v17927_v39 }
 0x1f0   : > { %20458 = vmatprep.mubr.msk.bf16.mxu1 %vm610_vm1, %v17933_v25 }
 0x1f3   : > { %20183 = vmatmul.mubr.msk.bf16.gmra.mrb[4].mxu0 %vm610_vm1, %v17523_v8 }
 0x1f4   : > { %20188 = vmatprep.mubr.msk.bf16.mxu0 %vm610_vm1, %v17529_v32 }
 0x1f7   : > { %20459 = vmatmul.mubr.msk.bf16.vlgmr.msra.gmra.mrb[0].mxu1 %vm610_vm1, %v28942_v12 }
 0x1f8   : > { %20462 = vmatprep.mubr.msk.bf16.mxu1 %vm610_vm1, %v17935_v46  ;;  %v8165_v46 = vld [vmem:[#allocation2 + $0xbc] sm:$0x1] }
 0x1fb   : > { %20189 = vmatmul.mubr.msk.bf16.vlgmr.msra.gmra.mrb[0].mxu0 %vm610_vm1, %v28937_v11  ;;  %v4340_v11 = vld [vmem:[#allocation2 + $0x5c] sm:$0x1] }
 0x1fc   : > { %20192 = vmatprep.mubr.msk.bf16.mxu0 %vm610_vm1, %v17531_v4 }
 0x1ff   : > { %20463 = vmatmul.mubr.msk.bf16.gmra.mrb[4].mxu1 %vm610_vm1, %v17936_v60 }
 0x203   : > { %20193 = vmatmul.mubr.msk.bf16.gmra.mrb[4].mxu0 %vm610_vm1, %v17532_v42 }
 0x2ca   : > { %v20460_v50 = vpop.f32.mrb[0].mxu1 }
 0x2cb   : > { %v21402_v20 = vadd.f32 %v20460_v50, %v25626_v59  ;;  %v7990_v36 = vpop.f32.mrb[1].mxu1 }
 0x2cc   : > { %v21403_v9 = vadd.f32 %v25626_v59, %v7990_v36  ;;  %v20461_v1 = vpop.f32.mrb[2].mxu1 }
 0x2cd   : > { %v8031_v54 = vmax.f32 %v21402_v20, 0.0  ;;  %v25634_v2 = vpop.f32.mrb[3].mxu1  ;;  %v21404_v28 = vadd.f32 %v20461_v1, %v25626_v59 }
 0x2ce   : > { %v20190_v3 = vpop.f32.mrb[0].mxu0  ;;  %v8029_v32 = vmax.f32 %v21403_v9, 0.0 }
 0x2cf   : > { %v21394_v56 = vadd.f32 %v20190_v3, %v25626_v59  ;;  %v4171_v37 = vpop.f32.mrb[1].mxu0  ;;  %v19174_v21 = vpack.c.bf16 %v8031_v54, %v8031_v54  ;;  %v8032_v4 = vmax.f32 %v21404_v28, 0.0 }
 0x2d0   : > { %v21395_v45 = vadd.f32 %v25626_v59, %v4171_v37  ;;  %v20191_v31 = vpop.f32.mrb[2].mxu0  ;;  %v19172_v35 = vpack.c.bf16 %v8029_v32, %v8029_v32  ;;  %v8171_v32 = vld [vmem:[#allocation2 + $0xc4] sm:$0x1] }
 0x2d1   : > { %v4212_v57 = vmax.f32 %v21394_v56, 0.0  ;;  %v21396_v23 = vadd.f32 %v20191_v31, %v25626_v59  ;;  %v4174_v10 = vpop.f32.mrb[3].mxu0  ;;  %v8086_v7 = vshrl.u32 %v19174_v21, 16  ;;  %v8089_v29 = vshll.u32 %v19174_v21, 16  ;;  %v4358_v31 = vld [vmem:[#allocation2 + $0x74] sm:$0x1] }
 0x2d2   : > { %v4210_v14 = vmax.f32 %v21395_v45, 0.0  ;;  %v21397_v62 = vadd.f32 %v25626_v59, %v4174_v10  ;;  %v8070_v48 = vshrl.u32 %v19172_v35, 16  ;;  %v8073_v40 = vshll.u32 %v19172_v35, 16  ;;  %v20464_v33 = vpop.f32.mrb[4].mxu1  ;;  %v4355_v45 = vld [vmem:[#allocation2 + $0x70] sm:$0xf] }
 0x2d3   : > { %v19166_v49 = vpack.c.bf16 %v4212_v57, %v4212_v57  ;;  %v4213_v6 = vmax.f32 %v21396_v23, 0.0  ;;  %v8088_v42 = vrot.slane %v8086_v7, 7  ;;  %v8006_v60 = vpop.f32.mrb[5].mxu1  ;;  %v19175_v57 = vpack.c.bf16 %v8032_v4, %v8032_v4  ;;  %v4346_v4 = vld [vmem:[#allocation2 + $0x64] sm:$0x1] }
 0x2d4   : > { %v19164_v24 = vpack.c.bf16 %v4210_v14, %v4210_v14  ;;  %v4211_v27 = vmax.f32 %v21397_v62, 0.0  ;;  %v8072_v37 = vrot.slane %v8070_v48, 7  ;;  %v25667_v23 = vpop.f32.mrb[6].mxu1  ;;  %v8153_v14 = vld [vmem:[#allocation2 + $0xac] sm:$0x1]  ;;  %v21406_v21 = vadd.f32 %v20464_v33, %v25626_v59 }
 0x2d5   : > { %v4267_v26 = vshrl.u32 %v19166_v49, 16  ;;  %v4270_v8 = vshll.u32 %v19166_v49, 16  ;;  %v19167_v52 = vpack.c.bf16 %v4213_v6, %v4213_v6  ;;  %v8091_v10 = vor.u32 %v8089_v29, %v8088_v42  ;;  %v25669_v20 = vpop.f32.mrb[7].mxu1 }
 0x2d6   : > { %v4251_v5 = vshrl.u32 %v19164_v24, 16  ;;  %v4254_v38 = vshll.u32 %v19164_v24, 16  ;;  %v25637_v13 = vpop.f32.mrb[4].mxu0  ;;  %v25653_v18 = vpack.c.bf16 %v4211_v27, %v4211_v27  ;;  %v8092_v50 = vrot.slane %v8088_v42, 4 }
 0x2d7   : > { %v4269_v44 = vrot.slane %v4267_v26, 7  ;;  %v4275_v63 = vshrl.u32 %v19167_v52, 16  ;;  %v4278_v25 = vshll.u32 %v19167_v52, 16  ;;  %v25645_v53 = vpop.f32.mrb[5].mxu0  ;;  %v8075_v36 = vor.u32 %v8073_v40, %v8072_v37 }
 0x2d8   : > { %v4253_v22 = vrot.slane %v4251_v5, 7  ;;  %v25655_v41 = vpop.f32.mrb[6].mxu0  ;;  %v8076_v6 = vrot.slane %v8072_v37, 4  ;;  %v8094_v24 = vshrl.u32 %v19175_v57, 16  ;;  %v8097_v9 = vshll.u32 %v19175_v57, 16 }
 0x2d9   : > { %v4272_v47 = vor.u32 %v4270_v8, %v4269_v44  ;;  %v4273_v0 = vrot.slane %v4269_v44, 4  ;;  %v25657_v30 = vpop.f32.mrb[7].mxu0  ;;  %v4277_v19 = vrot.slane %v4275_v63, 7  ;;  %v8163_v1 = vsel %vm25641_vm8, %v8091_v10, %v8162_v43  ;;  %v4373_v10 = vld [vmem:[#allocation2 + $0x88] sm:$0xf] }
 0x2da   : > { %v4256_v58 = vor.u32 %v4254_v38, %v4253_v22  ;;  %v4257_v17 = vrot.slane %v4253_v22, 4  ;;  %v8166_v27 = vsel %vm25649_vm9, %v8092_v50, %v8165_v46  ;;  %8164 = vst [vmem:[#allocation2 + $0xb8] sm:$0xf] %v8163_v1  ;;  %v8151_v54 = vsel %vm25641_vm8, %v8075_v36, %v8150_v55  ;;  %v8168_v38 = vld [vmem:[#allocation2 + $0xc0] sm:$0xf] }
 0x2db   : > { %v4350_v12 = vsel %vm25641_vm8, %v4272_v47, %v4349_v15  ;;  %v4353_v34 = vsel %vm25649_vm9, %v4273_v0, %v4352_v61  ;;  %v4280_v62 = vor.u32 %v4278_v25, %v4277_v19  ;;  %v4281_v49 = vrot.slane %v4277_v19, 4  ;;  %8167 = vst [vmem:[#allocation2 + $0xbc] sm:$0x1] %v8166_v27  ;;  %8152 = vst [vmem:[#allocation2 + $0xa8] sm:$0xf] %v8151_v54 }
 0x2dc   : > { %4351 = vst [vmem:[#allocation2 + $0x68] sm:$0xf] %v4350_v12  ;;  %4354 = vst [vmem:[#allocation2 + $0x6c] sm:$0x1] %v4353_v34  ;;  %v4335_v3 = vsel %vm25641_vm8, %v4256_v58, %v4334_v16  ;;  %v4341_v56 = vsel %vm25649_vm9, %v4257_v17, %v4340_v11  ;;  %v8154_v52 = vsel %vm25649_vm9, %v8076_v6, %v8153_v14  ;;  %v8096_v15 = vrot.slane %v8094_v24, 7 }
 0x2dd   : > { %4336 = vst [vmem:[#allocation2 + $0x58] sm:$0xf] %v4335_v3  ;;  %4342 = vst [vmem:[#allocation2 + $0x5c] sm:$0x1] %v4341_v56  ;;  %v4356_v26 = vsel %vm25641_vm8, %v4280_v62, %v4355_v45  ;;  %v4359_v8 = vsel %vm25649_vm9, %v4281_v49, %v4358_v31  ;;  %v4259_v5 = vshrl.u32 %v25653_v18, 16  ;;  %v4262_v28 = vshll.u32 %v25653_v18, 16 }
 0x2de   : > { %4357 = vst [vmem:[#allocation2 + $0x70] sm:$0xf] %v4356_v26  ;;  %4360 = vst [vmem:[#allocation2 + $0x74] sm:$0x1] %v4359_v8  ;;  %v21405_v44 = vadd.f32 %v25626_v59, %v25634_v2  ;;  %v21398_v61 = vadd.f32 %v25637_v13, %v25626_v59  ;;  %v8099_v63 = vor.u32 %v8097_v9, %v8096_v15  ;;  %v8100_v25 = vrot.slane %v8096_v15, 4 }
 0x2df   : > { %8155 = vst [vmem:[#allocation2 + $0xac] sm:$0x1] %v8154_v52  ;;  %v4261_v22 = vrot.slane %v4259_v5, 7  ;;  %v4343_v16 = vld [vmem:[#allocation2 + $0x60] sm:$0xf]  ;;  %v21399_v35 = vadd.f32 %v25626_v59, %v25645_v53  ;;  %v8035_v7 = vmax.f32 %v21406_v21, 0.0  ;;  %v21407_v18 = vadd.f32 %v25626_v59, %v8006_v60 }
 0x2e0   : > { %v8030_v47 = vmax.f32 %v21405_v44, 0.0  ;;  %v4216_v0 = vmax.f32 %v21398_v61, 0.0  ;;  %v8169_v2 = vsel %vm25641_vm8, %v8099_v63, %v8168_v38  ;;  %v8172_v13 = vsel %vm25649_vm9, %v8100_v25, %v8171_v32  ;;  %v8156_v19 = vld [vmem:[#allocation2 + $0xb0] sm:$0xf]  ;;  %v8159_v60 = vld [vmem:[#allocation2 + $0xb4] sm:$0x1] }
 0x2e1   : > { %v4264_v29 = vor.u32 %v4262_v28, %v4261_v22  ;;  %v4265_v11 = vrot.slane %v4261_v22, 4  ;;  %8170 = vst [vmem:[#allocation2 + $0xc0] sm:$0xf] %v8169_v2  ;;  %8173 = vst [vmem:[#allocation2 + $0xc4] sm:$0x1] %v8172_v13  ;;  %v19178_v58 = vpack.c.bf16 %v8035_v7, %v8035_v7  ;;  %v4214_v53 = vmax.f32 %v21399_v35, 0.0 }
 0x2e2   : > { %v19173_v43 = vpack.c.bf16 %v8030_v47, %v8030_v47  ;;  %v19170_v46 = vpack.c.bf16 %v4216_v0, %v4216_v0  ;;  %v8033_v40 = vmax.f32 %v21407_v18, 0.0  ;;  %v21400_v33 = vadd.f32 %v25655_v41, %v25626_v59  ;;  %v4376_v41 = vld [vmem:[#allocation2 + $0x8c] sm:$0x1]  ;;  %v8186_v26 = vld [vmem:[#allocation2 + $0xd8] sm:$0xf] }
 0x2e3   : > { %v4344_v17 = vsel %vm25641_vm8, %v4264_v29, %v4343_v16  ;;  %v4347_v48 = vsel %vm25649_vm9, %v4265_v11, %v4346_v4  ;;  %v8118_v3 = vshrl.u32 %v19178_v58, 16  ;;  %v8121_v56 = vshll.u32 %v19178_v58, 16  ;;  %v8189_v8 = vld [vmem:[#allocation2 + $0xdc] sm:$0x1]  ;;  %v4361_v44 = vld [vmem:[#allocation2 + $0x78] sm:$0xf] }
 0x2e4   : > { %4345 = vst [vmem:[#allocation2 + $0x60] sm:$0xf] %v4344_v17  ;;  %4348 = vst [vmem:[#allocation2 + $0x64] sm:$0x1] %v4347_v48  ;;  %v8078_v12 = vshrl.u32 %v19173_v43, 16  ;;  %v8081_v34 = vshll.u32 %v19173_v43, 16  ;;  %v19168_v37 = vpack.c.bf16 %v4214_v53, %v4214_v53  ;;  %v19176_v45 = vpack.c.bf16 %v8033_v40, %v8033_v40 }
 0x2e5   : > { %v4299_v42 = vshrl.u32 %v19170_v46, 16  ;;  %v4302_v55 = vshll.u32 %v19170_v46, 16  ;;  %v4217_v50 = vmax.f32 %v21400_v33, 0.0  ;;  %v21408_v14 = vadd.f32 %v25667_v23, %v25626_v59  ;;  %v4364_v61 = vld [vmem:[#allocation2 + $0x7c] sm:$0x1] }
 0x2e6   : > { %v8080_v31 = vrot.slane %v8078_v12, 7  ;;  %v8120_v62 = vrot.slane %v8118_v3, 7  ;;  %v4283_v49 = vshrl.u32 %v19168_v37, 16  ;;  %v4286_v36 = vshll.u32 %v19168_v37, 16  ;;  %v8177_v16 = vld [vmem:[#allocation2 + $0xcc] sm:$0x1] }
 0x2e7   : > { %v4301_v57 = vrot.slane %v4299_v42, 7  ;;  %v8102_v6 = vshrl.u32 %v19176_v45, 16  ;;  %v8105_v35 = vshll.u32 %v19176_v45, 16  ;;  %v19171_v47 = vpack.c.bf16 %v4217_v50, %v4217_v50  ;;  %v8174_v2 = vld [vmem:[#allocation2 + $0xc8] sm:$0xf] }
 0x2e8   : > { %v8083_v24 = vor.u32 %v8081_v34, %v8080_v31  ;;  %v8084_v9 = vrot.slane %v8080_v31, 4  ;;  %v8123_v54 = vor.u32 %v8121_v56, %v8120_v62  ;;  %v8124_v52 = vrot.slane %v8120_v62, 4  ;;  %v4382_v12 = vld [vmem:[#allocation2 + $0x94] sm:$0x1]  ;;  %v8192_v31 = vld [vmem:[#allocation2 + $0xe0] sm:$0xf] }
 0x2e9   : > { %v4304_v1 = vor.u32 %v4302_v55, %v4301_v57  ;;  %v4305_v27 = vrot.slane %v4301_v57, 4  ;;  %v4285_v15 = vrot.slane %v4283_v49, 7  ;;  %v8104_v5 = vrot.slane %v8102_v6, 7  ;;  %v8195_v57 = vld [vmem:[#allocation2 + $0xe4] sm:$0x1] }
 0x2ea   : > { %v8157_v38 = vsel %vm25641_vm8, %v8083_v24, %v8156_v19  ;;  %v8160_v23 = vsel %vm25649_vm9, %v8084_v9, %v8159_v60  ;;  %v8187_v21 = vsel %vm25641_vm8, %v8123_v54, %v8186_v26  ;;  %v8190_v63 = vsel %vm25649_vm9, %v8124_v52, %v8189_v8  ;;  %v4367_v49 = vld [vmem:[#allocation2 + $0x80] sm:$0xf]  ;;  %v8180_v26 = vld [vmem:[#allocation2 + $0xd0] sm:$0xf]  ;;  %v8183_v8 = vld [vmem:[#allocation2 + $0xd4] sm:$0x1] }
 0x2eb   : > { %v4374_v32 = vsel %vm25641_vm8, %v4304_v1, %v4373_v10  ;;  %v4377_v28 = vsel %vm25649_vm9, %v4305_v27, %v4376_v41  ;;  %8158 = vst [vmem:[#allocation2 + $0xb0] sm:$0xf] %v8157_v38  ;;  %8161 = vst [vmem:[#allocation2 + $0xb4] sm:$0x1] %v8160_v23  ;;  %v4288_v25 = vor.u32 %v4286_v36, %v4285_v15  ;;  %v4289_v22 = vrot.slane %v4285_v15, 4 }
 0x2ec   : > { %4375 = vst [vmem:[#allocation2 + $0x88] sm:$0xf] %v4374_v32  ;;  %4378 = vst [vmem:[#allocation2 + $0x8c] sm:$0x1] %v4377_v28  ;;  %v8108_v4 = vrot.slane %v8104_v5, 4  ;;  %v8036_v0 = vmax.f32 %v21408_v14, 0.0  ;;  %v21401_v13 = vadd.f32 %v25626_v59, %v25657_v30  ;;  %v21409_v29 = vadd.f32 %v25626_v59, %v25669_v20 }
 0x2ed   : > { %8188 = vst [vmem:[#allocation2 + $0xd8] sm:$0xf] %v8187_v21  ;;  %8191 = vst [vmem:[#allocation2 + $0xdc] sm:$0x1] %v8190_v63  ;;  %v4362_v7 = vsel %vm25641_vm8, %v4288_v25, %v4361_v44  ;;  %v4365_v18 = vsel %vm25649_vm9, %v4289_v22, %v4364_v61  ;;  %v8107_v11 = vor.u32 %v8105_v35, %v8104_v5  ;;  %v4307_v46 = vshrl.u32 %v19171_v47, 16 }
 0x2ee   : > { %4363 = vst [vmem:[#allocation2 + $0x78] sm:$0xf] %v4362_v7  ;;  %4366 = vst [vmem:[#allocation2 + $0x7c] sm:$0x1] %v4365_v18  ;;  %v8178_v43 = vsel %vm25649_vm9, %v8108_v4, %v8177_v16  ;;  %v19179_v58 = vpack.c.bf16 %v8036_v0, %v8036_v0  ;;  %v4215_v53 = vmax.f32 %v21401_v13, 0.0  ;;  %v8034_v17 = vmax.f32 %v21409_v29, 0.0 }
 0x2ef   : > { %8179 = vst [vmem:[#allocation2 + $0xcc] sm:$0x1] %v8178_v43  ;;  %v8175_v48 = vsel %vm25641_vm8, %v8107_v11, %v8174_v2  ;;  %v4309_v40 = vrot.slane %v4307_v46, 7  ;;  %v4310_v33 = vshll.u32 %v19171_v47, 16  ;;  %v4379_v30 = vld [vmem:[#allocation2 + $0x90] sm:$0xf] }
 0x2f0   : > { %8176 = vst [vmem:[#allocation2 + $0xc8] sm:$0xf] %v8175_v48  ;;  %v8126_v59 = vshrl.u32 %v19179_v58, 16  ;;  %v19169_v20 = vpack.c.bf16 %v4215_v53, %v4215_v53  ;;  %v19177_v34 = vpack.c.bf16 %v8034_v17, %v8034_v17  ;;  %v8129_v60 = vshll.u32 %v19179_v58, 16  ;;  %v4370_v36 = vld [vmem:[#allocation2 + $0x84] sm:$0x1] }
 0x2f1   : > { %v4312_v42 = vor.u32 %v4310_v33, %v4309_v40  ;;  %v4313_v55 = vrot.slane %v4309_v40, 4 }
 0x2f2   : > { %v8128_v19 = vrot.slane %v8126_v59, 7  ;;  %v4291_v3 = vshrl.u32 %v19169_v20, 16  ;;  %v8110_v56 = vshrl.u32 %v19177_v34, 16  ;;  %v4294_v10 = vshll.u32 %v19169_v20, 16 }
 0x2f3   : > { %v4380_v37 = vsel %vm25641_vm8, %v4312_v42, %v4379_v30  ;;  %v4383_v45 = vsel %vm25649_vm9, %v4313_v55, %v4382_v12  ;;  %v8113_v6 = vshll.u32 %v19177_v34, 16 }
 0x2f4   : > { %4381 = vst [vmem:[#allocation2 + $0x90] sm:$0xf] %v4380_v37  ;;  %4384 = vst [vmem:[#allocation2 + $0x94] sm:$0x1] %v4383_v45  ;;  %v8131_v50 = vor.u32 %v8129_v60, %v8128_v19  ;;  %v8132_v14 = vrot.slane %v8128_v19, 4  ;;  %v4293_v41 = vrot.slane %v4291_v3, 7 }
 0x2f5   : > { %v8112_v62 = vrot.slane %v8110_v56, 7 }
 0x2f6   : > { %v8193_v24 = vsel %vm25641_vm8, %v8131_v50, %v8192_v31  ;;  %v8196_v9 = vsel %vm25649_vm9, %v8132_v14, %v8195_v57  ;;  %v4296_v1 = vor.u32 %v4294_v10, %v4293_v41  ;;  %v4297_v27 = vrot.slane %v4293_v41, 4 }
 0x2f7   : > { %8194 = vst [vmem:[#allocation2 + $0xe0] sm:$0xf] %v8193_v24  ;;  %8197 = vst [vmem:[#allocation2 + $0xe4] sm:$0x1] %v8196_v9  ;;  %v8115_v54 = vor.u32 %v8113_v6, %v8112_v62  ;;  %v8116_v52 = vrot.slane %v8112_v62, 4 }
 0x2f8   : > { %v4368_v15 = vsel %vm25641_vm8, %v4296_v1, %v4367_v49  ;;  %v4371_v5 = vsel %vm25649_vm9, %v4297_v27, %v4370_v36 }
 0x2f9   : > { %4369 = vst [vmem:[#allocation2 + $0x80] sm:$0xf] %v4368_v15  ;;  %4372 = vst [vmem:[#allocation2 + $0x84] sm:$0x1] %v4371_v5  ;;  %v8181_v38 = vsel %vm25641_vm8, %v8115_v54, %v8180_v26  ;;  %v8184_v23 = vsel %vm25649_vm9, %v8116_v52, %v8183_v8 }
 0x2fa   : > { %8182 = vst [vmem:[#allocation2 + $0xd0] sm:$0xf] %v8181_v38  ;;  %8185 = vst [vmem:[#allocation2 + $0xd4] sm:$0x1] %v8184_v23 }
 0x2fb PF: > { %p8198_p1 = scmp.gt.s32.totalorder %s23030_s16, 0 }
 0x2fd   : > { %p8200_p2 = pnand %p8198_p1, %p459_p13 }
 0x2ff   : > { %8203 = sbr.rel (%p8200_p2) target bundleno = 1240 (0x4d8), region = 68 }
 0x306   : > { %v8286_v39 = vld [vmem:[%s28578_s4] sm:$0xf]  ;;  %vm8320_vm10 = vcmask 1043456   ;;  %v18171_v51 = vld [vmem:[%s28578_s4 + $0x34] sm:$0xf]  ;;  %s25755_s22 = smul.u32 72, %s23030_s16 }
 0x307   : > { %22322 = vmatprep.subr.msk.bf16.mxu1 %vm8320_vm10, %v8286_v39  ;;  %v8322_v32 = vsel %vm8320_vm10, %v8286_v39, 0  ;;  %22335 = vmatprep.subr.msk.bf16.mxu0 %vm8320_vm10, %v18171_v51  ;;  %v25761_v28 = vsel %vm8320_vm10, %v18171_v51, 0  ;;  %v18012_v44 = vld [vmem:[%s28578_s4 + $0x4] sm:$0xf]  ;;  %vm8307_vm11 = vcmask 64512   ;;  %vm12048_vm0 = vcmask 1040384  }
 0x308   : > { %28949 = vst [vmem:[#allocation50_spill] sm:$0xff] %v25761_v28  ;;  %20467 = vmatpush3.bf16.msra.mxu1 %v8322_v32  ;;  %20597 = vmatpush3.bf16.msra.mxu0 %v25761_v28  ;;  %s25769_s13 = scalar_lea.vmem %s23191_s19, %s25755_s22  ;;  %s25773_s27 = scalar_lea.vmem %s23206_s25, %s25755_s22  ;;  %v8432_v61 = vsel %vm8320_vm10, %v18012_v44, 0  ;;  %v18180_v21 = vld [vmem:[%s28578_s4 + $0x38] sm:$0xf]  ;;  %vm8507_vm12 = vsmask.f32 3328 }
 0x309   : > { %v17953_v63 = vld [vmem:[%s25769_s13 + $0x48] sm:$0xf]  ;;  %v25781_v25 = vld [vmem:[%s25769_s13 + $0x50] sm:$0xf]  ;;  %22323 = vmatprep.subr.msk.bf16.mxu1 %vm8320_vm10, %v18012_v44  ;;  %22337 = vmatprep.subr.msk.bf16.mxu0 %vm8320_vm10, %v18180_v21  ;;  %v25790_v7 = vld [vmem:[%s25769_s13 + $0x58] sm:$0xf]  ;;  %s25816_s19 = scalar_lea.vmem %s23201_s12, %s25755_s22  ;;  %s25860_s12 = scalar_lea.vmem %s23196_s15, %s25755_s22 }
 0x30a   : > { %v18004_v22 = vcombine.low %v17953_v63, %v25781_v25  ;;  %v8511_v16 = vshrl.u32 %v17953_v63, 16  ;;  %v8514_v35 = vshll.u32 %v17953_v63, 16  ;;  %v8525_v4 = vshrl.u32 %v25781_v25, 16  ;;  %v22593_v0 = vld [vmem:[%s25773_s27 + $0x90] ss:$8 sps:$4 sm:$0xff]  }
 0x30b   : > { %v8528_v47 = vshll.u32 %v25781_v25, 16  ;;  %v10312_v18 = vsel %vm8320_vm10, %v18180_v21, 0  ;;  %v25795_v11 = vld [vmem:[%s25769_s13 + $0x60] sm:$0xf]  ;;  %v8539_v43 = vshrl.u32 %v25790_v7, 16  ;;  %20598 = vmatprep.mubr.msk.bf16.mxu0 %vm8307_vm11, %v22593_v0  ;;  %v8542_v53 = vshll.u32 %v25790_v7, 16 }
 0x30c   : > { %20468 = vmatprep.mubr.msk.bf16.mxu1 %vm8307_vm11, %v18004_v22  ;;  %v8513_v2 = vrot.slane %v8511_v16, 4  ;;  %v8516_v13 = vrot.slane %v8514_v35, 5  ;;  %v8527_v29 = vrot.slane %v8525_v4, 4  ;;  %v18005_v58 = vcombine.low %v25790_v7, %v25795_v11  ;;  %v22595_v30 = vld [vmem:[%s25773_s27 + $0xa0] ss:$8 sps:$4 sm:$0xff]  }
 0x30d   : > { %v8530_v46 = vrot.slane %v8528_v47, 5  ;;  %v8553_v17 = vshrl.u32 %v25795_v11, 16  ;;  %v8541_v40 = vrot.slane %v8539_v43, 4  ;;  %v8556_v33 = vshll.u32 %v25795_v11, 16  ;;  %v25809_v34 = vld [vmem:[%s25769_s13 + $0x68] sm:$0xf]  ;;  %20599 = vmatmul.mubr.msk.bf16.vlgmr.msra.gmra.mrb[0].mxu0 %vm8307_vm11, %v22595_v30 }
 0x30e   : > { %v8517_v48 = vor.u32 %v8516_v13, %v8513_v2  ;;  %20469 = vmatmul.mubr.msk.bf16.vlgmr.msra.gmra.mrb[0].mxu1 %vm8307_vm11, %v18005_v58  ;;  %v8544_v20 = vrot.slane %v8542_v53, 5  ;;  %v25812_v42 = vld [vmem:[%s25769_s13 + $0x70] sm:$0xf]  ;;  %v25822_v19 = vld [vmem:[%s25769_s13 + $0x78] sm:$0xf]  ;;  %20607 = vmatpush3.bf16.msra.mxu0 %v10312_v18  ;;  %v8567_v57 = vshrl.u32 %v25809_v34, 16 }
 0x30f   : > { %v8531_v59 = vor.u32 %v8530_v46, %v8527_v29  ;;  %20477 = vmatpush3.bf16.msra.mxu1 %v8432_v61  ;;  %v18006_v55 = vcombine.low %v25809_v34, %v25812_v42  ;;  %v25826_v56 = vrot.slane %v8553_v17, 4  ;;  %v25828_v37 = vrot.slane %v8556_v33, 5  ;;  %v25831_v45 = vld [vmem:[%s25769_s13 + $0x80] sm:$0xf]  ;;  %v18111_v50 = vld [vmem:[%s25816_s19 + $0x90] sm:$0xf] }
 0x310   : > { %v25824_v60 = vrot.slane %v8517_v48, 4  ;;  %v8545_v3 = vor.u32 %v8544_v20, %v8541_v40  ;;  %v18112_v14 = vld [vmem:[%s25816_s19 + $0x94] sm:$0x1]  ;;  %v8570_v41 = vshll.u32 %v25809_v34, 16  ;;  %v8581_v62 = vshrl.u32 %v25812_v42, 16 }
 0x311   : > { %v25833_v31 = vrot.slane %v8531_v59, 4  ;;  %20472 = vmatprep.mubr.msk.bf16.mxu1 %vm8307_vm11, %v18006_v55  ;;  %v8584_v49 = vshll.u32 %v25812_v42, 16  ;;  %v18007_v36 = vcombine.low %v25822_v19, %v25831_v45  ;;  %v18113_v6 = vld [vmem:[%s25816_s19 + $0x98] sm:$0xf]  ;;  %v8595_v9 = vshrl.u32 %v25822_v19, 16 }
 0x312   : > { %v25847_v24 = vrot.slane %v8545_v3, 4  ;;  %vm8508_vm13 = vsmask.f32 7440  ;;  %v18114_v1 = vld [vmem:[%s25816_s19 + $0x9c] sm:$0x1]  ;;  %v10174_v26 = vshrl.u32 %v18111_v50, 16  ;;  %v8559_v5 = vor.u32 %v25828_v37, %v25826_v56 }
 0x313   : > { %v10177_v8 = vshll.u32 %v18111_v50, 16  ;;  %v10183_v54 = vshll.u32 %v18112_v14, 16  ;;  %v10188_v52 = vshrl.u32 %v18113_v6, 16  ;;  %v18115_v15 = vld [vmem:[%s25816_s19 + $0xa0] sm:$0xf]  ;;  %v10191_v38 = vshll.u32 %v18113_v6, 16  ;;  %vm25871_vm14 = vmor %vm8507_vm12, %vm8508_vm13 }
 0x314   : > { %v10197_v23 = vshll.u32 %v18114_v1, 16  ;;  %v18116_v39 = vld [vmem:[%s25816_s19 + $0xa4] sm:$0x1]  ;;  %v18117_v51 = vld [vmem:[%s25816_s19 + $0xa8] sm:$0xf]  ;;  %v10176_v32 = vrot.slane %v10174_v26, 4 }
 0x315   : > { %v10179_v44 = vrot.slane %v10177_v8, 5  ;;  %v10185_v61 = vrot.slane %v10183_v54, 5  ;;  %v10190_v21 = vrot.slane %v10188_v52, 4  ;;  %v18118_v63 = vld [vmem:[%s25816_s19 + $0xac] sm:$0x1]  ;;  %v10193_v22 = vrot.slane %v10191_v38, 5 }
 0x316   : > { %20473 = vmatmul.mubr.msk.bf16.gmra.mrb[4].mxu1 %vm8307_vm11, %v18007_v36  ;;  %v10199_v16 = vrot.slane %v10197_v23, 5  ;;  %v10202_v35 = vshrl.u32 %v18115_v15, 16  ;;  %v10205_v4 = vshll.u32 %v18115_v15, 16  ;;  %v18189_v47 = vld [vmem:[%s28578_s4 + $0x3c] sm:$0xf]  ;;  %v10211_v18 = vshll.u32 %v18116_v39, 16 }
 0x317   : > { %v10180_v0 = vor.u32 %v10179_v44, %v10176_v32  ;;  %v10216_v2 = vshrl.u32 %v18117_v51, 16  ;;  %v10219_v13 = vshll.u32 %v18117_v51, 16  ;;  %22338 = vmatprep.subr.msk.bf16.mxu0 %vm8320_vm10, %v18189_v47  ;;  %v17971_v29 = vld [vmem:[%s25860_s12 + $0x48] sm:$0xf]  ;;  %v10194_v46 = vor.u32 %v10193_v22, %v10190_v21  ;;  %v25876_v48 = vld [vmem:[%s25860_s12 + $0x50] sm:$0xf] }
 0x318   : > { %v10204_v58 = vrot.slane %v10202_v35, 4  ;;  %v10207_v53 = vrot.slane %v10205_v4, 5  ;;  %v10225_v17 = vshll.u32 %v18118_v63, 16  ;;  %v10213_v33 = vrot.slane %v10211_v18, 5  ;;  %v18021_v20 = vld [vmem:[%s28578_s4 + $0x8] sm:$0xf] }
 0x319   : > { %v10181_v40 = vrot.slane %v10180_v0, 4  ;;  %v10218_v30 = vrot.slane %v10216_v2, 4  ;;  %v10221_v59 = vrot.slane %v10219_v13, 5  ;;  %v10195_v55 = vrot.slane %v10194_v46, 4  ;;  %22324 = vmatprep.subr.msk.bf16.mxu1 %vm8320_vm10, %v18021_v20  ;;  %v25884_v36 = vld [vmem:[%s25860_s12 + $0x58] sm:$0xf] }
 0x31a   : > { %v10208_v3 = vor.u32 %v10207_v53, %v10204_v58  ;;  %v10227_v50 = vrot.slane %v10225_v17, 5  ;;  %v10408_v14 = vsel %vm8320_vm10, %v18189_v47, 0  ;;  %v18013_v26 = vcombine.low %v17971_v29, %v25876_v48  ;;  %v25890_v8 = vld [vmem:[%s25860_s12 + $0x60] sm:$0xf]  ;;  %v18119_v52 = vld [vmem:[%s25816_s19 + $0xb0] sm:$0xf] }
 0x31b   : > { %v10186_v6 = vsel %vm25871_vm14, %v10181_v40, %v10185_v61  ;;  %v10222_v1 = vor.u32 %v10221_v59, %v10218_v30  ;;  %v8649_v54 = vsel %vm8320_vm10, %v18021_v20, 0  ;;  %v10200_v15 = vsel %vm25871_vm14, %v10195_v55, %v10199_v16  ;;  %v18120_v39 = vld [vmem:[%s25816_s19 + $0xb4] sm:$0x1]  ;;  %v18121_v51 = vld [vmem:[%s25816_s19 + $0xb8] sm:$0xf] }
 0x31c   : > { %v10209_v38 = vrot.slane %v10208_v3, 4  ;;  %v18014_v23 = vcombine.low %v25884_v36, %v25890_v8  ;;  %v10230_v32 = vshrl.u32 %v18119_v52, 16  ;;  %v18181_v44 = vcombine.low %v10186_v6, %v10200_v15  ;;  %20478 = vmatprep.mubr.msk.bf16.mxu1 %vm8307_vm11, %v18013_v26  ;;  %v18122_v21 = vld [vmem:[%s25816_s19 + $0xbc] sm:$0x1]  ;;  %v18123_v0 = vld [vmem:[%s25816_s19 + $0xc0] sm:$0xf] }
 0x31d   : > { %v10223_v61 = vrot.slane %v10222_v1, 4  ;;  %v10233_v63 = vshll.u32 %v18119_v52, 16  ;;  %v10239_v22 = vshll.u32 %v18120_v39, 16  ;;  %v10244_v4 = vshrl.u32 %v18121_v51, 16  ;;  %v18124_v46 = vld [vmem:[%s25816_s19 + $0xc4] sm:$0x1] }
 0x31e   : > { %v10214_v35 = vsel %vm25871_vm14, %v10209_v38, %v10213_v33  ;;  %20479 = vmatmul.mubr.msk.bf16.vlgmr.msra.gmra.mrb[0].mxu1 %vm8307_vm11, %v18014_v23  ;;  %v10232_v16 = vrot.slane %v10230_v32, 4  ;;  %v10247_v47 = vshll.u32 %v18121_v51, 16  ;;  %20608 = vmatprep.mubr.msk.bf16.mxu0 %vm8307_vm11, %v18181_v44  ;;  %v10253_v29 = vshll.u32 %v18122_v21, 16  ;;  %v18125_v40 = vld [vmem:[%s25816_s19 + $0xc8] sm:$0xf] }
 0x31f   : > { %v10228_v18 = vsel %vm25871_vm14, %v10223_v61, %v10227_v50  ;;  %20487 = vmatpush3.bf16.msra.mxu1 %v8649_v54  ;;  %v10235_v2 = vrot.slane %v10233_v63, 5  ;;  %v10241_v13 = vrot.slane %v10239_v22, 5  ;;  %v10246_v53 = vrot.slane %v10244_v4, 4  ;;  %v18126_v33 = vld [vmem:[%s25816_s19 + $0xcc] sm:$0x1] }
 0x320   : > { %v18182_v58 = vcombine.low %v10214_v35, %v10228_v18  ;;  %v10249_v17 = vrot.slane %v10247_v47, 5  ;;  %v10255_v20 = vrot.slane %v10253_v29, 5  ;;  %v10258_v55 = vshrl.u32 %v18123_v0, 16  ;;  %v25915_v50 = vld [vmem:[%s25860_s12 + $0x68] sm:$0xf] }
 0x321   : > { %v10236_v59 = vor.u32 %v10235_v2, %v10232_v16  ;;  %v10261_v3 = vshll.u32 %v18123_v0, 16  ;;  %v10267_v1 = vshll.u32 %v18124_v46, 16  ;;  %v10272_v26 = vshrl.u32 %v18125_v40, 16  ;;  %v17976_v52 = vld [vmem:[%s25860_s12 + $0x70] sm:$0xf] }
 0x322   : > { %20609 = vmatmul.mubr.msk.bf16.vlgmr.msra.gmra.mrb[0].mxu0 %vm8307_vm11, %v18182_v58  ;;  %v10250_v6 = vor.u32 %v10249_v17, %v10246_v53  ;;  %v10275_v54 = vshll.u32 %v18125_v40, 16  ;;  %v10260_v38 = vrot.slane %v10258_v55, 4  ;;  %v10281_v39 = vshll.u32 %v18126_v33, 16  ;;  %v25920_v51 = vld [vmem:[%s25860_s12 + $0x78] sm:$0xf] }
 0x323   : > { %20617 = vmatpush3.bf16.msra.mxu0 %v10408_v14  ;;  %v10237_v15 = vrot.slane %v10236_v59, 4  ;;  %v10263_v23 = vrot.slane %v10261_v3, 5  ;;  %v10269_v44 = vrot.slane %v10267_v1, 5  ;;  %v10274_v61 = vrot.slane %v10272_v26, 4  ;;  %v17978_v63 = vld [vmem:[%s25860_s12 + $0x80] sm:$0xf] }
 0x324   : > { %v10251_v32 = vrot.slane %v10250_v6, 4  ;;  %v10277_v21 = vrot.slane %v10275_v54, 5  ;;  %v10283_v16 = vrot.slane %v10281_v39, 5  ;;  %v18015_v14 = vcombine.low %v25915_v50, %v17976_v52  ;;  %v25927_v4 = vld [vmem:[%s25769_s13 + $0x98] sm:$0xf] }
 0x325   : > { %v10242_v22 = vsel %vm25871_vm14, %v10237_v15, %v10241_v13  ;;  %v10264_v35 = vor.u32 %v10263_v23, %v10260_v38  ;;  %v18016_v2 = vcombine.low %v25920_v51, %v17978_v63  ;;  %v25935_v29 = vld [vmem:[%s25769_s13 + $0xa0] sm:$0xf]  ;;  %v25938_v13 = vld [vmem:[%s25769_s13 + $0xa8] sm:$0xf]  ;;  %v8598_v58 = vshll.u32 %v25822_v19, 16 }
 0x326   : > { %v10256_v47 = vsel %vm25871_vm14, %v10251_v32, %v10255_v20  ;;  %v10278_v0 = vor.u32 %v10277_v21, %v10274_v61  ;;  %28952 = vst [vmem:[#allocation51_spill] sm:$0xff] %v25935_v29  ;;  %28953 = vst [vmem:[#allocation52_spill] sm:$0xff] %v25938_v13  ;;  %v18198_v46 = vld [vmem:[%s28578_s4 + $0x40] sm:$0xf]  ;;  %20482 = vmatprep.mubr.msk.bf16.mxu1 %vm8307_vm11, %v18015_v14  ;;  %v17954_v33 = vld [vmem:[%s25769_s13 + $0x4c] sm:$0x1] }
 0x327   : > { %v18183_v53 = vcombine.low %v10242_v22, %v10256_v47  ;;  %v10265_v17 = vrot.slane %v10264_v35, 4  ;;  %22339 = vmatprep.subr.msk.bf16.mxu0 %vm8320_vm10, %v18198_v46  ;;  %v17956_v59 = vld [vmem:[%s25769_s13 + $0x54] sm:$0x1]  ;;  %v8560_v20 = vrot.slane %v8559_v5, 4  ;;  %v8609_v55 = vshrl.u32 %v25831_v45, 16  ;;  %20483 = vmatmul.mubr.msk.bf16.gmra.mrb[4].mxu1 %vm8307_vm11, %v18016_v2 }
 0x328   : > { %v8612_v3 = vshll.u32 %v25831_v45, 16  ;;  %v10279_v6 = vrot.slane %v10278_v0, 4  ;;  %v18030_v1 = vld [vmem:[%s28578_s4 + $0xc] sm:$0xf]  ;;  %v18190_v5 = vcombine.low %v25927_v4, %v25935_v29  ;;  %v17958_v54 = vld [vmem:[%s25769_s13 + $0x5c] sm:$0x1] }
 0x329   : > { %20612 = vmatprep.mubr.msk.bf16.mxu0 %vm8307_vm11, %v18183_v53  ;;  %v10270_v26 = vsel %vm25871_vm14, %v10265_v17, %v10269_v44  ;;  %22325 = vmatprep.subr.msk.bf16.mxu1 %vm8320_vm10, %v18030_v1  ;;  %v17960_v52 = vld [vmem:[%s25769_s13 + $0x64] sm:$0x1]  ;;  %v25972_v38 = vld [vmem:[%s25769_s13 + $0xb0] sm:$0xf]  ;;  %v8520_v23 = vshll.u32 %v17954_v33, 16  ;;  %v8534_v39 = vshll.u32 %v17956_v59, 16 }
 0x32a   : > { %v10284_v15 = vsel %vm25871_vm14, %v10279_v6, %v10283_v16  ;;  %v8548_v32 = vshll.u32 %v17958_v54, 16  ;;  %v8562_v63 = vshll.u32 %v17960_v52, 16  ;;  %v10504_v22 = vsel %vm8320_vm10, %v18198_v46, 0  ;;  %v25982_v53 = vld [vmem:[%s25769_s13 + $0xb8] sm:$0xf] }
 0x32b   : > { %v18184_v44 = vcombine.low %v10270_v26, %v10284_v15  ;;  %v8522_v35 = vrot.slane %v8520_v23, 5  ;;  %v8536_v14 = vrot.slane %v8534_v39, 5  ;;  %v18191_v16 = vcombine.low %v25938_v13, %v25972_v38  ;;  %v25985_v17 = vld [vmem:[%s25769_s13 + $0xc0] sm:$0xf]  ;;  %v17964_v54 = vld [vmem:[%s25769_s13 + $0x74] sm:$0x1] }
 0x32c   : > { %v8550_v47 = vrot.slane %v8548_v32, 5  ;;  %v8564_v0 = vrot.slane %v8562_v63, 5  ;;  %v8759_v2 = vsel %vm8320_vm10, %v18030_v1, 0  ;;  %v17962_v1 = vld [vmem:[%s25769_s13 + $0x6c] sm:$0x1]  ;;  %v18192_v15 = vcombine.low %v25982_v53, %v25985_v17 }
 0x32d   : > { %20613 = vmatmul.mubr.msk.bf16.gmra.mrb[4].mxu0 %vm8307_vm11, %v18184_v44  ;;  %v8523_v46 = vsel %vm25871_vm14, %v25824_v60, %v8522_v35  ;;  %v25994_v33 = vsel %vm25871_vm14, %v25833_v31, %v8536_v14  ;;  %v26017_v23 = vld [vmem:[%s25769_s13 + $0xd0] sm:$0xf]  ;;  %v8572_v39 = vrot.slane %v8570_v41, 5  ;;  %v8576_v32 = vshll.u32 %v17962_v1, 16  ;;  %v17966_v35 = vld [vmem:[%s25769_s13 + $0x7c] sm:$0x1] }
 0x32e   : > { %20618 = vmatprep.mubr.msk.bf16.mxu0 %vm8307_vm11, %v18190_v5  ;;  %v25999_v59 = vsel %vm25871_vm14, %v25847_v24, %v8550_v47  ;;  %v18022_v26 = vcombine.low %v8523_v46, %v25994_v33  ;;  %v26006_v5 = vsel %vm25871_vm14, %v8560_v20, %v8564_v0  ;;  %v8569_v20 = vrot.slane %v8567_v57, 4  ;;  %v17968_v0 = vld [vmem:[%s25769_s13 + $0x84] sm:$0x1]  ;;  %v26036_v46 = vld [vmem:[%s25769_s13 + $0xc8] sm:$0xf] }
 0x32f   : > { %28954 = vst [vmem:[#allocation53_spill] sm:$0xff] %v26006_v5  ;;  %v18023_v24 = vcombine.low %v25999_v59, %v26006_v5  ;;  %v8583_v44 = vrot.slane %v8581_v62, 4  ;;  %v8586_v63 = vrot.slane %v8584_v49, 5  ;;  %v10580_v14 = vshrl.u32 %v26017_v23, 16  ;;  %v26103_v27 = vld [vmem:[%s25860_s12 + $0xc8] sm:$0xf] }
 0x330   : > { %20488 = vmatprep.mubr.msk.bf16.mxu1 %vm8307_vm11, %v18022_v26  ;;  %v10583_v57 = vshll.u32 %v26017_v23, 16  ;;  %v8590_v47 = vshll.u32 %v17964_v54, 16  ;;  %v8597_v41 = vrot.slane %v8595_v9, 4  ;;  %v8573_v62 = vor.u32 %v8572_v39, %v8569_v20  ;;  %v26113_v12 = vld [vmem:[%s25816_s19 + $0x70] sm:$0xf] }
 0x331   : > { %20489 = vmatmul.mubr.msk.bf16.vlgmr.msra.gmra.mrb[0].mxu1 %vm8307_vm11, %v18023_v24  ;;  %v8578_v1 = vrot.slane %v8576_v32, 5  ;;  %v8587_v26 = vor.u32 %v8586_v63, %v8583_v44  ;;  %v8600_v49 = vrot.slane %v8598_v58, 5  ;;  %v26041_v24 = vld [vmem:[%s25860_s12 + $0xa0] sm:$0xf]  ;;  %v8604_v18 = vshll.u32 %v17966_v35, 16 }
 0x332   : > { %20497 = vmatpush3.bf16.msra.mxu1 %v8759_v2  ;;  %28955 = vst [vmem:[#allocation54_spill] sm:$0xff] %v26041_v24  ;;  %v8592_v40 = vrot.slane %v8590_v47, 5  ;;  %v8611_v54 = vrot.slane %v8609_v55, 4  ;;  %v8614_v9 = vrot.slane %v8612_v3, 5  ;;  %v18207_v2 = vld [vmem:[%s28578_s4 + $0x44] sm:$0xf] }
 0x333   : > { %v8574_v20 = vrot.slane %v8573_v62, 4  ;;  %v8588_v39 = vrot.slane %v8587_v26, 4  ;;  %v8601_v58 = vor.u32 %v8600_v49, %v8597_v41  ;;  %v8618_v32 = vshll.u32 %v17968_v0, 16  ;;  %v26052_v44 = vld [vmem:[%s25860_s12 + $0xa8] sm:$0xf] }
 0x334   : > { %28956 = vst [vmem:[#allocation55_spill] sm:$0xff] %v26052_v44  ;;  %v8606_v55 = vrot.slane %v8604_v18, 5  ;;  %v8615_v3 = vor.u32 %v8614_v9, %v8611_v54  ;;  %v18103_v63 = vld [vmem:[%s25860_s12 + $0x98] sm:$0xf]  ;;  %v17980_v0 = vld [vmem:[%s25816_s19 + $0x48] sm:$0xf]  ;;  %v18193_v49 = vcombine.low %v26036_v46, %v26017_v23 }
 0x335   : > { %20619 = vmatmul.mubr.msk.bf16.vlgmr.msra.gmra.mrb[0].mxu0 %vm8307_vm11, %v18191_v16  ;;  %v18039_v16 = vld [vmem:[%s28578_s4 + $0x10] sm:$0xf]  ;;  %v26064_v47 = vsel %vm25871_vm14, %v8574_v20, %v8578_v1  ;;  %v8620_v18 = vrot.slane %v8618_v32, 5  ;;  %v26081_v54 = vrot.slane %v10580_v14, 4  ;;  %v26083_v9 = vrot.slane %v10583_v57, 5 }
 0x336   : > { %20627 = vmatpush3.bf16.msra.mxu0 %v10504_v22  ;;  %20622 = vmatprep.mubr.msk.bf16.mxu0 %vm8307_vm11, %v18192_v15  ;;  %28957 = vst [vmem:[#allocation56_spill] sm:$0xff] %v26064_v47  ;;  %v26068_v22 = vsel %vm25871_vm14, %v8588_v39, %v8592_v40  ;;  %v8602_v15 = vrot.slane %v8601_v58, 4  ;;  %v17982_v41 = vld [vmem:[%s25816_s19 + $0x50] sm:$0xf]  ;;  %v8616_v40 = vrot.slane %v8615_v3, 4  ;;  %v18199_v23 = vcombine.low %v18103_v63, %v26041_v24 }
 0x337   : > { %22340 = vmatprep.subr.msk.bf16.mxu0 %vm8320_vm10, %v18207_v2  ;;  %22326 = vmatprep.subr.msk.bf16.mxu1 %vm8320_vm10, %v18039_v16  ;;  %v18024_v1 = vcombine.low %v26064_v47, %v26068_v22  ;;  %v18106_v58 = vld [vmem:[%s25860_s12 + $0xb0] sm:$0xf]  ;;  %v18031_v14 = vcombine.low %v17980_v0, %v17982_v41  ;;  %v8945_v57 = vshrl.u32 %v17980_v0, 16  ;;  %v17984_v32 = vld [vmem:[%s25816_s19 + $0x58] sm:$0xf]  ;;  %v8948_v3 = vshll.u32 %v17980_v0, 16 }
 0x338   : > { %v26087_v20 = vsel %vm25871_vm14, %v8602_v15, %v8606_v55  ;;  %v26092_v39 = vsel %vm25871_vm14, %v8616_v40, %v8620_v18  ;;  %v8959_v15 = vshrl.u32 %v17982_v41, 16  ;;  %v17986_v35 = vld [vmem:[%s25816_s19 + $0x60] sm:$0xf]  ;;  %v8973_v26 = vshrl.u32 %v17984_v32, 16  ;;  %v18107_v18 = vld [vmem:[%s25860_s12 + $0xb8] sm:$0xf] }
 0x339   : > { %20492 = vmatprep.mubr.msk.bf16.mxu1 %vm8307_vm11, %v18024_v1  ;;  %28958 = vst [vmem:[#allocation57_spill] sm:$0xff] %v26092_v39  ;;  %v18025_v55 = vcombine.low %v26087_v20, %v26092_v39  ;;  %v8962_v1 = vshll.u32 %v17982_v41, 16  ;;  %v8976_v30 = vshll.u32 %v17984_v32, 16  ;;  %v18108_v40 = vld [vmem:[%s25860_s12 + $0xc0] sm:$0xf]  ;;  %v10613_v10 = vsel %vm8320_vm10, %v18207_v2, 0 }
 0x33a   : > { %v26106_v63 = vld [vmem:[%s25860_s12 + $0xd0] sm:$0xf]  ;;  %v8987_v0 = vshrl.u32 %v17986_v35, 16  ;;  %v17988_v41 = vld [vmem:[%s25816_s19 + $0x68] sm:$0xf]  ;;  %v18200_v62 = vcombine.low %v26052_v44, %v18106_v58  ;;  %v26118_v45 = vrot.slane %v8945_v57, 4  ;;  %v18032_v52 = vcombine.low %v17984_v32, %v17986_v35 }
 0x33b   : > { %20493 = vmatmul.mubr.msk.bf16.gmra.mrb[4].mxu1 %vm8307_vm11, %v18025_v55  ;;  %v8990_v31 = vshll.u32 %v17986_v35, 16  ;;  %v26124_v55 = vld [vmem:[%s25816_s19 + $0x80] sm:$0xf]  ;;  %v26126_v2 = vrot.slane %v8948_v3, 5  ;;  %v26128_v60 = vrot.slane %v8959_v15, 4  ;;  %v26130_v6 = vrot.slane %v8962_v1, 5 }
 0x33c   : > { %20498 = vmatprep.mubr.msk.bf16.mxu1 %vm8307_vm11, %v18031_v14  ;;  %v9001_v58 = vshrl.u32 %v17988_v41, 16  ;;  %v26133_v21 = vrot.slane %v8973_v26, 4  ;;  %v26135_v14 = vrot.slane %v8976_v30, 5  ;;  %v8869_v35 = vsel %vm8320_vm10, %v18039_v16, 0  ;;  %v18089_v1 = vld [vmem:[%s25769_s13 + $0xa4] sm:$0x1] }
 0x33d   : > { %20623 = vmatmul.mubr.msk.bf16.gmra.mrb[4].mxu0 %vm8307_vm11, %v18193_v49  ;;  %v26121_v49 = vld [vmem:[%s25816_s19 + $0x78] sm:$0xf]  ;;  %v9004_v57 = vshll.u32 %v17988_v41, 16  ;;  %v26138_v32 = vrot.slane %v8987_v0, 4  ;;  %v18201_v61 = vcombine.low %v18107_v18, %v18108_v40  ;;  %v18033_v15 = vcombine.low %v17988_v41, %v26113_v12  ;;  %v18091_v16 = vld [vmem:[%s25769_s13 + $0xac] sm:$0x1] }
 0x33e   : > { %20628 = vmatprep.mubr.msk.bf16.mxu0 %vm8307_vm11, %v18199_v23  ;;  %v18087_v23 = vld [vmem:[%s25769_s13 + $0x9c] sm:$0x1]  ;;  %v26144_v37 = vrot.slane %v8990_v31, 5  ;;  %v18034_v30 = vcombine.low %v26121_v49, %v26124_v55  ;;  %v26151_v28 = vrot.slane %v9001_v58, 4  ;;  %v28959_v40 = vshrl.u32 %v25927_v4, 16 }
 0x33f   : > { %v28960_v41 = vshll.u32 %v25927_v4, 16  ;;  %v26161_v56 = vld [vmem:[%s28578_s4 + $0x48] sm:$0xf]  ;;  %v26166_v26 = vld [vmem:[%s28578_s4 + $0x14] sm:$0xf]  ;;  %v26168_v58 = vrot.slane %v9004_v57, 5 }
 0x340   : > { %v9756_v0 = vrot.slane %v28959_v40, 4  ;;  %v9763_v18 = vshll.u32 %v18087_v23, 16  ;;  %v28961_v3 = vshrl.u32 %v25935_v29, 16  ;;  %v28962_v4 = vshll.u32 %v25935_v29, 16  ;;  %v18093_v57 = vld [vmem:[%s25769_s13 + $0xb4] sm:$0x1] }
 0x341   : > { %v9759_v31 = vrot.slane %v28960_v41, 5  ;;  %v9777_v24 = vshll.u32 %v18089_v1, 16  ;;  %v9782_v39 = vshrl.u32 %v25938_v13, 16  ;;  %v9785_v47 = vshll.u32 %v25938_v13, 16  ;;  %v17952_v43 = vld [vmem:[%s28579_s5] ss:$0 sm:$0xff] }
 0x342   : > { %v9770_v40 = vrot.slane %v28961_v3, 4  ;;  %v9773_v44 = vrot.slane %v28962_v4, 5  ;;  %v9765_v23 = vrot.slane %v9763_v18, 5  ;;  %v9791_v3 = vshll.u32 %v18091_v16, 16  ;;  %v22618_v16 = vld [vmem:[%s25773_s27 + $0x48] ss:$8 sps:$4 sm:$0xff]  }
 0x343   : > { %20499 = vmatmul.mubr.msk.bf16.vlgmr.msra.gmra.mrb[0].mxu1 %vm8307_vm11, %v18032_v52  ;;  %v9760_v41 = vor.u32 %v9759_v31, %v9756_v0  ;;  %v9796_v29 = vshrl.u32 %v25972_v38, 16  ;;  %v9784_v1 = vrot.slane %v9782_v39, 4  ;;  %v9787_v0 = vrot.slane %v9785_v47, 5  ;;  %v18099_v4 = vld [vmem:[%s25769_s13 + $0xcc] sm:$0x1] }
 0x344   : > { %20507 = vmatpush3.bf16.msra.mxu1 %v8869_v35  ;;  %v9774_v5 = vor.u32 %v9773_v44, %v9770_v40  ;;  %20502 = vmatprep.mubr.msk.bf16.mxu1 %vm8307_vm11, %v18033_v15  ;;  %v9799_v44 = vshll.u32 %v25972_v38, 16  ;;  %v9793_v47 = vrot.slane %v9791_v3, 5  ;;  %v9805_v39 = vshll.u32 %v18093_v57, 16  ;;  %v18095_v15 = vld [vmem:[%s25769_s13 + $0xbc] sm:$0x1] }
 0x345   : > { %20629 = vmatmul.mubr.msk.bf16.vlgmr.msra.gmra.mrb[0].mxu0 %vm8307_vm11, %v18200_v62  ;;  %v9761_v52 = vrot.slane %v9760_v41, 4  ;;  %v9779_v62 = vrot.slane %v9777_v24, 5  ;;  %v9798_v31 = vrot.slane %v9796_v29, 4  ;;  %22327 = vmatprep.subr.msk.bf16.mxu1 %vm8320_vm10, %v26166_v26  ;;  %v9788_v24 = vor.u32 %v9787_v0, %v9784_v1 }
 0x346   : > { %20637 = vmatpush3.bf16.msra.mxu0 %v10613_v10  ;;  %20632 = vmatprep.mubr.msk.bf16.mxu0 %vm8307_vm11, %v18201_v61  ;;  %v9775_v35 = vrot.slane %v9774_v5, 4  ;;  %v18097_v5 = vld [vmem:[%s25769_s13 + $0xc4] sm:$0x1]  ;;  %v9801_v38 = vrot.slane %v9799_v44, 5  ;;  %v28963_v18 = vshrl.u32 %v25982_v53, 16  ;;  %v9807_v10 = vrot.slane %v9805_v39, 5 }
 0x347   : > { %22341 = vmatprep.subr.msk.bf16.mxu0 %vm8320_vm10, %v26161_v56  ;;  %v26191_v61 = vsel %vm25871_vm14, %v9761_v52, %v9765_v23  ;;  %v9789_v41 = vrot.slane %v9788_v24, 4  ;;  %v28964_v3 = vshll.u32 %v25982_v53, 16  ;;  %v9819_v1 = vshll.u32 %v18095_v15, 16  ;;  %v18101_v44 = vld [vmem:[%s25769_s13 + $0xd4] sm:$0x1] }
 0x348   : > { %v26197_v29 = vsel %vm25871_vm14, %v9775_v35, %v9779_v62  ;;  %v9812_v40 = vrot.slane %v28963_v18, 4  ;;  %v9802_v57 = vor.u32 %v9801_v38, %v9798_v31  ;;  %v28965_v0 = vshrl.u32 %v25985_v17, 16 }
 0x349   : > { %v18208_v23 = vcombine.low %v26191_v61, %v26197_v29  ;;  %v9815_v52 = vrot.slane %v28964_v3, 5  ;;  %v28966_v62 = vshll.u32 %v25985_v17, 16  ;;  %v28967_v18 = vcombine.low %v26103_v27, %v26106_v63 }
 0x34a   : > { %v9826_v13 = vrot.slane %v28965_v0, 4  ;;  %v26218_v53 = vsel %vm25871_vm14, %v9789_v41, %v9793_v47  ;;  %v9833_v24 = vshll.u32 %v18097_v5, 16  ;;  %v28968_v39 = vshrl.u32 %v26036_v46, 16 }
 0x34b   : > { %v9829_v35 = vrot.slane %v28966_v62, 5  ;;  %20503 = vmatmul.mubr.msk.bf16.gmra.mrb[4].mxu1 %vm8307_vm11, %v18034_v30  ;;  %v9816_v31 = vor.u32 %v9815_v52, %v9812_v40  ;;  %v9803_v17 = vrot.slane %v9802_v57, 4  ;;  %v9821_v27 = vrot.slane %v9819_v1, 5  ;;  %v22619_v57 = vld [vmem:[%s25773_s27 + $0x58] ss:$8 sps:$4 sm:$0xff]  }
 0x34c   : > { %v9840_v15 = vrot.slane %v28968_v39, 4  ;;  %20508 = vmatprep.mubr.msk.bf16.mxu1 %vm8307_vm11, %v22618_v16  ;;  %v9835_v3 = vrot.slane %v9833_v24, 5  ;;  %v28969_v47 = vshll.u32 %v26036_v46, 16  ;;  %v9847_v40 = vshll.u32 %v18099_v4, 16  ;;  %v22620_v62 = vld [vmem:[%s25773_s27 + $0x68] ss:$8 sps:$4 sm:$0xff]  }
 0x34d   : > { %20633 = vmatmul.mubr.msk.bf16.gmra.mrb[4].mxu0 %vm8307_vm11, %v28967_v18  ;;  %v9830_v63 = vor.u32 %v9829_v35, %v9826_v13  ;;  %v9817_v30 = vrot.slane %v9816_v31, 4  ;;  %v26230_v41 = vsel %vm25871_vm14, %v9803_v17, %v9807_v10  ;;  %v10589_v16 = vshll.u32 %v18101_v44, 16  ;;  %v26253_v31 = vld [vmem:[%s25769_s13 + $0xd8] sm:$0xf]  ;;  %v26256_v24 = vld [vmem:[%s25769_s13 + $0xe0] sm:$0xf] }
 0x34e   : > { %20638 = vmatprep.mubr.msk.bf16.mxu0 %vm8307_vm11, %v18208_v23  ;;  %v9843_v5 = vrot.slane %v28969_v47, 5  ;;  %v10586_v23 = vor.u32 %v26083_v9, %v26081_v54  ;;  %v18209_v13 = vcombine.low %v26218_v53, %v26230_v41  ;;  %v9849_v1 = vrot.slane %v9847_v40, 5  ;;  %v17985_v47 = vld [vmem:[%s25816_s19 + $0x5c] sm:$0x1] }
 0x34f   : > { %v9831_v52 = vrot.slane %v9830_v63, 4  ;;  %v26239_v46 = vsel %vm25871_vm14, %v9817_v30, %v9821_v27  ;;  %v10784_v10 = vsel %vm8320_vm10, %v26161_v56, 0  ;;  %v10591_v9 = vrot.slane %v10589_v16, 5  ;;  %v17981_v27 = vld [vmem:[%s25816_s19 + $0x4c] sm:$0x1] }
 0x350   : > { %v9844_v4 = vor.u32 %v9843_v5, %v9840_v15  ;;  %v10587_v54 = vrot.slane %v10586_v23, 4  ;;  %v9083_v35 = vsel %vm8320_vm10, %v26166_v26, 0  ;;  %v28971_v56 = vshrl.u32 %v26113_v12, 16  ;;  %v18276_v26 = vld [vmem:[%s28578_s4 + $0x4c] sm:$0xf] }
 0x351   : > { %v26245_v0 = vsel %vm25871_vm14, %v9831_v52, %v9835_v3  ;;  %v9043_v15 = vshrl.u32 %v26124_v55, 16  ;;  %v17983_v30 = vld [vmem:[%s25816_s19 + $0x54] sm:$0x1]  ;;  %v18057_v3 = vld [vmem:[%s28578_s4 + $0x18] sm:$0xf]  ;;  %v28972_v5 = vshll.u32 %v26113_v12, 16  ;;  %v8951_v12 = vor.u32 %v26126_v2, %v26118_v45 }
 0x352   : > { %28970 = vst [vmem:[#allocation58_spill] sm:$0xff] %v26245_v0  ;;  %v18210_v44 = vcombine.low %v26239_v46, %v26245_v0  ;;  %v9845_v18 = vrot.slane %v9844_v4, 4  ;;  %v26260_v39 = vrot.slane %v28971_v56, 4  ;;  %v10592_v17 = vsel %vm25871_vm14, %v10587_v54, %v10591_v9 }
 0x353   : > { %20509 = vmatmul.mubr.msk.bf16.vlgmr.msra.gmra.mrb[0].mxu1 %vm8307_vm11, %v22619_v57  ;;  %v26282_v40 = vrot.slane %v28972_v5, 5  ;;  %v28973_v52 = vshrl.u32 %v26121_v49, 16  ;;  %v9046_v16 = vshll.u32 %v26124_v55, 16  ;;  %v17987_v57 = vld [vmem:[%s25816_s19 + $0x64] sm:$0x1]  ;;  %v8965_v55 = vor.u32 %v26130_v6, %v26128_v60 }
 0x354   : > { %v26273_v63 = vsel %vm25871_vm14, %v9845_v18, %v9849_v1  ;;  %20517 = vmatpush3.bf16.msra.mxu1 %v9083_v35  ;;  %20512 = vmatprep.mubr.msk.bf16.mxu1 %vm8307_vm11, %v22620_v62  ;;  %v8954_v1 = vshll.u32 %v17981_v27, 16  ;;  %v8979_v54 = vor.u32 %v26135_v14, %v26133_v21  ;;  %v8982_v9 = vshll.u32 %v17985_v47, 16  ;;  %v22621_v35 = vld [vmem:[%s25773_s27 + $0x78] ss:$8 sps:$4 sm:$0xff]   ;;  %v26309_v21 = vld [vmem:[%s25769_s13 + $0xe8] sm:$0xf] }
 0x355   : > { %20639 = vmatmul.mubr.msk.bf16.vlgmr.msra.gmra.mrb[0].mxu0 %vm8307_vm11, %v18209_v13  ;;  %v26286_v23 = vrot.slane %v28973_v52, 4  ;;  %v18268_v13 = vcombine.low %v26253_v31, %v26256_v24  ;;  %v18211_v4 = vcombine.low %v26273_v63, %v10592_v17  ;;  %22328 = vmatprep.subr.msk.bf16.mxu1 %vm8320_vm10, %v18057_v3  ;;  %v8993_v62 = vor.u32 %v26144_v37, %v26138_v32  ;;  %v26312_v14 = vld [vmem:[%s25769_s13 + $0xf0] sm:$0xf] }
 0x356   : > { %20647 = vmatpush3.bf16.msra.mxu0 %v10784_v10  ;;  %20642 = vmatprep.mubr.msk.bf16.mxu0 %vm8307_vm11, %v18210_v44  ;;  %v8968_v10 = vshll.u32 %v17983_v30, 16  ;;  %v8952_v45 = vrot.slane %v8951_v12, 4  ;;  %v8956_v2 = vrot.slane %v8954_v1, 5  ;;  %v8966_v44 = vrot.slane %v8965_v55, 4  ;;  %v26325_v1 = vld [vmem:[%s25769_s13 + $0xf8] sm:$0xf] }
 0x357   : > { %22342 = vmatprep.subr.msk.bf16.mxu0 %vm8320_vm10, %v18276_v26  ;;  %v8996_v18 = vshll.u32 %v17987_v57, 16  ;;  %v8980_v60 = vrot.slane %v8979_v54, 4  ;;  %v8984_v56 = vrot.slane %v8982_v9, 5  ;;  %v8994_v17 = vrot.slane %v8993_v62, 4  ;;  %v17991_v55 = vld [vmem:[%s25816_s19 + $0x74] sm:$0x1] }
 0x358   : > { %v8970_v6 = vrot.slane %v8968_v10, 5  ;;  %v28974_v27 = vshll.u32 %v26121_v49, 16  ;;  %v8957_v37 = vsel %vm25871_vm14, %v8952_v45, %v8956_v2  ;;  %v9045_v47 = vrot.slane %v9043_v15, 4  ;;  %v17989_v15 = vld [vmem:[%s25816_s19 + $0x6c] sm:$0x1] }
 0x359   : > { %v8998_v32 = vrot.slane %v8996_v18, 5  ;;  %v9048_v5 = vrot.slane %v9046_v16, 5  ;;  %v8985_v49 = vsel %vm25871_vm14, %v8980_v60, %v8984_v56  ;;  %v10970_v16 = vshrl.u32 %v26253_v31, 16  ;;  %v17993_v54 = vld [vmem:[%s25816_s19 + $0x7c] sm:$0x1] }
 0x35a   : > { %v9034_v30 = vrot.slane %v28974_v27, 5  ;;  %v8971_v52 = vsel %vm25871_vm14, %v8966_v44, %v8970_v6  ;;  %v18269_v10 = vcombine.low %v26309_v21, %v26312_v14  ;;  %v17995_v9 = vld [vmem:[%s25816_s19 + $0x84] sm:$0x1]  ;;  %v10894_v62 = vsel %vm8320_vm10, %v18276_v26, 0  ;;  %v26343_v2 = vld [vmem:[%s25769_s13 + $0x100] sm:$0xf] }
 0x35b   : > { %20513 = vmatmul.mubr.msk.bf16.gmra.mrb[4].mxu1 %vm8307_vm11, %v22621_v35  ;;  %v18049_v57 = vcombine.low %v8957_v37, %v8971_v52  ;;  %v8999_v12 = vsel %vm25871_vm14, %v8994_v17, %v8998_v32  ;;  %v9179_v45 = vsel %vm8320_vm10, %v18057_v3, 0  ;;  %v9010_v44 = vshll.u32 %v17989_v15, 16  ;;  %v26372_v15 = vld [vmem:[%s25860_s12 + $0xf8] sm:$0xf] }
 0x35c   : > { %v18050_v35 = vcombine.low %v8985_v49, %v8999_v12  ;;  %v9021_v18 = vor.u32 %v26282_v40, %v26260_v39  ;;  %v9024_v6 = vshll.u32 %v17991_v55, 16  ;;  %v9035_v60 = vor.u32 %v9034_v30, %v26286_v23  ;;  %v26369_v12 = vld [vmem:[%s28578_s4 + $0x1c] sm:$0xf] }
 0x35d   : > { %20643 = vmatmul.mubr.msk.bf16.gmra.mrb[4].mxu0 %vm8307_vm11, %v18211_v4  ;;  %20518 = vmatprep.mubr.msk.bf16.mxu1 %vm8307_vm11, %v18049_v57  ;;  %v9038_v26 = vshll.u32 %v17993_v54, 16  ;;  %v9049_v17 = vor.u32 %v9048_v5, %v9045_v47  ;;  %v9052_v27 = vshll.u32 %v17995_v9, 16  ;;  %v9012_v37 = vrot.slane %v9010_v44, 5  ;;  %v26357_v5 = vld [vmem:[%s25860_s12 + $0xf0] sm:$0xf] }
 0x35e   : > { %20648 = vmatprep.mubr.msk.bf16.mxu0 %vm8307_vm11, %v18268_v13  ;;  %v9007_v13 = vor.u32 %v26168_v58, %v26151_v28  ;;  %v9022_v32 = vrot.slane %v9021_v18, 4  ;;  %v9026_v3 = vrot.slane %v9024_v6, 5  ;;  %v9036_v52 = vrot.slane %v9035_v60, 4  ;;  %v26379_v54 = vld [vmem:[%s25769_s13 + $0x110] sm:$0xf] }
 0x35f   : > { %v18270_v28 = vcombine.low %v26325_v1, %v26343_v2  ;;  %v9040_v58 = vrot.slane %v9038_v26, 5  ;;  %v9050_v49 = vrot.slane %v9049_v17, 4  ;;  %v9054_v39 = vrot.slane %v9052_v27, 5  ;;  %v26393_v18 = vld [vmem:[%s25860_s12 + $0xe0] sm:$0xf] }
 0x360   : > { %v9008_v56 = vrot.slane %v9007_v13, 4  ;;  %v10973_v40 = vshll.u32 %v26253_v31, 16  ;;  %v10984_v23 = vshrl.u32 %v26256_v24, 16  ;;  %v9027_v47 = vsel %vm25871_vm14, %v9022_v32, %v9026_v3  ;;  %v26364_v31 = vld [vmem:[%s28578_s4 + $0x50] sm:$0xf] }
 0x361   : > { %v10987_v55 = vshll.u32 %v26256_v24, 16  ;;  %v9041_v9 = vsel %vm25871_vm14, %v9036_v52, %v9040_v58  ;;  %v11012_v44 = vshrl.u32 %v26312_v14, 16  ;;  %v10972_v6 = vrot.slane %v10970_v16, 4  ;;  %v18223_v27 = vld [vmem:[%s25769_s13 + $0xf4] sm:$0x1] }
 0x362   : > { %v9013_v30 = vsel %vm25871_vm14, %v9008_v56, %v9012_v37  ;;  %v10975_v60 = vrot.slane %v10973_v40, 5  ;;  %v11026_v56 = vshrl.u32 %v26325_v1, 16  ;;  %v11029_v37 = vshll.u32 %v26325_v1, 16  ;;  %v18217_v32 = vld [vmem:[%s25769_s13 + $0xdc] sm:$0x1] }
 0x363   : > { %20519 = vmatmul.mubr.msk.bf16.vlgmr.msra.gmra.mrb[0].mxu1 %vm8307_vm11, %v18050_v35  ;;  %v18051_v57 = vcombine.low %v9013_v30, %v9027_v47  ;;  %v9055_v35 = vsel %vm25871_vm14, %v9050_v49, %v9054_v39  ;;  %v10986_v3 = vrot.slane %v10984_v23, 4  ;;  %v10989_v52 = vrot.slane %v10987_v55, 5  ;;  %v18225_v47 = vld [vmem:[%s25769_s13 + $0xfc] sm:$0x1] }
 0x364   : > { %20527 = vmatpush3.bf16.msra.mxu1 %v9179_v45  ;;  %v18234_v45 = vld [vmem:[%s25860_s12 + $0xd8] sm:$0xf]  ;;  %v18052_v17 = vcombine.low %v9041_v9, %v9055_v35  ;;  %v11014_v58 = vrot.slane %v11012_v44, 4  ;;  %v10998_v39 = vshrl.u32 %v26309_v21, 16  ;;  %v11001_v40 = vshll.u32 %v26309_v21, 16 }
 0x365   : > { %20649 = vmatmul.mubr.msk.bf16.vlgmr.msra.gmra.mrb[0].mxu0 %vm8307_vm11, %v18269_v10  ;;  %v26376_v10 = vld [vmem:[%s25769_s13 + $0x108] sm:$0xf]  ;;  %20522 = vmatprep.mubr.msk.bf16.mxu1 %vm8307_vm11, %v18051_v57  ;;  %v18277_v16 = vcombine.low %v18234_v45, %v26393_v18  ;;  %v11021_v30 = vshll.u32 %v18223_v27, 16  ;;  %v11040_v57 = vshrl.u32 %v26343_v2, 16  ;;  %v10976_v23 = vor.u32 %v10975_v60, %v10972_v6  ;;  %v26425_v6 = vld [vmem:[%s25860_s12 + $0x100] sm:$0xf] }
 0x366   : > { %20657 = vmatpush3.bf16.msra.mxu0 %v10894_v62  ;;  %v11015_v62 = vshll.u32 %v26312_v14, 16  ;;  %20652 = vmatprep.mubr.msk.bf16.mxu0 %vm8307_vm11, %v18270_v28  ;;  %v18271_v26 = vcombine.low %v26376_v10, %v26379_v54  ;;  %v18219_v28 = vld [vmem:[%s25769_s13 + $0xe4] sm:$0x1]  ;;  %v26414_v9 = vld [vmem:[%s25860_s12 + $0xe8] sm:$0xf]  ;;  %v10979_v55 = vshll.u32 %v18217_v32, 16  ;;  %v28975_v44 = vcombine.low %v25781_v25, %v25790_v7 }
 0x367   : > { %22343 = vmatprep.subr.msk.bf16.mxu0 %vm8320_vm10, %v26364_v31  ;;  %22329 = vmatprep.subr.msk.bf16.mxu1 %vm8320_vm10, %v26369_v12  ;;  %v10993_v45 = vshll.u32 %v18219_v28, 16  ;;  %v11028_v27 = vrot.slane %v11026_v56, 4  ;;  %v11031_v13 = vrot.slane %v11029_v37, 5  ;;  %v11057_v38 = vshll.u32 %v26376_v10, 16  ;;  %v18221_v32 = vld [vmem:[%s25769_s13 + $0xec] sm:$0x1] }
 0x368   : > { %v11017_v49 = vrot.slane %v11015_v62, 5  ;;  %v10990_v62 = vor.u32 %v10989_v52, %v10986_v3  ;;  %v11035_v60 = vshll.u32 %v18225_v47, 16  ;;  %v11023_v7 = vrot.slane %v11021_v30, 5  ;;  %v26438_v30 = vld [vmem:[%s25860_s12 + $0x108] sm:$0xf] }
 0x369   : > { %v11032_v3 = vor.u32 %v11031_v13, %v11028_v27  ;;  %v10977_v56 = vrot.slane %v10976_v23, 4  ;;  %v11000_v37 = vrot.slane %v10998_v39, 4  ;;  %v11003_v52 = vrot.slane %v11001_v40, 5  ;;  %v26441_v39 = vld [vmem:[%s25860_s12 + $0x110] sm:$0xf] }
 0x36a   : > { %v11018_v35 = vor.u32 %v11017_v49, %v11014_v58  ;;  %v11037_v28 = vrot.slane %v11035_v60, 5  ;;  %v10981_v58 = vrot.slane %v10979_v55, 5  ;;  %v10991_v49 = vrot.slane %v10990_v62, 4 }
 0x36b   : > { %20523 = vmatmul.mubr.msk.bf16.gmra.mrb[4].mxu1 %vm8307_vm11, %v18052_v17  ;;  %v11054_v17 = vshrl.u32 %v26376_v10, 16  ;;  %v11033_v4 = vrot.slane %v11032_v3, 4  ;;  %v11068_v0 = vshrl.u32 %v26379_v54, 16  ;;  %v11108_v47 = vsel %vm8320_vm10, %v26364_v31, 0  ;;  %v18294_v31 = vld [vmem:[%s28578_s4 + $0x54] sm:$0xf] }
 0x36c   : > { %20528 = vmatprep.mubr.msk.bf16.mxu1 %vm8307_vm11, %v28975_v44  ;;  %v11019_v25 = vrot.slane %v11018_v35, 4  ;;  %v10995_v44 = vrot.slane %v10993_v45, 5  ;;  %v9275_v35 = vsel %vm8320_vm10, %v26369_v12, 0  ;;  %v18279_v13 = vcombine.low %v26372_v15, %v26425_v6 }
 0x36d   : > { %20653 = vmatmul.mubr.msk.bf16.gmra.mrb[4].mxu0 %vm8307_vm11, %v18271_v26  ;;  %v11043_v26 = vshll.u32 %v26343_v2, 16  ;;  %v26452_v23 = vsel %vm25871_vm14, %v11033_v4, %v11037_v28  ;;  %v11042_v12 = vrot.slane %v11040_v57, 4  ;;  %v11071_v62 = vshll.u32 %v26379_v54, 16  ;;  %v18227_v4 = vld [vmem:[%s25769_s13 + $0x104] sm:$0x1] }
 0x36e   : > { %20658 = vmatprep.mubr.msk.bf16.mxu0 %vm8307_vm11, %v18277_v16  ;;  %v18278_v16 = vcombine.low %v26414_v9, %v26357_v5  ;;  %v26445_v40 = vsel %vm25871_vm14, %v11019_v25, %v11023_v7  ;;  %28976 = vst [vmem:[#allocation59_spill] sm:$0xff] %v26452_v23  ;;  %v28977_v45 = vcombine.low %v25795_v11, %v25809_v34  ;;  %v11007_v60 = vshll.u32 %v18221_v32, 16  ;;  %v18075_v25 = vld [vmem:[%s28578_s4 + $0x20] sm:$0xf] }
 0x36f   : > { %v11045_v55 = vrot.slane %v11043_v26, 5  ;;  %v11004_v27 = vor.u32 %v11003_v52, %v11000_v37  ;;  %v26467_v26 = vld [vmem:[%s25769_s13 + $0x88] sm:$0xf]  ;;  %v10982_v11 = vsel %vm25871_vm14, %v10977_v56, %v10981_v58  ;;  %v26473_v34 = vsel %vm25871_vm14, %v10991_v49, %v10995_v44  ;;  %v22666_v56 = vld [vmem:[%s25769_s13 + $0x80] sm:$0xf] }
 0x370   : > { %v18280_v32 = vcombine.low %v26438_v30, %v26441_v39  ;;  %v11049_v3 = vshll.u32 %v18227_v4, 16  ;;  %v18061_v37 = vcombine.low %v22666_v56, %v26467_v26  ;;  %v18286_v52 = vcombine.low %v10982_v11, %v26473_v34 }
 0x371   : > { %v11046_v7 = vor.u32 %v11045_v55, %v11042_v12  ;;  %v11005_v28 = vrot.slane %v11004_v27, 4  ;;  %v11059_v58 = vrot.slane %v11057_v38, 5  ;;  %v11070_v49 = vrot.slane %v11068_v0, 4 }
 0x372   : > { %v11073_v44 = vrot.slane %v11071_v62, 5  ;;  %v28979_v38 = vcombine.low %v25876_v48, %v25884_v36  ;;  %v11218_v48 = vsel %vm8320_vm10, %v18294_v31, 0  ;;  %v9384_v36 = vsel %vm8320_vm10, %v18075_v25, 0 }
 0x373   : > { %20529 = vmatmul.mubr.msk.bf16.vlgmr.msra.gmra.mrb[0].mxu1 %vm8307_vm11, %v28977_v45  ;;  %v11051_v45 = vrot.slane %v11049_v3, 5  ;;  %v22667_v3 = vld [vmem:[%s25860_s12 + $0x70] sm:$0xf]  ;;  %vm12043_vm15 = vsmask.f32 7938 }
 0x374   : > { %20537 = vmatpush3.bf16.msra.mxu1 %v9275_v35  ;;  %v18231_v35 = vld [vmem:[%s25769_s13 + $0x114] sm:$0x1]  ;;  %v11074_v55 = vor.u32 %v11073_v44, %v11070_v49  ;;  %v18069_v56 = vcombine.low %v22667_v3, %v25920_v51  ;;  %v9354_v51 = vshll.u32 %v26467_v26, 16  ;;  %vm12049_vm1 = vsmask.f32 256  ;;  %vm26826_vm2 = vmand %vm8320_vm10, %vm12043_vm15 }
 0x375   : > { %20659 = vmatmul.mubr.msk.bf16.vlgmr.msra.gmra.mrb[0].mxu0 %vm8307_vm11, %v18278_v16  ;;  %v28978_v16 = vcombine.low %v25812_v42, %v25822_v19  ;;  %22330 = vmatprep.subr.msk.bf16.mxu1 %vm8320_vm10, %v18075_v25  ;;  %v11009_v42 = vrot.slane %v11007_v60, 5  ;;  %v11056_v19 = vrot.slane %v11054_v17, 4  ;;  %v11077_v62 = vshll.u32 %v18231_v35, 16  ;;  %v18135_v25 = vld [vmem:[%s28578_s4 + $0x24] sm:$0xf]  ;;  %v28984_v3 = vld [vmem:[#allocation53_spill] sm:$0xff]  ;;  %vm26833_vm3 = vmand %vm12048_vm0, %vm12049_vm1 }
 0x376   : > { %20667 = vmatpush3.bf16.msra.mxu0 %v11108_v47  ;;  %20662 = vmatprep.mubr.msk.bf16.mxu0 %vm8307_vm11, %v18279_v13  ;;  %v18229_v47 = vld [vmem:[%s25769_s13 + $0x10c] sm:$0x1]  ;;  %v11047_v13 = vrot.slane %v11046_v7, 4 }
 0x377   : > { %20532 = vmatprep.mubr.msk.bf16.mxu1 %vm8307_vm11, %v28978_v16  ;;  %22344 = vmatprep.subr.msk.bf16.mxu0 %vm8320_vm10, %v18294_v31  ;;  %v26493_v12 = vsel %vm25871_vm14, %v11005_v28, %v11009_v42  ;;  %v11060_v0 = vor.u32 %v11059_v58, %v11056_v19  ;;  %v11063_v17 = vshll.u32 %v18229_v47, 16  ;;  %v11075_v16 = vrot.slane %v11074_v55, 4  ;;  %v18303_v31 = vld [vmem:[%s28578_s4 + $0x58] sm:$0xf]  ;;  %v17979_v28 = vld [vmem:[%s25860_s12 + $0x88] sm:$0xf] }
 0x378   : > { %v26502_v27 = vsel %vm25871_vm14, %v11047_v13, %v11051_v45  ;;  %v18287_v60 = vcombine.low %v26493_v12, %v26445_v40  ;;  %v18243_v42 = vld [vmem:[%s25816_s19 + $0xd8] sm:$0xf]  ;;  %v22668_v58 = vld [vmem:[%s25860_s12 + $0x80] sm:$0xf]  ;;  %v9356_v47 = vrot.slane %v9354_v51, 5  ;;  %v18076_v13 = vcombine.low %v25994_v33, %v25999_v59 }
 0x379   : > { %28980 = vst [vmem:[#allocation60_spill] sm:$0xff] %v26502_v27  ;;  %v11061_v4 = vrot.slane %v11060_v0, 4  ;;  %v11065_v11 = vrot.slane %v11063_v17, 5  ;;  %v18288_v7 = vcombine.low %v26452_v23, %v26502_v27  ;;  %v18070_v49 = vcombine.low %v22668_v58, %v17979_v28  ;;  %v17970_v45 = vld [vmem:[%s25769_s13 + $0x8c] sm:$0x1] }
 0x37a   : > { %v26553_v0 = vld [vmem:[%s25816_s19 + $0xf0] sm:$0xf]  ;;  %v9360_v55 = vshll.u32 %v17970_v45, 16  ;;  %v18256_v27 = vld [vmem:[%s25816_s19 + $0x10c] sm:$0x1] }
 0x37b   : > { %20533 = vmatmul.mubr.msk.bf16.gmra.mrb[4].mxu1 %vm8307_vm11, %v18061_v37  ;;  %v28981_v37 = vcombine.low %v25890_v8, %v25915_v50  ;;  %v26527_v8 = vsel %vm25871_vm14, %v11061_v4, %v11065_v11  ;;  %v26591_v51 = vld [vmem:[%s25816_s19 + $0x110] sm:$0xf] }
 0x37c   : > { %20538 = vmatprep.mubr.msk.bf16.mxu1 %vm8307_vm11, %v28979_v38  ;;  %28982 = vst [vmem:[#allocation61_spill] sm:$0xff] %v26527_v8  ;;  %v26550_v38 = vld [vmem:[%s25816_s19 + $0xe8] sm:$0xf]  ;;  %v9362_v11 = vrot.slane %v9360_v55, 5  ;;  %v22642_v55 = vld [vmem:[%s25773_s27 + $0xd8] ss:$8 sps:$4 sm:$0xff]  }
 0x37d   : > { %20663 = vmatmul.mubr.msk.bf16.gmra.mrb[4].mxu0 %vm8307_vm11, %v18280_v32  ;;  %v11079_v32 = vrot.slane %v11077_v62, 5  ;;  %v26557_v62 = vld [vmem:[%s25816_s19 + $0xf8] sm:$0xf]  ;;  %v18296_v59 = vcombine.low %v26550_v38, %v26553_v0 }
 0x37e   : > { %20668 = vmatprep.mubr.msk.bf16.mxu0 %vm8307_vm11, %v18286_v52  ;;  %v9351_v52 = vshrl.u32 %v26467_v26, 16  ;;  %v18245_v26 = vld [vmem:[%s25816_s19 + $0xe0] sm:$0xf] }
 0x37f   : > { %v26531_v50 = vsel %vm25871_vm14, %v11075_v16, %v11079_v32  ;;  %v18295_v35 = vcombine.low %v18243_v42, %v18245_v26  ;;  %v11328_v32 = vsel %vm8320_vm10, %v18303_v31, 0  ;;  %v11418_v58 = vshrl.u32 %v18245_v26, 16  ;;  %v18254_v16 = vld [vmem:[%s25816_s19 + $0x104] sm:$0x1] }
 0x380   : > { %28983 = vst [vmem:[#allocation62_spill] sm:$0xff] %v26531_v50  ;;  %v18289_v19 = vcombine.low %v26527_v8, %v26531_v50  ;;  %v9353_v44 = vrot.slane %v9351_v52, 4  ;;  %v11505_v8 = vshll.u32 %v26591_v51, 16 }
 0x382   : > { %v9357_v17 = vor.u32 %v9356_v47, %v9353_v44  ;;  %v26598_v44 = vld [vmem:[%s25769_s13 + $0x90] sm:$0xf]  ;;  %v26645_v47 = vld [vmem:[%s28578_s4 + $0x60] sm:$0xf] }
 0x383   : > { %20539 = vmatmul.mubr.msk.bf16.vlgmr.msra.gmra.mrb[0].mxu1 %vm8307_vm11, %v28981_v37 }
 0x384   : > { %20547 = vmatpush3.bf16.msra.mxu1 %v9384_v36  ;;  %20542 = vmatprep.mubr.msk.bf16.mxu1 %vm8307_vm11, %v18069_v56  ;;  %v9358_v4 = vrot.slane %v9357_v17, 4  ;;  %v28985_v56 = vld [vmem:[#allocation56_spill] sm:$0xff]  ;;  %v11432_v17 = vshrl.u32 %v26550_v38, 16 }
 0x385   : > { %20669 = vmatmul.mubr.msk.bf16.vlgmr.msra.gmra.mrb[0].mxu0 %vm8307_vm11, %v18287_v60  ;;  %22331 = vmatprep.subr.msk.bf16.mxu1 %vm8320_vm10, %v18135_v25  ;;  %v26560_v60 = vld [vmem:[%s25816_s19 + $0x100] sm:$0xf]  ;;  %v28986_v37 = vcombine.low %v28984_v3, %v28985_v56  ;;  %v18244_v3 = vld [vmem:[%s25816_s19 + $0xdc] sm:$0x1]  ;;  %v18246_v56 = vld [vmem:[%s25816_s19 + $0xe4] sm:$0x1] }
 0x386   : > { %20677 = vmatpush3.bf16.msra.mxu0 %v11218_v48  ;;  %20672 = vmatprep.mubr.msk.bf16.mxu0 %vm8307_vm11, %v18288_v7  ;;  %v9554_v48 = vsel %vm8320_vm10, %v18135_v25, 0  ;;  %v18297_v36 = vcombine.low %v26557_v62, %v26560_v60  ;;  %v18078_v7 = vcombine.low %v26068_v22, %v26087_v20  ;;  %v18144_v25 = vld [vmem:[%s28578_s4 + $0x28] sm:$0xf]  ;;  %v11404_v22 = vshrl.u32 %v18243_v42, 16 }
 0x387   : > { %22345 = vmatprep.subr.msk.bf16.mxu0 %vm8320_vm10, %v18303_v31  ;;  %v18312_v31 = vld [vmem:[%s28578_s4 + $0x5c] sm:$0xf]  ;;  %v26588_v20 = vld [vmem:[%s25816_s19 + $0x108] sm:$0xf]  ;;  %v9363_v28 = vsel %vm25871_vm14, %v9358_v4, %v9362_v11 }
 0x388   : > { %v11406_v11 = vrot.slane %v11404_v22, 4  ;;  %v11413_v22 = vshll.u32 %v18244_v3, 16  ;;  %v22671_v3 = vld [vmem:[%s25769_s13 + $0xb8] sm:$0xf] }
 0x38b   : > { %20543 = vmatmul.mubr.msk.bf16.gmra.mrb[4].mxu1 %vm8307_vm11, %v18070_v49  ;;  %v11421_v49 = vshll.u32 %v18245_v26, 16  ;;  %v18298_v26 = vcombine.low %v26588_v20, %v26591_v51 }
 0x38c   : > { %20548 = vmatprep.mubr.msk.bf16.mxu1 %vm8307_vm11, %v18076_v13 }
 0x38d   : > { %20673 = vmatmul.mubr.msk.bf16.gmra.mrb[4].mxu0 %vm8307_vm11, %v18289_v19  ;;  %v11407_v19 = vshll.u32 %v18243_v42, 16  ;;  %v18250_v42 = vld [vmem:[%s25816_s19 + $0xf4] sm:$0x1] }
 0x38e   : > { %20678 = vmatprep.mubr.msk.bf16.mxu0 %vm8307_vm11, %v18295_v35  ;;  %v28987_v35 = vld [vmem:[#allocation57_spill] sm:$0xff] }
 0x38f   : > { %v18079_v13 = vcombine.low %v28987_v35, %v9363_v28  ;;  %v11449_v28 = vshll.u32 %v26553_v0, 16  ;;  %v11460_v35 = vshrl.u32 %v26557_v62, 16 }
 0x391   : > { %v26631_v57 = vrot.slane %v11460_v35, 4 }
 0x393   : > { %20549 = vmatmul.mubr.msk.bf16.vlgmr.msra.gmra.mrb[0].mxu1 %vm8307_vm11, %v28986_v37  ;;  %v11446_v37 = vshrl.u32 %v26553_v0, 16 }
 0x394   : > { %20557 = vmatpush3.bf16.msra.mxu1 %v9554_v48  ;;  %20552 = vmatprep.mubr.msk.bf16.mxu1 %vm8307_vm11, %v18078_v7  ;;  %v11420_v48 = vrot.slane %v11418_v58, 4  ;;  %v11435_v7 = vshll.u32 %v26550_v38, 16  ;;  %v11427_v58 = vshll.u32 %v18246_v56, 16 }
 0x395   : > { %20679 = vmatmul.mubr.msk.bf16.vlgmr.msra.gmra.mrb[0].mxu0 %vm8307_vm11, %v18296_v59  ;;  %22332 = vmatprep.subr.msk.bf16.mxu1 %vm8320_vm10, %v18144_v25  ;;  %v22669_v59 = vld [vmem:[%s25769_s13 + $0x98] sm:$0xf]  ;;  %v11448_v45 = vrot.slane %v11446_v37, 4  ;;  %v11415_v37 = vrot.slane %v11413_v22, 5  ;;  %v28989_v22 = vld [vmem:[#allocation52_spill] sm:$0xff] }
 0x396   : > { %20687 = vmatpush3.bf16.msra.mxu0 %v11328_v32  ;;  %20682 = vmatprep.mubr.msk.bf16.mxu0 %vm8307_vm11, %v18297_v36  ;;  %v18136_v4 = vcombine.low %v26598_v44, %v22669_v59  ;;  %v11409_v32 = vrot.slane %v11407_v19, 5  ;;  %v11423_v36 = vrot.slane %v11421_v49, 5  ;;  %v26623_v59 = vrot.slane %v11432_v17, 4  ;;  %v22643_v17 = vld [vmem:[%s25773_s27 + $0xe8] ss:$8 sps:$4 sm:$0xff]  }
 0x397   : > { %22346 = vmatprep.subr.msk.bf16.mxu0 %vm8320_vm10, %v18312_v31  ;;  %v11437_v0 = vrot.slane %v11435_v7, 5  ;;  %v11463_v49 = vshll.u32 %v26557_v62, 16  ;;  %v9664_v62 = vsel %vm8320_vm10, %v18144_v25, 0  ;;  %v22670_v7 = vld [vmem:[%s25769_s13 + $0xb0] sm:$0xf]  ;;  %v11429_v35 = vrot.slane %v11427_v58, 5 }
 0x398   : > { %v11410_v38 = vor.u32 %v11409_v32, %v11406_v11  ;;  %v11424_v19 = vor.u32 %v11423_v36, %v11420_v48  ;;  %v22645_v11 = vld [vmem:[%s25773_s27 + $0xf8] ss:$8 sps:$4 sm:$0xff]   ;;  %v18248_v32 = vld [vmem:[%s25816_s19 + $0xec] sm:$0x1]  ;;  %v11491_v48 = vshll.u32 %v26588_v20, 16  ;;  %v11542_v36 = vsel %vm8320_vm10, %v18312_v31, 0 }
 0x399   : > { %v18138_v56 = vcombine.low %v22670_v7, %v22671_v3  ;;  %v11502_v25 = vshrl.u32 %v26591_v51, 16  ;;  %v26651_v7 = vld [vmem:[%s28578_s4 + $0x2c] sm:$0xf]  ;;  %v11438_v58 = vor.u32 %v11437_v0, %v26623_v59  ;;  %v18252_v3 = vld [vmem:[%s25816_s19 + $0xfc] sm:$0x1] }
 0x39a   : > { %v11493_v50 = vrot.slane %v11491_v48, 5  ;;  %v22646_v48 = vld [vmem:[%s25773_s27 + $0x108] ss:$8 sps:$4 sm:$0xff]  }
 0x39b   : > { %20553 = vmatmul.mubr.msk.bf16.gmra.mrb[4].mxu1 %vm8307_vm11, %v18079_v13  ;;  %v11477_v13 = vshll.u32 %v26560_v60, 16 }
 0x39c   : > { %20558 = vmatprep.mubr.msk.bf16.mxu1 %vm8307_vm11, %v18136_v4  ;;  %v11488_v4 = vshrl.u32 %v26588_v20, 16  ;;  %v11465_v20 = vrot.slane %v11463_v49, 5  ;;  %v11441_v49 = vshll.u32 %v18248_v32, 16  ;;  %v11483_v32 = vshll.u32 %v18254_v16, 16  ;;  %v18085_v16 = vld [vmem:[%s25769_s13 + $0x94] sm:$0x1] }
 0x39d   : > { %20683 = vmatmul.mubr.msk.bf16.gmra.mrb[4].mxu0 %vm8307_vm11, %v18298_v26  ;;  %v11474_v26 = vshrl.u32 %v26560_v60, 16  ;;  %v11411_v60 = vrot.slane %v11410_v38, 4  ;;  %v11479_v31 = vrot.slane %v11477_v13, 5  ;;  %v28988_v38 = vld [vmem:[#allocation51_spill] sm:$0xff]  ;;  %v11455_v13 = vshll.u32 %v18250_v42, 16 }
 0x39e   : > { %20688 = vmatprep.mubr.msk.bf16.mxu0 %vm8307_vm11, %v22642_v55  ;;  %v11451_v55 = vrot.slane %v11449_v28, 5  ;;  %v11425_v28 = vrot.slane %v11424_v19, 4  ;;  %v28990_v19 = vcombine.low %v28988_v38, %v28989_v22  ;;  %v11490_v33 = vrot.slane %v11488_v4, 4  ;;  %v22673_v42 = vld [vmem:[%s25769_s13 + $0xc8] sm:$0xf] }
 0x39f   : > { %v11476_v52 = vrot.slane %v11474_v26, 4  ;;  %v9743_v38 = vshll.u32 %v26598_v44, 16  ;;  %v11416_v0 = vsel %vm25871_vm14, %v11411_v60, %v11415_v37  ;;  %v11469_v4 = vshll.u32 %v18252_v3, 16  ;;  %v22674_v22 = vld [vmem:[%s25860_s12 + $0x98] sm:$0xf] }
 0x3a0   : > { %v11452_v26 = vor.u32 %v11451_v55, %v11448_v45  ;;  %v22672_v45 = vld [vmem:[%s25769_s13 + $0xc0] sm:$0xf]  ;;  %v11430_v51 = vsel %vm25871_vm14, %v11425_v28, %v11429_v35  ;;  %v18102_v55 = vld [vmem:[%s25860_s12 + $0x90] sm:$0xf]  ;;  %v11457_v60 = vrot.slane %v11455_v13, 5  ;;  %v11504_v37 = vrot.slane %v11502_v25, 4 }
 0x3a1   : > { %v18139_v59 = vcombine.low %v22672_v45, %v22673_v42  ;;  %v11507_v28 = vrot.slane %v11505_v8, 5  ;;  %v18313_v35 = vcombine.low %v11416_v0, %v11430_v51  ;;  %v9745_v42 = vrot.slane %v9743_v38, 5 }
 0x3a2   : > { %v11471_v3 = vrot.slane %v11469_v4, 5  ;;  %v11494_v25 = vor.u32 %v11493_v50, %v11490_v33  ;;  %v11638_v51 = vsel %vm8320_vm10, %v26645_v47, 0  ;;  %v9878_v50 = vsel %vm8320_vm10, %v26651_v7, 0 }
 0x3a3   : > { %20559 = vmatmul.mubr.msk.bf16.vlgmr.msra.gmra.mrb[0].mxu1 %vm8307_vm11, %v28990_v19  ;;  %v18145_v19 = vcombine.low %v18102_v55, %v22674_v22 }
 0x3a4   : > { %20567 = vmatpush3.bf16.msra.mxu1 %v9664_v62  ;;  %20562 = vmatprep.mubr.msk.bf16.mxu1 %vm8307_vm11, %v18138_v56  ;;  %v11443_v62 = vrot.slane %v11441_v49, 5  ;;  %v11453_v56 = vrot.slane %v11452_v26, 4  ;;  %v11508_v49 = vor.u32 %v11507_v28, %v11504_v37  ;;  %v11495_v33 = vrot.slane %v11494_v25, 4  ;;  %v22682_v25 = vld [vmem:[%s25816_s19 + $0xa0] sm:$0xf] }
 0x3a5   : > { %20689 = vmatmul.mubr.msk.bf16.vlgmr.msra.gmra.mrb[0].mxu0 %vm8307_vm11, %v22643_v17  ;;  %v9740_v17 = vshrl.u32 %v26598_v44, 16  ;;  %22333 = vmatprep.subr.msk.bf16.mxu1 %vm8320_vm10, %v26651_v7  ;;  %v11466_v44 = vor.u32 %v11465_v20, %v26631_v57  ;;  %v18258_v57 = vld [vmem:[%s25816_s19 + $0x114] sm:$0x1]  ;;  %v18330_v7 = vld [vmem:[%s28578_s4 + $0x64] sm:$0xf] }
 0x3a6   : > { %20697 = vmatpush3.bf16.msra.mxu0 %v11542_v36  ;;  %20692 = vmatprep.mubr.msk.bf16.mxu0 %vm8307_vm11, %v22645_v11  ;;  %v11480_v11 = vor.u32 %v11479_v31, %v11476_v52  ;;  %v11439_v36 = vrot.slane %v11438_v58, 4  ;;  %v11485_v52 = vrot.slane %v11483_v32, 5  ;;  %v11458_v8 = vsel %vm25871_vm14, %v11453_v56, %v11457_v60  ;;  %v22676_v32 = vld [vmem:[%s25860_s12 + $0xb8] sm:$0xf]  ;;  %v28992_v56 = vld [vmem:[#allocation55_spill] sm:$0xff] }
 0x3a7   : > { %22347 = vmatprep.subr.msk.bf16.mxu0 %vm8320_vm10, %v26645_v47  ;;  %v9742_v45 = vrot.slane %v9740_v17, 4  ;;  %v11467_v20 = vrot.slane %v11466_v44, 4  ;;  %v11497_v58 = vshll.u32 %v18256_v27, 16  ;;  %v11511_v26 = vshll.u32 %v18258_v57, 16  ;;  %v18162_v60 = vld [vmem:[%s28578_s4 + $0x30] sm:$0xf] }
 0x3a8   : > { %v11481_v23 = vrot.slane %v11480_v11, 4  ;;  %v11444_v31 = vsel %vm25871_vm14, %v11439_v36, %v11443_v62  ;;  %v9749_v17 = vshll.u32 %v18085_v16, 16  ;;  %v11509_v55 = vrot.slane %v11508_v49, 4  ;;  %v22675_v11 = vld [vmem:[%s25860_s12 + $0xb0] sm:$0xf] }
 0x3a9   : > { %v9746_v13 = vor.u32 %v9745_v42, %v9742_v45  ;;  %v11472_v38 = vsel %vm25871_vm14, %v11467_v20, %v11471_v3  ;;  %v18314_v0 = vcombine.low %v11444_v31, %v11458_v8  ;;  %v11499_v27 = vrot.slane %v11497_v58, 5  ;;  %v22678_v45 = vld [vmem:[%s25860_s12 + $0xc8] sm:$0xf]  ;;  %v18232_v31 = vld [vmem:[%s25769_s13 + $0x118] sm:$0xf] }
 0x3aa   : > { %v11513_v44 = vrot.slane %v11511_v26, 5  ;;  %v9751_v62 = vrot.slane %v9749_v17, 5  ;;  %v28994_v20 = vcombine.low %v26256_v24, %v26309_v21  ;;  %v11734_v3 = vsel %vm8320_vm10, %v18330_v7, 0  ;;  %v18339_v21 = vld [vmem:[%s28578_s4 + $0x68] sm:$0xf] }
 0x3ab   : > { %20563 = vmatmul.mubr.msk.bf16.gmra.mrb[4].mxu1 %vm8307_vm11, %v18139_v59  ;;  %v11486_v59 = vsel %vm25871_vm14, %v11481_v23, %v11485_v52  ;;  %v9747_v36 = vrot.slane %v9746_v13, 4  ;;  %v28991_v23 = vld [vmem:[#allocation54_spill] sm:$0xff]  ;;  %v11500_v37 = vsel %vm25871_vm14, %v11495_v33, %v11499_v27  ;;  %v9988_v52 = vsel %vm8320_vm10, %v18162_v60, 0  ;;  %v22684_v49 = vld [vmem:[%s25816_s19 + $0xb0] sm:$0xf] }
 0x3ac   : > { %20568 = vmatprep.mubr.msk.bf16.mxu1 %vm8307_vm11, %v18145_v19  ;;  %v18315_v4 = vcombine.low %v11472_v38, %v11486_v59  ;;  %v28993_v47 = vcombine.low %v28991_v23, %v28992_v56  ;;  %v11514_v28 = vsel %vm25871_vm14, %v11509_v55, %v11513_v44  ;;  %v22677_v19 = vld [vmem:[%s25860_s12 + $0xc0] sm:$0xf]  ;;  %v28995_v16 = vcombine.low %v26312_v14, %v26325_v1  ;;  %v22680_v1 = vld [vmem:[%s25816_s19 + $0x90] sm:$0xf]  ;;  %v22685_v26 = vld [vmem:[%s25816_s19 + $0xb8] sm:$0xf] }
 0x3ad   : > { %20693 = vmatmul.mubr.msk.bf16.gmra.mrb[4].mxu0 %vm8307_vm11, %v22646_v48  ;;  %v18147_v48 = vcombine.low %v22675_v11, %v22676_v32  ;;  %v18316_v22 = vcombine.low %v11500_v37, %v11514_v28  ;;  %v18148_v42 = vcombine.low %v22677_v19, %v22678_v45  ;;  %v28996_v24 = vcombine.low %v26197_v29, %v26218_v53  ;;  %v22679_v29 = vld [vmem:[%s28578_s4 + $0x34] sm:$0xf]  ;;  %v29001_v38 = vld [vmem:[#allocation50_spill] sm:$0xff]  ;;  %v29004_v32 = vld [vmem:[#allocation59_spill] sm:$0xff] }
 0x3ae   : > { %20698 = vmatprep.mubr.msk.bf16.mxu0 %vm8307_vm11, %v18313_v35  ;;  %v9752_v35 = vsel %vm25871_vm14, %v9747_v36, %v9751_v62  ;;  %v18325_v53 = vcombine.low %v26379_v54, %v18232_v31  ;;  %v28999_v8 = vcombine.low %v26393_v18, %v26414_v9  ;;  %v22683_v54 = vld [vmem:[%s25816_s19 + $0xa8] sm:$0xf]  ;;  %v18165_v13 = vcombine.low %v22684_v49, %v22685_v26  ;;  %v18242_v59 = vld [vmem:[%s25860_s12 + $0x118] sm:$0xf]  ;;  %v18233_v44 = vld [vmem:[%s25769_s13 + $0x11c] sm:$0x1] }
 0x3af   : > { %v18154_v57 = vcombine.low %v9752_v35, %v26191_v61  ;;  %v18156_v61 = vcombine.low %v26230_v41, %v26239_v46  ;;  %v28997_v41 = vcombine.low %v26343_v2, %v26376_v10  ;;  %v28998_v46 = vld [vmem:[#allocation58_spill] sm:$0xff]  ;;  %v18164_v58 = vcombine.low %v22682_v25, %v22683_v54  ;;  %v22663_v36 = vld [vmem:[%s25773_s27 + $0xc0] ss:$8 sps:$4 sm:$0xff]   ;;  %v29007_v23 = vld [vmem:[#allocation61_spill] sm:$0xff]  ;;  %s8205_s13 = sadd.s32 2, %s23030_s16 }
 0x3b0   : > { %v18157_v14 = vcombine.low %v28998_v46, %v26273_v63  ;;  %v22681_v2 = vld [vmem:[%s25816_s19 + $0x98] sm:$0xf]  ;;  %v11843_v63 = vsel %vm8320_vm10, %v18339_v21, 0  ;;  %v29000_v17 = vcombine.low %v26357_v5, %v26372_v15  ;;  %v11810_v18 = vshrl.u32 %v18232_v31, 16  ;;  %v22686_v15 = vld [vmem:[%s25816_s19 + $0xc0] sm:$0xf] }
 0x3b1   : > { %v18163_v10 = vcombine.low %v22680_v1, %v22681_v2  ;;  %v11813_v9 = vshll.u32 %v18232_v31, 16  ;;  %v18334_v5 = vcombine.low %v26441_v39, %v18242_v59  ;;  %v22662_v55 = vld [vmem:[%s25773_s27 + $0xb0] ss:$8 sps:$4 sm:$0xff]   ;;  %v11819_v39 = vshll.u32 %v18233_v44, 16  ;;  %v29006_v62 = vld [vmem:[#allocation60_spill] sm:$0xff]  ;;  %p8206_p4 = scmp.lt.s32.totalorder %s8205_s13, 0 }
 0x3b2   : > { %v11812_v33 = vrot.slane %v11810_v18, 4  ;;  %v29008_v56 = vcombine.low %v29006_v62, %v29007_v23 }
 0x3b3   : > { %20569 = vmatmul.mubr.msk.bf16.vlgmr.msra.gmra.mrb[0].mxu1 %vm8307_vm11, %v28993_v47  ;;  %v11815_v27 = vrot.slane %v11813_v9, 5  ;;  %v11821_v11 = vrot.slane %v11819_v39, 5 }
 0x3b4   : > { %20577 = vmatpush3.bf16.msra.mxu1 %v9878_v50  ;;  %20572 = vmatprep.mubr.msk.bf16.mxu1 %vm8307_vm11, %v18147_v48  ;;  %v29005_v48 = vcombine.low %v26445_v40, %v29004_v32 }
 0x3b5   : > { %20699 = vmatmul.mubr.msk.bf16.vlgmr.msra.gmra.mrb[0].mxu0 %vm8307_vm11, %v18314_v0  ;;  %22334 = vmatprep.subr.msk.bf16.mxu1 %vm8320_vm10, %v18162_v60  ;;  %v29002_v0 = vcombine.low %v26425_v6, %v26438_v30  ;;  %v29003_v6 = vcombine.low %v26473_v34, %v26493_v12  ;;  %v11816_v30 = vor.u32 %v11815_v27, %v11812_v33  ;;  %v29009_v12 = vld [vmem:[#allocation62_spill] sm:$0xff] }
 0x3b6   : > { %20707 = vmatpush3.bf16.msra.mxu0 %v11638_v51  ;;  %20702 = vmatprep.mubr.msk.bf16.mxu0 %vm8307_vm11, %v18315_v4  ;;  %v22687_v51 = vld [vmem:[%s25816_s19 + $0xc8] sm:$0xf]  ;;  %s8207_s19 = ssub.s32 0, %s8205_s13 }
 0x3b7   : > { %22348 = vmatprep.subr.msk.bf16.mxu0 %vm8320_vm10, %v18330_v7  ;;  %v18166_v50 = vcombine.low %v22686_v15, %v22687_v51  ;;  %v11817_v4 = vrot.slane %v11816_v30, 4  ;;  %s17949_s12 = smin.u32 %s8207_s19, %s8205_s13 }
 0x3b8   : > { %22664 = sdivrem.u32 %s17949_s12, 3 }
 0x3b9   : > { %v11822_v34 = vsel %vm25871_vm14, %v11817_v4, %v11821_v11 }
 0x3ba   : > { %v18343_v47 = vcombine.low %v29009_v12, %v11822_v34 }
 0x3bb   : > { %20573 = vmatmul.mubr.msk.bf16.gmra.mrb[4].mxu1 %vm8307_vm11, %v18148_v42 }
 0x3bc   : > { %20578 = vmatprep.mubr.msk.bf16.mxu1 %vm8307_vm11, %v18154_v57 }
 0x3bd   : > { %20703 = vmatmul.mubr.msk.bf16.gmra.mrb[4].mxu0 %vm8307_vm11, %v18316_v22 }
 0x3be   : > { %20708 = vmatprep.mubr.msk.bf16.mxu0 %vm8307_vm11, %v28994_v20 }
 0x3c1   : > { %s22665_s23 = spop.drf %22664 }
 0x3c2   : > { %s8211_s27 = ssub.s32 0, %s22665_s23 }
 0x3c3   : > { %20579 = vmatmul.mubr.msk.bf16.vlgmr.msra.gmra.mrb[0].mxu1 %vm8307_vm11, %v28996_v24  ;;  %s29126_s27 = smov (!%p8206_p4, %s8211_s27), %s22665_s23 }
 0x3c4   : > { %20587 = vmatpush3.bf16.msra.mxu1 %v9988_v52  ;;  %20582 = vmatprep.mubr.msk.bf16.mxu1 %vm8307_vm11, %v18156_v61  ;;  %p17951_p5 = scmp.lt.s32.totalorder %s29126_s27, 0  ;;  %s8217_s24 = sadd.s32 3, %s29126_s27 }
 0x3c5   : > { %20709 = vmatmul.mubr.msk.bf16.vlgmr.msra.gmra.mrb[0].mxu0 %vm8307_vm11, %v28995_v16  ;;  %22336 = vmatprep.subr.msk.bf16.mxu1 %vm8320_vm10, %v22679_v29 }
 0x3c6   : > { %20717 = vmatpush3.bf16.msra.mxu0 %v11734_v3  ;;  %20712 = vmatprep.mubr.msk.bf16.mxu0 %vm8307_vm11, %v28997_v41  ;;  %s29128_s24 = smov (!%p17951_p5, %s8217_s24), %s29126_s27 }
 0x3c7   : > { %22349 = vmatprep.subr.msk.bf16.mxu0 %vm8320_vm10, %v18339_v21  ;;  %s18356_s25 = smul.u32 80, %s29128_s24 }
 0x3c9   : > { %s26820_s26 = scalar_lea.vmem [#allocation2], %s18356_s25 }
 0x3ca   : > { %v18365_v49 = vld [vmem:[%s26820_s26 + $0x18] sm:$0xf]  ;;  %v18367_v26 = vld [vmem:[%s26820_s26 + $0x1c] sm:$0x1]  ;;  %v18359_v44 = vld [vmem:[%s26820_s26 + $0xc] sm:$0x1] }
 0x3cb   : > { %20583 = vmatmul.mubr.msk.bf16.gmra.mrb[4].mxu1 %vm8307_vm11, %v18157_v14  ;;  %v18371_v12 = vld [vmem:[%s26820_s26 + $0x24] sm:$0x1] }
 0x3cc   : > { %20588 = vmatprep.mubr.msk.bf16.mxu1 %vm8307_vm11, %v18163_v10 }
 0x3cd   : > { %20713 = vmatmul.mubr.msk.bf16.gmra.mrb[4].mxu0 %vm8307_vm11, %v18325_v53 }
 0x3ce   : > { %20718 = vmatprep.mubr.msk.bf16.mxu0 %vm8307_vm11, %v28999_v8 }
 0x3d3   : > { %20589 = vmatmul.mubr.msk.bf16.vlgmr.msra.gmra.mrb[0].mxu1 %vm8307_vm11, %v18164_v58 }
 0x3d4   : > { %21827 = vmatpush3.bf16.msra.mxu1 %v29001_v38  ;;  %20592 = vmatprep.mubr.msk.bf16.mxu1 %vm8307_vm11, %v18165_v13 }
 0x3d5   : > { %20719 = vmatmul.mubr.msk.bf16.vlgmr.msra.gmra.mrb[0].mxu0 %vm8307_vm11, %v29000_v17 }
 0x3d6   : > { %20727 = vmatpush3.bf16.msra.mxu0 %v11843_v63  ;;  %20722 = vmatprep.mubr.msk.bf16.mxu0 %vm8307_vm11, %v29002_v0 }
 0x3db   : > { %20593 = vmatmul.mubr.msk.bf16.gmra.mrb[4].mxu1 %vm8307_vm11, %v18166_v50 }
 0x3dc   : > { %20602 = vmatprep.mubr.msk.bf16.mxu1 %vm8307_vm11, %v22662_v55 }
 0x3dd   : > { %20723 = vmatmul.mubr.msk.bf16.gmra.mrb[4].mxu0 %vm8307_vm11, %v18334_v5  ;;  %v18357_v5 = vld [vmem:[%s26820_s26 + $0x8] sm:$0xf] }
 0x3de   : > { %20728 = vmatprep.mubr.msk.bf16.mxu0 %vm8307_vm11, %v29003_v6 }
 0x3e5   : > { %20729 = vmatmul.mubr.msk.bf16.vlgmr.msra.gmra.mrb[0].mxu0 %vm8307_vm11, %v29005_v48 }
 0x3e6   : > { %20732 = vmatprep.mubr.msk.bf16.mxu0 %vm8307_vm11, %v29008_v56 }
 0x3e7   : > { %20603 = vmatmul.mubr.msk.bf16.vlgmr.msra.gmra.mrb[4].mxu1 %vm8307_vm11, %v22663_v36  ;;  %v18369_v36 = vld [vmem:[%s26820_s26 + $0x20] sm:$0xf] }
 0x3ed   : > { %20733 = vmatmul.mubr.msk.bf16.gmra.mrb[4].mxu0 %vm8307_vm11, %v18343_v47 }
 0x4a6   : > { %v20590_v40 = vpop.f32.mrb[0].mxu1 }
 0x4a7   : > { %v10024_v7 = vpop.f32.mrb[1].mxu1  ;;  %v21828_v28 = vadd.f32 %v20590_v40, %v17952_v43 }
 0x4a8   : > { %v20591_v60 = vpop.f32.mrb[2].mxu1  ;;  %v21830_v35 = vadd.f32 %v17952_v43, %v10024_v7 }
 0x4a9   : > { %v10027_v37 = vpop.f32.mrb[3].mxu1  ;;  %v21832_v19 = vadd.f32 %v20591_v60, %v17952_v43 }
 0x4aa   : > { %v21834_v57 = vadd.f32 %v17952_v43, %v10027_v37 }
 0x4b8   : > { %v20730_v22 = vpop.f32.mrb[0].mxu0 }
 0x4b9   : > { %v21829_v45 = vadd.f32 %v21828_v28, %v20730_v22  ;;  %v11879_v42 = vpop.f32.mrb[1].mxu0  ;;  %v18361_v28 = vld [vmem:[%s26820_s26 + $0x10] sm:$0xf] }
 0x4ba   : > { %v21831_v20 = vadd.f32 %v21830_v35, %v11879_v42  ;;  %v20731_v3 = vpop.f32.mrb[2].mxu0  ;;  %v20604_v31 = vpop.f32.mrb[4].mxu1  ;;  %v18363_v35 = vld [vmem:[%s26820_s26 + $0x14] sm:$0x1] }
 0x4bb   : > { %v11920_v52 = vmax.f32 %v21829_v45, 0.0  ;;  %v21833_v61 = vadd.f32 %v21832_v19, %v20731_v3  ;;  %v11882_v16 = vpop.f32.mrb[3].mxu0  ;;  %v21836_v53 = vadd.f32 %v20604_v31, %v17952_v43  ;;  %v10150_v46 = vpop.f32.mrb[5].mxu1 }
 0x4bc   : > { %v11918_v24 = vmax.f32 %v21831_v20, 0.0  ;;  %v21835_v21 = vadd.f32 %v21834_v57, %v11882_v16  ;;  %v21838_v2 = vadd.f32 %v17952_v43, %v10150_v46  ;;  %v20605_v10 = vpop.f32.mrb[6].mxu1 }
 0x4bd   : > { %v19182_v41 = vpack.c.bf16 %v11920_v52, %v11920_v52  ;;  %v11921_v29 = vmax.f32 %v21833_v61, 0.0  ;;  %v21840_v58 = vadd.f32 %v20605_v10, %v17952_v43  ;;  %v10153_v63 = vpop.f32.mrb[7].mxu1 }
 0x4be   : > { %v19180_v14 = vpack.c.bf16 %v11918_v24, %v11918_v24  ;;  %v11919_v1 = vmax.f32 %v21835_v21, 0.0  ;;  %v21842_v38 = vadd.f32 %v17952_v43, %v10153_v63 }
 0x4bf   : > { %v11975_v8 = vshrl.u32 %v19182_v41, 16  ;;  %v11978_v25 = vshll.u32 %v19182_v41, 16  ;;  %v19183_v54 = vpack.c.bf16 %v11921_v29, %v11921_v29 }
 0x4c0   : > { %v11959_v13 = vshrl.u32 %v19180_v14, 16  ;;  %v11962_v17 = vshll.u32 %v19180_v14, 16  ;;  %v19181_v18 = vpack.c.bf16 %v11919_v1, %v11919_v1  ;;  %v20734_v9 = vpop.f32.mrb[4].mxu0  ;;  %v18381_v1 = vld [vmem:[%s26820_s26 + $0x38] sm:$0xf] }
 0x4c1   : > { %v11977_v59 = vrot.slane %v11975_v8, 7  ;;  %v11983_v15 = vshrl.u32 %v19183_v54, 16  ;;  %v11986_v51 = vshll.u32 %v19183_v54, 16  ;;  %v21837_v50 = vadd.f32 %v21836_v53, %v20734_v9  ;;  %v11895_v33 = vpop.f32.mrb[5].mxu0  ;;  %v18383_v8 = vld [vmem:[%s26820_s26 + $0x3c] sm:$0x1] }
 0x4c2   : > { %v11961_v55 = vrot.slane %v11959_v13, 7  ;;  %v11967_v6 = vshrl.u32 %v19181_v18, 16  ;;  %v11970_v30 = vshll.u32 %v19181_v18, 16  ;;  %v21839_v39 = vadd.f32 %v21838_v2, %v11895_v33  ;;  %v20735_v4 = vpop.f32.mrb[6].mxu0  ;;  %v18375_v54 = vld [vmem:[%s26820_s26 + $0x2c] sm:$0x1] }
 0x4c3   : > { %v11980_v11 = vor.u32 %v11978_v25, %v11977_v59  ;;  %v11981_v32 = vrot.slane %v11977_v59, 4  ;;  %v11985_v48 = vrot.slane %v11983_v15, 7  ;;  %v11924_v62 = vmax.f32 %v21837_v50, 0.0  ;;  %v11898_v23 = vpop.f32.mrb[7].mxu0  ;;  %v18373_v25 = vld [vmem:[%s26820_s26 + $0x28] sm:$0xf] }
 0x4c4   : > { %v11964_v56 = vor.u32 %v11962_v17, %v11961_v55  ;;  %v11965_v34 = vrot.slane %v11961_v55, 4  ;;  %v11969_v47 = vrot.slane %v11967_v6, 7  ;;  %v11922_v40 = vmax.f32 %v21839_v39, 0.0 }
 0x4c5   : > { %v12061_v7 = vsel %vm26826_vm2, %v11980_v11, %v18365_v49  ;;  %v12064_v60 = vsel %vm26833_vm3, %v11981_v32, %v18367_v26  ;;  %v11988_v37 = vor.u32 %v11986_v51, %v11985_v48  ;;  %v11989_v43 = vrot.slane %v11985_v48, 4  ;;  %v18387_v11 = vld [vmem:[%s26820_s26 + $0x44] sm:$0x1]  ;;  %v18377_v32 = vld [vmem:[%s26820_s26 + $0x30] sm:$0xf] }
 0x4c6   : > { %18366 = vst [vmem:[%s26820_s26 + $0x18] sm:$0xf] %v12061_v7  ;;  %18368 = vst [vmem:[%s26820_s26 + $0x1c] sm:$0x1] %v12064_v60  ;;  %v12046_v22 = vsel %vm26826_vm2, %v11964_v56, %v18357_v5  ;;  %v12052_v19 = vsel %vm26833_vm3, %v11965_v34, %v18359_v44  ;;  %v11972_v45 = vor.u32 %v11970_v30, %v11969_v47  ;;  %v11973_v42 = vrot.slane %v11969_v47, 4 }
 0x4c7   : > { %18358 = vst [vmem:[%s26820_s26 + $0x8] sm:$0xf] %v12046_v22  ;;  %18360 = vst [vmem:[%s26820_s26 + $0xc] sm:$0x1] %v12052_v19  ;;  %v12067_v57 = vsel %vm26826_vm2, %v11988_v37, %v18369_v36  ;;  %v12070_v20 = vsel %vm26833_vm3, %v11989_v43, %v18371_v12  ;;  %v19186_v3 = vpack.c.bf16 %v11924_v62, %v11924_v62  ;;  %v18385_v30 = vld [vmem:[%s26820_s26 + $0x40] sm:$0xf] }
 0x4c8   : > { %v19184_v52 = vpack.c.bf16 %v11922_v40, %v11922_v40  ;;  %18370 = vst [vmem:[%s26820_s26 + $0x20] sm:$0xf] %v12067_v57  ;;  %18372 = vst [vmem:[%s26820_s26 + $0x24] sm:$0x1] %v12070_v20  ;;  %v12055_v61 = vsel %vm26826_vm2, %v11972_v45, %v18361_v28  ;;  %v12058_v16 = vsel %vm26833_vm3, %v11973_v42, %v18363_v35  ;;  %v18379_v48 = vld [vmem:[%s26820_s26 + $0x34] sm:$0x1] }
 0x4c9   : > { %v21841_v24 = vadd.f32 %v21840_v58, %v20735_v4  ;;  %v21843_v21 = vadd.f32 %v21842_v38, %v11898_v23  ;;  %18362 = vst [vmem:[%s26820_s26 + $0x10] sm:$0xf] %v12055_v61  ;;  %18364 = vst [vmem:[%s26820_s26 + $0x14] sm:$0x1] %v12058_v16  ;;  %v12007_v31 = vshrl.u32 %v19186_v3, 16  ;;  %v12010_v14 = vshll.u32 %v19186_v3, 16 }
 0x4ca   : > { %v11991_v41 = vshrl.u32 %v19184_v52, 16  ;;  %v11994_v10 = vshll.u32 %v19184_v52, 16 }
 0x4cb   : > { %v11925_v29 = vmax.f32 %v21841_v24, 0.0  ;;  %v11923_v53 = vmax.f32 %v21843_v21, 0.0  ;;  %v12009_v46 = vrot.slane %v12007_v31, 7 }
 0x4cc   : > { %v11993_v2 = vrot.slane %v11991_v41, 7 }
 0x4cd   : > { %v19187_v58 = vpack.c.bf16 %v11925_v29, %v11925_v29  ;;  %v19185_v63 = vpack.c.bf16 %v11923_v53, %v11923_v53  ;;  %v12012_v49 = vor.u32 %v12010_v14, %v12009_v46  ;;  %v12013_v26 = vrot.slane %v12009_v46, 4 }
 0x4ce   : > { %v11996_v13 = vor.u32 %v11994_v10, %v11993_v2  ;;  %v11997_v17 = vrot.slane %v11993_v2, 4 }
 0x4cf   : > { %v12015_v18 = vshrl.u32 %v19187_v58, 16  ;;  %v11999_v9 = vshrl.u32 %v19185_v63, 16  ;;  %v12085_v38 = vsel %vm26826_vm2, %v12012_v49, %v18381_v1  ;;  %v12088_v59 = vsel %vm26833_vm3, %v12013_v26, %v18383_v8 }
 0x4d0   : > { %v12073_v5 = vsel %vm26826_vm2, %v11996_v13, %v18373_v25  ;;  %v12076_v15 = vsel %vm26833_vm3, %v11997_v17, %v18375_v54  ;;  %18382 = vst [vmem:[%s26820_s26 + $0x38] sm:$0xf] %v12085_v38  ;;  %18384 = vst [vmem:[%s26820_s26 + $0x3c] sm:$0x1] %v12088_v59  ;;  %v12018_v50 = vshll.u32 %v19187_v58, 16  ;;  %v12002_v55 = vshll.u32 %v19185_v63, 16 }
 0x4d1   : > { %18374 = vst [vmem:[%s26820_s26 + $0x28] sm:$0xf] %v12073_v5  ;;  %18376 = vst [vmem:[%s26820_s26 + $0x2c] sm:$0x1] %v12076_v15  ;;  %v12017_v51 = vrot.slane %v12015_v18, 7  ;;  %v12001_v33 = vrot.slane %v11999_v9, 7 }
 0x4d3   : > { %v12020_v44 = vor.u32 %v12018_v50, %v12017_v51  ;;  %v12021_v6 = vrot.slane %v12017_v51, 4  ;;  %v12004_v39 = vor.u32 %v12002_v55, %v12001_v33  ;;  %v12005_v4 = vrot.slane %v12001_v33, 4 }
 0x4d5   : > { %v12091_v36 = vsel %vm26826_vm2, %v12020_v44, %v18385_v30  ;;  %v12094_v62 = vsel %vm26833_vm3, %v12021_v6, %v18387_v11  ;;  %v12079_v23 = vsel %vm26826_vm2, %v12004_v39, %v18377_v32  ;;  %v12082_v56 = vsel %vm26833_vm3, %v12005_v4, %v18379_v48 }
 0x4d6   : > { %18386 = vst [vmem:[%s26820_s26 + $0x40] sm:$0xf] %v12091_v36  ;;  %18388 = vst [vmem:[%s26820_s26 + $0x44] sm:$0x1] %v12094_v62 }
 0x4d7   : > { %18378 = vst [vmem:[%s26820_s26 + $0x30] sm:$0xf] %v12079_v23  ;;  %18380 = vst [vmem:[%s26820_s26 + $0x34] sm:$0x1] %v12082_v56 }
 0x4d8 PF: > { %p18389_p6 = scmp.ne.s32.totalorder %s23030_s16, 3 }
 0x4d9   : > { %s12100_s15 = sadd.s32 (!%p18389_p6), 2, %s23030_s16  ;;  %v23049_v0 = vmov (!%p18389_p6), 0  }
 0x4da   : > { %12099 = sbr.rel (%p18389_p6) target bundleno = 1272 (0x4f8), region = 72  ;;  %s12102_s11 = ssub.s32 (!%p18389_p6), 0, %s12100_s15 }
 0x4db   : > { %s18390_s21 = smin.u32 (!%p18389_p6), %s12102_s11, %s12100_s15  ;;  %p12101_p7 = scmp.lt.s32.totalorder (!%p18389_p6), %s12100_s15, 0 }
 0x4dc   : > { %22688 = sdivrem.u32 (!%p18389_p6), %s18390_s21, 3 }
 0x4e5   : > { %s22689_s28 = spop.drf %22688 }
 0x4e6   : > { %s12106_s30 = ssub.s32 0, %s22689_s28 }
 0x4e7   : > { %s29130_s30 = smov (!%p12101_p7, %s12106_s30), %s22689_s28 }
 0x4e8   : > { %p18392_p9 = scmp.lt.s32.totalorder %s29130_s30, 0  ;;  %s12112_s29 = sadd.s32 3, %s29130_s30 }
 0x4ea   : > { %s29132_s29 = smov (!%p18392_p9, %s12112_s29), %s29130_s30 }
 0x4eb   : > { %s19188_s22 = smul.u32 80, %s29132_s29 }
 0x4ed   : > { %s12116_s13 = scalar_lea.vmem [#allocation2], %s19188_s22 }
 0x4ee   : > { %12117 = vst [vmem:[%s12116_s13] sm:$0xf] %v23049_v0  ;;  %12118 = vst [vmem:[%s12116_s13 + $0x4] sm:$0x1] %v23049_v0 }
 0x4ef   : > { %12119 = vst [vmem:[%s12116_s13 + $0x8] sm:$0xf] %v23049_v0  ;;  %12120 = vst [vmem:[%s12116_s13 + $0xc] sm:$0x1] %v23049_v0 }
 0x4f0   : > { %12121 = vst [vmem:[%s12116_s13 + $0x10] sm:$0xf] %v23049_v0  ;;  %12122 = vst [vmem:[%s12116_s13 + $0x14] sm:$0x1] %v23049_v0 }
 0x4f1   : > { %12123 = vst [vmem:[%s12116_s13 + $0x18] sm:$0xf] %v23049_v0  ;;  %12124 = vst [vmem:[%s12116_s13 + $0x1c] sm:$0x1] %v23049_v0 }
 0x4f2   : > { %12125 = vst [vmem:[%s12116_s13 + $0x20] sm:$0xf] %v23049_v0  ;;  %12126 = vst [vmem:[%s12116_s13 + $0x24] sm:$0x1] %v23049_v0 }
 0x4f3   : > { %12127 = vst [vmem:[%s12116_s13 + $0x28] sm:$0xf] %v23049_v0  ;;  %12128 = vst [vmem:[%s12116_s13 + $0x2c] sm:$0x1] %v23049_v0 }
 0x4f4   : > { %12129 = vst [vmem:[%s12116_s13 + $0x30] sm:$0xf] %v23049_v0  ;;  %12130 = vst [vmem:[%s12116_s13 + $0x34] sm:$0x1] %v23049_v0 }
 0x4f5   : > { %12131 = vst [vmem:[%s12116_s13 + $0x38] sm:$0xf] %v23049_v0  ;;  %12132 = vst [vmem:[%s12116_s13 + $0x3c] sm:$0x1] %v23049_v0 }
 0x4f6   : > { %12133 = vst [vmem:[%s12116_s13 + $0x40] sm:$0xf] %v23049_v0  ;;  %12134 = vst [vmem:[%s12116_s13 + $0x44] sm:$0x1] %v23049_v0 }
 0x4f7   : > { %12135 = vst [vmem:[%s12116_s13 + $0x48] sm:$0xf] %v23049_v0  ;;  %12136 = vst [vmem:[%s12116_s13 + $0x4c] sm:$0x1] %v23049_v0 }
 0x4f8 PF: > { %v22690_v27 = vld [vmem:[%s28580_s6] sm:$0xff]   ;;  %s12145_s24 = ssub.s32 0, %s23030_s16  ;;  %v22692_v12 = vld [vmem:[%s28580_s6 + $0x8] sm:$0xff]   ;;  %v22694_v40 = vld [vmem:[%s28580_s6 + $0x10] sm:$0xff]   ;;  %s26921_s29 = sadd.s32 1, %s23030_s16  ;;  %vm12618_vm4 = vcmask 1042432  }
 0x4f9   : > { %v22691_v34 = vld [vmem:[%s28580_s6 + $0x380] sm:$0xff]   ;;  %20736 = vmatprep.subr.bf16.mxu1 %v22690_v27  ;;  %s18395_s25 = smin.u32 %s23030_s16, %s12145_s24  ;;  %v22693_v47 = vld [vmem:[%s28580_s6 + $0x388] sm:$0xff]   ;;  %v22695_v7 = vld [vmem:[%s28580_s6 + $0x390] sm:$0xff]   ;;  %s13713_s22 = ssub.s32 0, %s26921_s29  ;;  %vm12619_vm5 = vcmask 1046532   ;;  %vm16879_vm10 = vcmask 1043456  }
 0x4fa   : > { %21072 = vmatprep.subr.bf16.mxu0 %v22691_v34  ;;  %20737 = vmatpush3.bf16.msra.mxu1 %v22690_v27  ;;  %22937 = sdivrem.u32 %s18395_s25, 3  ;;  %v22696_v60 = vld [vmem:[%s28580_s6 + $0x18] sm:$0xff]   ;;  %s18636_s12 = smin.u32 %s13713_s22, %s26921_s29  ;;  %v22698_v43 = vld [vmem:[%s28580_s6 + $0x20] sm:$0xff]   ;;  %v22700_v35 = vld [vmem:[%s28580_s6 + $0x28] sm:$0xff]   ;;  %vm12341_vm7 = vsmask.f32 3328 }
 0x4fb   : > { %21073 = vmatpush3.bf16.msra.mxu0 %v22691_v34  ;;  %20738 = vmatprep.subr.bf16.mxu1 %v22692_v12  ;;  %v22697_v37 = vld [vmem:[%s28580_s6 + $0x398] sm:$0xff]   ;;  %22939 = sdivrem.u32 %s18636_s12, 3  ;;  %p12144_p10 = scmp.lt.s32.totalorder %s23030_s16, 0  ;;  %v22699_v28 = vld [vmem:[%s28580_s6 + $0x3a0] sm:$0xff]   ;;  %v22701_v22 = vld [vmem:[%s28580_s6 + $0x3a8] sm:$0xff]   ;;  %vm16866_vm11 = vcmask 64512  }
 0x4fc   : > { %21074 = vmatprep.subr.bf16.mxu0 %v22693_v47  ;;  %p13712_p12 = scmp.lt.s32.totalorder %s26921_s29, 0  ;;  %v22702_v19 = vld [vmem:[%s28580_s6 + $0x30] sm:$0xff]   ;;  %v22704_v20 = vld [vmem:[%s28580_s6 + $0x38] sm:$0xff]   ;;  %v22707_v24 = vld [vmem:[%s28580_s6 + $0x40] sm:$0xff]   ;;  %vm12342_vm8 = vsmask.f32 7440 }
 0x4fd   : > { %v22703_v45 = vld [vmem:[%s28580_s6 + $0x3b0] sm:$0xff]   ;;  %v22705_v61 = vld [vmem:[%s28580_s6 + $0x3b8] sm:$0xff]   ;;  %v26979_v31 = vld [vmem:[%s28580_s6 + $0x3c0] sm:$0xff]   ;;  %vm16972_vm12 = vcmask 125952  }
 0x4fe   : > { %20739 = vmatpush3.bf16.msra.mxu1 %v22692_v12  ;;  %v22710_v1 = vld [vmem:[%s28580_s6 + $0x48] sm:$0xff]   ;;  %vm27011_vm6 = vmor %vm12618_vm4, %vm12619_vm5  ;;  %v22712_v4 = vld [vmem:[%s28580_s6 + $0x50] sm:$0xff]  }
 0x4ff   : > { %21075 = vmatpush3.bf16.msra.mxu0 %v22693_v47  ;;  %20740 = vmatprep.subr.bf16.mxu1 %v22694_v40  ;;  %v22711_v56 = vld [vmem:[%s28580_s6 + $0x3c8] sm:$0xff]   ;;  %v22714_v0 = vld [vmem:[%s28580_s6 + $0x58] sm:$0xff]   ;;  %vm27189_vm9 = vmor %vm12341_vm7, %vm12342_vm8 }
 0x500   : > { %21076 = vmatprep.subr.bf16.mxu0 %v22695_v7  ;;  %v22934_v49 = vld [vmem:[%s28580_s6 + $0x370] sm:$0xff]  }
 0x502   : > { %20741 = vmatpush3.bf16.msra.mxu1 %v22694_v40 }
 0x503   : > { %21077 = vmatpush3.bf16.msra.mxu0 %v22695_v7  ;;  %20742 = vmatprep.subr.bf16.mxu1 %v22696_v60  ;;  %s22938_s20 = spop.drf %22937 }
 0x504   : > { %21078 = vmatprep.subr.bf16.mxu0 %v22697_v37  ;;  %s12149_s15 = ssub.s32 0, %s22938_s20  ;;  %s22940_s13 = spop.drf %22939 }
 0x505   : > { %s29134_s15 = smov (!%p12144_p10, %s12149_s15), %s22938_s20  ;;  %s13717_s10 = ssub.s32 0, %s22940_s13 }
 0x506   : > { %20743 = vmatpush3.bf16.msra.mxu1 %v22696_v60  ;;  %p18397_p11 = scmp.lt.s32.totalorder %s29134_s15, 0  ;;  %s12155_s28 = sadd.s32 3, %s29134_s15 }
 0x507   : > { %21079 = vmatpush3.bf16.msra.mxu0 %v22697_v37  ;;  %20744 = vmatprep.subr.bf16.mxu1 %v22698_v43  ;;  %s29138_s10 = smov (!%p13712_p12, %s13717_s10), %s22940_s13 }
 0x508   : > { %21080 = vmatprep.subr.bf16.mxu0 %v22699_v28  ;;  %s29136_s28 = smov (!%p18397_p11, %s12155_s28), %s29134_s15  ;;  %p18638_p13 = scmp.lt.s32.totalorder %s29138_s10, 0 }
 0x509   : > { %s19189_s24 = smul.u32 80, %s29136_s28  ;;  %s13723_s29 = sadd.s32 3, %s29138_s10 }
 0x50a   : > { %20745 = vmatpush3.bf16.msra.mxu1 %v22698_v43  ;;  %s29140_s29 = smov (!%p18638_p13, %s13723_s29), %s29138_s10  ;;  %s27507_s15 = sadd.s32 2, %s23030_s16 }
 0x50b   : > { %21081 = vmatpush3.bf16.msra.mxu0 %v22699_v28  ;;  %20746 = vmatprep.subr.bf16.mxu1 %v22700_v35  ;;  %s26951_s20 = scalar_lea.vmem [#allocation2], %s19189_s24  ;;  %s19190_s30 = smul.u32 80, %s29140_s29 }
 0x50c   : > { %21082 = vmatprep.subr.bf16.mxu0 %v22701_v22  ;;  %v26954_v42 = vld [vmem:[%s26951_s20] sm:$0xf]  ;;  %v26957_v57 = vld [vmem:[%s26951_s20 + $0x8] sm:$0xf]  ;;  %v26965_v52 = vld [vmem:[%s26951_s20 + $0x10] sm:$0xf] }
 0x50d   : > { %v18399_v3 = vcombine.low %v26954_v42, %v26957_v57  ;;  %v12345_v21 = vshrl.u32 %v26954_v42, 16  ;;  %v12348_v41 = vshll.u32 %v26954_v42, 16  ;;  %s26983_s19 = scalar_lea.vmem [#allocation2], %s19190_s30  ;;  %v26987_v46 = vld [vmem:[%s26951_s20 + $0x18] sm:$0xf]  ;;  %v12373_v14 = vshrl.u32 %v26965_v52, 16 }
 0x50e   : > { %20747 = vmatpush3.bf16.msra.mxu1 %v22700_v35  ;;  %v13729_v53 = vld [vmem:[%s26983_s19 + $0x4] sm:$0x1]  ;;  %v13730_v2 = vld [vmem:[%s26983_s19 + $0x8] sm:$0xf]  ;;  %v13731_v10 = vld [vmem:[%s26983_s19 + $0xc] sm:$0x1]  ;;  %v27007_v63 = vcombine.low %v26965_v52, %v26987_v46 }
 0x50f   : > { %21083 = vmatpush3.bf16.msra.mxu0 %v22701_v22  ;;  %20748 = vmatprep.subr.bf16.mxu1 %v22702_v19  ;;  %v26996_v8 = vld [vmem:[%s26983_s19 + $0x10] sm:$0xf]  ;;  %v13728_v25 = vld [vmem:[%s26983_s19] sm:$0xf]  ;;  %v27000_v54 = vld [vmem:[%s26983_s19 + $0x14] sm:$0x1] }
 0x510   : > { %21084 = vmatprep.subr.bf16.mxu0 %v22703_v45  ;;  %20752 = vmatprep.mubr.bf16.mxu1 %v18399_v3  ;;  %v27003_v58 = vld [vmem:[%s26983_s19 + $0x18] sm:$0xf]  ;;  %29015 = vst [vmem:[#allocation64_spill] sm:$0xff] %v27007_v63  ;;  %v27016_v26 = vld [vmem:[%s26983_s19 + $0x1c] sm:$0x1]  ;;  %v18696_v13 = vrot.slane %v13728_v25, 9 }
 0x511   : > { %29014 = vst [vmem:[#allocation63_spill] sm:$0xff] %v27003_v58  ;;  %v14186_v17 = vrot.slane %v13729_v53, 5  ;;  %v27020_v18 = vld [vmem:[%s26983_s19 + $0x20] sm:$0xf]  ;;  %v18697_v9 = vrot.slane %v13730_v2, 9  ;;  %v14190_v38 = vrot.slane %v13731_v10, 5 }
 0x512   : > { %20749 = vmatpush3.bf16.msra.mxu1 %v22702_v19  ;;  %29018 = vst [vmem:[#allocation65_spill] sm:$0xff] %v27020_v18  ;;  %v18698_v59 = vrot.slane %v26996_v8, 9  ;;  %v12376_v5 = vshll.u32 %v26965_v52, 16  ;;  %v27026_v15 = vld [vmem:[%s26983_s19 + $0x24] sm:$0x1]  ;;  %v27028_v51 = vrot.slane %v12345_v21, 4 }
 0x513   : > { %21085 = vmatpush3.bf16.msra.mxu0 %v22703_v45  ;;  %20750 = vmatprep.subr.bf16.mxu1 %v22704_v20  ;;  %v27032_v50 = vsel %vm27011_vm6, %v18696_v13, %v14186_v17  ;;  %v14194_v33 = vrot.slane %v27000_v54, 5  ;;  %v18699_v55 = vrot.slane %v27003_v58, 9  ;;  %v27036_v44 = vrot.slane %v12348_v41, 5  ;;  %v27063_v27 = vld [vmem:[%s26951_s20 + $0x20] sm:$0xf]  ;;  %s15276_s22 = ssub.s32 0, %s27507_s15 }
 0x514   : > { %21086 = vmatprep.subr.bf16.mxu0 %v22705_v61  ;;  %29019 = vst [vmem:[#allocation66_spill] sm:$0xff] %v27032_v50  ;;  %v27040_v6 = vsel %vm27011_vm6, %v18697_v9, %v14190_v38  ;;  %v14198_v30 = vrot.slane %v27016_v26, 5  ;;  %v18700_v39 = vrot.slane %v27020_v18, 9  ;;  %v12387_v48 = vshrl.u32 %v26987_v46, 16  ;;  %v27066_v34 = vld [vmem:[%s26951_s20 + $0x28] sm:$0xf]  ;;  %s18893_s13 = smin.u32 %s15276_s22, %s27507_s15 }
 0x515   : > { %29020 = vst [vmem:[#allocation67_spill] sm:$0xff] %v27040_v6  ;;  %v14195_v11 = vsel %vm27011_vm6, %v18698_v59, %v14194_v33  ;;  %v14202_v36 = vrot.slane %v27026_v15, 5  ;;  %v27074_v40 = vcombine.low %v27063_v27, %v27066_v34  ;;  %v27077_v7 = vld [vmem:[%s26983_s19 + $0x28] sm:$0xf]  ;;  %v27082_v43 = vld [vmem:[%s26983_s19 + $0x2c] sm:$0x1] }
 0x516   : > { %20751 = vmatpush3.bf16.msra.mxu1 %v22704_v20  ;;  %v14199_v62 = vsel %vm27011_vm6, %v18699_v55, %v14198_v30  ;;  %v18805_v23 = vcombine.low %v27040_v6, %v14195_v11  ;;  %29023 = vst [vmem:[#allocation70_spill] sm:$0xff] %v27077_v7  ;;  %v27085_v28 = vld [vmem:[%s26983_s19 + $0x30] sm:$0xf]  ;;  %v27088_v35 = vld [vmem:[%s26983_s19 + $0x34] sm:$0x1]  ;;  %v27090_v22 = vrot.slane %v12373_v14, 4 }
 0x517   : > { %21087 = vmatpush3.bf16.msra.mxu0 %v22705_v61  ;;  %20760 = vmatprep.subr.bf16.mxu1 %v22707_v24  ;;  %v27068_v12 = vcombine.low %v14195_v11, %v14199_v62  ;;  %v14203_v47 = vsel %vm27011_vm6, %v18700_v39, %v14202_v36  ;;  %29022 = vst [vmem:[#allocation69_spill] sm:$0xff] %v27074_v40  ;;  %29024 = vst [vmem:[#allocation71_spill] sm:$0xff] %v27085_v28  ;;  %v18701_v19 = vrot.slane %v27077_v7, 9  ;;  %v22713_v61 = vld [vmem:[%s28580_s6 + $0x3d0] sm:$0xff]   ;;  %v27113_v2 = vld [vmem:[%s26951_s20 + $0x38] sm:$0xf] }
 0x518   : > { %21096 = vmatprep.subr.bf16.mxu0 %v26979_v31  ;;  %21088 = vmatprep.mubr.bf16.mxu0 %v18805_v23  ;;  %v18806_v37 = vcombine.low %v14199_v62, %v14203_v47  ;;  %v14206_v45 = vrot.slane %v27082_v43, 5  ;;  %v18702_v20 = vrot.slane %v27085_v28, 9  ;;  %v12390_v3 = vshll.u32 %v26987_v46, 16  ;;  %v27105_v41 = vld [vmem:[%s26951_s20 + $0x30] sm:$0xf]  ;;  %22941 = sdivrem.u32 %s18893_s13, 3 }
 0x519   : > { %20753 = vmatmul.mubr.bf16.vlgmr.msra.gmra.mrb[0].mxu1 %v27007_v63  ;;  %29021 = vst [vmem:[#allocation68_spill] sm:$0xff] %v27068_v12  ;;  %v14210_v21 = vrot.slane %v27088_v35, 5  ;;  %v12378_v53 = vrot.slane %v12376_v5, 5  ;;  %v27107_v14 = vrot.slane %v12387_v48, 4  ;;  %v27116_v10 = vld [vmem:[%s26983_s19 + $0x38] sm:$0xf]  ;;  %v12351_v48 = vor.u32 %v27036_v44, %v27028_v51 }
 0x51a   : > { %20761 = vmatpush3.bf16.msra.mxu1 %v22707_v24  ;;  %20756 = vmatprep.mubr.bf16.mxu1 %v27074_v40  ;;  %v22716_v24 = vld [vmem:[%s28580_s6 + $0x60] sm:$0xff]   ;;  %29025 = vst [vmem:[#allocation72_spill] sm:$0xff] %v27116_v10  ;;  %v27129_v9 = vld [vmem:[%s26983_s19 + $0x3c] sm:$0x1]  ;;  %v18703_v33 = vrot.slane %v27116_v10, 9  ;;  %v12392_v39 = vrot.slane %v12390_v3, 5 }
 0x51b   : > { %20762 = vmatprep.subr.bf16.mxu1 %v22710_v1  ;;  %21089 = vmatmul.mubr.bf16.vlgmr.msra.gmra.mrb[0].mxu0 %v18806_v37  ;;  %v14211_v13 = vsel %vm27011_vm6, %v18702_v20, %v14210_v21  ;;  %v27132_v38 = vld [vmem:[%s26983_s19 + $0x40] sm:$0xf]  ;;  %v27135_v59 = vld [vmem:[%s26983_s19 + $0x44] sm:$0x1]  ;;  %v14214_v55 = vrot.slane %v27129_v9, 5  ;;  %v22718_v37 = vld [vmem:[%s28580_s6 + $0x68] sm:$0xff]  }
 0x51c   : > { %21097 = vmatpush3.bf16.msra.mxu0 %v26979_v31  ;;  %v27126_v31 = vcombine.low %v27105_v41, %v27113_v2  ;;  %29028 = vst [vmem:[#allocation75_spill] sm:$0xff] %v27132_v38  ;;  %v18788_v30 = vrot.slane %v27132_v38, 9  ;;  %v14682_v11 = vrot.slane %v27135_v59, 5  ;;  %v27150_v62 = vld [vmem:[%s26951_s20 + $0x4] sm:$0x1]  ;;  %v22721_v20 = vld [vmem:[%s28580_s6 + $0x70] sm:$0xff]  }
 0x51d   : > { %21098 = vmatprep.subr.bf16.mxu0 %v22711_v56  ;;  %v14215_v36 = vsel %vm27011_vm6, %v18703_v33, %v14214_v55  ;;  %v27153_v23 = vld [vmem:[%s26951_s20 + $0xc] sm:$0x1]  ;;  %v12354_v44 = vshll.u32 %v27150_v62, 16  ;;  %v12352_v3 = vrot.slane %v12351_v48, 4  ;;  %v27184_v32 = vld [vmem:[%s26951_s20 + $0x1c] sm:$0x1]  ;;  %v12393_v48 = vor.u32 %v12392_v39, %v27107_v14 }
 0x51e   : > { %20763 = vmatpush3.bf16.msra.mxu1 %v22710_v1  ;;  %v14207_v1 = vsel %vm27011_vm6, %v18701_v19, %v14206_v45  ;;  %29027 = vst [vmem:[#allocation74_spill] sm:$0xff] %v27126_v31  ;;  %v27161_v51 = vsel %vm27011_vm6, %v18788_v30, %v14682_v11  ;;  %v12368_v19 = vshll.u32 %v27153_v23, 16  ;;  %v22717_v45 = vld [vmem:[%s28580_s6 + $0x3e0] sm:$0xff]   ;;  %v27181_v11 = vld [vmem:[%s26951_s20 + $0x14] sm:$0x1]  ;;  %v22719_v14 = vld [vmem:[%s28580_s6 + $0x3e8] sm:$0xff]  }
 0x51f   : > { %20764 = vmatprep.subr.bf16.mxu1 %v22712_v4  ;;  %v27122_v17 = vcombine.low %v14203_v47, %v14207_v1  ;;  %v18807_v5 = vcombine.low %v14207_v1, %v14211_v13  ;;  %v12379_v47 = vor.u32 %v12378_v53, %v27090_v22  ;;  %v12362_v22 = vshll.u32 %v26957_v57, 16  ;;  %v22724_v39 = vld [vmem:[%s28580_s6 + $0x78] sm:$0xff]   ;;  %v27256_v60 = vld [vmem:[%s26951_s20 + $0x34] sm:$0x1]  ;;  %p15275_p0 = scmp.lt.s32.totalorder %s27507_s15, 0  ;;  %s19159_s10 = sshll.u32 %s23030_s16, 3 }
 0x520   : > { %21099 = vmatpush3.bf16.msra.mxu0 %v22711_v56  ;;  %v18808_v56 = vcombine.low %v14215_v36, %v27161_v51  ;;  %v12356_v21 = vrot.slane %v12354_v44, 5  ;;  %v27176_v53 = vcombine.low %v26996_v8, %v27003_v58  ;;  %v27178_v1 = vcombine.low %v14211_v13, %v14215_v36  ;;  %v27260_v29 = vld [vmem:[%s26951_s20 + $0x3c] sm:$0x1]  ;;  %v22914_v13 = vld [vmem:[%s28580_s6 + $0x6a0] sm:$0xff]   ;;  %s19160_s29 = sshll.u32 %s23034_s17, 5  ;;  %s16997_s16 = sshll.u32 %s23213_s18, 4  ;;  %s28507_s16 = int_to_ptr.vmem [resolvable:$true] %s16997_s16 }
 0x521   : > { %29026 = vst [vmem:[#allocation73_spill] sm:$0xff] %v27122_v17  ;;  %20757 = vmatmul.mubr.bf16.gmra.mrb[4].mxu1 %v27126_v31  ;;  %21100 = vmatprep.subr.bf16.mxu0 %v22713_v61  ;;  %v12364_v33 = vrot.slane %v12362_v22, 5  ;;  %v12370_v55 = vrot.slane %v12368_v19, 5  ;;  %v12380_v30 = vrot.slane %v12379_v47, 4  ;;  %v12396_v36 = vshll.u32 %v27184_v32, 16  ;;  %s22942_s28 = spop.drf %22941  ;;  %s16994_s25 = sadd.s32 %s19160_s29, %s19159_s10 }
 0x522   : > { %20765 = vmatpush3.bf16.msra.mxu1 %v22712_v4  ;;  %v22715_v4 = vld [vmem:[%s28580_s6 + $0x3d8] sm:$0xff]   ;;  %21092 = vmatprep.mubr.bf16.mxu0 %v18807_v5  ;;  %29029 = vst [vmem:[#allocation76_spill] sm:$0xff] %v27176_v53  ;;  %29030 = vst [vmem:[#allocation77_spill] sm:$0xff] %v27178_v1  ;;  %v12401_v44 = vshrl.u32 %v27063_v27, 16  ;;  %v12357_v22 = vsel %vm27189_vm9, %v12352_v3, %v12356_v21  ;;  %v12394_v19 = vrot.slane %v12393_v48, 4  ;;  %v12404_v25 = vshll.u32 %v27063_v27, 16 }
 0x523   : > { %20766 = vmatprep.subr.bf16.mxu1 %v22714_v0  ;;  %21093 = vmatmul.mubr.bf16.gmra.mrb[4].mxu0 %v18808_v56  ;;  %v22722_v21 = vld [vmem:[%s28580_s6 + $0x3f0] sm:$0xff]   ;;  %v13948_v48 = vshll.u32 %v27000_v54, 16  ;;  %v22730_v54 = vld [vmem:[%s28580_s6 + $0x88] sm:$0xff]   ;;  %v12443_v6 = vshrl.u32 %v27113_v2, 16  ;;  %s15280_s13 = ssub.s32 0, %s22942_s28  ;;  %s19161_s26 = sshll.u32 %s16994_s25, 6 }
 0x524   : > { %21101 = vmatpush3.bf16.msra.mxu0 %v22713_v61  ;;  %21112 = vmatprep.mubr.bf16.mxu0 %v27176_v53  ;;  %v12627_v53 = vrot.slane %v27153_v23, 5  ;;  %s29142_s13 = smov (!%p15275_p0, %s15280_s13), %s22942_s28  ;;  %s29105_s28 = sld [smem:[#allocation93_spill]] }
 0x525   : > { %21102 = vmatprep.subr.bf16.mxu0 %v22715_v4  ;;  %v12445_v50 = vrot.slane %v12443_v6, 4  ;;  %p18895_p1 = scmp.lt.s32.totalorder %s29142_s13, 0  ;;  %s15286_s24 = sadd.s32 3, %s29142_s13 }
 0x526   : > { %20767 = vmatpush3.bf16.msra.mxu1 %v22714_v0  ;;  %v12359_v0 = vshrl.u32 %v26957_v57, 16 }
 0x527   : > { %20768 = vmatprep.subr.bf16.mxu1 %v22716_v24  ;;  %s29144_s24 = smov (!%p18895_p1, %s15286_s24), %s29142_s13  ;;  %s23050_s13 = smov [#allocation3]  }
 0x528   : > { %v12361_v5 = vrot.slane %v12359_v0, 4  ;;  %21103 = vmatpush3.bf16.msra.mxu0 %v22715_v4  ;;  %s19191_s22 = smul.u32 80, %s29144_s24  ;;  %s22956_s15 = sshll.u32 %s23050_s13, 4  ;;  %s22957_s15 = int_to_ptr.vmem [resolvable:$false] %s22956_s15 }
 0x529   : > { %21104 = vmatprep.subr.bf16.mxu0 %v22717_v45  ;;  %s22958_s12 = scalar_lea.vmem %s22957_s15, 1024  ;;  %p22959_p6 = scmp.lt.s32.totalorder %s28507_s16, %s22957_s15 }
 0x52a   : > { %20769 = vmatpush3.bf16.msra.mxu1 %v22716_v24  ;;  %v12365_v61 = vor.u32 %v12364_v33, %v12361_v5  ;;  %v12382_v24 = vshll.u32 %v27181_v11, 16  ;;  %v12398_v5 = vrot.slane %v12396_v36, 5  ;;  %v12403_v33 = vrot.slane %v12401_v44, 4  ;;  %v22726_v36 = vld [vmem:[%s28580_s6 + $0x80] sm:$0xff]   ;;  %s27601_s27 = scalar_lea.vmem [#allocation2], %s19191_s22  ;;  %s22952_s22 = scalar_lea.vmem %s28507_s16, 512 }
 0x52b   : > { %20770 = vmatprep.subr.bf16.mxu1 %v22718_v37  ;;  %p22953_p2 = scmp.ne.s32.totalorder %s28507_s16, %s22952_s22  ;;  %p22960_p7 = scmp.lt.s32.totalorder %s22958_s12, %s22952_s22 }
 0x52c   : > { %v12366_v56 = vrot.slane %v12365_v61, 4  ;;  %v12384_v0 = vrot.slane %v12382_v24, 5  ;;  %v12415_v24 = vshrl.u32 %v27066_v34, 16  ;;  %21105 = vmatpush3.bf16.msra.mxu0 %v22717_v45  ;;  %v27229_v45 = vsel %vm27189_vm9, %v12394_v19, %v12398_v5  ;;  %v27243_v19 = vld [vmem:[%s26951_s20 + $0x2c] sm:$0x1] }
 0x52d   : > { %21106 = vmatprep.subr.bf16.mxu0 %v22719_v14  ;;  %v12432_v61 = vshll.u32 %v27105_v41, 16  ;;  %p22954_p4 = pnand %p22953_p2, %p23159_p3  ;;  %p22961_p9 = por %p22960_p7, %p22959_p6 }
 0x52e   : > { %20771 = vmatpush3.bf16.msra.mxu1 %v22718_v37  ;;  %v27208_v4 = vsel %vm27189_vm9, %v12366_v56, %v12370_v55  ;;  %v27212_v37 = vsel %vm27189_vm9, %v12380_v30, %v12384_v0  ;;  %v12406_v30 = vrot.slane %v12404_v25, 5  ;;  %v12418_v56 = vshll.u32 %v27066_v34, 16  ;;  %v22725_v25 = vld [vmem:[%s28580_s6 + $0x3f8] sm:$0xff]  }
 0x52f   : > { %20772 = vmatprep.subr.bf16.mxu1 %v22721_v20  ;;  %v18427_v55 = vcombine.low %v12357_v22, %v27208_v4  ;;  %v12429_v0 = vshrl.u32 %v27105_v41, 16  ;;  %v27240_v22 = vld [vmem:[%s26951_s20 + $0x24] sm:$0x1]  ;;  %p22955_p5 = pneg %p22954_p4 }
 0x530   : > { %v12407_v44 = vor.u32 %v12406_v30, %v12403_v33  ;;  %21107 = vmatpush3.bf16.msra.mxu0 %v22719_v14  ;;  %v12420_v33 = vrot.slane %v12418_v56, 5  ;;  %v12424_v30 = vshll.u32 %v27243_v19, 16  ;;  %v27251_v14 = vrot.slane %v13948_v48, 5 }
 0x531   : > { %20776 = vmatprep.mubr.bf16.mxu1 %v18427_v55  ;;  %21108 = vmatprep.subr.bf16.mxu0 %v22722_v21  ;;  %v12410_v55 = vshll.u32 %v27240_v22, 16  ;;  %v12431_v16 = vrot.slane %v12429_v0, 4  ;;  %v12438_v48 = vshll.u32 %v27256_v60, 16  ;;  %v12452_v0 = vshll.u32 %v27260_v29, 16  ;;  %p22962_p10 = pnand %p22961_p9, %p22955_p5 }
 0x532   : > { %20773 = vmatpush3.bf16.msra.mxu1 %v22721_v20  ;;  %v12417_v20 = vrot.slane %v12415_v24, 4  ;;  %v12408_v5 = vrot.slane %v12407_v44, 4  ;;  %v27247_v24 = vcombine.low %v27212_v37, %v27229_v45  ;;  %v12426_v56 = vrot.slane %v12424_v30, 5 }
 0x533   : > { %20774 = vmatprep.subr.bf16.mxu1 %v22724_v39  ;;  %v12412_v44 = vrot.slane %v12410_v55, 5  ;;  %v22731_v55 = vld [vmem:[%s28580_s6 + $0x408] sm:$0xff]   ;;  %v12440_v6 = vrot.slane %v12438_v48, 5  ;;  %v27307_v48 = vcombine.low %v27085_v28, %v27116_v10 }
 0x534   : > { %29033 = vst [vmem:[#allocation78_spill] sm:$0xff] %v27247_v24  ;;  %v12421_v3 = vor.u32 %v12420_v33, %v12417_v20  ;;  %21109 = vmatpush3.bf16.msra.mxu0 %v22722_v21  ;;  %v12446_v20 = vshll.u32 %v27113_v2, 16  ;;  %v22728_v33 = vld [vmem:[%s28580_s6 + $0x400] sm:$0xff]   ;;  %v22732_v21 = vld [vmem:[%s28580_s6 + $0x90] sm:$0xff]  }
 0x535   : > { %21110 = vmatprep.subr.bf16.mxu0 %v22725_v25  ;;  %29036 = vst [vmem:[#allocation81_spill] sm:$0xff] %v27307_v48 }
 0x536   : > { %20775 = vmatpush3.bf16.msra.mxu1 %v22724_v39  ;;  %v12422_v47 = vrot.slane %v12421_v3, 4  ;;  %v27273_v3 = vsel %vm27189_vm9, %v12408_v5, %v12412_v44  ;;  %v27286_v5 = vcombine.low %v27020_v18, %v27077_v7  ;;  %v12448_v44 = vrot.slane %v12446_v20, 5 }
 0x537   : > { %20784 = vmatprep.subr.bf16.mxu1 %v22726_v36  ;;  %v12623_v39 = vrot.slane %v27150_v62, 5  ;;  %v13939_v62 = vshrl.u32 %v26996_v8, 16 }
 0x538   : > { %v27279_v30 = vsel %vm27189_vm9, %v12422_v47, %v12426_v56  ;;  %29034 = vst [vmem:[#allocation79_spill] sm:$0xff] %v27286_v5  ;;  %21111 = vmatpush3.bf16.msra.mxu0 %v22725_v25  ;;  %v12454_v56 = vrot.slane %v12452_v0, 5  ;;  %v12449_v20 = vor.u32 %v12448_v44, %v12445_v50  ;;  %v13942_v0 = vshll.u32 %v26996_v8, 16 }
 0x539   : > { %20777 = vmatmul.mubr.bf16.vlgmr.msra.gmra.mrb[0].mxu1 %v27247_v24  ;;  %v27293_v47 = vcombine.low %v27273_v3, %v27279_v30  ;;  %21120 = vmatprep.subr.bf16.mxu0 %v22728_v33  ;;  %v13953_v24 = vshrl.u32 %v27003_v58, 16  ;;  %v13941_v31 = vrot.slane %v13939_v62, 4  ;;  %v29038_v62 = vshll.u32 %v27016_v26, 16 }
 0x53a   : > { %20785 = vmatpush3.bf16.msra.mxu1 %v22726_v36  ;;  %v12434_v36 = vrot.slane %v12432_v61, 5  ;;  %v12450_v50 = vrot.slane %v12449_v20, 4  ;;  %v13944_v40 = vrot.slane %v13942_v0, 5 }
 0x53b   : > { %20786 = vmatprep.subr.bf16.mxu1 %v22730_v54  ;;  %29035 = vst [vmem:[#allocation80_spill] sm:$0xff] %v27293_v47  ;;  %20780 = vmatprep.mubr.bf16.mxu1 %v27293_v47  ;;  %v13956_v47 = vshll.u32 %v27003_v58, 16  ;;  %v13964_v0 = vrot.slane %v29038_v62, 5  ;;  %v29041_v62 = vrot.slane %v26965_v52, 9 }
 0x53c   : > { %v12435_v61 = vor.u32 %v12434_v36, %v12431_v16  ;;  %v22734_v16 = vld [vmem:[%s28580_s6 + $0x98] sm:$0xff]   ;;  %v27300_v36 = vld [vmem:[%s26983_s19 + $0x48] sm:$0xf]  ;;  %21113 = vmatmul.mubr.bf16.vlgmr.msra.gmra.mrb[0].mxu0 %v27286_v5  ;;  %v13955_v5 = vrot.slane %v13953_v24, 4  ;;  %v13967_v24 = vshrl.u32 %v27020_v18, 16 }
 0x53d   : > { %21121 = vmatpush3.bf16.msra.mxu0 %v22728_v33  ;;  %v18833_v8 = vcombine.low %v27132_v38, %v27300_v36  ;;  %v27336_v33 = vsel %vm27189_vm9, %v12450_v50, %v12454_v56  ;;  %21116 = vmatprep.mubr.bf16.mxu0 %v27307_v48  ;;  %v13984_v56 = vshll.u32 %v27077_v7, 16  ;;  %v12631_v50 = vrot.slane %v27181_v11, 5 }
 0x53e   : > { %20787 = vmatpush3.bf16.msra.mxu1 %v22730_v54  ;;  %v12436_v25 = vrot.slane %v12435_v61, 4  ;;  %v18440_v54 = vrot.slane %v26957_v57, 9  ;;  %v29037_v61 = vrot.slane %v26954_v42, 9  ;;  %21122 = vmatprep.subr.bf16.mxu0 %v22731_v55  ;;  %v22733_v42 = vld [vmem:[%s28580_s6 + $0x410] sm:$0xff]  }
 0x53f   : > { %20788 = vmatprep.subr.bf16.mxu1 %v22732_v21 }
 0x540   : > { %v12624_v23 = vsel %vm27011_vm6, %v29037_v61, %v12623_v39  ;;  %v27319_v44 = vsel %vm27011_vm6, %v18440_v54, %v12627_v53  ;;  %v22736_v53 = vld [vmem:[%s28580_s6 + $0xa0] sm:$0xff]   ;;  %v27332_v39 = vsel %vm27189_vm9, %v12436_v25, %v12440_v6  ;;  %v13945_v54 = vor.u32 %v13944_v40, %v13941_v31 }
 0x541   : > { %v18463_v20 = vcombine.low %v12624_v23, %v27319_v44  ;;  %v13970_v61 = vshll.u32 %v27020_v18, 16  ;;  %v13969_v6 = vrot.slane %v13967_v24, 4  ;;  %v13981_v25 = vshrl.u32 %v27077_v7, 16  ;;  %21123 = vmatpush3.bf16.msra.mxu0 %v22731_v55 }
 0x542   : > { %20789 = vmatpush3.bf16.msra.mxu1 %v22732_v21  ;;  %v13958_v21 = vrot.slane %v13956_v47, 5  ;;  %v22735_v47 = vld [vmem:[%s28580_s6 + $0x418] sm:$0xff]   ;;  %v27351_v40 = vcombine.low %v27332_v39, %v27336_v33  ;;  %v13946_v26 = vrot.slane %v13945_v54, 4  ;;  %21124 = vmatprep.subr.bf16.mxu0 %v22733_v42  ;;  %v29039_v23 = vshll.u32 %v27026_v15, 16  ;;  %v22737_v15 = vld [vmem:[%s28580_s6 + $0x420] sm:$0xff]  }
 0x543   : > { %20790 = vmatprep.subr.bf16.mxu1 %v22734_v16  ;;  %v13972_v31 = vrot.slane %v13970_v61, 5  ;;  %v13983_v61 = vrot.slane %v13981_v25, 4 }
 0x544   : > { %v13959_v63 = vor.u32 %v13958_v21, %v13955_v5  ;;  %v22738_v5 = vld [vmem:[%s28580_s6 + $0xa8] sm:$0xff]   ;;  %v13978_v21 = vrot.slane %v29039_v23, 5  ;;  %20781 = vmatmul.mubr.bf16.gmra.mrb[4].mxu1 %v27351_v40  ;;  %v27366_v11 = vsel %vm27189_vm9, %v13946_v26, %v27251_v14  ;;  %21117 = vmatmul.mubr.bf16.gmra.mrb[4].mxu0 %v18833_v8  ;;  %v13986_v14 = vrot.slane %v13984_v56, 5 }
 0x545   : > { %29040 = vst [vmem:[#allocation82_spill] sm:$0xff] %v27366_v11  ;;  %v13973_v54 = vor.u32 %v13972_v31, %v13969_v6  ;;  %20800 = vmatprep.mubr.bf16.mxu1 %v18463_v20  ;;  %21125 = vmatpush3.bf16.msra.mxu0 %v22733_v42  ;;  %v18443_v31 = vrot.slane %v27063_v27, 9  ;;  %v29044_v8 = vshll.u32 %v27082_v43, 16  ;;  %v22740_v42 = vld [vmem:[%s28580_s6 + $0xb0] sm:$0xff]   ;;  %v29046_v43 = vrot.slane %v26987_v46, 9 }
 0x546   : > { %20791 = vmatpush3.bf16.msra.mxu1 %v22734_v16  ;;  %v13960_v55 = vrot.slane %v13959_v63, 4  ;;  %v12635_v16 = vrot.slane %v27184_v32, 5  ;;  %v27372_v63 = vsel %vm27011_vm6, %v29041_v62, %v12631_v50  ;;  %21126 = vmatprep.subr.bf16.mxu0 %v22735_v47  ;;  %v13987_v62 = vor.u32 %v13986_v14, %v13983_v61  ;;  %v22742_v61 = vld [vmem:[%s28580_s6 + $0x430] sm:$0xff]  }
 0x547   : > { %20792 = vmatprep.subr.bf16.mxu1 %v22736_v53  ;;  %v13974_v6 = vrot.slane %v13973_v54, 4  ;;  %v13992_v20 = vrot.slane %v29044_v8, 5  ;;  %v22739_v54 = vld [vmem:[%s28580_s6 + $0x428] sm:$0xff]   ;;  %v12643_v8 = vrot.slane %v27243_v19, 5  ;;  %v13998_v23 = vshll.u32 %v27085_v28, 16 }
 0x548   : > { %v27379_v32 = vsel %vm27189_vm9, %v13960_v55, %v13964_v0  ;;  %v27406_v56 = vsel %vm27011_vm6, %v29046_v43, %v12635_v16  ;;  %v12639_v55 = vrot.slane %v27240_v22, 5  ;;  %v18444_v16 = vrot.slane %v27066_v34, 9 }
 0x549   : > { %29042 = vst [vmem:[#allocation83_spill] sm:$0xff] %v27379_v32  ;;  %v27383_v26 = vcombine.low %v27366_v11, %v27379_v32  ;;  %v27399_v25 = vsel %vm27189_vm9, %v13974_v6, %v13978_v21  ;;  %v22744_v21 = vld [vmem:[%s28580_s6 + $0xb8] sm:$0xff]   ;;  %21127 = vmatpush3.bf16.msra.mxu0 %v22735_v47  ;;  %v13995_v43 = vshrl.u32 %v27085_v28, 16  ;;  %v14004_v14 = vshll.u32 %v27088_v35, 16 }
 0x54a   : > { %20793 = vmatpush3.bf16.msra.mxu1 %v22736_v53  ;;  %29045 = vst [vmem:[#allocation85_spill] sm:$0xff] %v27399_v25  ;;  %v27423_v22 = vsel %vm27011_vm6, %v18443_v31, %v12639_v55  ;;  %21128 = vmatprep.subr.bf16.mxu0 %v22737_v15  ;;  %v14009_v6 = vshrl.u32 %v27116_v10, 16  ;;  %v14974_v19 = vshrl.u32 %v27300_v36, 16  ;;  %v14012_v31 = vshll.u32 %v27116_v10, 16 }
 0x54b   : > { %29043 = vst [vmem:[#allocation84_spill] sm:$0xff] %v27383_v26  ;;  %20794 = vmatprep.subr.bf16.mxu1 %v22738_v5  ;;  %21136 = vmatprep.mubr.bf16.mxu0 %v27383_v26  ;;  %v13997_v47 = vrot.slane %v13995_v43, 4  ;;  %v13988_v55 = vrot.slane %v13987_v62, 4  ;;  %v14018_v53 = vshll.u32 %v27129_v9, 16  ;;  %v18445_v50 = vrot.slane %v27105_v41, 9  ;;  %v22746_v9 = vld [vmem:[%s28580_s6 + $0xc0] sm:$0xff]  }
 0x54c   : > { %v14011_v0 = vrot.slane %v14009_v6, 4  ;;  %v14006_v24 = vrot.slane %v14004_v14, 5  ;;  %v14014_v32 = vrot.slane %v14012_v31, 5  ;;  %v12647_v43 = vrot.slane %v27256_v60, 5  ;;  %v27739_v26 = vld [vmem:[%s27601_s27 + $0x4] sm:$0x1] }
 0x54d   : > { %21129 = vmatpush3.bf16.msra.mxu0 %v22737_v15  ;;  %v27445_v15 = vsel %vm27011_vm6, %v18444_v16, %v12643_v8  ;;  %v14519_v62 = vshrl.u32 %v27132_v38, 16  ;;  %v27459_v16 = vsel %vm27189_vm9, %v13988_v55, %v13992_v20  ;;  %v22748_v8 = vld [vmem:[%s28580_s6 + $0xc8] sm:$0xff]   ;;  %v14020_v31 = vrot.slane %v14018_v53, 5 }
 0x54e   : > { %20795 = vmatpush3.bf16.msra.mxu1 %v22738_v5  ;;  %v14000_v5 = vrot.slane %v13998_v23, 5  ;;  %21130 = vmatprep.subr.bf16.mxu0 %v22739_v54  ;;  %v14977_v23 = vshll.u32 %v27300_v36, 16  ;;  %v14015_v14 = vor.u32 %v14014_v32, %v14011_v0  ;;  %v27451_v60 = vsel %vm27011_vm6, %v18445_v50, %v12647_v43  ;;  %29047 = vst [vmem:[#allocation86_spill] sm:$0xff] %v27459_v16 }
 0x54f   : > { %20796 = vmatprep.subr.bf16.mxu1 %v22740_v42  ;;  %v14521_v32 = vrot.slane %v14519_v62, 4  ;;  %v18446_v55 = vrot.slane %v27113_v2, 9  ;;  %v12651_v53 = vrot.slane %v27260_v29, 5  ;;  %v13747_v29 = vld [vmem:[%s26983_s19 + $0x4c] sm:$0x1] }
 0x550   : > { %v14001_v35 = vor.u32 %v14000_v5, %v13997_v47  ;;  %v14528_v47 = vshll.u32 %v27135_v59, 16  ;;  %v22745_v5 = vld [vmem:[%s28580_s6 + $0x438] sm:$0xff]   ;;  %v27466_v59 = vcombine.low %v27372_v63, %v27406_v56  ;;  %v14016_v20 = vrot.slane %v14015_v14, 4 }
 0x551   : > { %21131 = vmatpush3.bf16.msra.mxu0 %v22739_v54  ;;  %v14979_v62 = vrot.slane %v14977_v23, 5  ;;  %v18867_v14 = vrot.slane %v27300_v36, 9  ;;  %v22750_v23 = vld [vmem:[%s28580_s6 + $0xd0] sm:$0xff]   ;;  %v27653_v54 = vld [vmem:[%s27601_s27] sm:$0xf] }
 0x552   : > { %20797 = vmatpush3.bf16.msra.mxu1 %v22740_v42  ;;  %v14522_v42 = vshll.u32 %v27132_v38, 16  ;;  %v14002_v6 = vrot.slane %v14001_v35, 4  ;;  %21132 = vmatprep.subr.bf16.mxu0 %v22742_v61  ;;  %v14530_v43 = vrot.slane %v14528_v47, 5  ;;  %v27484_v2 = vsel %vm27189_vm9, %v14016_v20, %v14020_v31  ;;  %v27673_v38 = vld [vmem:[%s27601_s27 + $0x24] sm:$0x1] }
 0x553   : > { %20798 = vmatprep.subr.bf16.mxu1 %v22744_v21  ;;  %29049 = vst [vmem:[#allocation88_spill] sm:$0xff] %v27484_v2  ;;  %v27497_v47 = vsel %vm27011_vm6, %v18446_v55, %v12651_v53  ;;  %v27518_v55 = vcombine.low %v27399_v25, %v27459_v16  ;;  %v22752_v53 = vld [vmem:[%s28580_s6 + $0xd8] sm:$0xff]   ;;  %v22777_v16 = vld [vmem:[%s28580_s6 + $0x130] sm:$0xff]  }
 0x554   : > { %v14524_v0 = vrot.slane %v14522_v42, 5  ;;  %v27470_v50 = vsel %vm27189_vm9, %v14002_v6, %v14006_v24  ;;  %v22747_v24 = vld [vmem:[%s28580_s6 + $0x440] sm:$0xff]  }
 0x555   : > { %29048 = vst [vmem:[#allocation87_spill] sm:$0xff] %v27470_v50  ;;  %21133 = vmatpush3.bf16.msra.mxu0 %v22742_v61  ;;  %v14983_v61 = vshll.u32 %v13747_v29, 16  ;;  %29051 = vst [vmem:[#allocation90_spill] sm:$0xff] %v27518_v55 }
 0x556   : > { %20799 = vmatpush3.bf16.msra.mxu1 %v22744_v21  ;;  %v14525_v35 = vor.u32 %v14524_v0, %v14521_v32  ;;  %v14976_v21 = vrot.slane %v14974_v19, 4  ;;  %v27490_v19 = vcombine.low %v27423_v22, %v27445_v15  ;;  %21134 = vmatprep.subr.bf16.mxu0 %v22745_v5  ;;  %v22749_v0 = vld [vmem:[%s28580_s6 + $0x448] sm:$0xff]   ;;  %v22772_v32 = vld [vmem:[%s28580_s6 + $0x120] sm:$0xff]  }
 0x557   : > { %20808 = vmatprep.subr.bf16.mxu1 %v22746_v9 }
 0x558   : > { %v14526_v6 = vrot.slane %v14525_v35, 4  ;;  %v14980_v36 = vor.u32 %v14979_v62, %v14976_v21  ;;  %v27535_v21 = vcombine.low %v27470_v50, %v27484_v2  ;;  %v22751_v62 = vld [vmem:[%s28580_s6 + $0x450] sm:$0xff]  }
 0x559   : > { %20801 = vmatmul.mubr.bf16.vlgmr.msra.gmra.mrb[0].mxu1 %v27466_v59  ;;  %21135 = vmatpush3.bf16.msra.mxu0 %v22745_v5  ;;  %v27525_v5 = vcombine.low %v27451_v60, %v27497_v47 }
 0x55a   : > { %20809 = vmatpush3.bf16.msra.mxu1 %v22746_v9  ;;  %v27501_v31 = vsel %vm27189_vm9, %v14526_v6, %v14530_v43  ;;  %20804 = vmatprep.mubr.bf16.mxu1 %v27490_v19  ;;  %v15131_v9 = vrot.slane %v13747_v29, 5  ;;  %v14981_v35 = vrot.slane %v14980_v36, 4  ;;  %v14985_v43 = vrot.slane %v14983_v61, 5  ;;  %29052 = vst [vmem:[#allocation91_spill] sm:$0xff] %v27535_v21  ;;  %v22754_v29 = vld [vmem:[%s28580_s6 + $0xe0] sm:$0xff]   ;;  %v22757_v61 = vld [vmem:[%s28580_s6 + $0x468] sm:$0xff]  }
 0x55b   : > { %20810 = vmatprep.subr.bf16.mxu1 %v22748_v8  ;;  %29050 = vst [vmem:[#allocation89_spill] sm:$0xff] %v27501_v31  ;;  %21144 = vmatprep.subr.bf16.mxu0 %v22747_v24  ;;  %v29053_v6 = vcombine.low %v26957_v57, %v26965_v52  ;;  %v22755_v57 = vld [vmem:[%s28580_s6 + $0x460] sm:$0xff]   ;;  %v22758_v52 = vld [vmem:[%s28580_s6 + $0xf0] sm:$0xff]  }
 0x55c   : > { %v27514_v20 = vsel %vm27011_vm6, %v18867_v14, %v15131_v9  ;;  %21137 = vmatmul.mubr.bf16.vlgmr.msra.gmra.mrb[0].mxu0 %v27518_v55  ;;  %v22753_v14 = vld [vmem:[%s28580_s6 + $0x458] sm:$0xff]  }
 0x55d   : > { %21145 = vmatpush3.bf16.msra.mxu0 %v22747_v24  ;;  %21140 = vmatprep.mubr.bf16.mxu0 %v27535_v21  ;;  %v14986_v24 = vsel %vm27189_vm9, %v14981_v35, %v14985_v43  ;;  %v22760_v9 = vld [vmem:[%s28580_s6 + $0xf8] sm:$0xff]   ;;  %v22766_v43 = vld [vmem:[%s28580_s6 + $0x108] sm:$0xff]  }
 0x55e   : > { %20811 = vmatpush3.bf16.msra.mxu1 %v22748_v8  ;;  %21146 = vmatprep.subr.bf16.mxu0 %v22749_v0  ;;  %v18858_v36 = vcombine.low %v27501_v31, %v14986_v24  ;;  %v22761_v35 = vld [vmem:[%s28580_s6 + $0x478] sm:$0xff]   ;;  %v22768_v24 = vld [vmem:[%s28580_s6 + $0x110] sm:$0xff]  }
 0x55f   : > { %20812 = vmatprep.subr.bf16.mxu1 %v22750_v23 }
 0x561   : > { %20805 = vmatmul.mubr.bf16.gmra.mrb[4].mxu1 %v27525_v5  ;;  %21147 = vmatpush3.bf16.msra.mxu0 %v22749_v0  ;;  %v22759_v0 = vld [vmem:[%s28580_s6 + $0x470] sm:$0xff]  }
 0x562   : > { %20813 = vmatpush3.bf16.msra.mxu1 %v22750_v23  ;;  %20824 = vmatprep.mubr.bf16.mxu1 %v29053_v6  ;;  %v22756_v23 = vld [vmem:[%s28580_s6 + $0xe8] sm:$0xff]   ;;  %v29055_v6 = vcombine.low %v27066_v34, %v27105_v41  ;;  %v22770_v41 = vld [vmem:[%s28580_s6 + $0x118] sm:$0xff]  }
 0x563   : > { %20814 = vmatprep.subr.bf16.mxu1 %v22752_v53  ;;  %21148 = vmatprep.subr.bf16.mxu0 %v22751_v62  ;;  %v22767_v34 = vld [vmem:[%s28580_s6 + $0x488] sm:$0xff]  }
 0x564   : > { %21141 = vmatmul.mubr.bf16.gmra.mrb[4].mxu0 %v18858_v36  ;;  %v22944_v36 = vld [vmem:[%s26951_s20 + $0x38] sm:$0xf] }
 0x565   : > { %21149 = vmatpush3.bf16.msra.mxu0 %v22751_v62  ;;  %21160 = vmatprep.mubr.bf16.mxu0 %v27068_v12  ;;  %v29054_v62 = vcombine.low %v26987_v46, %v27063_v27  ;;  %v27599_v27 = vld [vmem:[%s26951_s20 + $0x40] sm:$0xf] }
 0x566   : > { %20815 = vmatpush3.bf16.msra.mxu1 %v22752_v53  ;;  %21150 = vmatprep.subr.bf16.mxu0 %v22753_v14  ;;  %v22763_v53 = vld [vmem:[%s28580_s6 + $0x100] sm:$0xff]  }
 0x567   : > { %20816 = vmatprep.subr.bf16.mxu1 %v22754_v29 }
 0x569   : > { %21151 = vmatpush3.bf16.msra.mxu0 %v22753_v14  ;;  %v27595_v14 = vld [vmem:[%s26983_s19 + $0x4] sm:$0x1] }
 0x56a   : > { %20817 = vmatpush3.bf16.msra.mxu1 %v22754_v29  ;;  %21152 = vmatprep.subr.bf16.mxu0 %v22755_v57  ;;  %v22764_v29 = vld [vmem:[%s28580_s6 + $0x480] sm:$0xff]  }
 0x56b   : > { %20818 = vmatprep.subr.bf16.mxu1 %v22756_v23 }
 0x56d   : > { %21153 = vmatpush3.bf16.msra.mxu0 %v22755_v57  ;;  %v18494_v57 = vcombine.low %v22944_v36, %v27599_v27  ;;  %v22774_v36 = vld [vmem:[%s28580_s6 + $0x128] sm:$0xff]  }
 0x56e   : > { %20819 = vmatpush3.bf16.msra.mxu1 %v22756_v23  ;;  %21154 = vmatprep.subr.bf16.mxu0 %v22757_v61  ;;  %v27604_v23 = vld [vmem:[%s27601_s27 + $0x18] sm:$0xf] }
 0x56f   : > { %20820 = vmatprep.subr.bf16.mxu1 %v22758_v52 }
 0x571   : > { %21155 = vmatpush3.bf16.msra.mxu0 %v22757_v61  ;;  %v15519_v61 = vshll.u32 %v27604_v23, 16 }
 0x572   : > { %20821 = vmatpush3.bf16.msra.mxu1 %v22758_v52  ;;  %21156 = vmatprep.subr.bf16.mxu0 %v22759_v0  ;;  %v15516_v52 = vshrl.u32 %v27604_v23, 16 }
 0x573   : > { %20822 = vmatprep.subr.bf16.mxu1 %v22760_v9 }
 0x575   : > { %21157 = vmatpush3.bf16.msra.mxu0 %v22759_v0  ;;  %v27620_v0 = vld [vmem:[%s27601_s27 + $0x20] sm:$0xf] }
 0x576   : > { %20823 = vmatpush3.bf16.msra.mxu1 %v22760_v9  ;;  %21158 = vmatprep.subr.bf16.mxu0 %v22761_v35  ;;  %v27617_v9 = vld [vmem:[%s27601_s27 + $0x8] sm:$0xf]  ;;  %v15533_v46 = vshll.u32 %v27620_v0, 16 }
 0x577   : > { %20832 = vmatprep.subr.bf16.mxu1 %v22763_v53  ;;  %v15488_v42 = vshrl.u32 %v27617_v9, 16  ;;  %v18913_v8 = vcombine.low %v27653_v54, %v27617_v9  ;;  %v15491_v31 = vshll.u32 %v27617_v9, 16 }
 0x579   : > { %20825 = vmatmul.mubr.bf16.vlgmr.msra.gmra.mrb[0].mxu1 %v29054_v62  ;;  %21159 = vmatpush3.bf16.msra.mxu0 %v22761_v35  ;;  %v27627_v35 = vld [vmem:[%s27601_s27 + $0x10] sm:$0xf]  ;;  %v15518_v62 = vrot.slane %v15516_v52, 4  ;;  %v12959_v52 = vshll.u32 %v27599_v27, 16 }
 0x57a   : > { %20833 = vmatpush3.bf16.msra.mxu1 %v22763_v53  ;;  %20828 = vmatprep.mubr.bf16.mxu1 %v29055_v6  ;;  %v22769_v53 = vld [vmem:[%s28580_s6 + $0x490] sm:$0xff]   ;;  %v15521_v6 = vrot.slane %v15519_v61, 5  ;;  %v22771_v61 = vld [vmem:[%s28580_s6 + $0x498] sm:$0xff]   ;;  %v15502_v2 = vshrl.u32 %v27627_v35, 16 }
 0x57b   : > { %20834 = vmatprep.subr.bf16.mxu1 %v22766_v43  ;;  %21168 = vmatprep.subr.bf16.mxu0 %v22764_v29  ;;  %v12961_v11 = vrot.slane %v12959_v52, 5 }
 0x57c   : > { %21161 = vmatmul.mubr.bf16.vlgmr.msra.gmra.mrb[0].mxu0 %v27122_v17 }
 0x57d   : > { %21169 = vmatpush3.bf16.msra.mxu0 %v22764_v29  ;;  %21164 = vmatprep.mubr.bf16.mxu0 %v27178_v1  ;;  %v29056_v29 = vcombine.low %v27208_v4, %v27212_v37  ;;  %v15522_v4 = vor.u32 %v15521_v6, %v15518_v62  ;;  %v15505_v62 = vshll.u32 %v27627_v35, 16  ;;  %v15535_v6 = vrot.slane %v15533_v46, 5 }
 0x57e   : > { %20835 = vmatpush3.bf16.msra.mxu1 %v22766_v43  ;;  %v27630_v43 = vld [vmem:[%s27601_s27 + $0x1c] sm:$0x1]  ;;  %21170 = vmatprep.subr.bf16.mxu0 %v22767_v34  ;;  %v15490_v46 = vrot.slane %v15488_v42, 4  ;;  %v18956_v1 = vrot.slane %v27604_v23, 9 }
 0x57f   : > { %20836 = vmatprep.subr.bf16.mxu1 %v22768_v24  ;;  %v15525_v37 = vshll.u32 %v27630_v43, 16  ;;  %v15507_v10 = vrot.slane %v15505_v62, 5  ;;  %v22780_v42 = vld [vmem:[%s28580_s6 + $0x138] sm:$0xff]   ;;  %v15761_v17 = vrot.slane %v27630_v43, 5  ;;  %v22784_v43 = vld [vmem:[%s28580_s6 + $0x4c0] sm:$0xff]  }
 0x581   : > { %20829 = vmatmul.mubr.bf16.gmra.mrb[4].mxu1 %v18494_v57  ;;  %v15530_v57 = vshrl.u32 %v27620_v0, 16  ;;  %21171 = vmatpush3.bf16.msra.mxu0 %v22767_v34  ;;  %v22773_v34 = vld [vmem:[%s28580_s6 + $0x4a0] sm:$0xff]   ;;  %v15527_v50 = vrot.slane %v15525_v37, 5  ;;  %v15504_v37 = vrot.slane %v15502_v2, 4 }
 0x582   : > { %20837 = vmatpush3.bf16.msra.mxu1 %v22768_v24  ;;  %20848 = vmatprep.mubr.bf16.mxu1 %v29056_v29  ;;  %v12956_v24 = vshrl.u32 %v27599_v27, 16 }
 0x583   : > { %20838 = vmatprep.subr.bf16.mxu1 %v22770_v41  ;;  %21172 = vmatprep.subr.bf16.mxu0 %v22769_v53  ;;  %v15532_v29 = vrot.slane %v15530_v57, 4  ;;  %v15523_v57 = vrot.slane %v15522_v4, 4  ;;  %v15493_v4 = vrot.slane %v15491_v31, 5 }
 0x584   : > { %v12958_v25 = vrot.slane %v12956_v24, 4  ;;  %v22775_v24 = vld [vmem:[%s28580_s6 + $0x4a8] sm:$0xff]  }
 0x585   : > { %21173 = vmatpush3.bf16.msra.mxu0 %v22769_v53  ;;  %v27678_v53 = vld [vmem:[%s27601_s27 + $0xc] sm:$0x1]  ;;  %v27691_v31 = vsel %vm27189_vm9, %v15523_v57, %v15527_v50  ;;  %v22778_v57 = vld [vmem:[%s28580_s6 + $0x4b0] sm:$0xff]  }
 0x586   : > { %20839 = vmatpush3.bf16.msra.mxu1 %v22770_v41  ;;  %v29057_v41 = vcombine.low %v27161_v51, %v27514_v20  ;;  %21174 = vmatprep.subr.bf16.mxu0 %v22771_v61  ;;  %v15536_v51 = vor.u32 %v15535_v6, %v15532_v29  ;;  %v22945_v20 = vld [vmem:[%s26983_s19] sm:$0xf]  ;;  %v22946_v29 = vld [vmem:[%s26983_s19 + $0x8] sm:$0xf]  ;;  %v15497_v7 = vshll.u32 %v27678_v53, 16 }
 0x587   : > { %20840 = vmatprep.subr.bf16.mxu1 %v22772_v32  ;;  %v13914_v52 = vshll.u32 %v22945_v20, 16  ;;  %v13925_v62 = vshrl.u32 %v22946_v29, 16  ;;  %v13928_v6 = vshll.u32 %v22946_v29, 16 }
 0x588   : > { %21165 = vmatmul.mubr.bf16.gmra.mrb[4].mxu0 %v29057_v41  ;;  %v13911_v41 = vshrl.u32 %v22945_v20, 16  ;;  %v15537_v28 = vrot.slane %v15536_v51, 4  ;;  %v27707_v20 = vld [vmem:[%s26951_s20 + $0x44] sm:$0x1] }
 0x589   : > { %21184 = vmatprep.mubr.bf16.mxu0 %v18913_v8  ;;  %21175 = vmatpush3.bf16.msra.mxu0 %v22771_v61  ;;  %v27687_v8 = vld [vmem:[%s27601_s27 + $0x14] sm:$0x1]  ;;  %v12962_v61 = vor.u32 %v12961_v11, %v12958_v25  ;;  %v15494_v11 = vor.u32 %v15493_v4, %v15490_v46  ;;  %v15508_v25 = vor.u32 %v15507_v10, %v15504_v37  ;;  %v27716_v46 = vrot.slane %v13925_v62, 4  ;;  %v27722_v37 = vld [vmem:[%s27601_s27 + $0x28] sm:$0xf] }
 0x58a   : > { %20841 = vmatpush3.bf16.msra.mxu1 %v22772_v32  ;;  %v15539_v32 = vshll.u32 %v27673_v38, 16  ;;  %21176 = vmatprep.subr.bf16.mxu0 %v22773_v34  ;;  %v13913_v50 = vrot.slane %v13911_v41, 4  ;;  %v13916_v41 = vrot.slane %v13914_v52, 5  ;;  %v27718_v10 = vrot.slane %v13928_v6, 5  ;;  %v22781_v52 = vld [vmem:[%s28580_s6 + $0x4b8] sm:$0xff]  }
 0x58b   : > { %20842 = vmatprep.subr.bf16.mxu1 %v22774_v36  ;;  %v12963_v51 = vrot.slane %v12962_v61, 4  ;;  %v15477_v4 = vshll.u32 %v27653_v54, 16  ;;  %v22786_v61 = vld [vmem:[%s28580_s6 + $0x148] sm:$0xff]   ;;  %v15495_v62 = vrot.slane %v15494_v11, 4  ;;  %v15499_v6 = vrot.slane %v15497_v7, 5 }
 0x58c   : > { %v15541_v2 = vrot.slane %v15539_v32, 5  ;;  %v15511_v32 = vshll.u32 %v27687_v8, 16  ;;  %v15509_v29 = vrot.slane %v15508_v25, 4  ;;  %v13917_v21 = vor.u32 %v13916_v41, %v13913_v50 }
 0x58d   : > { %21177 = vmatpush3.bf16.msra.mxu0 %v22773_v34  ;;  %v27726_v34 = vld [vmem:[%s27601_s27 + $0x30] sm:$0xf]  ;;  %v29058_v7 = vcombine.low %v27229_v45, %v27273_v3  ;;  %v27750_v50 = vsel %vm27011_vm6, %v18956_v1, %v15761_v17  ;;  %v15765_v11 = vrot.slane %v27673_v38, 5  ;;  %v27758_v3 = vsel %vm27189_vm9, %v15495_v62, %v15499_v6 }
 0x58e   : > { %20843 = vmatpush3.bf16.msra.mxu1 %v22774_v36  ;;  %v27695_v36 = vld [vmem:[%s26983_s19 + $0xc] sm:$0x1]  ;;  %v27701_v18 = vsel %vm27189_vm9, %v15537_v28, %v15541_v2  ;;  %v22782_v28 = vld [vmem:[%s28580_s6 + $0x140] sm:$0xff]   ;;  %21178 = vmatprep.subr.bf16.mxu0 %v22775_v24  ;;  %v15474_v2 = vshrl.u32 %v27653_v54, 16  ;;  %v15513_v58 = vrot.slane %v15511_v32, 5  ;;  %v19007_v12 = vcombine.low %v27722_v37, %v27726_v34  ;;  %v22788_v45 = vld [vmem:[%s28580_s6 + $0x150] sm:$0xff]  }
 0x58f   : > { %20844 = vmatprep.subr.bf16.mxu1 %v22777_v16  ;;  %v13918_v25 = vrot.slane %v13917_v21, 4  ;;  %v29059_v17 = vcombine.low %v27279_v30, %v27332_v39  ;;  %v29060_v32 = vshll.u32 %v27595_v14, 16  ;;  %v27781_v21 = vcombine.low %v27627_v35, %v27604_v23 }
 0x590   : > { %v15476_v48 = vrot.slane %v15474_v2, 4  ;;  %v15483_v39 = vshll.u32 %v27739_v26, 16  ;;  %v15547_v62 = vshll.u32 %v27722_v37, 16  ;;  %v15558_v6 = vshrl.u32 %v27726_v34, 16 }
 0x591   : > { %21179 = vmatpush3.bf16.msra.mxu0 %v22775_v24  ;;  %v15479_v24 = vrot.slane %v15477_v4, 5 }
 0x592   : > { %20845 = vmatpush3.bf16.msra.mxu1 %v22777_v16  ;;  %v12965_v16 = vshll.u32 %v27707_v20, 16  ;;  %21180 = vmatprep.subr.bf16.mxu0 %v22778_v57 }
 0x593   : > { %20846 = vmatprep.subr.bf16.mxu1 %v22780_v42  ;;  %v15480_v30 = vor.u32 %v15479_v24, %v15476_v48  ;;  %v22790_v48 = vld [vmem:[%s28580_s6 + $0x158] sm:$0xff]  }
 0x594   : > { %v12967_v55 = vrot.slane %v12965_v16, 5  ;;  %v15485_v16 = vrot.slane %v15483_v39, 5 }
 0x595   : > { %21181 = vmatpush3.bf16.msra.mxu0 %v22778_v57  ;;  %v27762_v57 = vsel %vm27189_vm9, %v15509_v29, %v15513_v58  ;;  %v13931_v58 = vor.u32 %v27718_v10, %v27716_v46  ;;  %v29061_v29 = vshll.u32 %v27695_v36, 16  ;;  %v27800_v46 = vcombine.low %v27620_v0, %v27722_v37  ;;  %v22789_v36 = vld [vmem:[%s28580_s6 + $0x4d0] sm:$0xff]   ;;  %v22792_v10 = vld [vmem:[%s28580_s6 + $0x160] sm:$0xff]  }
 0x596   : > { %20847 = vmatpush3.bf16.msra.mxu1 %v22780_v42  ;;  %v18957_v42 = vrot.slane %v27620_v0, 9  ;;  %21182 = vmatprep.subr.bf16.mxu0 %v22781_v52  ;;  %v27769_v38 = vsel %vm27189_vm9, %v12963_v51, %v12967_v55  ;;  %v22787_v51 = vld [vmem:[%s28580_s6 + $0x4c8] sm:$0xff]   ;;  %v19033_v14 = vcombine.low %v27758_v3, %v27762_v57  ;;  %v15481_v4 = vrot.slane %v15480_v30, 4 }
 0x597   : > { %20856 = vmatprep.subr.bf16.mxu1 %v22782_v28  ;;  %v13936_v41 = vrot.slane %v29061_v29, 5  ;;  %v18522_v2 = vcombine.low %v27336_v33, %v27769_v38  ;;  %v27846_v29 = vld [vmem:[%s27601_s27 + $0x34] sm:$0x1] }
 0x598   : > { %v27773_v1 = vsel %vm27011_vm6, %v18957_v42, %v15765_v11  ;;  %v27821_v42 = vld [vmem:[%s27601_s27 + $0x38] sm:$0xf] }
 0x599   : > { %20849 = vmatmul.mubr.bf16.vlgmr.msra.gmra.mrb[0].mxu1 %v29058_v7  ;;  %v19063_v55 = vcombine.low %v27750_v50, %v27773_v1  ;;  %21183 = vmatpush3.bf16.msra.mxu0 %v22781_v52  ;;  %v13932_v52 = vrot.slane %v13931_v58, 4  ;;  %v15561_v7 = vshll.u32 %v27726_v34, 16  ;;  %v15560_v58 = vrot.slane %v15558_v6, 4  ;;  %v22798_v6 = vld [vmem:[%s28580_s6 + $0x4f0] sm:$0xff]  }
 0x59a   : > { %20857 = vmatpush3.bf16.msra.mxu1 %v22782_v28  ;;  %20852 = vmatprep.mubr.bf16.mxu1 %v29059_v17  ;;  %v13922_v28 = vrot.slane %v29060_v32, 5  ;;  %v27837_v17 = vcombine.low %v27726_v34, %v27821_v42 }
 0x59b   : > { %20858 = vmatprep.subr.bf16.mxu1 %v22786_v61  ;;  %21192 = vmatprep.subr.bf16.mxu0 %v22784_v43  ;;  %v27817_v24 = vsel %vm27189_vm9, %v13932_v52, %v13936_v41  ;;  %v15563_v30 = vrot.slane %v15561_v7, 5  ;;  %v22793_v41 = vld [vmem:[%s28580_s6 + $0x4e0] sm:$0xff]  }
 0x59c   : > { %21185 = vmatmul.mubr.bf16.vlgmr.msra.gmra.mrb[0].mxu0 %v27781_v21  ;;  %v13923_v33 = vsel %vm27189_vm9, %v13918_v25, %v13922_v28  ;;  %v22794_v25 = vld [vmem:[%s28580_s6 + $0x168] sm:$0xff]   ;;  %v15549_v28 = vrot.slane %v15547_v62, 5  ;;  %v22802_v7 = vld [vmem:[%s28580_s6 + $0x180] sm:$0xff]  }
 0x59d   : > { %21193 = vmatpush3.bf16.msra.mxu0 %v22784_v43  ;;  %21188 = vmatprep.mubr.bf16.mxu0 %v27800_v46  ;;  %v29062_v43 = vcombine.low %v27319_v44, %v27372_v63  ;;  %v27827_v11 = vcombine.low %v13923_v33, %v27817_v24  ;;  %v15486_v44 = vsel %vm27189_vm9, %v15481_v4, %v15485_v16  ;;  %v27842_v63 = vld [vmem:[%s27601_s27 + $0x2c] sm:$0x1]  ;;  %v15567_v16 = vshll.u32 %v27846_v29, 16 }
 0x59e   : > { %20859 = vmatpush3.bf16.msra.mxu1 %v22786_v61  ;;  %v15544_v61 = vshrl.u32 %v27722_v37, 16  ;;  %21194 = vmatprep.subr.bf16.mxu0 %v22787_v51  ;;  %v18941_v39 = vcombine.low %v15486_v44, %v27758_v3  ;;  %v15564_v4 = vor.u32 %v15563_v30, %v15560_v58  ;;  %v15572_v44 = vshrl.u32 %v27821_v42, 16  ;;  %v22851_v3 = vld [vmem:[%s28580_s6 + $0x5b0] sm:$0xff]  }
 0x59f   : > { %20860 = vmatprep.subr.bf16.mxu1 %v22788_v45  ;;  %v15569_v62 = vrot.slane %v15567_v16, 5  ;;  %v13119_v58 = vrot.slane %v27707_v20, 5  ;;  %v18954_v30 = vrot.slane %v27617_v9, 9  ;;  %v29063_v20 = vcombine.low %v27406_v56, %v27423_v22  ;;  %v27897_v16 = vld [vmem:[%s27601_s27 + $0x3c] sm:$0x1] }
 0x5a0   : > { %v15546_v32 = vrot.slane %v15544_v61, 4  ;;  %v15565_v61 = vrot.slane %v15564_v4, 4  ;;  %v29064_v22 = vcombine.low %v27445_v15, %v27451_v60  ;;  %v27928_v15 = vcombine.low %v27762_v57, %v27691_v31  ;;  %v22808_v60 = vld [vmem:[%s28580_s6 + $0x198] sm:$0xff]   ;;  %v22855_v57 = vld [vmem:[%s28580_s6 + $0x240] sm:$0xff]  }
 0x5a1   : > { %20853 = vmatmul.mubr.bf16.gmra.mrb[4].mxu1 %v18522_v2  ;;  %21195 = vmatpush3.bf16.msra.mxu0 %v22787_v51  ;;  %v22796_v2 = vld [vmem:[%s28580_s6 + $0x170] sm:$0xff]  }
 0x5a2   : > { %20861 = vmatpush3.bf16.msra.mxu1 %v22788_v45  ;;  %20872 = vmatprep.mubr.bf16.mxu1 %v29062_v43  ;;  %v22791_v45 = vld [vmem:[%s28580_s6 + $0x4d8] sm:$0xff]   ;;  %v15550_v51 = vor.u32 %v15549_v28, %v15546_v32  ;;  %v18531_v43 = vrot.slane %v27599_v27, 9  ;;  %v15575_v32 = vshll.u32 %v27821_v42, 16  ;;  %v22804_v27 = vld [vmem:[%s28580_s6 + $0x188] sm:$0xff]  }
 0x5a3   : > { %20862 = vmatprep.subr.bf16.mxu1 %v22790_v48  ;;  %21196 = vmatprep.subr.bf16.mxu0 %v22789_v36  ;;  %v22801_v28 = vld [vmem:[%s28580_s6 + $0x4f8] sm:$0xff]  }
 0x5a4   : > { %21189 = vmatmul.mubr.bf16.gmra.mrb[4].mxu0 %v27837_v17  ;;  %v15551_v33 = vrot.slane %v15550_v51, 4  ;;  %v18955_v51 = vrot.slane %v27627_v35, 9  ;;  %v15577_v4 = vrot.slane %v15575_v32, 5  ;;  %v18953_v32 = vrot.slane %v27653_v54, 9 }
 0x5a5   : > { %21197 = vmatpush3.bf16.msra.mxu0 %v22789_v36  ;;  %21208 = vmatprep.mubr.bf16.mxu0 %v18941_v39  ;;  %v22795_v36 = vld [vmem:[%s28580_s6 + $0x4e8] sm:$0xff]   ;;  %v15753_v39 = vrot.slane %v27678_v53, 5  ;;  %v22803_v53 = vld [vmem:[%s28580_s6 + $0x500] sm:$0xff]   ;;  %v18959_v54 = vrot.slane %v27726_v34, 9 }
 0x5a6   : > { %20863 = vmatpush3.bf16.msra.mxu1 %v22790_v48  ;;  %v15553_v48 = vshll.u32 %v27842_v63, 16  ;;  %21198 = vmatprep.subr.bf16.mxu0 %v22791_v45  ;;  %v22848_v34 = vld [vmem:[%s28580_s6 + $0x5a8] sm:$0xff]  }
 0x5a7   : > { %20864 = vmatprep.subr.bf16.mxu1 %v22792_v10 }
 0x5a8   : > { %v15555_v52 = vrot.slane %v15553_v48, 5  ;;  %v15757_v48 = vrot.slane %v27687_v8, 5  ;;  %v22806_v8 = vld [vmem:[%s28580_s6 + $0x190] sm:$0xff]  }
 0x5a9   : > { %21199 = vmatpush3.bf16.msra.mxu0 %v22791_v45 }
 0x5aa   : > { %20865 = vmatpush3.bf16.msra.mxu1 %v22792_v10  ;;  %v22800_v10 = vld [vmem:[%s28580_s6 + $0x178] sm:$0xff]   ;;  %21200 = vmatprep.subr.bf16.mxu0 %v22793_v41  ;;  %v27872_v45 = vsel %vm27189_vm9, %v15551_v33, %v15555_v52  ;;  %v27911_v56 = vsel %vm27011_vm6, %v18955_v51, %v15757_v48  ;;  %v15581_v52 = vshll.u32 %v27897_v16, 16 }
 0x5ab   : > { %20866 = vmatprep.subr.bf16.mxu1 %v22794_v25  ;;  %v29065_v48 = vld [vmem:[#allocation64_spill] sm:$0xff] }
 0x5ad   : > { %21201 = vmatpush3.bf16.msra.mxu0 %v22793_v41 }
 0x5ae   : > { %20867 = vmatpush3.bf16.msra.mxu1 %v22794_v25  ;;  %21202 = vmatprep.subr.bf16.mxu0 %v22795_v36  ;;  %v27876_v25 = vsel %vm27189_vm9, %v15565_v61, %v15569_v62  ;;  %v22805_v61 = vld [vmem:[%s28580_s6 + $0x508] sm:$0xff]  }
 0x5af   : > { %20868 = vmatprep.subr.bf16.mxu1 %v22796_v2  ;;  %v19035_v41 = vcombine.low %v27872_v45, %v27876_v25 }
 0x5b1   : > { %21203 = vmatpush3.bf16.msra.mxu0 %v22795_v36  ;;  %v27907_v36 = vsel %vm27011_vm6, %v18954_v30, %v15753_v39  ;;  %v15769_v30 = vrot.slane %v27842_v63, 5  ;;  %v15773_v39 = vrot.slane %v27846_v29, 5  ;;  %v22812_v29 = vld [vmem:[%s28580_s6 + $0x1a8] sm:$0xff]  }
 0x5b2   : > { %20869 = vmatpush3.bf16.msra.mxu1 %v22796_v2  ;;  %21204 = vmatprep.subr.bf16.mxu0 %v22798_v6  ;;  %v15574_v2 = vrot.slane %v15572_v44, 4  ;;  %v19062_v62 = vcombine.low %v27907_v36, %v27911_v56  ;;  %v22807_v44 = vld [vmem:[%s28580_s6 + $0x510] sm:$0xff]  }
 0x5b3   : > { %20870 = vmatprep.subr.bf16.mxu1 %v22800_v10 }
 0x5b4   : > { %v15578_v33 = vor.u32 %v15577_v4, %v15574_v2 }
 0x5b5   : > { %21205 = vmatpush3.bf16.msra.mxu0 %v22798_v6 }
 0x5b6   : > { %20871 = vmatpush3.bf16.msra.mxu1 %v22800_v10  ;;  %21206 = vmatprep.subr.bf16.mxu0 %v22801_v28  ;;  %v27918_v10 = vsel %vm27011_vm6, %v18531_v43, %v13119_v58  ;;  %v15583_v43 = vrot.slane %v15581_v52, 5  ;;  %v18958_v58 = vrot.slane %v27722_v37, 9  ;;  %v22813_v52 = vld [vmem:[%s28580_s6 + $0x528] sm:$0xff]  }
 0x5b7   : > { %20880 = vmatprep.subr.bf16.mxu1 %v22802_v7  ;;  %v18551_v6 = vcombine.low %v27497_v47, %v27918_v10  ;;  %v27945_v47 = vcombine.low %v27701_v18, %v27872_v45 }
 0x5b8   : > { %v27972_v4 = vsel %vm27011_vm6, %v18958_v58, %v15769_v30  ;;  %v22821_v58 = vld [vmem:[%s28580_s6 + $0x548] sm:$0xff]   ;;  %v22824_v30 = vld [vmem:[%s28580_s6 + $0x1d8] sm:$0xff]  }
 0x5b9   : > { %20873 = vmatmul.mubr.bf16.vlgmr.msra.gmra.mrb[0].mxu1 %v29063_v20  ;;  %21207 = vmatpush3.bf16.msra.mxu0 %v22801_v28  ;;  %v22810_v28 = vld [vmem:[%s28580_s6 + $0x1a0] sm:$0xff]   ;;  %v27976_v20 = vsel %vm27011_vm6, %v18959_v54, %v15773_v39  ;;  %v28021_v54 = vld [vmem:[%s26951_s20 + $0x48] sm:$0xf]  ;;  %v28025_v39 = vcombine.low %v27911_v56, %v27750_v50 }
 0x5ba   : > { %20881 = vmatpush3.bf16.msra.mxu1 %v22802_v7  ;;  %20876 = vmatprep.mubr.bf16.mxu1 %v29064_v22  ;;  %v15579_v7 = vrot.slane %v15578_v33, 4  ;;  %v19064_v22 = vcombine.low %v27972_v4, %v27976_v20  ;;  %v22814_v33 = vld [vmem:[%s28580_s6 + $0x1b0] sm:$0xff]   ;;  %v22872_v56 = vld [vmem:[%s28580_s6 + $0x280] sm:$0xff]  }
 0x5bb   : > { %20882 = vmatprep.subr.bf16.mxu1 %v22804_v27  ;;  %21216 = vmatprep.subr.bf16.mxu0 %v22803_v53 }
 0x5bc   : > { %21209 = vmatmul.mubr.bf16.vlgmr.msra.gmra.mrb[0].mxu0 %v27928_v15  ;;  %v27955_v51 = vsel %vm27189_vm9, %v15579_v7, %v15583_v43  ;;  %v22817_v7 = vld [vmem:[%s28580_s6 + $0x538] sm:$0xff]   ;;  %v22820_v43 = vld [vmem:[%s28580_s6 + $0x1c8] sm:$0xff]  }
 0x5bd   : > { %21217 = vmatpush3.bf16.msra.mxu0 %v22803_v53  ;;  %21212 = vmatprep.mubr.bf16.mxu0 %v27945_v47  ;;  %v27968_v2 = vcombine.low %v27876_v25, %v27955_v51  ;;  %v22811_v53 = vld [vmem:[%s28580_s6 + $0x520] sm:$0xff]  }
 0x5be   : > { %20883 = vmatpush3.bf16.msra.mxu1 %v22804_v27  ;;  %v15749_v27 = vrot.slane %v27739_v26, 5  ;;  %21218 = vmatprep.subr.bf16.mxu0 %v22805_v61  ;;  %v22809_v26 = vld [vmem:[%s28580_s6 + $0x518] sm:$0xff]   ;;  %v22864_v25 = vld [vmem:[%s28580_s6 + $0x5e0] sm:$0xff]  }
 0x5bf   : > { %20884 = vmatprep.subr.bf16.mxu1 %v22806_v8 }
 0x5c0   : > { %v15750_v63 = vsel %vm27011_vm6, %v18953_v32, %v15749_v27  ;;  %v22819_v32 = vld [vmem:[%s28580_s6 + $0x540] sm:$0xff]   ;;  %v29067_v27 = vld [vmem:[#allocation74_spill] sm:$0xff] }
 0x5c1   : > { %20877 = vmatmul.mubr.bf16.gmra.mrb[4].mxu1 %v18551_v6  ;;  %21219 = vmatpush3.bf16.msra.mxu0 %v22805_v61  ;;  %v22816_v61 = vld [vmem:[%s28580_s6 + $0x1b8] sm:$0xff]   ;;  %v22818_v6 = vld [vmem:[%s28580_s6 + $0x1c0] sm:$0xff]  }
 0x5c2   : > { %20885 = vmatpush3.bf16.msra.mxu1 %v22806_v8  ;;  %20896 = vmatprep.mubr.bf16.mxu1 %v29065_v48  ;;  %v18977_v8 = vcombine.low %v15750_v63, %v27907_v36  ;;  %v22948_v48 = vld [vmem:[%s26951_s20 + $0x40] sm:$0xf]  ;;  %v18960_v63 = vrot.slane %v27821_v42, 9  ;;  %v22868_v36 = vld [vmem:[%s28580_s6 + $0x5f0] sm:$0xff]  }
 0x5c3   : > { %20886 = vmatprep.subr.bf16.mxu1 %v22808_v60  ;;  %21220 = vmatprep.subr.bf16.mxu0 %v22807_v44 }
 0x5c4   : > { %21213 = vmatmul.mubr.bf16.gmra.mrb[4].mxu0 %v27968_v2 }
 0x5c5   : > { %21221 = vmatpush3.bf16.msra.mxu0 %v22807_v44  ;;  %21232 = vmatprep.mubr.bf16.mxu0 %v18977_v8  ;;  %v29066_v44 = vld [vmem:[#allocation69_spill] sm:$0xff] }
 0x5c6   : > { %20887 = vmatpush3.bf16.msra.mxu1 %v22808_v60  ;;  %21222 = vmatprep.subr.bf16.mxu0 %v22809_v26  ;;  %v22815_v60 = vld [vmem:[%s28580_s6 + $0x530] sm:$0xff]   ;;  %v22826_v8 = vld [vmem:[%s28580_s6 + $0x1e0] sm:$0xff]  }
 0x5c7   : > { %20888 = vmatprep.subr.bf16.mxu1 %v22810_v28 }
 0x5c9   : > { %21223 = vmatpush3.bf16.msra.mxu0 %v22809_v26  ;;  %v18576_v26 = vcombine.low %v22948_v48, %v28021_v54 }
 0x5ca   : > { %20889 = vmatpush3.bf16.msra.mxu1 %v22810_v28  ;;  %21224 = vmatprep.subr.bf16.mxu0 %v22811_v53  ;;  %v22822_v28 = vld [vmem:[%s28580_s6 + $0x1d0] sm:$0xff]  }
 0x5cb   : > { %20890 = vmatprep.subr.bf16.mxu1 %v22812_v29 }
 0x5cd   : > { %21225 = vmatpush3.bf16.msra.mxu0 %v22811_v53  ;;  %v22823_v53 = vld [vmem:[%s28580_s6 + $0x550] sm:$0xff]  }
 0x5ce   : > { %20891 = vmatpush3.bf16.msra.mxu1 %v22812_v29  ;;  %21226 = vmatprep.subr.bf16.mxu0 %v22813_v52  ;;  %v15777_v29 = vrot.slane %v27897_v16, 5 }
 0x5cf   : > { %20892 = vmatprep.subr.bf16.mxu1 %v22814_v33 }
 0x5d0   : > { %v28045_v16 = vsel %vm27011_vm6, %v18960_v63, %v15777_v29 }
 0x5d1   : > { %21227 = vmatpush3.bf16.msra.mxu0 %v22813_v52  ;;  %v29068_v52 = vld [vmem:[#allocation78_spill] sm:$0xff] }
 0x5d2   : > { %20893 = vmatpush3.bf16.msra.mxu1 %v22814_v33  ;;  %21228 = vmatprep.subr.bf16.mxu0 %v22815_v60  ;;  %v28040_v33 = vcombine.low %v27773_v1, %v27972_v4  ;;  %v22879_v1 = vld [vmem:[%s28580_s6 + $0x618] sm:$0xff]  }
 0x5d3   : > { %20894 = vmatprep.subr.bf16.mxu1 %v22816_v61 }
 0x5d5   : > { %21229 = vmatpush3.bf16.msra.mxu0 %v22815_v60  ;;  %v22828_v60 = vld [vmem:[%s28580_s6 + $0x1e8] sm:$0xff]  }
 0x5d6   : > { %20895 = vmatpush3.bf16.msra.mxu1 %v22816_v61  ;;  %21230 = vmatprep.subr.bf16.mxu0 %v22817_v7  ;;  %v22825_v61 = vld [vmem:[%s28580_s6 + $0x558] sm:$0xff]  }
 0x5d7   : > { %20904 = vmatprep.subr.bf16.mxu1 %v22818_v6 }
 0x5d9   : > { %20897 = vmatmul.mubr.bf16.vlgmr.msra.gmra.mrb[0].mxu1 %v29066_v44  ;;  %21231 = vmatpush3.bf16.msra.mxu0 %v22817_v7  ;;  %v22827_v7 = vld [vmem:[%s28580_s6 + $0x560] sm:$0xff]   ;;  %v13414_v44 = vshll.u32 %v28021_v54, 16 }
 0x5da   : > { %20905 = vmatpush3.bf16.msra.mxu1 %v22818_v6  ;;  %20900 = vmatprep.mubr.bf16.mxu1 %v29067_v27  ;;  %v28056_v6 = vcombine.low %v27976_v20, %v28045_v16  ;;  %v22829_v27 = vld [vmem:[%s28580_s6 + $0x568] sm:$0xff]   ;;  %v22884_v20 = vld [vmem:[%s28580_s6 + $0x2b0] sm:$0xff]  }
 0x5db   : > { %20906 = vmatprep.subr.bf16.mxu1 %v22820_v43  ;;  %21240 = vmatprep.subr.bf16.mxu0 %v22819_v32 }
 0x5dc   : > { %21233 = vmatmul.mubr.bf16.vlgmr.msra.gmra.mrb[0].mxu0 %v28025_v39 }
 0x5dd   : > { %21241 = vmatpush3.bf16.msra.mxu0 %v22819_v32  ;;  %21236 = vmatprep.mubr.bf16.mxu0 %v28040_v33  ;;  %v22830_v32 = vld [vmem:[%s28580_s6 + $0x1f0] sm:$0xff]  }
 0x5de   : > { %20907 = vmatpush3.bf16.msra.mxu1 %v22820_v43  ;;  %21242 = vmatprep.subr.bf16.mxu0 %v22821_v58  ;;  %v13411_v43 = vshrl.u32 %v28021_v54, 16 }
 0x5df   : > { %20908 = vmatprep.subr.bf16.mxu1 %v22822_v28 }
 0x5e0   : > { %v13413_v48 = vrot.slane %v13411_v43, 4  ;;  %v22841_v43 = vld [vmem:[%s28580_s6 + $0x210] sm:$0xff]  }
 0x5e1   : > { %20901 = vmatmul.mubr.bf16.gmra.mrb[4].mxu1 %v18576_v26  ;;  %21243 = vmatpush3.bf16.msra.mxu0 %v22821_v58  ;;  %v22833_v58 = vld [vmem:[%s28580_s6 + $0x1f8] sm:$0xff]   ;;  %v13416_v26 = vrot.slane %v13414_v44, 5 }
 0x5e2   : > { %20909 = vmatpush3.bf16.msra.mxu1 %v22822_v28  ;;  %20920 = vmatprep.mubr.bf16.mxu1 %v29068_v52  ;;  %v29069_v28 = vcombine.low %v27617_v9, %v27627_v35  ;;  %v22831_v9 = vld [vmem:[%s28580_s6 + $0x570] sm:$0xff]   ;;  %v22835_v35 = vld [vmem:[%s28580_s6 + $0x200] sm:$0xff]  }
 0x5e3   : > { %20910 = vmatprep.subr.bf16.mxu1 %v22824_v30  ;;  %21244 = vmatprep.subr.bf16.mxu0 %v22823_v53  ;;  %v13417_v29 = vor.u32 %v13416_v26, %v13413_v48  ;;  %v22845_v48 = vld [vmem:[%s28580_s6 + $0x220] sm:$0xff]  }
 0x5e4   : > { %21237 = vmatmul.mubr.bf16.gmra.mrb[4].mxu0 %v28056_v6 }
 0x5e5   : > { %21245 = vmatpush3.bf16.msra.mxu0 %v22823_v53  ;;  %21256 = vmatprep.mubr.bf16.mxu0 %v29069_v28  ;;  %v22834_v53 = vld [vmem:[%s28580_s6 + $0x578] sm:$0xff]   ;;  %v13418_v52 = vrot.slane %v13417_v29, 4 }
 0x5e6   : > { %20911 = vmatpush3.bf16.msra.mxu1 %v22824_v30  ;;  %21246 = vmatprep.subr.bf16.mxu0 %v22825_v61  ;;  %v28077_v30 = vld [vmem:[%s26951_s20 + $0x4c] sm:$0x1]  ;;  %v22843_v28 = vld [vmem:[%s28580_s6 + $0x218] sm:$0xff]   ;;  %s28514_s20 = scalar_lea.hbm %s29105_s28, %s19161_s26 }
 0x5e7   : > { %20912 = vmatprep.subr.bf16.mxu1 %v22826_v8  ;;  %v13420_v63 = vshll.u32 %v28077_v30, 16  ;;  %v13568_v29 = vrot.slane %v28077_v30, 5 }
 0x5e9   : > { %21247 = vmatpush3.bf16.msra.mxu0 %v22825_v61  ;;  %v13422_v61 = vrot.slane %v13420_v63, 5  ;;  %v18610_v63 = vrot.slane %v28021_v54, 9  ;;  %v22859_v54 = vld [vmem:[%s28580_s6 + $0x250] sm:$0xff]  }
 0x5ea   : > { %20913 = vmatpush3.bf16.msra.mxu1 %v22826_v8  ;;  %21248 = vmatprep.subr.bf16.mxu0 %v22827_v7  ;;  %v22839_v8 = vld [vmem:[%s28580_s6 + $0x208] sm:$0xff]  }
 0x5eb   : > { %20914 = vmatprep.subr.bf16.mxu1 %v22828_v60  ;;  %v13423_v44 = vsel %vm27189_vm9, %v13418_v52, %v13422_v61  ;;  %v28166_v52 = vld [vmem:[%s27601_s27 + $0x44] sm:$0x1]  ;;  %v13569_v30 = vsel %vm27011_vm6, %v18610_v63, %v13568_v29  ;;  %v22885_v29 = vld [vmem:[%s28580_s6 + $0x630] sm:$0xff]  }
 0x5ec   : > { %v22856_v61 = vld [vmem:[%s28580_s6 + $0x5c0] sm:$0xff]  }
 0x5ed   : > { %21249 = vmatpush3.bf16.msra.mxu0 %v22827_v7  ;;  %v22837_v7 = vld [vmem:[%s28580_s6 + $0x580] sm:$0xff]  }
 0x5ee   : > { %20915 = vmatpush3.bf16.msra.mxu1 %v22828_v60  ;;  %21250 = vmatprep.subr.bf16.mxu0 %v22829_v27  ;;  %v29070_v60 = vld [vmem:[#allocation80_spill] sm:$0xff]  ;;  %v22880_v63 = vld [vmem:[%s28580_s6 + $0x2a0] sm:$0xff]  }
 0x5ef   : > { %20916 = vmatprep.subr.bf16.mxu1 %v22830_v32 }
 0x5f1   : > { %21251 = vmatpush3.bf16.msra.mxu0 %v22829_v27  ;;  %v18601_v27 = vcombine.low %v27769_v38, %v13423_v44  ;;  %v22847_v38 = vld [vmem:[%s28580_s6 + $0x228] sm:$0xff]  }
 0x5f2   : > { %20917 = vmatpush3.bf16.msra.mxu1 %v22830_v32  ;;  %21252 = vmatprep.subr.bf16.mxu0 %v22831_v9  ;;  %v22840_v32 = vld [vmem:[%s28580_s6 + $0x588] sm:$0xff]  }
 0x5f3   : > { %20918 = vmatprep.subr.bf16.mxu1 %v22833_v58 }
 0x5f5   : > { %21253 = vmatpush3.bf16.msra.mxu0 %v22831_v9  ;;  %v22854_v9 = vld [vmem:[%s28580_s6 + $0x5b8] sm:$0xff]  }
 0x5f6   : > { %20919 = vmatpush3.bf16.msra.mxu1 %v22833_v58  ;;  %21254 = vmatprep.subr.bf16.mxu0 %v22834_v53  ;;  %v22842_v58 = vld [vmem:[%s28580_s6 + $0x590] sm:$0xff]  }
 0x5f7   : > { %20928 = vmatprep.subr.bf16.mxu1 %v22835_v35 }
 0x5f9   : > { %20921 = vmatmul.mubr.bf16.vlgmr.msra.gmra.mrb[0].mxu1 %v29070_v60  ;;  %21255 = vmatpush3.bf16.msra.mxu0 %v22834_v53  ;;  %v16091_v60 = vshll.u32 %v28166_v52, 16 }
 0x5fa   : > { %20929 = vmatpush3.bf16.msra.mxu1 %v22835_v35  ;;  %20924 = vmatprep.mubr.bf16.mxu1 %v27351_v40  ;;  %v29071_v40 = vcombine.low %v27604_v23, %v27620_v0  ;;  %v28123_v23 = vld [vmem:[%s27601_s27 + $0x40] sm:$0xf]  ;;  %v22844_v0 = vld [vmem:[%s28580_s6 + $0x598] sm:$0xff]   ;;  %v22857_v35 = vld [vmem:[%s28580_s6 + $0x248] sm:$0xff]  }
 0x5fb   : > { %20930 = vmatprep.subr.bf16.mxu1 %v22839_v8  ;;  %21264 = vmatprep.subr.bf16.mxu0 %v22837_v7  ;;  %v19008_v37 = vcombine.low %v27821_v42, %v28123_v23  ;;  %v22853_v42 = vld [vmem:[%s28580_s6 + $0x238] sm:$0xff]   ;;  %v16085_v26 = vshll.u32 %v28123_v23, 16 }
 0x5fc   : > { %21257 = vmatmul.mubr.bf16.vlgmr.msra.gmra.mrb[0].mxu0 %v29071_v40  ;;  %v22950_v40 = vld [vmem:[%s26983_s19] sm:$0xf] }
 0x5fd   : > { %21265 = vmatpush3.bf16.msra.mxu0 %v22837_v7  ;;  %21260 = vmatprep.mubr.bf16.mxu0 %v19007_v12  ;;  %v22846_v12 = vld [vmem:[%s28580_s6 + $0x5a0] sm:$0xff]   ;;  %v22858_v7 = vld [vmem:[%s28580_s6 + $0x5c8] sm:$0xff]  }
 0x5fe   : > { %20931 = vmatpush3.bf16.msra.mxu1 %v22839_v8  ;;  %21266 = vmatprep.subr.bf16.mxu0 %v22840_v32  ;;  %v16087_v8 = vrot.slane %v16085_v26, 5  ;;  %v16245_v26 = vrot.slane %v28166_v52, 5  ;;  %v29076_v52 = vld [vmem:[#allocation84_spill] sm:$0xff] }
 0x5ff   : > { %20932 = vmatprep.subr.bf16.mxu1 %v22841_v43 }
 0x601   : > { %20925 = vmatmul.mubr.bf16.gmra.mrb[4].mxu1 %v18601_v27  ;;  %21267 = vmatpush3.bf16.msra.mxu0 %v22840_v32  ;;  %v16093_v32 = vrot.slane %v16091_v60, 5  ;;  %v28189_v27 = vld [vmem:[%s26983_s19 + $0x8] sm:$0xf]  ;;  %v22894_v60 = vld [vmem:[%s28580_s6 + $0x2d8] sm:$0xff]  }
 0x602   : > { %20933 = vmatpush3.bf16.msra.mxu1 %v22841_v43  ;;  %20944 = vmatprep.mubr.bf16.mxu1 %v27466_v59  ;;  %v22849_v59 = vld [vmem:[%s28580_s6 + $0x230] sm:$0xff]   ;;  %v18627_v43 = vcombine.low %v27918_v10, %v13569_v30  ;;  %v22863_v10 = vld [vmem:[%s28580_s6 + $0x260] sm:$0xff]   ;;  %v29077_v30 = vld [vmem:[#allocation90_spill] sm:$0xff] }
 0x603   : > { %20934 = vmatprep.subr.bf16.mxu1 %v22843_v28  ;;  %21268 = vmatprep.subr.bf16.mxu0 %v22842_v58 }
 0x604   : > { %21261 = vmatmul.mubr.bf16.gmra.mrb[4].mxu0 %v19008_v37  ;;  %v22874_v37 = vld [vmem:[%s28580_s6 + $0x288] sm:$0xff]  }
 0x605   : > { %21269 = vmatpush3.bf16.msra.mxu0 %v22842_v58  ;;  %21280 = vmatprep.mubr.bf16.mxu0 %v19033_v14  ;;  %v16082_v14 = vshrl.u32 %v28123_v23, 16  ;;  %v18656_v58 = vcombine.low %v22950_v40, %v28189_v27  ;;  %v22895_v40 = vld [vmem:[%s28580_s6 + $0x658] sm:$0xff]  }
 0x606   : > { %20935 = vmatpush3.bf16.msra.mxu1 %v22843_v28  ;;  %21270 = vmatprep.subr.bf16.mxu0 %v22844_v0  ;;  %v29072_v28 = vcombine.low %v27691_v31, %v27701_v18  ;;  %v22862_v31 = vld [vmem:[%s28580_s6 + $0x5d8] sm:$0xff]  }
 0x607   : > { %20936 = vmatprep.subr.bf16.mxu1 %v22845_v48  ;;  %v16084_v53 = vrot.slane %v16082_v14, 4  ;;  %v19045_v14 = vrot.slane %v28123_v23, 9 }
 0x609   : > { %21271 = vmatpush3.bf16.msra.mxu0 %v22844_v0  ;;  %v22865_v0 = vld [vmem:[%s28580_s6 + $0x268] sm:$0xff]   ;;  %v28272_v50 = vsel %vm27011_vm6, %v19045_v14, %v16245_v26 }
 0x60a   : > { %20937 = vmatpush3.bf16.msra.mxu1 %v22845_v48  ;;  %21272 = vmatprep.subr.bf16.mxu0 %v22846_v12  ;;  %v22860_v48 = vld [vmem:[%s28580_s6 + $0x5d0] sm:$0xff]   ;;  %v19065_v4 = vcombine.low %v28045_v16, %v28272_v50  ;;  %v22886_v16 = vld [vmem:[%s28580_s6 + $0x2b8] sm:$0xff]  }
 0x60b   : > { %20938 = vmatprep.subr.bf16.mxu1 %v22847_v38 }
 0x60d   : > { %21273 = vmatpush3.bf16.msra.mxu0 %v22846_v12  ;;  %v29073_v12 = vld [vmem:[#allocation76_spill] sm:$0xff] }
 0x60e   : > { %20939 = vmatpush3.bf16.msra.mxu1 %v22847_v38  ;;  %21274 = vmatprep.subr.bf16.mxu0 %v22848_v34  ;;  %v22869_v38 = vld [vmem:[%s28580_s6 + $0x278] sm:$0xff]  }
 0x60f   : > { %20940 = vmatprep.subr.bf16.mxu1 %v22849_v59 }
 0x611   : > { %21275 = vmatpush3.bf16.msra.mxu0 %v22848_v34  ;;  %v22876_v34 = vld [vmem:[%s28580_s6 + $0x290] sm:$0xff]  }
 0x612   : > { %20941 = vmatpush3.bf16.msra.mxu1 %v22849_v59  ;;  %21276 = vmatprep.subr.bf16.mxu0 %v22851_v3  ;;  %v22873_v59 = vld [vmem:[%s28580_s6 + $0x600] sm:$0xff]  }
 0x613   : > { %20942 = vmatprep.subr.bf16.mxu1 %v22853_v42 }
 0x615   : > { %21277 = vmatpush3.bf16.msra.mxu0 %v22851_v3  ;;  %v22875_v3 = vld [vmem:[%s28580_s6 + $0x608] sm:$0xff]  }
 0x616   : > { %20943 = vmatpush3.bf16.msra.mxu1 %v22853_v42  ;;  %21278 = vmatprep.subr.bf16.mxu0 %v22854_v9  ;;  %v29074_v42 = vld [vmem:[#allocation79_spill] sm:$0xff] }
 0x617   : > { %20952 = vmatprep.subr.bf16.mxu1 %v22855_v57 }
 0x619   : > { %20945 = vmatmul.mubr.bf16.vlgmr.msra.gmra.mrb[0].mxu1 %v27490_v19  ;;  %v16088_v19 = vor.u32 %v16087_v8, %v16084_v53  ;;  %21279 = vmatpush3.bf16.msra.mxu0 %v22854_v9  ;;  %v29075_v9 = vld [vmem:[#allocation81_spill] sm:$0xff]  ;;  %v22887_v53 = vld [vmem:[%s28580_s6 + $0x638] sm:$0xff]   ;;  %v22890_v8 = vld [vmem:[%s28580_s6 + $0x2c8] sm:$0xff]  }
 0x61a   : > { %20953 = vmatpush3.bf16.msra.mxu1 %v22855_v57  ;;  %20948 = vmatprep.mubr.bf16.mxu1 %v27525_v5  ;;  %v22861_v5 = vld [vmem:[%s28580_s6 + $0x258] sm:$0xff]  }
 0x61b   : > { %20954 = vmatprep.subr.bf16.mxu1 %v22857_v35  ;;  %21288 = vmatprep.subr.bf16.mxu0 %v22856_v61  ;;  %v16089_v44 = vrot.slane %v16088_v19, 4  ;;  %v22878_v57 = vld [vmem:[%s28580_s6 + $0x298] sm:$0xff]   ;;  %v22891_v19 = vld [vmem:[%s28580_s6 + $0x648] sm:$0xff]  }
 0x61c   : > { %21281 = vmatmul.mubr.bf16.vlgmr.msra.gmra.mrb[0].mxu0 %v29072_v28 }
 0x61d   : > { %21289 = vmatpush3.bf16.msra.mxu0 %v22856_v61  ;;  %21284 = vmatprep.mubr.bf16.mxu0 %v19035_v41  ;;  %v28204_v18 = vsel %vm27189_vm9, %v16089_v44, %v16093_v32  ;;  %v22867_v41 = vld [vmem:[%s28580_s6 + $0x270] sm:$0xff]   ;;  %v22889_v61 = vld [vmem:[%s28580_s6 + $0x640] sm:$0xff]   ;;  %v29079_v44 = vld [vmem:[#allocation66_spill] sm:$0xff] }
 0x61e   : > { %20955 = vmatpush3.bf16.msra.mxu1 %v22857_v35  ;;  %21290 = vmatprep.subr.bf16.mxu0 %v22858_v7  ;;  %v19036_v45 = vcombine.low %v27955_v51, %v28204_v18  ;;  %v22866_v51 = vld [vmem:[%s28580_s6 + $0x5e8] sm:$0xff]   ;;  %v22877_v35 = vld [vmem:[%s28580_s6 + $0x610] sm:$0xff]  }
 0x61f   : > { %20956 = vmatprep.subr.bf16.mxu1 %v22859_v54  ;;  %v29080_v32 = vld [vmem:[#allocation67_spill] sm:$0xff] }
 0x620   : > { %v29081_v28 = vcombine.low %v29079_v44, %v29080_v32  ;;  %v29091_v44 = vld [vmem:[#allocation72_spill] sm:$0xff]  ;;  %v29092_v32 = vld [vmem:[#allocation75_spill] sm:$0xff] }
 0x621   : > { %20949 = vmatmul.mubr.bf16.gmra.mrb[4].mxu1 %v18627_v43  ;;  %21291 = vmatpush3.bf16.msra.mxu0 %v22858_v7  ;;  %v29078_v7 = vld [vmem:[#allocation91_spill] sm:$0xff]  ;;  %v22896_v43 = vld [vmem:[%s28580_s6 + $0x2e0] sm:$0xff]  }
 0x622   : > { %20957 = vmatpush3.bf16.msra.mxu1 %v22859_v54  ;;  %20968 = vmatprep.mubr.bf16.mxu1 %v18656_v58  ;;  %v22892_v54 = vld [vmem:[%s28580_s6 + $0x2d0] sm:$0xff]   ;;  %v22898_v58 = vld [vmem:[%s28580_s6 + $0x2e8] sm:$0xff]  }
 0x623   : > { %20958 = vmatprep.subr.bf16.mxu1 %v22861_v5  ;;  %21292 = vmatprep.subr.bf16.mxu0 %v22860_v48 }
 0x624   : > { %21285 = vmatmul.mubr.bf16.gmra.mrb[4].mxu0 %v19036_v45 }
 0x625   : > { %21293 = vmatpush3.bf16.msra.mxu0 %v22860_v48  ;;  %21304 = vmatprep.mubr.bf16.mxu0 %v19062_v62  ;;  %v22870_v62 = vld [vmem:[%s28580_s6 + $0x5f8] sm:$0xff]   ;;  %v22897_v48 = vld [vmem:[%s28580_s6 + $0x660] sm:$0xff]  }
 0x626   : > { %20959 = vmatpush3.bf16.msra.mxu1 %v22861_v5  ;;  %21294 = vmatprep.subr.bf16.mxu0 %v22862_v31  ;;  %v22893_v5 = vld [vmem:[%s28580_s6 + $0x650] sm:$0xff]  }
 0x627   : > { %20960 = vmatprep.subr.bf16.mxu1 %v22863_v10 }
 0x629   : > { %21295 = vmatpush3.bf16.msra.mxu0 %v22862_v31  ;;  %v22903_v31 = vld [vmem:[%s28580_s6 + $0x2f8] sm:$0xff]  }
 0x62a   : > { %20961 = vmatpush3.bf16.msra.mxu1 %v22863_v10  ;;  %21296 = vmatprep.subr.bf16.mxu0 %v22864_v25  ;;  %v22900_v10 = vld [vmem:[%s28580_s6 + $0x2f0] sm:$0xff]  }
 0x62b   : > { %20962 = vmatprep.subr.bf16.mxu1 %v22865_v0 }
 0x62d   : > { %21297 = vmatpush3.bf16.msra.mxu0 %v22864_v25 }
 0x62e   : > { %20963 = vmatpush3.bf16.msra.mxu1 %v22865_v0  ;;  %21298 = vmatprep.subr.bf16.mxu0 %v22866_v51  ;;  %v22905_v0 = vld [vmem:[%s28580_s6 + $0x300] sm:$0xff]  }
 0x62f   : > { %20964 = vmatprep.subr.bf16.mxu1 %v22867_v41 }
 0x631   : > { %21299 = vmatpush3.bf16.msra.mxu0 %v22866_v51  ;;  %v22907_v51 = vld [vmem:[%s28580_s6 + $0x308] sm:$0xff]  }
 0x632   : > { %20965 = vmatpush3.bf16.msra.mxu1 %v22867_v41  ;;  %21300 = vmatprep.subr.bf16.mxu0 %v22868_v36  ;;  %v22904_v41 = vld [vmem:[%s28580_s6 + $0x678] sm:$0xff]  }
 0x633   : > { %20966 = vmatprep.subr.bf16.mxu1 %v22869_v38 }
 0x635   : > { %21301 = vmatpush3.bf16.msra.mxu0 %v22868_v36 }
 0x636   : > { %20967 = vmatpush3.bf16.msra.mxu1 %v22869_v38  ;;  %21302 = vmatprep.subr.bf16.mxu0 %v22870_v62 }
 0x637   : > { %20976 = vmatprep.subr.bf16.mxu1 %v22872_v56 }
 0x639   : > { %20969 = vmatmul.mubr.bf16.vlgmr.msra.gmra.mrb[0].mxu1 %v29073_v12  ;;  %21303 = vmatpush3.bf16.msra.mxu0 %v22870_v62  ;;  %v28374_v62 = vld [vmem:[%s27601_s27 + $0x4c] sm:$0x1]  ;;  %v22909_v12 = vld [vmem:[%s28580_s6 + $0x310] sm:$0xff]  }
 0x63a   : > { %20977 = vmatpush3.bf16.msra.mxu1 %v22872_v56  ;;  %20972 = vmatprep.mubr.bf16.mxu1 %v29074_v42  ;;  %v29082_v56 = vld [vmem:[#allocation68_spill] sm:$0xff]  ;;  %v16546_v42 = vshll.u32 %v28374_v62, 16 }
 0x63b   : > { %20978 = vmatprep.subr.bf16.mxu1 %v22874_v37  ;;  %21312 = vmatprep.subr.bf16.mxu0 %v22873_v59 }
 0x63c   : > { %21305 = vmatmul.mubr.bf16.vlgmr.msra.gmra.mrb[0].mxu0 %v19063_v55  ;;  %v22882_v55 = vld [vmem:[%s28580_s6 + $0x2a8] sm:$0xff]   ;;  %v16548_v26 = vrot.slane %v16546_v42, 5 }
 0x63d   : > { %21313 = vmatpush3.bf16.msra.mxu0 %v22873_v59  ;;  %21308 = vmatprep.mubr.bf16.mxu0 %v19064_v22  ;;  %v22883_v22 = vld [vmem:[%s28580_s6 + $0x628] sm:$0xff]   ;;  %v29083_v59 = vld [vmem:[#allocation73_spill] sm:$0xff] }
 0x63e   : > { %20979 = vmatpush3.bf16.msra.mxu1 %v22874_v37  ;;  %21314 = vmatprep.subr.bf16.mxu0 %v22875_v3  ;;  %v22906_v37 = vld [vmem:[%s28580_s6 + $0x680] sm:$0xff]  }
 0x63f   : > { %20980 = vmatprep.subr.bf16.mxu1 %v22876_v34 }
 0x641   : > { %20973 = vmatmul.mubr.bf16.gmra.mrb[4].mxu1 %v29075_v9  ;;  %21315 = vmatpush3.bf16.msra.mxu0 %v22875_v3  ;;  %v22908_v3 = vld [vmem:[%s28580_s6 + $0x688] sm:$0xff]   ;;  %v29084_v9 = vld [vmem:[#allocation77_spill] sm:$0xff] }
 0x642   : > { %20981 = vmatpush3.bf16.msra.mxu1 %v22876_v34  ;;  %20992 = vmatprep.mubr.bf16.mxu1 %v27827_v11  ;;  %v22881_v11 = vld [vmem:[%s28580_s6 + $0x620] sm:$0xff]  }
 0x643   : > { %20982 = vmatprep.subr.bf16.mxu1 %v22878_v57  ;;  %21316 = vmatprep.subr.bf16.mxu0 %v22877_v35 }
 0x644   : > { %21309 = vmatmul.mubr.bf16.gmra.mrb[4].mxu0 %v19065_v4  ;;  %v22915_v4 = vld [vmem:[%s28580_s6 + $0x328] sm:$0xff]  }
 0x645   : > { %21317 = vmatpush3.bf16.msra.mxu0 %v22877_v35  ;;  %21328 = vmatprep.mubr.bf16.mxu0 %v27781_v21  ;;  %v22888_v21 = vld [vmem:[%s28580_s6 + $0x2c0] sm:$0xff]   ;;  %v22951_v35 = vld [vmem:[%s26983_s19 + $0x10] sm:$0xf] }
 0x646   : > { %20983 = vmatpush3.bf16.msra.mxu1 %v22878_v57  ;;  %21318 = vmatprep.subr.bf16.mxu0 %v22879_v1  ;;  %v22911_v57 = vld [vmem:[%s28580_s6 + $0x318] sm:$0xff]  }
 0x647   : > { %20984 = vmatprep.subr.bf16.mxu1 %v22880_v63 }
 0x649   : > { %21319 = vmatpush3.bf16.msra.mxu0 %v22879_v1  ;;  %v22910_v1 = vld [vmem:[%s28580_s6 + $0x690] sm:$0xff]  }
 0x64a   : > { %20985 = vmatpush3.bf16.msra.mxu1 %v22880_v63  ;;  %21320 = vmatprep.subr.bf16.mxu0 %v22881_v11  ;;  %v18748_v63 = vcombine.low %v28189_v27, %v22951_v35  ;;  %v22912_v27 = vld [vmem:[%s28580_s6 + $0x698] sm:$0xff]  }
 0x64b   : > { %20986 = vmatprep.subr.bf16.mxu1 %v22882_v55 }
 0x64d   : > { %21321 = vmatpush3.bf16.msra.mxu0 %v22881_v11 }
 0x64e   : > { %20987 = vmatpush3.bf16.msra.mxu1 %v22882_v55  ;;  %21322 = vmatprep.subr.bf16.mxu0 %v22883_v22  ;;  %v22913_v55 = vld [vmem:[%s28580_s6 + $0x320] sm:$0xff]  }
 0x64f   : > { %20988 = vmatprep.subr.bf16.mxu1 %v22884_v20 }
 0x651   : > { %21323 = vmatpush3.bf16.msra.mxu0 %v22883_v22  ;;  %v22918_v22 = vld [vmem:[%s28580_s6 + $0x6b0] sm:$0xff]  }
 0x652   : > { %20989 = vmatpush3.bf16.msra.mxu1 %v22884_v20  ;;  %21324 = vmatprep.subr.bf16.mxu0 %v22885_v29  ;;  %v22919_v20 = vld [vmem:[%s28580_s6 + $0x338] sm:$0xff]  }
 0x653   : > { %20990 = vmatprep.subr.bf16.mxu1 %v22886_v16 }
 0x655   : > { %21325 = vmatpush3.bf16.msra.mxu0 %v22885_v29  ;;  %v22924_v29 = vld [vmem:[%s28580_s6 + $0x348] sm:$0xff]  }
 0x656   : > { %20991 = vmatpush3.bf16.msra.mxu1 %v22886_v16  ;;  %21326 = vmatprep.subr.bf16.mxu0 %v22887_v53  ;;  %v22920_v16 = vld [vmem:[%s28580_s6 + $0x6b8] sm:$0xff]  }
 0x657   : > { %21000 = vmatprep.subr.bf16.mxu1 %v22888_v21 }
 0x659   : > { %20993 = vmatmul.mubr.bf16.vlgmr.msra.gmra.mrb[0].mxu1 %v29076_v52  ;;  %21327 = vmatpush3.bf16.msra.mxu0 %v22887_v53  ;;  %v29086_v53 = vld [vmem:[#allocation65_spill] sm:$0xff]  ;;  %v22925_v52 = vld [vmem:[%s28580_s6 + $0x350] sm:$0xff]  }
 0x65a   : > { %21001 = vmatpush3.bf16.msra.mxu1 %v22888_v21  ;;  %20996 = vmatprep.mubr.bf16.mxu1 %v29077_v30  ;;  %v29085_v21 = vld [vmem:[#allocation63_spill] sm:$0xff] }
 0x65b   : > { %21002 = vmatprep.subr.bf16.mxu1 %v22890_v8  ;;  %21336 = vmatprep.subr.bf16.mxu0 %v22889_v61  ;;  %v29089_v30 = vld [vmem:[#allocation71_spill] sm:$0xff] }
 0x65c   : > { %21329 = vmatmul.mubr.bf16.vlgmr.msra.gmra.mrb[0].mxu0 %v27800_v46  ;;  %v28335_v46 = vld [vmem:[%s27601_s27 + $0x48] sm:$0xf]  ;;  %s29106_s27 = sand.u32 1, %s23022_s14  }
 0x65d   : > { %21337 = vmatpush3.bf16.msra.mxu0 %v22889_v61  ;;  %21332 = vmatprep.mubr.bf16.mxu0 %v27837_v17  ;;  %v19090_v17 = vcombine.low %v28123_v23, %v28335_v46  ;;  %v22899_v23 = vld [vmem:[%s28580_s6 + $0x668] sm:$0xff]   ;;  %v16537_v45 = vshrl.u32 %v28335_v46, 16  ;;  %v16540_v25 = vshll.u32 %v28335_v46, 16  ;;  %v16845_v61 = vld [vmem:[%s28583_s9] sm:$0xf]  ;;  %s28522_s30 = scalar_lea.sflag [#allocation4], %s29106_s27 }
 0x65e   : > { %21003 = vmatpush3.bf16.msra.mxu1 %v22890_v8  ;;  %21338 = vmatprep.subr.bf16.mxu0 %v22891_v19  ;;  %v29087_v8 = vcombine.low %v29085_v21, %v29086_v53 }
 0x65f   : > { %21004 = vmatprep.subr.bf16.mxu1 %v22892_v54  ;;  %v16539_v38 = vrot.slane %v16537_v45, 4  ;;  %v16542_v36 = vrot.slane %v16540_v25, 5  ;;  %v29098_v45 = vld [vmem:[#allocation86_spill] sm:$0xff]  ;;  %v29099_v25 = vld [vmem:[#allocation87_spill] sm:$0xff] }
 0x661   : > { %20997 = vmatmul.mubr.bf16.gmra.mrb[4].mxu1 %v29078_v7  ;;  %21339 = vmatpush3.bf16.msra.mxu0 %v22891_v19  ;;  %v16543_v34 = vor.u32 %v16542_v36, %v16539_v38  ;;  %v19124_v7 = vrot.slane %v28335_v46, 9  ;;  %v22928_v46 = vld [vmem:[%s28580_s6 + $0x360] sm:$0xff]  }
 0x662   : > { %21005 = vmatpush3.bf16.msra.mxu1 %v22892_v54  ;;  %21016 = vmatprep.mubr.bf16.mxu1 %v29081_v28  ;;  %v29088_v54 = vld [vmem:[#allocation70_spill] sm:$0xff]  ;;  %v29093_v28 = vcombine.low %v29091_v44, %v29092_v32  ;;  %v29102_v38 = vld [vmem:[#allocation89_spill] sm:$0xff] }
 0x663   : > { %21006 = vmatprep.subr.bf16.mxu1 %v22894_v60  ;;  %21340 = vmatprep.subr.bf16.mxu0 %v22893_v5  ;;  %v16544_v14 = vrot.slane %v16543_v34, 4  ;;  %v29090_v19 = vcombine.low %v29088_v54, %v29089_v30 }
 0x664   : > { %21333 = vmatmul.mubr.bf16.gmra.mrb[4].mxu0 %v19090_v17  ;;  %v22927_v17 = vld [vmem:[%s23211_s0] sm:$0xff]  }
 0x665   : > { %21341 = vmatpush3.bf16.msra.mxu0 %v22893_v5  ;;  %21352 = vmatprep.mubr.bf16.mxu0 %v27928_v15  ;;  %v22901_v15 = vld [vmem:[%s28580_s6 + $0x670] sm:$0xff]   ;;  %v16694_v5 = vrot.slane %v28374_v62, 5 }
 0x666   : > { %21007 = vmatpush3.bf16.msra.mxu1 %v22894_v60  ;;  %21342 = vmatprep.subr.bf16.mxu0 %v22895_v40  ;;  %v22926_v60 = vld [vmem:[%s28580_s6 + $0x358] sm:$0xff]  }
 0x667   : > { %21008 = vmatprep.subr.bf16.mxu1 %v22896_v43 }
 0x669   : > { %21343 = vmatpush3.bf16.msra.mxu0 %v22895_v40  ;;  %v29094_v40 = vld [vmem:[#allocation82_spill] sm:$0xff] }
 0x66a   : > { %21009 = vmatpush3.bf16.msra.mxu1 %v22896_v43  ;;  %21344 = vmatprep.subr.bf16.mxu0 %v22897_v48  ;;  %v16881_v43 = vsel %vm16879_vm10, %v16845_v61, 0 }
 0x66b   : > { %21010 = vmatprep.subr.bf16.mxu1 %v22898_v58 }
 0x66d   : > { %21345 = vmatpush3.bf16.msra.mxu0 %v22897_v48  ;;  %v22929_v48 = vld [vmem:[%s23211_s0 + $0x8] sm:$0xff]  }
 0x66e   : > { %21011 = vmatpush3.bf16.msra.mxu1 %v22898_v58  ;;  %21346 = vmatprep.subr.bf16.mxu0 %v22899_v23  ;;  %v18776_v58 = vcombine.low %v27817_v24, %v29094_v40  ;;  %v22930_v24 = vld [vmem:[%s28580_s6 + $0x368] sm:$0xff]  }
 0x66f   : > { %21012 = vmatprep.subr.bf16.mxu1 %v22900_v10 }
 0x671   : > { %21347 = vmatpush3.bf16.msra.mxu0 %v22899_v23  ;;  %v22935_v23 = vld [vmem:[%s23211_s0 + $0x18] sm:$0xff]  }
 0x672   : > { %21013 = vmatpush3.bf16.msra.mxu1 %v22900_v10  ;;  %21348 = vmatprep.subr.bf16.mxu0 %v22901_v15  ;;  %v22932_v10 = vld [vmem:[%s23211_s0 + $0x10] sm:$0xff]  }
 0x673   : > { %21014 = vmatprep.subr.bf16.mxu1 %v22903_v31 }
 0x675   : > { %21349 = vmatpush3.bf16.msra.mxu0 %v22901_v15  ;;  %v29096_v15 = vld [vmem:[#allocation85_spill] sm:$0xff] }
 0x676   : > { %21015 = vmatpush3.bf16.msra.mxu1 %v22903_v31  ;;  %21350 = vmatprep.subr.bf16.mxu0 %v22904_v41  ;;  %v29095_v31 = vld [vmem:[#allocation83_spill] sm:$0xff] }
 0x677   : > { %21024 = vmatprep.subr.bf16.mxu1 %v22905_v0 }
 0x679   : > { %21017 = vmatmul.mubr.bf16.vlgmr.msra.gmra.mrb[0].mxu1 %v29082_v56  ;;  %21351 = vmatpush3.bf16.msra.mxu0 %v22904_v41  ;;  %v29100_v41 = vcombine.low %v29098_v45, %v29099_v25 }
 0x67a   : > { %21025 = vmatpush3.bf16.msra.mxu1 %v22905_v0  ;;  %21020 = vmatprep.mubr.bf16.mxu1 %v29083_v59  ;;  %v29097_v0 = vcombine.low %v29095_v31, %v29096_v15  ;;  %v18394_v59 = vld [vmem:[%s28581_s7] ss:$0 sm:$0xff] }
 0x67b   : > { %21026 = vmatprep.subr.bf16.mxu1 %v22907_v51  ;;  %21360 = vmatprep.subr.bf16.mxu0 %v22906_v37 }
 0x67c   : > { %21353 = vmatmul.mubr.bf16.vlgmr.msra.gmra.mrb[0].mxu0 %v27945_v47  ;;  %v16549_v47 = vsel %vm27189_vm9, %v16544_v14, %v16548_v26 }
 0x67d   : > { %21361 = vmatpush3.bf16.msra.mxu0 %v22906_v37  ;;  %21356 = vmatprep.mubr.bf16.mxu0 %v27968_v2  ;;  %v19115_v11 = vcombine.low %v28204_v18, %v16549_v47  ;;  %v22917_v2 = vld [vmem:[%s28580_s6 + $0x330] sm:$0xff]   ;;  %v22916_v18 = vld [vmem:[%s28580_s6 + $0x6a8] sm:$0xff]  }
 0x67e   : > { %21027 = vmatpush3.bf16.msra.mxu1 %v22907_v51  ;;  %21362 = vmatprep.subr.bf16.mxu0 %v22908_v3  ;;  %v29101_v51 = vld [vmem:[#allocation88_spill] sm:$0xff] }
 0x67f   : > { %21028 = vmatprep.subr.bf16.mxu1 %v22909_v12  ;;  %v29103_v36 = vcombine.low %v29101_v51, %v29102_v38 }
 0x681   : > { %21021 = vmatmul.mubr.bf16.gmra.mrb[4].mxu1 %v29084_v9  ;;  %21363 = vmatpush3.bf16.msra.mxu0 %v22908_v3 }
 0x682   : > { %21029 = vmatpush3.bf16.msra.mxu1 %v22909_v12  ;;  %21040 = vmatprep.mubr.bf16.mxu1 %v18748_v63 }
 0x683   : > { %21030 = vmatprep.subr.bf16.mxu1 %v22911_v57  ;;  %21364 = vmatprep.subr.bf16.mxu0 %v22910_v1 }
 0x684   : > { %21357 = vmatmul.mubr.bf16.gmra.mrb[4].mxu0 %v19115_v11 }
 0x685   : > { %21365 = vmatpush3.bf16.msra.mxu0 %v22910_v1  ;;  %21376 = vmatprep.mubr.bf16.mxu0 %v28025_v39  ;;  %v22922_v39 = vld [vmem:[%s28580_s6 + $0x340] sm:$0xff]  }
 0x686   : > { %21031 = vmatpush3.bf16.msra.mxu1 %v22911_v57  ;;  %21366 = vmatprep.subr.bf16.mxu0 %v22912_v27 }
 0x687   : > { %21032 = vmatprep.subr.bf16.mxu1 %v22913_v55 }
 0x689   : > { %21367 = vmatpush3.bf16.msra.mxu0 %v22912_v27 }
 0x68a   : > { %21033 = vmatpush3.bf16.msra.mxu1 %v22913_v55  ;;  %21368 = vmatprep.subr.bf16.mxu0 %v22914_v13 }
 0x68b   : > { %21034 = vmatprep.subr.bf16.mxu1 %v22915_v4 }
 0x68d   : > { %21369 = vmatpush3.bf16.msra.mxu0 %v22914_v13 }
 0x68e   : > { %21035 = vmatpush3.bf16.msra.mxu1 %v22915_v4  ;;  %21370 = vmatprep.subr.bf16.mxu0 %v22916_v18 }
 0x68f   : > { %21036 = vmatprep.subr.bf16.mxu1 %v22917_v2 }
 0x691   : > { %21371 = vmatpush3.bf16.msra.mxu0 %v22916_v18 }
 0x692   : > { %21037 = vmatpush3.bf16.msra.mxu1 %v22917_v2  ;;  %21372 = vmatprep.subr.bf16.mxu0 %v22918_v22 }
 0x693   : > { %21038 = vmatprep.subr.bf16.mxu1 %v22919_v20 }
 0x695   : > { %21373 = vmatpush3.bf16.msra.mxu0 %v22918_v22 }
 0x696   : > { %21039 = vmatpush3.bf16.msra.mxu1 %v22919_v20  ;;  %21374 = vmatprep.subr.bf16.mxu0 %v22920_v16 }
 0x697   : > { %21048 = vmatprep.subr.bf16.mxu1 %v22922_v39 }
 0x699   : > { %21041 = vmatmul.mubr.bf16.vlgmr.msra.gmra.mrb[0].mxu1 %v29087_v8  ;;  %21375 = vmatpush3.bf16.msra.mxu0 %v22920_v16 }
 0x69a   : > { %21049 = vmatpush3.bf16.msra.mxu1 %v22922_v39  ;;  %21044 = vmatprep.mubr.bf16.mxu1 %v29090_v19 }
 0x69b   : > { %21050 = vmatprep.subr.bf16.mxu1 %v22924_v29  ;;  %22350 = vmatprep.subr.msk.bf16.mxu0 %vm16879_vm10, %v16845_v61 }
 0x69c   : > { %21377 = vmatmul.mubr.bf16.vlgmr.msra.gmra.mrb[0].mxu0 %v28040_v33  ;;  %v16695_v33 = vsel %vm27011_vm6, %v19124_v7, %v16694_v5 }
 0x69d   : > { %21380 = vmatprep.mubr.bf16.mxu0 %v28056_v6  ;;  %21385 = vmatpush3.bf16.msra.mxu0 %v16881_v43  ;;  %v19141_v6 = vcombine.low %v28272_v50, %v16695_v33  ;;  %v22936_v50 = vld [vmem:[%s28580_s6 + $0x378] sm:$0xff]  }
 0x69e   : > { %21051 = vmatpush3.bf16.msra.mxu1 %v22924_v29 }
 0x69f   : > { %21052 = vmatprep.subr.bf16.mxu1 %v22925_v52 }
 0x6a1   : > { %21045 = vmatmul.mubr.bf16.gmra.mrb[4].mxu1 %v29093_v28 }
 0x6a2   : > { %21053 = vmatpush3.bf16.msra.mxu1 %v22925_v52  ;;  %21064 = vmatprep.mubr.bf16.mxu1 %v18776_v58 }
 0x6a3   : > { %21054 = vmatprep.subr.bf16.mxu1 %v22926_v60 }
 0x6a4   : > { %21381 = vmatmul.mubr.bf16.gmra.mrb[4].mxu0 %v19141_v6 }
 0x6a5   : > { %21386 = vmatprep.mubr.msk.bf16.mxu0 %vm16866_vm11, %v22927_v17 }
 0x6a6   : > { %21055 = vmatpush3.bf16.msra.mxu1 %v22926_v60 }
 0x6a7   : > { %21056 = vmatprep.subr.bf16.mxu1 %v22928_v46 }
 0x6aa   : > { %21057 = vmatpush3.bf16.msra.mxu1 %v22928_v46 }
 0x6ab   : > { %21058 = vmatprep.subr.bf16.mxu1 %v22930_v24 }
 0x6ac   : > { %21387 = vmatmul.mubr.msk.bf16.vlgmr.msra.gmra.mrb[0].mxu0 %vm16866_vm11, %v22929_v48 }
 0x6ad   : > { %21390 = vmatprep.mubr.msk.bf16.mxu0 %vm16866_vm11, %v22932_v10 }
 0x6ae   : > { %21059 = vmatpush3.bf16.msra.mxu1 %v22930_v24 }
 0x6af   : > { %21060 = vmatprep.subr.bf16.mxu1 %v22934_v49 }
 0x6b2   : > { %21061 = vmatpush3.bf16.msra.mxu1 %v22934_v49 }
 0x6b3   : > { %21062 = vmatprep.subr.bf16.mxu1 %v22936_v50 }
 0x6b4   : > { %21391 = vmatmul.mubr.msk.bf16.gmra.mrb[4].mxu0 %vm16866_vm11, %v22935_v23 }
 0x6b6   : > { %21063 = vmatpush3.bf16.msra.mxu1 %v22936_v50 }
 0x6b9   : > { %21065 = vmatmul.mubr.bf16.vlgmr.msra.gmra.mrb[0].mxu1 %v29097_v0 }
 0x6ba   : > { %21068 = vmatprep.mubr.bf16.mxu1 %v29100_v41 }
 0x6c1   : > { %21069 = vmatmul.mubr.bf16.gmra.mrb[4].mxu1 %v29103_v36 }
 0x77f   : > { %v21388_v56 = vpop.f32.mrb[0].mxu0 }
 0x780   : > { %v16917_v62 = vpop.f32.mrb[1].mxu0 }
 0x781   : > { %v21389_v37 = vpop.f32.mrb[2].mxu0 }
 0x782   : > { %v16920_v12 = vpop.f32.mrb[3].mxu0 }
 0x787   : > { %v21392_v34 = vpop.f32.mrb[4].mxu0 }
 0x788   : > { %v16933_v3 = vpop.f32.mrb[5].mxu0 }
 0x789   : > { %v21393_v26 = vpop.f32.mrb[6].mxu0 }
 0x78a   : > { %v16936_v63 = vpop.f32.mrb[7].mxu0 }
 0x78c   : > { %v21066_v42 = vpop.f32.mrb[0].mxu1 }
 0x78d   : > { %v22044_v57 = vadd.f32 %v21066_v42, %v18394_v59  ;;  %v14640_v14 = vpop.f32.mrb[1].mxu1 }
 0x78e   : > { %v22046_v9 = vadd.f32 %v18394_v59, %v14640_v14  ;;  %v21067_v35 = vpop.f32.mrb[2].mxu1 }
 0x78f   : > { %v22045_v1 = vadd.f32 %v22044_v57, %v21388_v56  ;;  %v22048_v55 = vadd.f32 %v21067_v35, %v18394_v59  ;;  %v14643_v47 = vpop.f32.mrb[3].mxu1 }
 0x790   : > { %v22047_v27 = vadd.f32 %v22046_v9, %v16917_v62  ;;  %v22050_v4 = vadd.f32 %v18394_v59, %v14643_v47 }
 0x791   : > { %v16958_v11 = vmax.f32 %v22045_v1, 0.0  ;;  %v22049_v13 = vadd.f32 %v22048_v55, %v21389_v37 }
 0x792   : > { %v16956_v2 = vmax.f32 %v22047_v27, 0.0  ;;  %v22051_v18 = vadd.f32 %v22050_v4, %v16920_v12 }
 0x793   : > { %v16966_v20 = vpack.c.bf16 %v16958_v11, %v16958_v11  ;;  %v16959_v22 = vmax.f32 %v22049_v13, 0.0 }
 0x794   : > { %v16964_v39 = vpack.c.bf16 %v16956_v2, %v16956_v2  ;;  %v16957_v16 = vmax.f32 %v22051_v18, 0.0  ;;  %v21070_v29 = vpop.f32.mrb[4].mxu1 }
 0x795   : > { %16975 = vst.msk [vmem:[%s23213_s18 + $0x8] sm:$0xf] %vm16972_vm12, %v16966_v20  ;;  %v16967_v21 = vpack.c.bf16 %v16959_v22, %v16959_v22  ;;  %v22052_v53 = vadd.f32 %v21070_v29, %v18394_v59  ;;  %v14656_v8 = vpop.f32.mrb[5].mxu1 }
 0x796   : > { %16973 = vst.msk [vmem:[%s23213_s18] sm:$0xf] %vm16972_vm12, %v16964_v39  ;;  %v16965_v52 = vpack.c.bf16 %v16957_v16, %v16957_v16  ;;  %v22054_v61 = vadd.f32 %v18394_v59, %v14656_v8  ;;  %v21071_v54 = vpop.f32.mrb[6].mxu1 }
 0x797   : > { %16976 = vst.msk [vmem:[%s23213_s18 + $0xc] sm:$0xf] %vm16972_vm12, %v16967_v21  ;;  %v22053_v30 = vadd.f32 %v22052_v53, %v21392_v34  ;;  %v22056_v19 = vadd.f32 %v21071_v54, %v18394_v59  ;;  %v14659_v60 = vpop.f32.mrb[7].mxu1 }
 0x798   : > { %16974 = vst.msk [vmem:[%s23213_s18 + $0x4] sm:$0xf] %vm16972_vm12, %v16965_v52  ;;  %v22055_v7 = vadd.f32 %v22054_v61, %v16933_v3  ;;  %v22058_v5 = vadd.f32 %v18394_v59, %v14659_v60 }
 0x799   : > { %v16962_v43 = vmax.f32 %v22053_v30, 0.0  ;;  %v22057_v44 = vadd.f32 %v22056_v19, %v21393_v26 }
 0x79a   : > { %v16960_v32 = vmax.f32 %v22055_v7, 0.0  ;;  %v22059_v28 = vadd.f32 %v22058_v5, %v16936_v63 }
 0x79b   : > { %v16970_v40 = vpack.c.bf16 %v16962_v43, %v16962_v43  ;;  %v16963_v58 = vmax.f32 %v22057_v44, 0.0 }
 0x79c   : > { %v16968_v46 = vpack.c.bf16 %v16960_v32, %v16960_v32  ;;  %v16961_v33 = vmax.f32 %v22059_v28, 0.0 }
 0x79d   : > { %16979 = vst.msk [vmem:[%s23213_s18 + $0x18] sm:$0xf] %vm16972_vm12, %v16970_v40  ;;  %v16971_v17 = vpack.c.bf16 %v16963_v58, %v16963_v58 }
 0x79e   : > { %16977 = vst.msk [vmem:[%s23213_s18 + $0x10] sm:$0xf] %vm16972_vm12, %v16968_v46  ;;  %v16969_v6 = vpack.c.bf16 %v16961_v33, %v16961_v33 }
 0x79f   : > { %16980 = vst.msk [vmem:[%s23213_s18 + $0x1c] sm:$0xf] %vm16972_vm12, %v16971_v17 }
 0x7a0   : > { %16978 = vst.msk [vmem:[%s23213_s18 + $0x14] sm:$0xf] %vm16972_vm12, %v16969_v6 }
 0x7a1   : > { %22965 = shalt.err (!%p22962_p10)
}
 0x7a2   : > { %s22966_s18 = scalar_lea.hbm %s28514_s20, 512  ;;  %s22970_s0 = scalar_lea.hbm %s29105_s28, 4096 }
 0x7a3   : > { %p22967_p11 = scmp.ne.s32.totalorder %s28514_s20, %s22966_s18  ;;  %p22971_p0 = scmp.lt.u32.totalorder %s28514_s20, %s29105_s28 }
 0x7a4   : > { %p22972_p1 = scmp.lt.u32.totalorder %s22970_s0, %s22966_s18  ;;  %p22974_p4 = scmp.lt.u32.totalorder %s22966_s18, %s28514_s20 }
 0x7a5   : > { %p22968_p12 = pnand %p22967_p11, %p23159_p3 }
 0x7a6   : > { %p22973_p2 = por %p22972_p1, %p22971_p0 }
 0x7a7   : > { %p22969_p13 = pneg %p22968_p12 }
 0x7a8   : > { %p22975_p5 = por %p22974_p4, %p22973_p2 }
 0x7aa   : > { %p22976_p6 = pnand %p22975_p5, %p22969_p13 }
 0x7ac   : > { %22979 = shalt.err (!%p22976_p6)
}
 0x7ad   : > { %s23051_s29 = smov 64   ;;  %s23052_s25 = smov 4  }
 0x7ae   : > { %22352 = dma.vmem_to_hbm [thread:$0]  (%p23159_p3), %s28507_s16, 512, %s28514_s20, %s28522_s30, %s23051_s29, %s23051_s29, %s23052_s25  }
 0x7af PF: > { %s29107_s26 = sld [smem:[#allocation10_spill]]  ;;  %s29108_s11 = sld [smem:[#allocation6_spill]] }
 0x7b5   : > { %p22358_p7 = scmp.ge.s32.totalorder %s29107_s26, 2  ;;  %s17012_s27 = sand.u32 1, %s29108_s11  }
 0x7b6   : > { %s17013_s22 = scalar_lea.sflag [#allocation4], %s17012_s27 }
 0x7b7   : > { %p22355_p9 = pnand %p22358_p7, %p23168_p8 }
 0x7b9   : > { %23013 = dma.done.wait (!%p22355_p9), %s17013_s22, 512  }
 0x7ba   : > { %23015 = vsyncadd (!%p22355_p9), %s17013_s22, 4294966784  ;;  %s23_s20 = sadd.s32 1, %s29107_s26   ;;  %s29110_s15 = sld [smem:[#allocation7_spill]] }
 0x7bb   : > { %p20_p10 = scmp.ge.s32.totalorder %s23_s20, 10   ;;  %s29111_s12 = sld [smem:[#allocation15_spill]] }
 0x7bc   : > { %s29112_s16 = sld [smem:[#allocation8_spill]]  ;;  %s29113_s17 = sld [smem:[#allocation9_spill]] }
 0x7bd   : > { %s29114_s18 = sld [smem:[#allocation11_spill]]  ;;  %s29115_s19 = sld [smem:[#allocation13_spill]] }
 0x7be   : > { %s29116_s13 = smov %s23022_s14  ;;  %22 = sbr.rel (!%p20_p10) target bundleno = 8 (0x8), region = 228 }
 0x7c0   : > { %s29117_s14 = smov %s29110_s15 }
 0x7c1   : > { %s29118_s15 = smov %s29111_s12 }
 0x7c5   :  { %17018 = vsyncpa [#allocation4], 1 }
 0x7c6   :  { %17020 = vsyncpa [#allocation4 + $0x1], 1 }

</bundles_post_ra>
